<compile_context>
chip_gen: v7x
topology: tpu7x:2x2x1
jax: 0.10.0
libtpu: 0.0.40
codegen_flags: <defaults>
</compile_context>

<pallas_src>
import functools

import jax
import jax.numpy as jnp
from jax.experimental import pallas as pl
from jax.experimental.pallas import tpu as pltpu


# ----------------------------------------------------------------------------- kernel
# Kernel layout (time-major view of one BS tile):
#   x   : (S, BS_tile, N)   x[t] is the (BS_tile, N) LSTM input at chunk t and is
#                           simultaneously the residual for that step.
#   out : (S, BS_tile, N)
#   gx  : (S, BS_tile, 8H)  precomputed input gates, [:, :, :4H] fwd | [:, :, 4H:] bwd
#   hs  : (S, BS_tile, 2H)  hidden states, [:, :, :H] fwd | [:, :, H:] bwd
def _inter_chunk_kernel(x_ref, wih_ref, b_ref, whh_f_ref, whh_b_ref,
                        wfc_ref, bfc_ref, gamma_ref, beta_ref,
                        out_ref, gx_ref, hs_ref, *, mm_dtype, unroll_limit=32):
    S, BSt, N = x_ref.shape
    H = whh_f_ref.shape[0]
    G = 4 * H

    # ---- Fused input projection: both directions in ONE big MXU matmul ----------
    x_slab = x_ref[...].reshape(S * BSt, N)
    gx_ref[...] = (
        jnp.dot(x_slab.astype(mm_dtype), wih_ref[...].astype(mm_dtype),
                preferred_element_type=jnp.float32)
        + b_ref[...]                                   # (1, 8H) broadcast, hoisted
    ).reshape(S, BSt, 2 * G)

    # Recurrent weights loaded once (VMEM-resident), reused every step.
    whh_f = whh_f_ref[...].astype(mm_dtype)
    whh_b = whh_b_ref[...].astype(mm_dtype)

    def cell(gates, c):
        # sigmoid(x) == 0.5*tanh(0.5x) + 0.5 : one EUP op per gate (vs exp + recip).
        # i|f computed as one contiguous (BSt, 2H) slab; H % 128 == 0 keeps every
        # gate slice vreg/lane aligned.
        s_if = 0.5 * jnp.tanh(0.5 * gates[:, 0:2 * H]) + 0.5
        g_g = jnp.tanh(gates[:, 2 * H:3 * H])
        o_g = 0.5 * jnp.tanh(0.5 * gates[:, 3 * H:4 * H]) + 0.5
        c_new = s_if[:, H:2 * H] * c + s_if[:, 0:H] * g_g      # f*c + i*g  (f32)
        h_new = o_g * jnp.tanh(c_new)
        return h_new, c_new

    def step(t_f, t_b, h_f, c_f, h_b, c_b):
        # Two independent small matmuls + gate pipelines per iteration: the
        # compiler interleaves them, hiding MXU drain / EUP latency of one
        # direction under the other's VPU work.
        gates_f = gx_ref[t_f, :, 0:G] + jnp.dot(
            h_f.astype(mm_dtype), whh_f, preferred_element_type=jnp.float32)
        gates_b = gx_ref[t_b, :, G:2 * G] + jnp.dot(
            h_b.astype(mm_dtype), whh_b, preferred_element_type=jnp.float32)
        h_f, c_f = cell(gates_f, c_f)
        h_b, c_b = cell(gates_b, c_b)
        hs_ref[t_f, :, 0:H] = h_f            # forward half of the concat buffer
        hs_ref[t_b, :, H:2 * H] = h_b        # backward half (128-lane aligned)
        return h_f, c_f, h_b, c_b

    zeros = jnp.zeros((BSt, H), jnp.float32)        # PyTorch default h0 = c0 = 0
    carry = (zeros, zeros, zeros, zeros)
    if S <= unroll_limit:
        # Fully unrolled serial recurrence: t is a compile-time constant per step,
        # giving the LLO scheduler full visibility (biggest win on the serial path).
        for s in range(S):
            carry = step(s, S - 1 - s, *carry)
    else:
        carry = jax.lax.fori_loop(
            0, S, lambda s, c: step(s, S - 1 - s, *c), carry, unroll=4)

    # ---- FC (single matmul, K = 2H fills the 256-wide MXU) + LayerNorm + residual
    hs_slab = hs_ref[...].reshape(S * BSt, 2 * H)
    y = (jnp.dot(hs_slab.astype(mm_dtype), wfc_ref[...].astype(mm_dtype),
                 preferred_element_type=jnp.float32)
         + bfc_ref[...])                                           # (S*BSt, N)
    mu = jnp.mean(y, axis=-1, keepdims=True)
    var = jnp.mean(jnp.square(y - mu), axis=-1, keepdims=True)     # biased, eps=1e-5
    y_n = (y - mu) * jax.lax.rsqrt(var + 1e-5)
    out = y_n * gamma_ref[...] + beta_ref[...] + x_ref[...].reshape(S * BSt, N)
    out_ref[...] = out.reshape(S, BSt, N).astype(out_ref.dtype)    # lane-dense stores


# -------------------------------------------------------------------- tiling policy
def _device_policy():
    """(min_grid_tiles, vmem_limit_bytes) per TPU generation."""
    try:
        kind = jax.devices()[0].device_kind.lower()
    except Exception:
        kind = ""
    if "v7" in kind:
        # 2 TensorCores / 64 MiB VMEM: split rows across cores, tight budget.
        return 2, 40 * 1024 * 1024
    if any(t in kind for t in ("v4", "v5", "v6")):
        # Single TensorCore / 128 MiB VMEM: biggest single tile that fits.
        return 1, 100 * 1024 * 1024
    return 1, 64 * 1024 * 1024          # unknown generation: conservative budget


def _vmem_estimate_bytes(S, bs, N, H):
    f32 = 4
    io_tiles = 2 * 2 * S * bs * N * f32                         # x & out, double-buffered
    weights = 2 * f32 * (N * 8 * H + 2 * H * 4 * H + 8 * H + 2 * H * N + 3 * N)
    scratch = f32 * S * bs * (8 * H + 2 * H)                    # gx + hs
    slab_tmp = 2 * f32 * S * bs * N                             # y / LayerNorm headroom
    return io_tiles + weights + scratch + slab_tmp


def _pick_bs_tile(BS, S, N, H, min_grid, vmem_limit):
    budget = int(0.8 * vmem_limit)
    # Prefer multiples of 8 (copy-free (S, bs, N) -> (S*bs, N) reshape); bs == BS
    # is also allowed (perf note only if BS % 8 != 0).
    cands = [t for t in range(BS, 0, -1)
             if BS % t == 0 and (t % 8 == 0 or t == BS) and BS // t >= min_grid]
    if not cands:
        cands = [t for t in range(BS, 0, -1)
                 if BS % t == 0 and (t % 8 == 0 or t == BS)]
    for t in cands:
        if _vmem_estimate_bytes(S, t, N, H) <= budget:
            return t
    return cands[-1]


# ------------------------------------------------------------------------- wrapper
def init_params(key, num_features, hidden_dim):
    """Deterministic synthetic parameters with the same shapes as the PyTorch module."""
    N, H = num_features, hidden_dim
    keys = jax.random.split(key, 10)
    s = 0.1
    return dict(
        # LSTM weights stored transposed (input-dim first) for x @ W
        wih_f=s * jax.random.normal(keys[0], (N, 4 * H), jnp.float32),
        whh_f=s * jax.random.normal(keys[1], (H, 4 * H), jnp.float32),
        b_f=s * jax.random.normal(keys[2], (1, 4 * H), jnp.float32),   # b_ih + b_hh (fwd)
        wih_b=s * jax.random.normal(keys[3], (N, 4 * H), jnp.float32),
        whh_b=s * jax.random.normal(keys[4], (H, 4 * H), jnp.float32),
        b_b=s * jax.random.normal(keys[5], (1, 4 * H), jnp.float32),   # b_ih + b_hh (bwd)
        wfc=s * jax.random.normal(keys[6], (2 * H, N), jnp.float32),   # fc.weight.T
        bfc=s * jax.random.normal(keys[7], (1, N), jnp.float32),
        gamma=1.0 + s * jax.random.normal(keys[8], (1, N), jnp.float32),
        beta=s * jax.random.normal(keys[9], (1, N), jnp.float32),
    )


@functools.partial(jax.jit, static_argnames=("bs_tile", "use_bf16_matmuls"))
def inter_chunk_rnn(data, params, *, bs_tile=None, use_bf16_matmuls=False):
    """data: (B, num_features, S, chunk_size) -> same shape."""
    B, N, S, C = data.shape
    H = params["whh_f"].shape[0]
    BS = B * C                                   # LSTM batch rows = B * chunk_size
    assert N % 128 == 0 and H % 128 == 0, "pick lane-aligned N / H (multiples of 128)"

    min_grid, vmem_limit = _device_policy()
    if bs_tile is None:
        bs_tile = _pick_bs_tile(BS, S, N, H, min_grid, vmem_limit)
    assert BS % bs_tile == 0 and (bs_tile % 8 == 0 or bs_tile == BS)

    # (B, N, S, C) -> (S, B, C, N) -> (S, B*C, N): time-major over the S (chunk) axis,
    # matching data.permute(0,3,2,1) + rearrange in the PyTorch forward.
    x = jnp.transpose(data, (2, 0, 3, 1)).reshape(S, BS, N).astype(jnp.float32)

    # Fused (fwd | bwd) input-projection weights; the concat in the wrapper is free.
    wih = jnp.concatenate([params["wih_f"], params["wih_b"]], axis=1)   # (N, 8H)
    b = jnp.concatenate([params["b_f"], params["b_b"]], axis=1)         # (1, 8H)

    mm_dtype = jnp.bfloat16 if use_bf16_matmuls else jnp.float32
    kernel = functools.partial(_inter_chunk_kernel, mm_dtype=mm_dtype)

    def full(shape):  # whole-array VMEM-resident block (weights), constant block index
        return pl.BlockSpec(shape, lambda i: (0,) * len(shape))
    # TODO(synk): mark the constant-index weight specs single-buffered
    # (pipeline_mode=pl.Buffered(1)) to reclaim ~2.5 MiB of VMEM once verified.

    out = pl.pallas_call(
        kernel,
        out_shape=jax.ShapeDtypeStruct((S, BS, N), jnp.float32),
        grid_spec=pltpu.PrefetchScalarGridSpec(
            num_scalar_prefetch=0,
            grid=(BS // bs_tile,),               # independent rows -> parallel grid
            in_specs=[
                pl.BlockSpec((S, bs_tile, N), lambda i: (0, i, 0)),    # x tile
                full((N, 8 * H)), full((1, 8 * H)),                    # fused W_ih, bias
                full((H, 4 * H)), full((H, 4 * H)),                    # W_hh fwd / bwd
                full((2 * H, N)), full((1, N)), full((1, N)), full((1, N)),
            ],
            out_specs=pl.BlockSpec((S, bs_tile, N), lambda i: (0, i, 0)),
            scratch_shapes=[
                pltpu.VMEM((S, bs_tile, 8 * H), jnp.float32),  # fused input gates
                pltpu.VMEM((S, bs_tile, 2 * H), jnp.float32),  # concat hidden states
            ]),
        compiler_params=pltpu.CompilerParams(
            dimension_semantics=("parallel",),                 # megacore-shardable
            vmem_limit_bytes=vmem_limit),                      # generation-aware budget
    )(x, wih, b,
      params["whh_f"], params["whh_b"],
      params["wfc"], params["bfc"], params["gamma"], params["beta"])

    # (S, B*C, N) -> (S, B, C, N) -> (B, N, S, C)
    return jnp.transpose(out.reshape(S, B, C, N), (1, 3, 0, 2))


# ------------------------------------------------------------------------ reference
def reference(data, p):
    """Pure-JAX reference reproducing the PyTorch InterChunkRNN forward semantics."""
    B, N, S, C = data.shape
    H = p["whh_f"].shape[0]
    xs = jnp.transpose(data, (2, 0, 3, 1)).reshape(S, B * C, N)   # (S, BS, N) time-major

    def run(wih, whh, b, seq):
        def step(carry, x_t):
            h, c = carry
            g = x_t @ wih + h @ whh + b
            i = jax.nn.sigmoid(g[:, :H])
            f = jax.nn.sigmoid(g[:, H:2 * H])
            gg = jnp.tanh(g[:, 2 * H:3 * H])
            o = jax.nn.sigmoid(g[:, 3 * H:])
            c = f * c + i * gg
            h = o * jnp.tanh(c)
            return (h, c), h
        init = (jnp.zeros((B * C, H), jnp.float32),
                jnp.zeros((B * C, H), jnp.float32))
        _, hs = jax.lax.scan(step, init, seq)
        return hs                                                 # (S, BS, H)

    hs_f = run(p["wih_f"], p["whh_f"], p["b_f"], xs)
    hs_b = run(p["wih_b"], p["whh_b"], p["b_b"], xs[::-1])[::-1]
    h = jnp.concatenate([hs_f, hs_b], axis=-1)                    # (S, BS, 2H)
    y = h @ p["wfc"] + p["bfc"]                                   # (S, BS, N)
    mu = y.mean(-1, keepdims=True)
    var = ((y - mu) ** 2).mean(-1, keepdims=True)
    y = (y - mu) / jnp.sqrt(var + 1e-5) * p["gamma"] + p["beta"] + xs
    return jnp.transpose(y.reshape(S, B, C, N), (1, 3, 0, 2))


if __name__ == "__main__":
    # batch, num_features, S (chunks), chunk_size, hidden_dim
    # N and H chosen lane-aligned (multiples of 128) per the perf guidance.
    B, N, S, C, H = 2, 128, 8, 16, 128

    key = jax.random.PRNGKey(0)
    k_data, k_param = jax.random.split(key)
    data = jax.random.normal(k_data, (B, N, S, C), jnp.float32)
    params = init_params(k_param, num_features=N, hidden_dim=H)

    # bs_tile / VMEM limit chosen automatically per TPU generation
    # (single 32-row tile on v5e/v6e, two 16-row tiles on v7x).
    out = inter_chunk_rnn(data, params)
    out = jax.block_until_ready(out)

    ref = reference(data, params)
    assert out.shape == (B, N, S, C)
    assert jnp.allclose(out, ref, rtol=1e-4, atol=1e-4), "kernel does not match reference"
    print("KERNEL_OK")
</pallas_src>

<mosaic_0001>
module attributes {stable_mosaic.version = 11 : i64} {
  func.func @_inter_chunk_kernel(%arg0: i32, %arg1: memref<8x32x128xf32, #tpu.memory_space<vmem>>, %arg2: memref<128x1024xf32, #tpu.memory_space<vmem>>, %arg3: memref<1x1024xf32, #tpu.memory_space<vmem>>, %arg4: memref<128x512xf32, #tpu.memory_space<vmem>>, %arg5: memref<128x512xf32, #tpu.memory_space<vmem>>, %arg6: memref<256x128xf32, #tpu.memory_space<vmem>>, %arg7: memref<1x128xf32, #tpu.memory_space<vmem>>, %arg8: memref<1x128xf32, #tpu.memory_space<vmem>>, %arg9: memref<1x128xf32, #tpu.memory_space<vmem>>, %arg10: memref<8x32x128xf32, #tpu.memory_space<vmem>>, %arg11: memref<8x32x1024xf32, #tpu.memory_space<vmem>>, %arg12: memref<8x32x256xf32, #tpu.memory_space<vmem>>) attributes {dimension_semantics = [#tpu.dimension_semantics<parallel>], iteration_bounds = array<i64: 1>, scalar_prefetch = 0 : i64, scratch_operands = 2 : i64, tpu.core_type = #tpu.core_type<tc>, window_params = [{transform_indices = @transform_0, window_bounds = array<i64: 8, 32, 128>}, {pipeline_mode = #tpu.pipeline_mode<synchronous>, transform_indices = @transform_1, window_bounds = array<i64: 128, 1024>}, {pipeline_mode = #tpu.pipeline_mode<synchronous>, transform_indices = @transform_2, window_bounds = array<i64: 1, 1024>}, {pipeline_mode = #tpu.pipeline_mode<synchronous>, transform_indices = @transform_3, window_bounds = array<i64: 128, 512>}, {pipeline_mode = #tpu.pipeline_mode<synchronous>, transform_indices = @transform_4, window_bounds = array<i64: 128, 512>}, {pipeline_mode = #tpu.pipeline_mode<synchronous>, transform_indices = @transform_5, window_bounds = array<i64: 256, 128>}, {pipeline_mode = #tpu.pipeline_mode<synchronous>, transform_indices = @transform_6, window_bounds = array<i64: 1, 128>}, {pipeline_mode = #tpu.pipeline_mode<synchronous>, transform_indices = @transform_7, window_bounds = array<i64: 1, 128>}, {pipeline_mode = #tpu.pipeline_mode<synchronous>, transform_indices = @transform_8, window_bounds = array<i64: 1, 128>}, {transform_indices = @transform_9, window_bounds = array<i64: 8, 32, 128>}]} {
    %c0 = arith.constant 0 : index
    %c0_0 = arith.constant 0 : index
    %c0_1 = arith.constant 0 : index
    %0 = vector.load %arg1[%c0, %c0_0, %c0_1] : memref<8x32x128xf32, #tpu.memory_space<vmem>>, vector<8x32x128xf32>
    %1 = vector.shape_cast %0 : vector<8x32x128xf32> to vector<256x128xf32>
    %c0_2 = arith.constant 0 : index
    %c0_3 = arith.constant 0 : index
    %2 = vector.load %arg2[%c0_2, %c0_3] : memref<128x1024xf32, #tpu.memory_space<vmem>>, vector<128x1024xf32>
    %cst = arith.constant dense<0.000000e+00> : vector<256x1024xf32>
    %3 = tpu.matmul %1, %2, %cst {dimension_numbers = #tpu.dot_dimension_numbers<[1], [0], [0], [1], [0, 0, 1, 1], [], []>} : vector<256x128xf32>, vector<128x1024xf32>, vector<256x1024xf32> -> vector<256x1024xf32>
    %c0_4 = arith.constant 0 : index
    %c0_5 = arith.constant 0 : index
    %4 = vector.load %arg3[%c0_4, %c0_5] : memref<1x1024xf32, #tpu.memory_space<vmem>>, vector<1x1024xf32>
    %5 = vector.broadcast %4 : vector<1x1024xf32> to vector<256x1024xf32>
    %6 = arith.addf %3, %5 : vector<256x1024xf32>
    %7 = vector.shape_cast %6 : vector<256x1024xf32> to vector<8x32x1024xf32>
    %c0_6 = arith.constant 0 : index
    %c0_7 = arith.constant 0 : index
    %c0_8 = arith.constant 0 : index
    %8 = vector.load %arg11[%c0_6, %c0_7, %c0_8] : memref<8x32x1024xf32, #tpu.memory_space<vmem>>, vector<8x32x1024xf32>
    tpu.vector_store %arg11[%c0_6, %c0_7, %c0_8], %7 {strides = array<i32>} : memref<8x32x1024xf32, #tpu.memory_space<vmem>>, vector<8x32x1024xf32>,
    %c0_9 = arith.constant 0 : index
    %c0_10 = arith.constant 0 : index
    %9 = vector.load %arg4[%c0_9, %c0_10] : memref<128x512xf32, #tpu.memory_space<vmem>>, vector<128x512xf32>
    %c0_11 = arith.constant 0 : index
    %c0_12 = arith.constant 0 : index
    %10 = vector.load %arg5[%c0_11, %c0_12] : memref<128x512xf32, #tpu.memory_space<vmem>>, vector<128x512xf32>
    %cst_13 = arith.constant 0.000000e+00 : f32
    %11 = vector.broadcast %cst_13 : f32 to vector<32x128xf32>
    %c0_14 = arith.constant 0 : index
    %c0_15 = arith.constant 0 : index
    %c0_16 = arith.constant 0 : index
    %12 = vector.load %arg11[%c0_14, %c0_15, %c0_16] : memref<8x32x1024xf32, #tpu.memory_space<vmem>>, vector<1x32x512xf32>
    %13 = vector.shape_cast %12 : vector<1x32x512xf32> to vector<32x512xf32>
    %cst_17 = arith.constant dense<0.000000e+00> : vector<32x512xf32>
    %14 = tpu.matmul %11, %9, %cst_17 {dimension_numbers = #tpu.dot_dimension_numbers<[1], [0], [0], [1], [0, 0, 1, 1], [], []>} : vector<32x128xf32>, vector<128x512xf32>, vector<32x512xf32> -> vector<32x512xf32>
    %15 = arith.addf %13, %14 : vector<32x512xf32>
    %c7 = arith.constant 7 : index
    %c0_18 = arith.constant 0 : index
    %c512 = arith.constant 512 : index
    %16 = vector.load %arg11[%c7, %c0_18, %c512] : memref<8x32x1024xf32, #tpu.memory_space<vmem>>, vector<1x32x512xf32>
    %17 = vector.shape_cast %16 : vector<1x32x512xf32> to vector<32x512xf32>
    %cst_19 = arith.constant dense<0.000000e+00> : vector<32x512xf32>
    %18 = tpu.matmul %11, %10, %cst_19 {dimension_numbers = #tpu.dot_dimension_numbers<[1], [0], [0], [1], [0, 0, 1, 1], [], []>} : vector<32x128xf32>, vector<128x512xf32>, vector<32x512xf32> -> vector<32x512xf32>
    %19 = arith.addf %17, %18 : vector<32x512xf32>
    %20 = vector.extract_strided_slice %15 {offsets = [0, 0], sizes = [32, 256], strides = [1, 1]} : vector<32x512xf32> to vector<32x256xf32>
    %cst_20 = arith.constant 5.000000e-01 : f32
    %21 = vector.broadcast %cst_20 : f32 to vector<32x256xf32>
    %22 = arith.mulf %21, %20 : vector<32x256xf32>
    %23 = math.tanh %22 : vector<32x256xf32>
    %cst_21 = arith.constant 5.000000e-01 : f32
    %24 = vector.broadcast %cst_21 : f32 to vector<32x256xf32>
    %25 = arith.mulf %24, %23 : vector<32x256xf32>
    %cst_22 = arith.constant 5.000000e-01 : f32
    %26 = vector.broadcast %cst_22 : f32 to vector<32x256xf32>
    %27 = arith.addf %25, %26 : vector<32x256xf32>
    %28 = vector.extract_strided_slice %15 {offsets = [0, 256], sizes = [32, 128], strides = [1, 1]} : vector<32x512xf32> to vector<32x128xf32>
    %29 = math.tanh %28 : vector<32x128xf32>
    %30 = vector.extract_strided_slice %15 {offsets = [0, 384], sizes = [32, 128], strides = [1, 1]} : vector<32x512xf32> to vector<32x128xf32>
    %cst_23 = arith.constant 5.000000e-01 : f32
    %31 = vector.broadcast %cst_23 : f32 to vector<32x128xf32>
    %32 = arith.mulf %31, %30 : vector<32x128xf32>
    %33 = math.tanh %32 : vector<32x128xf32>
    %cst_24 = arith.constant 5.000000e-01 : f32
    %34 = vector.broadcast %cst_24 : f32 to vector<32x128xf32>
    %35 = arith.mulf %34, %33 : vector<32x128xf32>
    %cst_25 = arith.constant 5.000000e-01 : f32
    %36 = vector.broadcast %cst_25 : f32 to vector<32x128xf32>
    %37 = arith.addf %35, %36 : vector<32x128xf32>
    %38 = vector.extract_strided_slice %27 {offsets = [0, 128], sizes = [32, 128], strides = [1, 1]} : vector<32x256xf32> to vector<32x128xf32>
    %39 = arith.mulf %38, %11 : vector<32x128xf32>
    %40 = vector.extract_strided_slice %27 {offsets = [0, 0], sizes = [32, 128], strides = [1, 1]} : vector<32x256xf32> to vector<32x128xf32>
    %41 = arith.mulf %40, %29 : vector<32x128xf32>
    %42 = arith.addf %39, %41 : vector<32x128xf32>
    %43 = math.tanh %42 : vector<32x128xf32>
    %44 = arith.mulf %37, %43 : vector<32x128xf32>
    %45 = vector.extract_strided_slice %19 {offsets = [0, 0], sizes = [32, 256], strides = [1, 1]} : vector<32x512xf32> to vector<32x256xf32>
    %cst_26 = arith.constant 5.000000e-01 : f32
    %46 = vector.broadcast %cst_26 : f32 to vector<32x256xf32>
    %47 = arith.mulf %46, %45 : vector<32x256xf32>
    %48 = math.tanh %47 : vector<32x256xf32>
    %cst_27 = arith.constant 5.000000e-01 : f32
    %49 = vector.broadcast %cst_27 : f32 to vector<32x256xf32>
    %50 = arith.mulf %49, %48 : vector<32x256xf32>
    %cst_28 = arith.constant 5.000000e-01 : f32
    %51 = vector.broadcast %cst_28 : f32 to vector<32x256xf32>
    %52 = arith.addf %50, %51 : vector<32x256xf32>
    %53 = vector.extract_strided_slice %19 {offsets = [0, 256], sizes = [32, 128], strides = [1, 1]} : vector<32x512xf32> to vector<32x128xf32>
    %54 = math.tanh %53 : vector<32x128xf32>
    %55 = vector.extract_strided_slice %19 {offsets = [0, 384], sizes = [32, 128], strides = [1, 1]} : vector<32x512xf32> to vector<32x128xf32>
    %cst_29 = arith.constant 5.000000e-01 : f32
    %56 = vector.broadcast %cst_29 : f32 to vector<32x128xf32>
    %57 = arith.mulf %56, %55 : vector<32x128xf32>
    %58 = math.tanh %57 : vector<32x128xf32>
    %cst_30 = arith.constant 5.000000e-01 : f32
    %59 = vector.broadcast %cst_30 : f32 to vector<32x128xf32>
    %60 = arith.mulf %59, %58 : vector<32x128xf32>
    %cst_31 = arith.constant 5.000000e-01 : f32
    %61 = vector.broadcast %cst_31 : f32 to vector<32x128xf32>
    %62 = arith.addf %60, %61 : vector<32x128xf32>
    %63 = vector.extract_strided_slice %52 {offsets = [0, 128], sizes = [32, 128], strides = [1, 1]} : vector<32x256xf32> to vector<32x128xf32>
    %64 = arith.mulf %63, %11 : vector<32x128xf32>
    %65 = vector.extract_strided_slice %52 {offsets = [0, 0], sizes = [32, 128], strides = [1, 1]} : vector<32x256xf32> to vector<32x128xf32>
    %66 = arith.mulf %65, %54 : vector<32x128xf32>
    %67 = arith.addf %64, %66 : vector<32x128xf32>
    %68 = math.tanh %67 : vector<32x128xf32>
    %69 = arith.mulf %62, %68 : vector<32x128xf32>
    %c0_32 = arith.constant 0 : index
    %c0_33 = arith.constant 0 : index
    %c0_34 = arith.constant 0 : index
    %70 = vector.load %arg12[%c0_32, %c0_33, %c0_34] : memref<8x32x256xf32, #tpu.memory_space<vmem>>, vector<1x32x128xf32>
    %71 = vector.shape_cast %70 : vector<1x32x128xf32> to vector<32x128xf32>
    %72 = vector.shape_cast %44 : vector<32x128xf32> to vector<1x32x128xf32>
    tpu.vector_store %arg12[%c0_32, %c0_33, %c0_34], %72 {strides = array<i32>} : memref<8x32x256xf32, #tpu.memory_space<vmem>>, vector<1x32x128xf32>,
    %c7_35 = arith.constant 7 : index
    %c0_36 = arith.constant 0 : index
    %c128 = arith.constant 128 : index
    %73 = vector.load %arg12[%c7_35, %c0_36, %c128] : memref<8x32x256xf32, #tpu.memory_space<vmem>>, vector<1x32x128xf32>
    %74 = vector.shape_cast %73 : vector<1x32x128xf32> to vector<32x128xf32>
    %75 = vector.shape_cast %69 : vector<32x128xf32> to vector<1x32x128xf32>
    tpu.vector_store %arg12[%c7_35, %c0_36, %c128], %75 {strides = array<i32>} : memref<8x32x256xf32, #tpu.memory_space<vmem>>, vector<1x32x128xf32>,
    %c1 = arith.constant 1 : index
    %c0_37 = arith.constant 0 : index
    %c0_38 = arith.constant 0 : index
    %76 = vector.load %arg11[%c1, %c0_37, %c0_38] : memref<8x32x1024xf32, #tpu.memory_space<vmem>>, vector<1x32x512xf32>
    %77 = vector.shape_cast %76 : vector<1x32x512xf32> to vector<32x512xf32>
    %cst_39 = arith.constant dense<0.000000e+00> : vector<32x512xf32>
    %78 = tpu.matmul %44, %9, %cst_39 {dimension_numbers = #tpu.dot_dimension_numbers<[1], [0], [0], [1], [0, 0, 1, 1], [], []>} : vector<32x128xf32>, vector<128x512xf32>, vector<32x512xf32> -> vector<32x512xf32>
    %79 = arith.addf %77, %78 : vector<32x512xf32>
    %c6 = arith.constant 6 : index
    %c0_40 = arith.constant 0 : index
    %c512_41 = arith.constant 512 : index
    %80 = vector.load %arg11[%c6, %c0_40, %c512_41] : memref<8x32x1024xf32, #tpu.memory_space<vmem>>, vector<1x32x512xf32>
    %81 = vector.shape_cast %80 : vector<1x32x512xf32> to vector<32x512xf32>
    %cst_42 = arith.constant dense<0.000000e+00> : vector<32x512xf32>
    %82 = tpu.matmul %69, %10, %cst_42 {dimension_numbers = #tpu.dot_dimension_numbers<[1], [0], [0], [1], [0, 0, 1, 1], [], []>} : vector<32x128xf32>, vector<128x512xf32>, vector<32x512xf32> -> vector<32x512xf32>
    %83 = arith.addf %81, %82 : vector<32x512xf32>
    %84 = vector.extract_strided_slice %79 {offsets = [0, 0], sizes = [32, 256], strides = [1, 1]} : vector<32x512xf32> to vector<32x256xf32>
    %cst_43 = arith.constant 5.000000e-01 : f32
    %85 = vector.broadcast %cst_43 : f32 to vector<32x256xf32>
    %86 = arith.mulf %85, %84 : vector<32x256xf32>
    %87 = math.tanh %86 : vector<32x256xf32>
    %cst_44 = arith.constant 5.000000e-01 : f32
    %88 = vector.broadcast %cst_44 : f32 to vector<32x256xf32>
    %89 = arith.mulf %88, %87 : vector<32x256xf32>
    %cst_45 = arith.constant 5.000000e-01 : f32
    %90 = vector.broadcast %cst_45 : f32 to vector<32x256xf32>
    %91 = arith.addf %89, %90 : vector<32x256xf32>
    %92 = vector.extract_strided_slice %79 {offsets = [0, 256], sizes = [32, 128], strides = [1, 1]} : vector<32x512xf32> to vector<32x128xf32>
    %93 = math.tanh %92 : vector<32x128xf32>
    %94 = vector.extract_strided_slice %79 {offsets = [0, 384], sizes = [32, 128], strides = [1, 1]} : vector<32x512xf32> to vector<32x128xf32>
    %cst_46 = arith.constant 5.000000e-01 : f32
    %95 = vector.broadcast %cst_46 : f32 to vector<32x128xf32>
    %96 = arith.mulf %95, %94 : vector<32x128xf32>
    %97 = math.tanh %96 : vector<32x128xf32>
    %cst_47 = arith.constant 5.000000e-01 : f32
    %98 = vector.broadcast %cst_47 : f32 to vector<32x128xf32>
    %99 = arith.mulf %98, %97 : vector<32x128xf32>
    %cst_48 = arith.constant 5.000000e-01 : f32
    %100 = vector.broadcast %cst_48 : f32 to vector<32x128xf32>
    %101 = arith.addf %99, %100 : vector<32x128xf32>
    %102 = vector.extract_strided_slice %91 {offsets = [0, 128], sizes = [32, 128], strides = [1, 1]} : vector<32x256xf32> to vector<32x128xf32>
    %103 = arith.mulf %102, %42 : vector<32x128xf32>
    %104 = vector.extract_strided_slice %91 {offsets = [0, 0], sizes = [32, 128], strides = [1, 1]} : vector<32x256xf32> to vector<32x128xf32>
    %105 = arith.mulf %104, %93 : vector<32x128xf32>
    %106 = arith.addf %103, %105 : vector<32x128xf32>
    %107 = math.tanh %106 : vector<32x128xf32>
    %108 = arith.mulf %101, %107 : vector<32x128xf32>
    %109 = vector.extract_strided_slice %83 {offsets = [0, 0], sizes = [32, 256], strides = [1, 1]} : vector<32x512xf32> to vector<32x256xf32>
    %cst_49 = arith.constant 5.000000e-01 : f32
    %110 = vector.broadcast %cst_49 : f32 to vector<32x256xf32>
    %111 = arith.mulf %110, %109 : vector<32x256xf32>
    %112 = math.tanh %111 : vector<32x256xf32>
    %cst_50 = arith.constant 5.000000e-01 : f32
    %113 = vector.broadcast %cst_50 : f32 to vector<32x256xf32>
    %114 = arith.mulf %113, %112 : vector<32x256xf32>
    %cst_51 = arith.constant 5.000000e-01 : f32
    %115 = vector.broadcast %cst_51 : f32 to vector<32x256xf32>
    %116 = arith.addf %114, %115 : vector<32x256xf32>
    %117 = vector.extract_strided_slice %83 {offsets = [0, 256], sizes = [32, 128], strides = [1, 1]} : vector<32x512xf32> to vector<32x128xf32>
    %118 = math.tanh %117 : vector<32x128xf32>
    %119 = vector.extract_strided_slice %83 {offsets = [0, 384], sizes = [32, 128], strides = [1, 1]} : vector<32x512xf32> to vector<32x128xf32>
    %cst_52 = arith.constant 5.000000e-01 : f32
    %120 = vector.broadcast %cst_52 : f32 to vector<32x128xf32>
    %121 = arith.mulf %120, %119 : vector<32x128xf32>
    %122 = math.tanh %121 : vector<32x128xf32>
    %cst_53 = arith.constant 5.000000e-01 : f32
    %123 = vector.broadcast %cst_53 : f32 to vector<32x128xf32>
    %124 = arith.mulf %123, %122 : vector<32x128xf32>
    %cst_54 = arith.constant 5.000000e-01 : f32
    %125 = vector.broadcast %cst_54 : f32 to vector<32x128xf32>
    %126 = arith.addf %124, %125 : vector<32x128xf32>
    %127 = vector.extract_strided_slice %116 {offsets = [0, 128], sizes = [32, 128], strides = [1, 1]} : vector<32x256xf32> to vector<32x128xf32>
    %128 = arith.mulf %127, %67 : vector<32x128xf32>
    %129 = vector.extract_strided_slice %116 {offsets = [0, 0], sizes = [32, 128], strides = [1, 1]} : vector<32x256xf32> to vector<32x128xf32>
    %130 = arith.mulf %129, %118 : vector<32x128xf32>
    %131 = arith.addf %128, %130 : vector<32x128xf32>
    %132 = math.tanh %131 : vector<32x128xf32>
    %133 = arith.mulf %126, %132 : vector<32x128xf32>
    %c1_55 = arith.constant 1 : index
    %c0_56 = arith.constant 0 : index
    %c0_57 = arith.constant 0 : index
    %134 = vector.load %arg12[%c1_55, %c0_56, %c0_57] : memref<8x32x256xf32, #tpu.memory_space<vmem>>, vector<1x32x128xf32>
    %135 = vector.shape_cast %134 : vector<1x32x128xf32> to vector<32x128xf32>
    %136 = vector.shape_cast %108 : vector<32x128xf32> to vector<1x32x128xf32>
    tpu.vector_store %arg12[%c1_55, %c0_56, %c0_57], %136 {strides = array<i32>} : memref<8x32x256xf32, #tpu.memory_space<vmem>>, vector<1x32x128xf32>,
    %c6_58 = arith.constant 6 : index
    %c0_59 = arith.constant 0 : index
    %c128_60 = arith.constant 128 : index
    %137 = vector.load %arg12[%c6_58, %c0_59, %c128_60] : memref<8x32x256xf32, #tpu.memory_space<vmem>>, vector<1x32x128xf32>
    %138 = vector.shape_cast %137 : vector<1x32x128xf32> to vector<32x128xf32>
    %139 = vector.shape_cast %133 : vector<32x128xf32> to vector<1x32x128xf32>
    tpu.vector_store %arg12[%c6_58, %c0_59, %c128_60], %139 {strides = array<i32>} : memref<8x32x256xf32, #tpu.memory_space<vmem>>, vector<1x32x128xf32>,
    %c2 = arith.constant 2 : index
    %c0_61 = arith.constant 0 : index
    %c0_62 = arith.constant 0 : index
    %140 = vector.load %arg11[%c2, %c0_61, %c0_62] : memref<8x32x1024xf32, #tpu.memory_space<vmem>>, vector<1x32x512xf32>
    %141 = vector.shape_cast %140 : vector<1x32x512xf32> to vector<32x512xf32>
    %cst_63 = arith.constant dense<0.000000e+00> : vector<32x512xf32>
    %142 = tpu.matmul %108, %9, %cst_63 {dimension_numbers = #tpu.dot_dimension_numbers<[1], [0], [0], [1], [0, 0, 1, 1], [], []>} : vector<32x128xf32>, vector<128x512xf32>, vector<32x512xf32> -> vector<32x512xf32>
    %143 = arith.addf %141, %142 : vector<32x512xf32>
    %c5 = arith.constant 5 : index
    %c0_64 = arith.constant 0 : index
    %c512_65 = arith.constant 512 : index
    %144 = vector.load %arg11[%c5, %c0_64, %c512_65] : memref<8x32x1024xf32, #tpu.memory_space<vmem>>, vector<1x32x512xf32>
    %145 = vector.shape_cast %144 : vector<1x32x512xf32> to vector<32x512xf32>
    %cst_66 = arith.constant dense<0.000000e+00> : vector<32x512xf32>
    %146 = tpu.matmul %133, %10, %cst_66 {dimension_numbers = #tpu.dot_dimension_numbers<[1], [0], [0], [1], [0, 0, 1, 1], [], []>} : vector<32x128xf32>, vector<128x512xf32>, vector<32x512xf32> -> vector<32x512xf32>
    %147 = arith.addf %145, %146 : vector<32x512xf32>
    %148 = vector.extract_strided_slice %143 {offsets = [0, 0], sizes = [32, 256], strides = [1, 1]} : vector<32x512xf32> to vector<32x256xf32>
    %cst_67 = arith.constant 5.000000e-01 : f32
    %149 = vector.broadcast %cst_67 : f32 to vector<32x256xf32>
    %150 = arith.mulf %149, %148 : vector<32x256xf32>
    %151 = math.tanh %150 : vector<32x256xf32>
    %cst_68 = arith.constant 5.000000e-01 : f32
    %152 = vector.broadcast %cst_68 : f32 to vector<32x256xf32>
    %153 = arith.mulf %152, %151 : vector<32x256xf32>
    %cst_69 = arith.constant 5.000000e-01 : f32
    %154 = vector.broadcast %cst_69 : f32 to vector<32x256xf32>
    %155 = arith.addf %153, %154 : vector<32x256xf32>
    %156 = vector.extract_strided_slice %143 {offsets = [0, 256], sizes = [32, 128], strides = [1, 1]} : vector<32x512xf32> to vector<32x128xf32>
    %157 = math.tanh %156 : vector<32x128xf32>
    %158 = vector.extract_strided_slice %143 {offsets = [0, 384], sizes = [32, 128], strides = [1, 1]} : vector<32x512xf32> to vector<32x128xf32>
    %cst_70 = arith.constant 5.000000e-01 : f32
    %159 = vector.broadcast %cst_70 : f32 to vector<32x128xf32>
    %160 = arith.mulf %159, %158 : vector<32x128xf32>
    %161 = math.tanh %160 : vector<32x128xf32>
    %cst_71 = arith.constant 5.000000e-01 : f32
    %162 = vector.broadcast %cst_71 : f32 to vector<32x128xf32>
    %163 = arith.mulf %162, %161 : vector<32x128xf32>
    %cst_72 = arith.constant 5.000000e-01 : f32
    %164 = vector.broadcast %cst_72 : f32 to vector<32x128xf32>
    %165 = arith.addf %163, %164 : vector<32x128xf32>
    %166 = vector.extract_strided_slice %155 {offsets = [0, 128], sizes = [32, 128], strides = [1, 1]} : vector<32x256xf32> to vector<32x128xf32>
    %167 = arith.mulf %166, %106 : vector<32x128xf32>
    %168 = vector.extract_strided_slice %155 {offsets = [0, 0], sizes = [32, 128], strides = [1, 1]} : vector<32x256xf32> to vector<32x128xf32>
    %169 = arith.mulf %168, %157 : vector<32x128xf32>
    %170 = arith.addf %167, %169 : vector<32x128xf32>
    %171 = math.tanh %170 : vector<32x128xf32>
    %172 = arith.mulf %165, %171 : vector<32x128xf32>
    %173 = vector.extract_strided_slice %147 {offsets = [0, 0], sizes = [32, 256], strides = [1, 1]} : vector<32x512xf32> to vector<32x256xf32>
    %cst_73 = arith.constant 5.000000e-01 : f32
    %174 = vector.broadcast %cst_73 : f32 to vector<32x256xf32>
    %175 = arith.mulf %174, %173 : vector<32x256xf32>
    %176 = math.tanh %175 : vector<32x256xf32>
    %cst_74 = arith.constant 5.000000e-01 : f32
    %177 = vector.broadcast %cst_74 : f32 to vector<32x256xf32>
    %178 = arith.mulf %177, %176 : vector<32x256xf32>
    %cst_75 = arith.constant 5.000000e-01 : f32
    %179 = vector.broadcast %cst_75 : f32 to vector<32x256xf32>
    %180 = arith.addf %178, %179 : vector<32x256xf32>
    %181 = vector.extract_strided_slice %147 {offsets = [0, 256], sizes = [32, 128], strides = [1, 1]} : vector<32x512xf32> to vector<32x128xf32>
    %182 = math.tanh %181 : vector<32x128xf32>
    %183 = vector.extract_strided_slice %147 {offsets = [0, 384], sizes = [32, 128], strides = [1, 1]} : vector<32x512xf32> to vector<32x128xf32>
    %cst_76 = arith.constant 5.000000e-01 : f32
    %184 = vector.broadcast %cst_76 : f32 to vector<32x128xf32>
    %185 = arith.mulf %184, %183 : vector<32x128xf32>
    %186 = math.tanh %185 : vector<32x128xf32>
    %cst_77 = arith.constant 5.000000e-01 : f32
    %187 = vector.broadcast %cst_77 : f32 to vector<32x128xf32>
    %188 = arith.mulf %187, %186 : vector<32x128xf32>
    %cst_78 = arith.constant 5.000000e-01 : f32
    %189 = vector.broadcast %cst_78 : f32 to vector<32x128xf32>
    %190 = arith.addf %188, %189 : vector<32x128xf32>
    %191 = vector.extract_strided_slice %180 {offsets = [0, 128], sizes = [32, 128], strides = [1, 1]} : vector<32x256xf32> to vector<32x128xf32>
    %192 = arith.mulf %191, %131 : vector<32x128xf32>
    %193 = vector.extract_strided_slice %180 {offsets = [0, 0], sizes = [32, 128], strides = [1, 1]} : vector<32x256xf32> to vector<32x128xf32>
    %194 = arith.mulf %193, %182 : vector<32x128xf32>
    %195 = arith.addf %192, %194 : vector<32x128xf32>
    %196 = math.tanh %195 : vector<32x128xf32>
    %197 = arith.mulf %190, %196 : vector<32x128xf32>
    %c2_79 = arith.constant 2 : index
    %c0_80 = arith.constant 0 : index
    %c0_81 = arith.constant 0 : index
    %198 = vector.load %arg12[%c2_79, %c0_80, %c0_81] : memref<8x32x256xf32, #tpu.memory_space<vmem>>, vector<1x32x128xf32>
    %199 = vector.shape_cast %198 : vector<1x32x128xf32> to vector<32x128xf32>
    %200 = vector.shape_cast %172 : vector<32x128xf32> to vector<1x32x128xf32>
    tpu.vector_store %arg12[%c2_79, %c0_80, %c0_81], %200 {strides = array<i32>} : memref<8x32x256xf32, #tpu.memory_space<vmem>>, vector<1x32x128xf32>,
    %c5_82 = arith.constant 5 : index
    %c0_83 = arith.constant 0 : index
    %c128_84 = arith.constant 128 : index
    %201 = vector.load %arg12[%c5_82, %c0_83, %c128_84] : memref<8x32x256xf32, #tpu.memory_space<vmem>>, vector<1x32x128xf32>
    %202 = vector.shape_cast %201 : vector<1x32x128xf32> to vector<32x128xf32>
    %203 = vector.shape_cast %197 : vector<32x128xf32> to vector<1x32x128xf32>
    tpu.vector_store %arg12[%c5_82, %c0_83, %c128_84], %203 {strides = array<i32>} : memref<8x32x256xf32, #tpu.memory_space<vmem>>, vector<1x32x128xf32>,
    %c3 = arith.constant 3 : index
    %c0_85 = arith.constant 0 : index
    %c0_86 = arith.constant 0 : index
    %204 = vector.load %arg11[%c3, %c0_85, %c0_86] : memref<8x32x1024xf32, #tpu.memory_space<vmem>>, vector<1x32x512xf32>
    %205 = vector.shape_cast %204 : vector<1x32x512xf32> to vector<32x512xf32>
    %cst_87 = arith.constant dense<0.000000e+00> : vector<32x512xf32>
    %206 = tpu.matmul %172, %9, %cst_87 {dimension_numbers = #tpu.dot_dimension_numbers<[1], [0], [0], [1], [0, 0, 1, 1], [], []>} : vector<32x128xf32>, vector<128x512xf32>, vector<32x512xf32> -> vector<32x512xf32>
    %207 = arith.addf %205, %206 : vector<32x512xf32>
    %c4 = arith.constant 4 : index
    %c0_88 = arith.constant 0 : index
    %c512_89 = arith.constant 512 : index
    %208 = vector.load %arg11[%c4, %c0_88, %c512_89] : memref<8x32x1024xf32, #tpu.memory_space<vmem>>, vector<1x32x512xf32>
    %209 = vector.shape_cast %208 : vector<1x32x512xf32> to vector<32x512xf32>
    %cst_90 = arith.constant dense<0.000000e+00> : vector<32x512xf32>
    %210 = tpu.matmul %197, %10, %cst_90 {dimension_numbers = #tpu.dot_dimension_numbers<[1], [0], [0], [1], [0, 0, 1, 1], [], []>} : vector<32x128xf32>, vector<128x512xf32>, vector<32x512xf32> -> vector<32x512xf32>
    %211 = arith.addf %209, %210 : vector<32x512xf32>
    %212 = vector.extract_strided_slice %207 {offsets = [0, 0], sizes = [32, 256], strides = [1, 1]} : vector<32x512xf32> to vector<32x256xf32>
    %cst_91 = arith.constant 5.000000e-01 : f32
    %213 = vector.broadcast %cst_91 : f32 to vector<32x256xf32>
    %214 = arith.mulf %213, %212 : vector<32x256xf32>
    %215 = math.tanh %214 : vector<32x256xf32>
    %cst_92 = arith.constant 5.000000e-01 : f32
    %216 = vector.broadcast %cst_92 : f32 to vector<32x256xf32>
    %217 = arith.mulf %216, %215 : vector<32x256xf32>
    %cst_93 = arith.constant 5.000000e-01 : f32
    %218 = vector.broadcast %cst_93 : f32 to vector<32x256xf32>
    %219 = arith.addf %217, %218 : vector<32x256xf32>
    %220 = vector.extract_strided_slice %207 {offsets = [0, 256], sizes = [32, 128], strides = [1, 1]} : vector<32x512xf32> to vector<32x128xf32>
    %221 = math.tanh %220 : vector<32x128xf32>
    %222 = vector.extract_strided_slice %207 {offsets = [0, 384], sizes = [32, 128], strides = [1, 1]} : vector<32x512xf32> to vector<32x128xf32>
    %cst_94 = arith.constant 5.000000e-01 : f32
    %223 = vector.broadcast %cst_94 : f32 to vector<32x128xf32>
    %224 = arith.mulf %223, %222 : vector<32x128xf32>
    %225 = math.tanh %224 : vector<32x128xf32>
    %cst_95 = arith.constant 5.000000e-01 : f32
    %226 = vector.broadcast %cst_95 : f32 to vector<32x128xf32>
    %227 = arith.mulf %226, %225 : vector<32x128xf32>
    %cst_96 = arith.constant 5.000000e-01 : f32
    %228 = vector.broadcast %cst_96 : f32 to vector<32x128xf32>
    %229 = arith.addf %227, %228 : vector<32x128xf32>
    %230 = vector.extract_strided_slice %219 {offsets = [0, 128], sizes = [32, 128], strides = [1, 1]} : vector<32x256xf32> to vector<32x128xf32>
    %231 = arith.mulf %230, %170 : vector<32x128xf32>
    %232 = vector.extract_strided_slice %219 {offsets = [0, 0], sizes = [32, 128], strides = [1, 1]} : vector<32x256xf32> to vector<32x128xf32>
    %233 = arith.mulf %232, %221 : vector<32x128xf32>
    %234 = arith.addf %231, %233 : vector<32x128xf32>
    %235 = math.tanh %234 : vector<32x128xf32>
    %236 = arith.mulf %229, %235 : vector<32x128xf32>
    %237 = vector.extract_strided_slice %211 {offsets = [0, 0], sizes = [32, 256], strides = [1, 1]} : vector<32x512xf32> to vector<32x256xf32>
    %cst_97 = arith.constant 5.000000e-01 : f32
    %238 = vector.broadcast %cst_97 : f32 to vector<32x256xf32>
    %239 = arith.mulf %238, %237 : vector<32x256xf32>
    %240 = math.tanh %239 : vector<32x256xf32>
    %cst_98 = arith.constant 5.000000e-01 : f32
    %241 = vector.broadcast %cst_98 : f32 to vector<32x256xf32>
    %242 = arith.mulf %241, %240 : vector<32x256xf32>
    %cst_99 = arith.constant 5.000000e-01 : f32
    %243 = vector.broadcast %cst_99 : f32 to vector<32x256xf32>
    %244 = arith.addf %242, %243 : vector<32x256xf32>
    %245 = vector.extract_strided_slice %211 {offsets = [0, 256], sizes = [32, 128], strides = [1, 1]} : vector<32x512xf32> to vector<32x128xf32>
    %246 = math.tanh %245 : vector<32x128xf32>
    %247 = vector.extract_strided_slice %211 {offsets = [0, 384], sizes = [32, 128], strides = [1, 1]} : vector<32x512xf32> to vector<32x128xf32>
    %cst_100 = arith.constant 5.000000e-01 : f32
    %248 = vector.broadcast %cst_100 : f32 to vector<32x128xf32>
    %249 = arith.mulf %248, %247 : vector<32x128xf32>
    %250 = math.tanh %249 : vector<32x128xf32>
    %cst_101 = arith.constant 5.000000e-01 : f32
    %251 = vector.broadcast %cst_101 : f32 to vector<32x128xf32>
    %252 = arith.mulf %251, %250 : vector<32x128xf32>
    %cst_102 = arith.constant 5.000000e-01 : f32
    %253 = vector.broadcast %cst_102 : f32 to vector<32x128xf32>
    %254 = arith.addf %252, %253 : vector<32x128xf32>
    %255 = vector.extract_strided_slice %244 {offsets = [0, 128], sizes = [32, 128], strides = [1, 1]} : vector<32x256xf32> to vector<32x128xf32>
    %256 = arith.mulf %255, %195 : vector<32x128xf32>
    %257 = vector.extract_strided_slice %244 {offsets = [0, 0], sizes = [32, 128], strides = [1, 1]} : vector<32x256xf32> to vector<32x128xf32>
    %258 = arith.mulf %257, %246 : vector<32x128xf32>
    %259 = arith.addf %256, %258 : vector<32x128xf32>
    %260 = math.tanh %259 : vector<32x128xf32>
    %261 = arith.mulf %254, %260 : vector<32x128xf32>
    %c3_103 = arith.constant 3 : index
    %c0_104 = arith.constant 0 : index
    %c0_105 = arith.constant 0 : index
    %262 = vector.load %arg12[%c3_103, %c0_104, %c0_105] : memref<8x32x256xf32, #tpu.memory_space<vmem>>, vector<1x32x128xf32>
    %263 = vector.shape_cast %262 : vector<1x32x128xf32> to vector<32x128xf32>
    %264 = vector.shape_cast %236 : vector<32x128xf32> to vector<1x32x128xf32>
    tpu.vector_store %arg12[%c3_103, %c0_104, %c0_105], %264 {strides = array<i32>} : memref<8x32x256xf32, #tpu.memory_space<vmem>>, vector<1x32x128xf32>,
    %c4_106 = arith.constant 4 : index
    %c0_107 = arith.constant 0 : index
    %c128_108 = arith.constant 128 : index
    %265 = vector.load %arg12[%c4_106, %c0_107, %c128_108] : memref<8x32x256xf32, #tpu.memory_space<vmem>>, vector<1x32x128xf32>
    %266 = vector.shape_cast %265 : vector<1x32x128xf32> to vector<32x128xf32>
    %267 = vector.shape_cast %261 : vector<32x128xf32> to vector<1x32x128xf32>
    tpu.vector_store %arg12[%c4_106, %c0_107, %c128_108], %267 {strides = array<i32>} : memref<8x32x256xf32, #tpu.memory_space<vmem>>, vector<1x32x128xf32>,
    %c4_109 = arith.constant 4 : index
    %c0_110 = arith.constant 0 : index
    %c0_111 = arith.constant 0 : index
    %268 = vector.load %arg11[%c4_109, %c0_110, %c0_111] : memref<8x32x1024xf32, #tpu.memory_space<vmem>>, vector<1x32x512xf32>
    %269 = vector.shape_cast %268 : vector<1x32x512xf32> to vector<32x512xf32>
    %cst_112 = arith.constant dense<0.000000e+00> : vector<32x512xf32>
    %270 = tpu.matmul %236, %9, %cst_112 {dimension_numbers = #tpu.dot_dimension_numbers<[1], [0], [0], [1], [0, 0, 1, 1], [], []>} : vector<32x128xf32>, vector<128x512xf32>, vector<32x512xf32> -> vector<32x512xf32>
    %271 = arith.addf %269, %270 : vector<32x512xf32>
    %c3_113 = arith.constant 3 : index
    %c0_114 = arith.constant 0 : index
    %c512_115 = arith.constant 512 : index
    %272 = vector.load %arg11[%c3_113, %c0_114, %c512_115] : memref<8x32x1024xf32, #tpu.memory_space<vmem>>, vector<1x32x512xf32>
    %273 = vector.shape_cast %272 : vector<1x32x512xf32> to vector<32x512xf32>
    %cst_116 = arith.constant dense<0.000000e+00> : vector<32x512xf32>
    %274 = tpu.matmul %261, %10, %cst_116 {dimension_numbers = #tpu.dot_dimension_numbers<[1], [0], [0], [1], [0, 0, 1, 1], [], []>} : vector<32x128xf32>, vector<128x512xf32>, vector<32x512xf32> -> vector<32x512xf32>
    %275 = arith.addf %273, %274 : vector<32x512xf32>
    %276 = vector.extract_strided_slice %271 {offsets = [0, 0], sizes = [32, 256], strides = [1, 1]} : vector<32x512xf32> to vector<32x256xf32>
    %cst_117 = arith.constant 5.000000e-01 : f32
    %277 = vector.broadcast %cst_117 : f32 to vector<32x256xf32>
    %278 = arith.mulf %277, %276 : vector<32x256xf32>
    %279 = math.tanh %278 : vector<32x256xf32>
    %cst_118 = arith.constant 5.000000e-01 : f32
    %280 = vector.broadcast %cst_118 : f32 to vector<32x256xf32>
    %281 = arith.mulf %280, %279 : vector<32x256xf32>
    %cst_119 = arith.constant 5.000000e-01 : f32
    %282 = vector.broadcast %cst_119 : f32 to vector<32x256xf32>
    %283 = arith.addf %281, %282 : vector<32x256xf32>
    %284 = vector.extract_strided_slice %271 {offsets = [0, 256], sizes = [32, 128], strides = [1, 1]} : vector<32x512xf32> to vector<32x128xf32>
    %285 = math.tanh %284 : vector<32x128xf32>
    %286 = vector.extract_strided_slice %271 {offsets = [0, 384], sizes = [32, 128], strides = [1, 1]} : vector<32x512xf32> to vector<32x128xf32>
    %cst_120 = arith.constant 5.000000e-01 : f32
    %287 = vector.broadcast %cst_120 : f32 to vector<32x128xf32>
    %288 = arith.mulf %287, %286 : vector<32x128xf32>
    %289 = math.tanh %288 : vector<32x128xf32>
    %cst_121 = arith.constant 5.000000e-01 : f32
    %290 = vector.broadcast %cst_121 : f32 to vector<32x128xf32>
    %291 = arith.mulf %290, %289 : vector<32x128xf32>
    %cst_122 = arith.constant 5.000000e-01 : f32
    %292 = vector.broadcast %cst_122 : f32 to vector<32x128xf32>
    %293 = arith.addf %291, %292 : vector<32x128xf32>
    %294 = vector.extract_strided_slice %283 {offsets = [0, 128], sizes = [32, 128], strides = [1, 1]} : vector<32x256xf32> to vector<32x128xf32>
    %295 = arith.mulf %294, %234 : vector<32x128xf32>
    %296 = vector.extract_strided_slice %283 {offsets = [0, 0], sizes = [32, 128], strides = [1, 1]} : vector<32x256xf32> to vector<32x128xf32>
    %297 = arith.mulf %296, %285 : vector<32x128xf32>
    %298 = arith.addf %295, %297 : vector<32x128xf32>
    %299 = math.tanh %298 : vector<32x128xf32>
    %300 = arith.mulf %293, %299 : vector<32x128xf32>
    %301 = vector.extract_strided_slice %275 {offsets = [0, 0], sizes = [32, 256], strides = [1, 1]} : vector<32x512xf32> to vector<32x256xf32>
    %cst_123 = arith.constant 5.000000e-01 : f32
    %302 = vector.broadcast %cst_123 : f32 to vector<32x256xf32>
    %303 = arith.mulf %302, %301 : vector<32x256xf32>
    %304 = math.tanh %303 : vector<32x256xf32>
    %cst_124 = arith.constant 5.000000e-01 : f32
    %305 = vector.broadcast %cst_124 : f32 to vector<32x256xf32>
    %306 = arith.mulf %305, %304 : vector<32x256xf32>
    %cst_125 = arith.constant 5.000000e-01 : f32
    %307 = vector.broadcast %cst_125 : f32 to vector<32x256xf32>
    %308 = arith.addf %306, %307 : vector<32x256xf32>
    %309 = vector.extract_strided_slice %275 {offsets = [0, 256], sizes = [32, 128], strides = [1, 1]} : vector<32x512xf32> to vector<32x128xf32>
    %310 = math.tanh %309 : vector<32x128xf32>
    %311 = vector.extract_strided_slice %275 {offsets = [0, 384], sizes = [32, 128], strides = [1, 1]} : vector<32x512xf32> to vector<32x128xf32>
    %cst_126 = arith.constant 5.000000e-01 : f32
    %312 = vector.broadcast %cst_126 : f32 to vector<32x128xf32>
    %313 = arith.mulf %312, %311 : vector<32x128xf32>
    %314 = math.tanh %313 : vector<32x128xf32>
    %cst_127 = arith.constant 5.000000e-01 : f32
    %315 = vector.broadcast %cst_127 : f32 to vector<32x128xf32>
    %316 = arith.mulf %315, %314 : vector<32x128xf32>
    %cst_128 = arith.constant 5.000000e-01 : f32
    %317 = vector.broadcast %cst_128 : f32 to vector<32x128xf32>
    %318 = arith.addf %316, %317 : vector<32x128xf32>
    %319 = vector.extract_strided_slice %308 {offsets = [0, 128], sizes = [32, 128], strides = [1, 1]} : vector<32x256xf32> to vector<32x128xf32>
    %320 = arith.mulf %319, %259 : vector<32x128xf32>
    %321 = vector.extract_strided_slice %308 {offsets = [0, 0], sizes = [32, 128], strides = [1, 1]} : vector<32x256xf32> to vector<32x128xf32>
    %322 = arith.mulf %321, %310 : vector<32x128xf32>
    %323 = arith.addf %320, %322 : vector<32x128xf32>
    %324 = math.tanh %323 : vector<32x128xf32>
    %325 = arith.mulf %318, %324 : vector<32x128xf32>
    %c4_129 = arith.constant 4 : index
    %c0_130 = arith.constant 0 : index
    %c0_131 = arith.constant 0 : index
    %326 = vector.load %arg12[%c4_129, %c0_130, %c0_131] : memref<8x32x256xf32, #tpu.memory_space<vmem>>, vector<1x32x128xf32>
    %327 = vector.shape_cast %326 : vector<1x32x128xf32> to vector<32x128xf32>
    %328 = vector.shape_cast %300 : vector<32x128xf32> to vector<1x32x128xf32>
    tpu.vector_store %arg12[%c4_129, %c0_130, %c0_131], %328 {strides = array<i32>} : memref<8x32x256xf32, #tpu.memory_space<vmem>>, vector<1x32x128xf32>,
    %c3_132 = arith.constant 3 : index
    %c0_133 = arith.constant 0 : index
    %c128_134 = arith.constant 128 : index
    %329 = vector.load %arg12[%c3_132, %c0_133, %c128_134] : memref<8x32x256xf32, #tpu.memory_space<vmem>>, vector<1x32x128xf32>
    %330 = vector.shape_cast %329 : vector<1x32x128xf32> to vector<32x128xf32>
    %331 = vector.shape_cast %325 : vector<32x128xf32> to vector<1x32x128xf32>
    tpu.vector_store %arg12[%c3_132, %c0_133, %c128_134], %331 {strides = array<i32>} : memref<8x32x256xf32, #tpu.memory_space<vmem>>, vector<1x32x128xf32>,
    %c5_135 = arith.constant 5 : index
    %c0_136 = arith.constant 0 : index
    %c0_137 = arith.constant 0 : index
    %332 = vector.load %arg11[%c5_135, %c0_136, %c0_137] : memref<8x32x1024xf32, #tpu.memory_space<vmem>>, vector<1x32x512xf32>
    %333 = vector.shape_cast %332 : vector<1x32x512xf32> to vector<32x512xf32>
    %cst_138 = arith.constant dense<0.000000e+00> : vector<32x512xf32>
    %334 = tpu.matmul %300, %9, %cst_138 {dimension_numbers = #tpu.dot_dimension_numbers<[1], [0], [0], [1], [0, 0, 1, 1], [], []>} : vector<32x128xf32>, vector<128x512xf32>, vector<32x512xf32> -> vector<32x512xf32>
    %335 = arith.addf %333, %334 : vector<32x512xf32>
    %c2_139 = arith.constant 2 : index
    %c0_140 = arith.constant 0 : index
    %c512_141 = arith.constant 512 : index
    %336 = vector.load %arg11[%c2_139, %c0_140, %c512_141] : memref<8x32x1024xf32, #tpu.memory_space<vmem>>, vector<1x32x512xf32>
    %337 = vector.shape_cast %336 : vector<1x32x512xf32> to vector<32x512xf32>
    %cst_142 = arith.constant dense<0.000000e+00> : vector<32x512xf32>
    %338 = tpu.matmul %325, %10, %cst_142 {dimension_numbers = #tpu.dot_dimension_numbers<[1], [0], [0], [1], [0, 0, 1, 1], [], []>} : vector<32x128xf32>, vector<128x512xf32>, vector<32x512xf32> -> vector<32x512xf32>
    %339 = arith.addf %337, %338 : vector<32x512xf32>
    %340 = vector.extract_strided_slice %335 {offsets = [0, 0], sizes = [32, 256], strides = [1, 1]} : vector<32x512xf32> to vector<32x256xf32>
    %cst_143 = arith.constant 5.000000e-01 : f32
    %341 = vector.broadcast %cst_143 : f32 to vector<32x256xf32>
    %342 = arith.mulf %341, %340 : vector<32x256xf32>
    %343 = math.tanh %342 : vector<32x256xf32>
    %cst_144 = arith.constant 5.000000e-01 : f32
    %344 = vector.broadcast %cst_144 : f32 to vector<32x256xf32>
    %345 = arith.mulf %344, %343 : vector<32x256xf32>
    %cst_145 = arith.constant 5.000000e-01 : f32
    %346 = vector.broadcast %cst_145 : f32 to vector<32x256xf32>
    %347 = arith.addf %345, %346 : vector<32x256xf32>
    %348 = vector.extract_strided_slice %335 {offsets = [0, 256], sizes = [32, 128], strides = [1, 1]} : vector<32x512xf32> to vector<32x128xf32>
    %349 = math.tanh %348 : vector<32x128xf32>
    %350 = vector.extract_strided_slice %335 {offsets = [0, 384], sizes = [32, 128], strides = [1, 1]} : vector<32x512xf32> to vector<32x128xf32>
    %cst_146 = arith.constant 5.000000e-01 : f32
    %351 = vector.broadcast %cst_146 : f32 to vector<32x128xf32>
    %352 = arith.mulf %351, %350 : vector<32x128xf32>
    %353 = math.tanh %352 : vector<32x128xf32>
    %cst_147 = arith.constant 5.000000e-01 : f32
    %354 = vector.broadcast %cst_147 : f32 to vector<32x128xf32>
    %355 = arith.mulf %354, %353 : vector<32x128xf32>
    %cst_148 = arith.constant 5.000000e-01 : f32
    %356 = vector.broadcast %cst_148 : f32 to vector<32x128xf32>
    %357 = arith.addf %355, %356 : vector<32x128xf32>
    %358 = vector.extract_strided_slice %347 {offsets = [0, 128], sizes = [32, 128], strides = [1, 1]} : vector<32x256xf32> to vector<32x128xf32>
    %359 = arith.mulf %358, %298 : vector<32x128xf32>
    %360 = vector.extract_strided_slice %347 {offsets = [0, 0], sizes = [32, 128], strides = [1, 1]} : vector<32x256xf32> to vector<32x128xf32>
    %361 = arith.mulf %360, %349 : vector<32x128xf32>
    %362 = arith.addf %359, %361 : vector<32x128xf32>
    %363 = math.tanh %362 : vector<32x128xf32>
    %364 = arith.mulf %357, %363 : vector<32x128xf32>
    %365 = vector.extract_strided_slice %339 {offsets = [0, 0], sizes = [32, 256], strides = [1, 1]} : vector<32x512xf32> to vector<32x256xf32>
    %cst_149 = arith.constant 5.000000e-01 : f32
    %366 = vector.broadcast %cst_149 : f32 to vector<32x256xf32>
    %367 = arith.mulf %366, %365 : vector<32x256xf32>
    %368 = math.tanh %367 : vector<32x256xf32>
    %cst_150 = arith.constant 5.000000e-01 : f32
    %369 = vector.broadcast %cst_150 : f32 to vector<32x256xf32>
    %370 = arith.mulf %369, %368 : vector<32x256xf32>
    %cst_151 = arith.constant 5.000000e-01 : f32
    %371 = vector.broadcast %cst_151 : f32 to vector<32x256xf32>
    %372 = arith.addf %370, %371 : vector<32x256xf32>
    %373 = vector.extract_strided_slice %339 {offsets = [0, 256], sizes = [32, 128], strides = [1, 1]} : vector<32x512xf32> to vector<32x128xf32>
    %374 = math.tanh %373 : vector<32x128xf32>
    %375 = vector.extract_strided_slice %339 {offsets = [0, 384], sizes = [32, 128], strides = [1, 1]} : vector<32x512xf32> to vector<32x128xf32>
    %cst_152 = arith.constant 5.000000e-01 : f32
    %376 = vector.broadcast %cst_152 : f32 to vector<32x128xf32>
    %377 = arith.mulf %376, %375 : vector<32x128xf32>
    %378 = math.tanh %377 : vector<32x128xf32>
    %cst_153 = arith.constant 5.000000e-01 : f32
    %379 = vector.broadcast %cst_153 : f32 to vector<32x128xf32>
    %380 = arith.mulf %379, %378 : vector<32x128xf32>
    %cst_154 = arith.constant 5.000000e-01 : f32
    %381 = vector.broadcast %cst_154 : f32 to vector<32x128xf32>
    %382 = arith.addf %380, %381 : vector<32x128xf32>
    %383 = vector.extract_strided_slice %372 {offsets = [0, 128], sizes = [32, 128], strides = [1, 1]} : vector<32x256xf32> to vector<32x128xf32>
    %384 = arith.mulf %383, %323 : vector<32x128xf32>
    %385 = vector.extract_strided_slice %372 {offsets = [0, 0], sizes = [32, 128], strides = [1, 1]} : vector<32x256xf32> to vector<32x128xf32>
    %386 = arith.mulf %385, %374 : vector<32x128xf32>
    %387 = arith.addf %384, %386 : vector<32x128xf32>
    %388 = math.tanh %387 : vector<32x128xf32>
    %389 = arith.mulf %382, %388 : vector<32x128xf32>
    %c5_155 = arith.constant 5 : index
    %c0_156 = arith.constant 0 : index
    %c0_157 = arith.constant 0 : index
    %390 = vector.load %arg12[%c5_155, %c0_156, %c0_157] : memref<8x32x256xf32, #tpu.memory_space<vmem>>, vector<1x32x128xf32>
    %391 = vector.shape_cast %390 : vector<1x32x128xf32> to vector<32x128xf32>
    %392 = vector.shape_cast %364 : vector<32x128xf32> to vector<1x32x128xf32>
    tpu.vector_store %arg12[%c5_155, %c0_156, %c0_157], %392 {strides = array<i32>} : memref<8x32x256xf32, #tpu.memory_space<vmem>>, vector<1x32x128xf32>,
    %c2_158 = arith.constant 2 : index
    %c0_159 = arith.constant 0 : index
    %c128_160 = arith.constant 128 : index
    %393 = vector.load %arg12[%c2_158, %c0_159, %c128_160] : memref<8x32x256xf32, #tpu.memory_space<vmem>>, vector<1x32x128xf32>
    %394 = vector.shape_cast %393 : vector<1x32x128xf32> to vector<32x128xf32>
    %395 = vector.shape_cast %389 : vector<32x128xf32> to vector<1x32x128xf32>
    tpu.vector_store %arg12[%c2_158, %c0_159, %c128_160], %395 {strides = array<i32>} : memref<8x32x256xf32, #tpu.memory_space<vmem>>, vector<1x32x128xf32>,
    %c6_161 = arith.constant 6 : index
    %c0_162 = arith.constant 0 : index
    %c0_163 = arith.constant 0 : index
    %396 = vector.load %arg11[%c6_161, %c0_162, %c0_163] : memref<8x32x1024xf32, #tpu.memory_space<vmem>>, vector<1x32x512xf32>
    %397 = vector.shape_cast %396 : vector<1x32x512xf32> to vector<32x512xf32>
    %cst_164 = arith.constant dense<0.000000e+00> : vector<32x512xf32>
    %398 = tpu.matmul %364, %9, %cst_164 {dimension_numbers = #tpu.dot_dimension_numbers<[1], [0], [0], [1], [0, 0, 1, 1], [], []>} : vector<32x128xf32>, vector<128x512xf32>, vector<32x512xf32> -> vector<32x512xf32>
    %399 = arith.addf %397, %398 : vector<32x512xf32>
    %c1_165 = arith.constant 1 : index
    %c0_166 = arith.constant 0 : index
    %c512_167 = arith.constant 512 : index
    %400 = vector.load %arg11[%c1_165, %c0_166, %c512_167] : memref<8x32x1024xf32, #tpu.memory_space<vmem>>, vector<1x32x512xf32>
    %401 = vector.shape_cast %400 : vector<1x32x512xf32> to vector<32x512xf32>
    %cst_168 = arith.constant dense<0.000000e+00> : vector<32x512xf32>
    %402 = tpu.matmul %389, %10, %cst_168 {dimension_numbers = #tpu.dot_dimension_numbers<[1], [0], [0], [1], [0, 0, 1, 1], [], []>} : vector<32x128xf32>, vector<128x512xf32>, vector<32x512xf32> -> vector<32x512xf32>
    %403 = arith.addf %401, %402 : vector<32x512xf32>
    %404 = vector.extract_strided_slice %399 {offsets = [0, 0], sizes = [32, 256], strides = [1, 1]} : vector<32x512xf32> to vector<32x256xf32>
    %cst_169 = arith.constant 5.000000e-01 : f32
    %405 = vector.broadcast %cst_169 : f32 to vector<32x256xf32>
    %406 = arith.mulf %405, %404 : vector<32x256xf32>
    %407 = math.tanh %406 : vector<32x256xf32>
    %cst_170 = arith.constant 5.000000e-01 : f32
    %408 = vector.broadcast %cst_170 : f32 to vector<32x256xf32>
    %409 = arith.mulf %408, %407 : vector<32x256xf32>
    %cst_171 = arith.constant 5.000000e-01 : f32
    %410 = vector.broadcast %cst_171 : f32 to vector<32x256xf32>
    %411 = arith.addf %409, %410 : vector<32x256xf32>
    %412 = vector.extract_strided_slice %399 {offsets = [0, 256], sizes = [32, 128], strides = [1, 1]} : vector<32x512xf32> to vector<32x128xf32>
    %413 = math.tanh %412 : vector<32x128xf32>
    %414 = vector.extract_strided_slice %399 {offsets = [0, 384], sizes = [32, 128], strides = [1, 1]} : vector<32x512xf32> to vector<32x128xf32>
    %cst_172 = arith.constant 5.000000e-01 : f32
    %415 = vector.broadcast %cst_172 : f32 to vector<32x128xf32>
    %416 = arith.mulf %415, %414 : vector<32x128xf32>
    %417 = math.tanh %416 : vector<32x128xf32>
    %cst_173 = arith.constant 5.000000e-01 : f32
    %418 = vector.broadcast %cst_173 : f32 to vector<32x128xf32>
    %419 = arith.mulf %418, %417 : vector<32x128xf32>
    %cst_174 = arith.constant 5.000000e-01 : f32
    %420 = vector.broadcast %cst_174 : f32 to vector<32x128xf32>
    %421 = arith.addf %419, %420 : vector<32x128xf32>
    %422 = vector.extract_strided_slice %411 {offsets = [0, 128], sizes = [32, 128], strides = [1, 1]} : vector<32x256xf32> to vector<32x128xf32>
    %423 = arith.mulf %422, %362 : vector<32x128xf32>
    %424 = vector.extract_strided_slice %411 {offsets = [0, 0], sizes = [32, 128], strides = [1, 1]} : vector<32x256xf32> to vector<32x128xf32>
    %425 = arith.mulf %424, %413 : vector<32x128xf32>
    %426 = arith.addf %423, %425 : vector<32x128xf32>
    %427 = math.tanh %426 : vector<32x128xf32>
    %428 = arith.mulf %421, %427 : vector<32x128xf32>
    %429 = vector.extract_strided_slice %403 {offsets = [0, 0], sizes = [32, 256], strides = [1, 1]} : vector<32x512xf32> to vector<32x256xf32>
    %cst_175 = arith.constant 5.000000e-01 : f32
    %430 = vector.broadcast %cst_175 : f32 to vector<32x256xf32>
    %431 = arith.mulf %430, %429 : vector<32x256xf32>
    %432 = math.tanh %431 : vector<32x256xf32>
    %cst_176 = arith.constant 5.000000e-01 : f32
    %433 = vector.broadcast %cst_176 : f32 to vector<32x256xf32>
    %434 = arith.mulf %433, %432 : vector<32x256xf32>
    %cst_177 = arith.constant 5.000000e-01 : f32
    %435 = vector.broadcast %cst_177 : f32 to vector<32x256xf32>
    %436 = arith.addf %434, %435 : vector<32x256xf32>
    %437 = vector.extract_strided_slice %403 {offsets = [0, 256], sizes = [32, 128], strides = [1, 1]} : vector<32x512xf32> to vector<32x128xf32>
    %438 = math.tanh %437 : vector<32x128xf32>
    %439 = vector.extract_strided_slice %403 {offsets = [0, 384], sizes = [32, 128], strides = [1, 1]} : vector<32x512xf32> to vector<32x128xf32>
    %cst_178 = arith.constant 5.000000e-01 : f32
    %440 = vector.broadcast %cst_178 : f32 to vector<32x128xf32>
    %441 = arith.mulf %440, %439 : vector<32x128xf32>
    %442 = math.tanh %441 : vector<32x128xf32>
    %cst_179 = arith.constant 5.000000e-01 : f32
    %443 = vector.broadcast %cst_179 : f32 to vector<32x128xf32>
    %444 = arith.mulf %443, %442 : vector<32x128xf32>
    %cst_180 = arith.constant 5.000000e-01 : f32
    %445 = vector.broadcast %cst_180 : f32 to vector<32x128xf32>
    %446 = arith.addf %444, %445 : vector<32x128xf32>
    %447 = vector.extract_strided_slice %436 {offsets = [0, 128], sizes = [32, 128], strides = [1, 1]} : vector<32x256xf32> to vector<32x128xf32>
    %448 = arith.mulf %447, %387 : vector<32x128xf32>
    %449 = vector.extract_strided_slice %436 {offsets = [0, 0], sizes = [32, 128], strides = [1, 1]} : vector<32x256xf32> to vector<32x128xf32>
    %450 = arith.mulf %449, %438 : vector<32x128xf32>
    %451 = arith.addf %448, %450 : vector<32x128xf32>
    %452 = math.tanh %451 : vector<32x128xf32>
    %453 = arith.mulf %446, %452 : vector<32x128xf32>
    %c6_181 = arith.constant 6 : index
    %c0_182 = arith.constant 0 : index
    %c0_183 = arith.constant 0 : index
    %454 = vector.load %arg12[%c6_181, %c0_182, %c0_183] : memref<8x32x256xf32, #tpu.memory_space<vmem>>, vector<1x32x128xf32>
    %455 = vector.shape_cast %454 : vector<1x32x128xf32> to vector<32x128xf32>
    %456 = vector.shape_cast %428 : vector<32x128xf32> to vector<1x32x128xf32>
    tpu.vector_store %arg12[%c6_181, %c0_182, %c0_183], %456 {strides = array<i32>} : memref<8x32x256xf32, #tpu.memory_space<vmem>>, vector<1x32x128xf32>,
    %c1_184 = arith.constant 1 : index
    %c0_185 = arith.constant 0 : index
    %c128_186 = arith.constant 128 : index
    %457 = vector.load %arg12[%c1_184, %c0_185, %c128_186] : memref<8x32x256xf32, #tpu.memory_space<vmem>>, vector<1x32x128xf32>
    %458 = vector.shape_cast %457 : vector<1x32x128xf32> to vector<32x128xf32>
    %459 = vector.shape_cast %453 : vector<32x128xf32> to vector<1x32x128xf32>
    tpu.vector_store %arg12[%c1_184, %c0_185, %c128_186], %459 {strides = array<i32>} : memref<8x32x256xf32, #tpu.memory_space<vmem>>, vector<1x32x128xf32>,
    %c7_187 = arith.constant 7 : index
    %c0_188 = arith.constant 0 : index
    %c0_189 = arith.constant 0 : index
    %460 = vector.load %arg11[%c7_187, %c0_188, %c0_189] : memref<8x32x1024xf32, #tpu.memory_space<vmem>>, vector<1x32x512xf32>
    %461 = vector.shape_cast %460 : vector<1x32x512xf32> to vector<32x512xf32>
    %cst_190 = arith.constant dense<0.000000e+00> : vector<32x512xf32>
    %462 = tpu.matmul %428, %9, %cst_190 {dimension_numbers = #tpu.dot_dimension_numbers<[1], [0], [0], [1], [0, 0, 1, 1], [], []>} : vector<32x128xf32>, vector<128x512xf32>, vector<32x512xf32> -> vector<32x512xf32>
    %463 = arith.addf %461, %462 : vector<32x512xf32>
    %c0_191 = arith.constant 0 : index
    %c0_192 = arith.constant 0 : index
    %c512_193 = arith.constant 512 : index
    %464 = vector.load %arg11[%c0_191, %c0_192, %c512_193] : memref<8x32x1024xf32, #tpu.memory_space<vmem>>, vector<1x32x512xf32>
    %465 = vector.shape_cast %464 : vector<1x32x512xf32> to vector<32x512xf32>
    %cst_194 = arith.constant dense<0.000000e+00> : vector<32x512xf32>
    %466 = tpu.matmul %453, %10, %cst_194 {dimension_numbers = #tpu.dot_dimension_numbers<[1], [0], [0], [1], [0, 0, 1, 1], [], []>} : vector<32x128xf32>, vector<128x512xf32>, vector<32x512xf32> -> vector<32x512xf32>
    %467 = arith.addf %465, %466 : vector<32x512xf32>
    %468 = vector.extract_strided_slice %463 {offsets = [0, 0], sizes = [32, 256], strides = [1, 1]} : vector<32x512xf32> to vector<32x256xf32>
    %cst_195 = arith.constant 5.000000e-01 : f32
    %469 = vector.broadcast %cst_195 : f32 to vector<32x256xf32>
    %470 = arith.mulf %469, %468 : vector<32x256xf32>
    %471 = math.tanh %470 : vector<32x256xf32>
    %cst_196 = arith.constant 5.000000e-01 : f32
    %472 = vector.broadcast %cst_196 : f32 to vector<32x256xf32>
    %473 = arith.mulf %472, %471 : vector<32x256xf32>
    %cst_197 = arith.constant 5.000000e-01 : f32
    %474 = vector.broadcast %cst_197 : f32 to vector<32x256xf32>
    %475 = arith.addf %473, %474 : vector<32x256xf32>
    %476 = vector.extract_strided_slice %463 {offsets = [0, 256], sizes = [32, 128], strides = [1, 1]} : vector<32x512xf32> to vector<32x128xf32>
    %477 = math.tanh %476 : vector<32x128xf32>
    %478 = vector.extract_strided_slice %463 {offsets = [0, 384], sizes = [32, 128], strides = [1, 1]} : vector<32x512xf32> to vector<32x128xf32>
    %cst_198 = arith.constant 5.000000e-01 : f32
    %479 = vector.broadcast %cst_198 : f32 to vector<32x128xf32>
    %480 = arith.mulf %479, %478 : vector<32x128xf32>
    %481 = math.tanh %480 : vector<32x128xf32>
    %cst_199 = arith.constant 5.000000e-01 : f32
    %482 = vector.broadcast %cst_199 : f32 to vector<32x128xf32>
    %483 = arith.mulf %482, %481 : vector<32x128xf32>
    %cst_200 = arith.constant 5.000000e-01 : f32
    %484 = vector.broadcast %cst_200 : f32 to vector<32x128xf32>
    %485 = arith.addf %483, %484 : vector<32x128xf32>
    %486 = vector.extract_strided_slice %475 {offsets = [0, 128], sizes = [32, 128], strides = [1, 1]} : vector<32x256xf32> to vector<32x128xf32>
    %487 = arith.mulf %486, %426 : vector<32x128xf32>
    %488 = vector.extract_strided_slice %475 {offsets = [0, 0], sizes = [32, 128], strides = [1, 1]} : vector<32x256xf32> to vector<32x128xf32>
    %489 = arith.mulf %488, %477 : vector<32x128xf32>
    %490 = arith.addf %487, %489 : vector<32x128xf32>
    %491 = math.tanh %490 : vector<32x128xf32>
    %492 = arith.mulf %485, %491 : vector<32x128xf32>
    %493 = vector.extract_strided_slice %467 {offsets = [0, 0], sizes = [32, 256], strides = [1, 1]} : vector<32x512xf32> to vector<32x256xf32>
    %cst_201 = arith.constant 5.000000e-01 : f32
    %494 = vector.broadcast %cst_201 : f32 to vector<32x256xf32>
    %495 = arith.mulf %494, %493 : vector<32x256xf32>
    %496 = math.tanh %495 : vector<32x256xf32>
    %cst_202 = arith.constant 5.000000e-01 : f32
    %497 = vector.broadcast %cst_202 : f32 to vector<32x256xf32>
    %498 = arith.mulf %497, %496 : vector<32x256xf32>
    %cst_203 = arith.constant 5.000000e-01 : f32
    %499 = vector.broadcast %cst_203 : f32 to vector<32x256xf32>
    %500 = arith.addf %498, %499 : vector<32x256xf32>
    %501 = vector.extract_strided_slice %467 {offsets = [0, 256], sizes = [32, 128], strides = [1, 1]} : vector<32x512xf32> to vector<32x128xf32>
    %502 = math.tanh %501 : vector<32x128xf32>
    %503 = vector.extract_strided_slice %467 {offsets = [0, 384], sizes = [32, 128], strides = [1, 1]} : vector<32x512xf32> to vector<32x128xf32>
    %cst_204 = arith.constant 5.000000e-01 : f32
    %504 = vector.broadcast %cst_204 : f32 to vector<32x128xf32>
    %505 = arith.mulf %504, %503 : vector<32x128xf32>
    %506 = math.tanh %505 : vector<32x128xf32>
    %cst_205 = arith.constant 5.000000e-01 : f32
    %507 = vector.broadcast %cst_205 : f32 to vector<32x128xf32>
    %508 = arith.mulf %507, %506 : vector<32x128xf32>
    %cst_206 = arith.constant 5.000000e-01 : f32
    %509 = vector.broadcast %cst_206 : f32 to vector<32x128xf32>
    %510 = arith.addf %508, %509 : vector<32x128xf32>
    %511 = vector.extract_strided_slice %500 {offsets = [0, 128], sizes = [32, 128], strides = [1, 1]} : vector<32x256xf32> to vector<32x128xf32>
    %512 = arith.mulf %511, %451 : vector<32x128xf32>
    %513 = vector.extract_strided_slice %500 {offsets = [0, 0], sizes = [32, 128], strides = [1, 1]} : vector<32x256xf32> to vector<32x128xf32>
    %514 = arith.mulf %513, %502 : vector<32x128xf32>
    %515 = arith.addf %512, %514 : vector<32x128xf32>
    %516 = math.tanh %515 : vector<32x128xf32>
    %517 = arith.mulf %510, %516 : vector<32x128xf32>
    %c7_207 = arith.constant 7 : index
    %c0_208 = arith.constant 0 : index
    %c0_209 = arith.constant 0 : index
    %518 = vector.load %arg12[%c7_207, %c0_208, %c0_209] : memref<8x32x256xf32, #tpu.memory_space<vmem>>, vector<1x32x128xf32>
    %519 = vector.shape_cast %518 : vector<1x32x128xf32> to vector<32x128xf32>
    %520 = vector.shape_cast %492 : vector<32x128xf32> to vector<1x32x128xf32>
    tpu.vector_store %arg12[%c7_207, %c0_208, %c0_209], %520 {strides = array<i32>} : memref<8x32x256xf32, #tpu.memory_space<vmem>>, vector<1x32x128xf32>,
    %c0_210 = arith.constant 0 : index
    %c0_211 = arith.constant 0 : index
    %c128_212 = arith.constant 128 : index
    %521 = vector.load %arg12[%c0_210, %c0_211, %c128_212] : memref<8x32x256xf32, #tpu.memory_space<vmem>>, vector<1x32x128xf32>
    %522 = vector.shape_cast %521 : vector<1x32x128xf32> to vector<32x128xf32>
    %523 = vector.shape_cast %517 : vector<32x128xf32> to vector<1x32x128xf32>
    tpu.vector_store %arg12[%c0_210, %c0_211, %c128_212], %523 {strides = array<i32>} : memref<8x32x256xf32, #tpu.memory_space<vmem>>, vector<1x32x128xf32>,
    %c0_213 = arith.constant 0 : index
    %c0_214 = arith.constant 0 : index
    %c0_215 = arith.constant 0 : index
    %524 = vector.load %arg12[%c0_213, %c0_214, %c0_215] : memref<8x32x256xf32, #tpu.memory_space<vmem>>, vector<8x32x256xf32>
    %525 = vector.shape_cast %524 : vector<8x32x256xf32> to vector<256x256xf32>
    %c0_216 = arith.constant 0 : index
    %c0_217 = arith.constant 0 : index
    %526 = vector.load %arg6[%c0_216, %c0_217] : memref<256x128xf32, #tpu.memory_space<vmem>>, vector<256x128xf32>
    %cst_218 = arith.constant dense<0.000000e+00> : vector<256x128xf32>
    %527 = tpu.matmul %525, %526, %cst_218 {dimension_numbers = #tpu.dot_dimension_numbers<[1], [0], [0], [1], [0, 0, 1, 1], [], []>} : vector<256x256xf32>, vector<256x128xf32>, vector<256x128xf32> -> vector<256x128xf32>
    %c0_219 = arith.constant 0 : index
    %c0_220 = arith.constant 0 : index
    %528 = vector.load %arg7[%c0_219, %c0_220] : memref<1x128xf32, #tpu.memory_space<vmem>>, vector<1x128xf32>
    %529 = vector.broadcast %528 : vector<1x128xf32> to vector<256x128xf32>
    %530 = arith.addf %527, %529 : vector<256x128xf32>
    %cst_221 = arith.constant dense<0.000000e+00> : vector<256xf32>
    %531 = vector.multi_reduction <add>, %530, %cst_221 [1] : vector<256x128xf32> to vector<256xf32>
    %532 = vector.shape_cast %531 : vector<256xf32> to vector<256x1xf32>
    %cst_222 = arith.constant 1.280000e+02 : f32
    %533 = vector.broadcast %cst_222 : f32 to vector<256x1xf32>
    %534 = arith.divf %532, %533 : vector<256x1xf32>
    %535 = vector.broadcast %534 : vector<256x1xf32> to vector<256x128xf32>
    %536 = arith.subf %530, %535 : vector<256x128xf32>
    %537 = arith.mulf %536, %536 : vector<256x128xf32>
    %cst_223 = arith.constant dense<0.000000e+00> : vector<256xf32>
    %538 = vector.multi_reduction <add>, %537, %cst_223 [1] : vector<256x128xf32> to vector<256xf32>
    %539 = vector.shape_cast %538 : vector<256xf32> to vector<256x1xf32>
    %cst_224 = arith.constant 1.280000e+02 : f32
    %540 = vector.broadcast %cst_224 : f32 to vector<256x1xf32>
    %541 = arith.divf %539, %540 : vector<256x1xf32>
    %542 = vector.broadcast %534 : vector<256x1xf32> to vector<256x128xf32>
    %543 = arith.subf %530, %542 : vector<256x128xf32>
    %cst_225 = arith.constant 9.99999974E-6 : f32
    %544 = vector.broadcast %cst_225 : f32 to vector<256x1xf32>
    %545 = arith.addf %541, %544 : vector<256x1xf32>
    %546 = math.rsqrt %545 : vector<256x1xf32>
    %547 = vector.broadcast %546 : vector<256x1xf32> to vector<256x128xf32>
    %548 = arith.mulf %543, %547 : vector<256x128xf32>
    %c0_226 = arith.constant 0 : index
    %c0_227 = arith.constant 0 : index
    %549 = vector.load %arg8[%c0_226, %c0_227] : memref<1x128xf32, #tpu.memory_space<vmem>>, vector<1x128xf32>
    %550 = vector.broadcast %549 : vector<1x128xf32> to vector<256x128xf32>
    %551 = arith.mulf %548, %550 : vector<256x128xf32>
    %c0_228 = arith.constant 0 : index
    %c0_229 = arith.constant 0 : index
    %552 = vector.load %arg9[%c0_228, %c0_229] : memref<1x128xf32, #tpu.memory_space<vmem>>, vector<1x128xf32>
    %553 = vector.broadcast %552 : vector<1x128xf32> to vector<256x128xf32>
    %554 = arith.addf %551, %553 : vector<256x128xf32>
    %c0_230 = arith.constant 0 : index
    %c0_231 = arith.constant 0 : index
    %c0_232 = arith.constant 0 : index
    %555 = vector.load %arg1[%c0_230, %c0_231, %c0_232] : memref<8x32x128xf32, #tpu.memory_space<vmem>>, vector<8x32x128xf32>
    %556 = vector.shape_cast %555 : vector<8x32x128xf32> to vector<256x128xf32>
    %557 = arith.addf %554, %556 : vector<256x128xf32>
    %558 = vector.shape_cast %557 : vector<256x128xf32> to vector<8x32x128xf32>
    %c0_233 = arith.constant 0 : index
    %c0_234 = arith.constant 0 : index
    %c0_235 = arith.constant 0 : index
    %559 = vector.load %arg10[%c0_233, %c0_234, %c0_235] : memref<8x32x128xf32, #tpu.memory_space<vmem>>, vector<8x32x128xf32>
    tpu.vector_store %arg10[%c0_233, %c0_234, %c0_235], %558 {strides = array<i32>} : memref<8x32x128xf32, #tpu.memory_space<vmem>>, vector<8x32x128xf32>,
    return
  }
  func.func @transform_0(%arg0: i32) -> (i32, i32, i32) {
    %c0_i32 = arith.constant 0 : i32
    %c0_i32_0 = arith.constant 0 : i32
    %c0_i32_1 = arith.constant 0 : i32
    return %c0_i32, %arg0, %c0_i32_0 : i32, i32, i32
  }
  func.func @transform_1(%arg0: i32) -> (i32, i32) {
    %c0_i32 = arith.constant 0 : i32
    %c0_i32_0 = arith.constant 0 : i32
    %c0_i32_1 = arith.constant 0 : i32
    return %c0_i32, %c0_i32_0 : i32, i32
  }
  func.func @transform_2(%arg0: i32) -> (i32, i32) {
    %c0_i32 = arith.constant 0 : i32
    %c0_i32_0 = arith.constant 0 : i32
    %c0_i32_1 = arith.constant 0 : i32
    return %c0_i32, %c0_i32_0 : i32, i32
  }
  func.func @transform_3(%arg0: i32) -> (i32, i32) {
    %c0_i32 = arith.constant 0 : i32
    %c0_i32_0 = arith.constant 0 : i32
    %c0_i32_1 = arith.constant 0 : i32
    return %c0_i32, %c0_i32_0 : i32, i32
  }
  func.func @transform_4(%arg0: i32) -> (i32, i32) {
    %c0_i32 = arith.constant 0 : i32
    %c0_i32_0 = arith.constant 0 : i32
    %c0_i32_1 = arith.constant 0 : i32
    return %c0_i32, %c0_i32_0 : i32, i32
  }
  func.func @transform_5(%arg0: i32) -> (i32, i32) {
    %c0_i32 = arith.constant 0 : i32
    %c0_i32_0 = arith.constant 0 : i32
    %c0_i32_1 = arith.constant 0 : i32
    return %c0_i32, %c0_i32_0 : i32, i32
  }
  func.func @transform_6(%arg0: i32) -> (i32, i32) {
    %c0_i32 = arith.constant 0 : i32
    %c0_i32_0 = arith.constant 0 : i32
    %c0_i32_1 = arith.constant 0 : i32
    return %c0_i32, %c0_i32_0 : i32, i32
  }
  func.func @transform_7(%arg0: i32) -> (i32, i32) {
    %c0_i32 = arith.constant 0 : i32
    %c0_i32_0 = arith.constant 0 : i32
    %c0_i32_1 = arith.constant 0 : i32
    return %c0_i32, %c0_i32_0 : i32, i32
  }
  func.func @transform_8(%arg0: i32) -> (i32, i32) {
    %c0_i32 = arith.constant 0 : i32
    %c0_i32_0 = arith.constant 0 : i32
    %c0_i32_1 = arith.constant 0 : i32
    return %c0_i32, %c0_i32_0 : i32, i32
  }
  func.func @transform_9(%arg0: i32) -> (i32, i32, i32) {
    %c0_i32 = arith.constant 0 : i32
    %c0_i32_0 = arith.constant 0 : i32
    %c0_i32_1 = arith.constant 0 : i32
    return %c0_i32, %arg0, %c0_i32_0 : i32, i32, i32
  }
}

</mosaic_0001>

<bundles_post_ra>
// kernel: inter_chunk_rnn.1
= control target key start
LH: loop header
LB: loop body
LE: loop exit
PB: predicated region body
PF: predicated region fallthrough
CT: control target
= control target key end

     0   :  { %14 = vsyncpa [#allocation5], 0  ;;  %s12597_s0 = inlined_call_operand.hbm [shape: f32[8,32,128], index: 0, kind: input, shape index: {}]   ;;  %s12598_s1 = inlined_call_operand.hbm [shape: f32[128,1024], index: 1, kind: input, shape index: {}]   ;;  %s12599_s2 = inlined_call_operand.hbm [shape: f32[1,1024], index: 2, kind: input, shape index: {}]   ;;  %s12600_s3 = inlined_call_operand.hbm [shape: f32[128,512], index: 3, kind: input, shape index: {}]   ;;  %s12601_s4 = inlined_call_operand.hbm [shape: f32[128,512], index: 4, kind: input, shape index: {}]   ;;  %s12602_s5 = inlined_call_operand.hbm [shape: f32[256,128], index: 5, kind: input, shape index: {}]   ;;  %s12603_s6 = inlined_call_operand.hbm [shape: f32[1,128], index: 6, kind: input, shape index: {}]   ;;  %s12604_s7 = inlined_call_operand.hbm [shape: f32[1,128], index: 7, kind: input, shape index: {}]   ;;  %s12605_s8 = inlined_call_operand.hbm [shape: f32[1,128], index: 8, kind: input, shape index: {}]   ;;  %s12606_s9 = inlined_call_operand.hbm [shape: f32[8,32,128], index: 9, kind: output, shape index: {}]  }
   0x1   :  { %15 = vsyncpa [#allocation8], 0 }
   0x2   :  { %16 = vsyncpa [#allocation11], 0 }
   0x3   :  { %17 = vsyncpa [#allocation14], 0 }
   0x4   :  { %18 = vsyncpa [#allocation17], 0 }
   0x5   :  { %19 = vsyncpa [#allocation6], 0  ;;  %s9931_s30 = smov [#allocation7]   ;;  %s9699_s13 = scalar_lea.hbm %s12598_s1, 16384 }
   0x6   :  { %s37_s10 = sshll.u32 %s9931_s30, 4  ;;  %p9700_p0 = scmp.ne.s32.totalorder %s12598_s1, %s9699_s13  ;;  %s38_s10 = int_to_ptr.vmem [resolvable:$true] %s37_s10 }
   0x7   :  { %p9703_p1 = scmp.lt.u32.totalorder %s9699_s13, %s12598_s1 }
   0x9   :  { %p9705_p2 = pnand %p9703_p1, %p9700_p0 }
   0xb   :  { %9708 = shalt.err (!%p9705_p2)
}
   0xc   :  { %s9709_s18 = scalar_lea.vmem %s38_s10, 16384  ;;  %p9714_p4 = scmp.lt.s32.totalorder %s38_s10, %s38_s10 }
   0xd   :  { %p9710_p3 = scmp.ne.s32.totalorder %s38_s10, %s9709_s18  ;;  %p9715_p5 = scmp.lt.s32.totalorder %s9709_s18, %s9709_s18 }
   0xf   :  { %p9716_p6 = por %p9715_p5, %p9714_p4 }
  0x11   :  { %p9717_p7 = pnand %p9716_p6, %p9710_p3 }
  0x13   :  { %9720 = shalt.err (!%p9717_p7)
}
  0x14   :  { %s9932_s19 = smov 1024   ;;  %s9933_s20 = smov 64  }
  0x15   :  { %43 = dma.hbm_to_vmem [thread:$0]  %s12598_s1, 16384, %s38_s10, [#allocation8], %s9932_s19, %s9932_s19, %s9933_s20  }
  0x16   :  { %s9934_s23 = smov [#allocation10]   ;;  %s9721_s27 = scalar_lea.hbm %s12600_s3, 8192 }
  0x17   :  { %s59_s24 = sshll.u32 %s9934_s23, 4  ;;  %p9722_p8 = scmp.ne.s32.totalorder %s12600_s3, %s9721_s27  ;;  %s60_s24 = int_to_ptr.vmem [resolvable:$true] %s59_s24 }
  0x18   :  { %p9725_p9 = scmp.lt.u32.totalorder %s9721_s27, %s12600_s3 }
  0x1a   :  { %p9727_p10 = pnand %p9725_p9, %p9722_p8 }
  0x1c   :  { %9730 = shalt.err (!%p9727_p10)
}
  0x1d   :  { %s9731_s12 = scalar_lea.vmem %s60_s24, 8192  ;;  %p9736_p12 = scmp.lt.s32.totalorder %s60_s24, %s60_s24 }
  0x1e   :  { %p9732_p11 = scmp.ne.s32.totalorder %s60_s24, %s9731_s12  ;;  %p9737_p13 = scmp.lt.s32.totalorder %s9731_s12, %s9731_s12 }
  0x20   :  { %p9738_p0 = por %p9737_p13, %p9736_p12 }
  0x22   :  { %p9739_p1 = pnand %p9738_p0, %p9732_p11 }
  0x24   :  { %9742 = shalt.err (!%p9739_p1)
}
  0x25   :  { %s9935_s1 = smov 512   ;;  %s9936_s10 = smov 32  }
  0x26   :  { %65 = dma.hbm_to_vmem [thread:$0]  %s12600_s3, 8192, %s60_s24, [#allocation11], %s9935_s1, %s9935_s1, %s9936_s10  }
  0x27   :  { %s9937_s15 = smov [#allocation13]   ;;  %s9938_s17 = smov [#allocation16]  }
  0x28   :  { %s83_s16 = sshll.u32 %s9937_s15, 4  ;;  %s106_s18 = sshll.u32 %s9938_s17, 4  ;;  %s84_s16 = int_to_ptr.vmem [resolvable:$true] %s83_s16  ;;  %s10026_s18 = int_to_ptr.vmem [resolvable:$true] %s106_s18 }
  0x29   :  { %s9743_s21 = scalar_lea.hbm %s12602_s5, 4096 }
  0x2a   :  { %p9744_p2 = scmp.ne.s32.totalorder %s12602_s5, %s9743_s21  ;;  %p9747_p3 = scmp.lt.u32.totalorder %s9743_s21, %s12602_s5 }
  0x2c   :  { %p9749_p4 = pnand %p9747_p3, %p9744_p2 }
  0x2e   :  { %9752 = shalt.err (!%p9749_p4)
}
  0x2f   :  { %s9753_s3 = scalar_lea.vmem %s84_s16, 4096  ;;  %p9758_p6 = scmp.lt.s32.totalorder %s84_s16, %s84_s16 }
  0x30   :  { %p9754_p5 = scmp.ne.s32.totalorder %s84_s16, %s9753_s3  ;;  %p9759_p7 = scmp.lt.s32.totalorder %s9753_s3, %s9753_s3 }
  0x32   :  { %p9760_p8 = por %p9759_p7, %p9758_p6 }
  0x34   :  { %p9761_p9 = pnand %p9760_p8, %p9754_p5 }
  0x36   :  { %9764 = shalt.err (!%p9761_p9)
}
  0x37   :  { %s9939_s24 = smov 128   ;;  %s9940_s27 = smov 8  }
  0x38   :  { %89 = dma.hbm_to_vmem [thread:$0]  %s12602_s5, 4096, %s84_s16, [#allocation14], %s9939_s24, %s9939_s24, %s9940_s27  }
  0x39   :  { %s9765_s12 = scalar_lea.hbm %s12604_s7, 16 }
  0x3a   :  { %p9766_p10 = scmp.ne.s32.totalorder %s12604_s7, %s9765_s12  ;;  %p9769_p11 = scmp.lt.u32.totalorder %s9765_s12, %s12604_s7 }
  0x3c   :  { %p9771_p12 = pnand %p9769_p11, %p9766_p10 }
  0x3e   :  { %9774 = shalt.err (!%p9771_p12)
}
  0x3f   :  { %s9775_s19 = scalar_lea.vmem %s10026_s18, 16  ;;  %s9779_s5 = scalar_lea.vmem %s10026_s18, 32 }
  0x40   :  { %p9776_p13 = scmp.ne.s32.totalorder %s10026_s18, %s9775_s19  ;;  %p9780_p0 = scmp.lt.s32.totalorder %s10026_s18, %s10026_s18 }
  0x41   :  { %p9781_p1 = scmp.lt.s32.totalorder %s9779_s5, %s9775_s19 }
  0x43   :  { %p9782_p2 = por %p9781_p1, %p9780_p0 }
  0x45   :  { %p9783_p3 = pnand %p9782_p2, %p9776_p13 }
  0x47   :  { %9786 = shalt.err (!%p9783_p3)
}
  0x48   :  { %109 = dma.hbm_to_vmem [thread:$0]  %s12604_s7, 16, %s10026_s18, [#allocation17]  }
  0x49   :  { %s9941_s21 = smov [#allocation4]   ;;  %s9942_s23 = smov [#allocation9]  }
  0x4a   :  { %s25_s22 = sshll.u32 %s9941_s21, 4  ;;  %s50_s25 = sshll.u32 %s9942_s23, 4  ;;  %s26_s22 = int_to_ptr.vmem [resolvable:$true] %s25_s22  ;;  %s51_s25 = int_to_ptr.vmem [resolvable:$true] %s50_s25 }
  0x4b   :  { %s9787_s28 = scalar_lea.hbm %s12597_s0, 4096 }
  0x4c   :  { %p9788_p4 = scmp.ne.s32.totalorder %s12597_s0, %s9787_s28  ;;  %p9791_p5 = scmp.lt.u32.totalorder %s9787_s28, %s12597_s0 }
  0x4e   :  { %p9793_p6 = pnand %p9791_p5, %p9788_p4 }
  0x50   :  { %9796 = shalt.err (!%p9793_p6)
}
  0x51   :  { %s9797_s7 = scalar_lea.vmem %s26_s22, 4096  ;;  %p9802_p8 = scmp.lt.s32.totalorder %s26_s22, %s26_s22 }
  0x52   :  { %p9798_p7 = scmp.ne.s32.totalorder %s26_s22, %s9797_s7  ;;  %p9803_p9 = scmp.lt.s32.totalorder %s9797_s7, %s9797_s7 }
  0x54   :  { %p9804_p10 = por %p9803_p9, %p9802_p8 }
  0x56   :  { %p9805_p11 = pnand %p9804_p10, %p9798_p7 }
  0x58   :  { %9808 = shalt.err (!%p9805_p11)
}
  0x59   :  { %31 = dma.hbm_to_vmem [thread:$0]  %s12597_s0, 4096, %s26_s22, [#allocation5], %s9939_s24, %s9939_s24, %s9940_s27  }
  0x5a   :  { %s9809_s17 = scalar_lea.hbm %s12599_s2, 128 }
  0x5b   :  { %p9810_p12 = scmp.ne.s32.totalorder %s12599_s2, %s9809_s17  ;;  %p9813_p13 = scmp.lt.u32.totalorder %s9809_s17, %s12599_s2 }
  0x5d   :  { %p9815_p0 = pnand %p9813_p13, %p9810_p12 }
  0x5f   :  { %9818 = shalt.err (!%p9815_p0)
}
  0x60   :  { %s9819_s21 = scalar_lea.vmem %s51_s25, 128  ;;  %p9824_p2 = scmp.lt.s32.totalorder %s51_s25, %s51_s25 }
  0x61   :  { %p9820_p1 = scmp.ne.s32.totalorder %s51_s25, %s9819_s21  ;;  %p9825_p3 = scmp.lt.s32.totalorder %s9819_s21, %s9819_s21 }
  0x63   :  { %p9826_p4 = por %p9825_p3, %p9824_p2 }
  0x65   :  { %p9827_p5 = pnand %p9826_p4, %p9820_p1 }
  0x67   :  { %9830 = shalt.err (!%p9827_p5)
}
  0x68   :  { %53 = dma.hbm_to_vmem [thread:$0]  %s12599_s2, 128, %s51_s25, [#allocation8]  }
  0x69   :  { %s9943_s23 = smov [#allocation12]   ;;  %s9944_s3 = smov [#allocation15]  }
  0x6a   :  { %s71_s26 = sshll.u32 %s9943_s23, 4  ;;  %s96_s28 = sshll.u32 %s9944_s3, 4  ;;  %s72_s26 = int_to_ptr.vmem [resolvable:$true] %s71_s26  ;;  %s97_s28 = int_to_ptr.vmem [resolvable:$true] %s96_s28 }
  0x6b   :  { %s9831_s11 = scalar_lea.hbm %s12601_s4, 8192 }
  0x6c   :  { %p9832_p6 = scmp.ne.s32.totalorder %s12601_s4, %s9831_s11  ;;  %p9835_p7 = scmp.lt.u32.totalorder %s9831_s11, %s12601_s4 }
  0x6e   :  { %p9837_p8 = pnand %p9835_p7, %p9832_p6 }
  0x70   :  { %9840 = shalt.err (!%p9837_p8)
}
  0x71   :  { %s9841_s2 = scalar_lea.vmem %s72_s26, 8192  ;;  %p9846_p10 = scmp.lt.s32.totalorder %s72_s26, %s72_s26 }
  0x72   :  { %p9842_p9 = scmp.ne.s32.totalorder %s72_s26, %s9841_s2  ;;  %p9847_p11 = scmp.lt.s32.totalorder %s9841_s2, %s9841_s2 }
  0x74   :  { %p9848_p12 = por %p9847_p11, %p9846_p10 }
  0x76   :  { %p9849_p13 = pnand %p9848_p12, %p9842_p9 }
  0x78   :  { %9852 = shalt.err (!%p9849_p13)
}
  0x79   :  { %77 = dma.hbm_to_vmem [thread:$0]  %s12601_s4, 8192, %s72_s26, [#allocation11], %s9935_s1, %s9935_s1, %s9936_s10  }
  0x7a   :  { %s9853_s19 = scalar_lea.hbm %s12603_s6, 16 }
  0x7b   :  { %p9854_p0 = scmp.ne.s32.totalorder %s12603_s6, %s9853_s19  ;;  %p9857_p1 = scmp.lt.u32.totalorder %s9853_s19, %s12603_s6 }
  0x7d   :  { %p9859_p2 = pnand %p9857_p1, %p9854_p0 }
  0x7f   :  { %9862 = shalt.err (!%p9859_p2)
}
  0x80   :  { %s9863_s0 = scalar_lea.vmem %s97_s28, 16  ;;  %s9867_s22 = scalar_lea.vmem %s97_s28, 32 }
  0x81   :  { %p9864_p3 = scmp.ne.s32.totalorder %s97_s28, %s9863_s0  ;;  %p9868_p4 = scmp.lt.s32.totalorder %s97_s28, %s97_s28 }
  0x82   :  { %p9869_p5 = scmp.lt.s32.totalorder %s9867_s22, %s9863_s0 }
  0x84   :  { %p9870_p6 = por %p9869_p5, %p9868_p4 }
  0x86   :  { %p9871_p7 = pnand %p9870_p6, %p9864_p3 }
  0x88   :  { %9874 = shalt.err (!%p9871_p7)
}
  0x89   :  { %99 = dma.hbm_to_vmem [thread:$0]  %s12603_s6, 16, %s97_s28, [#allocation14]  }
  0x8a   :  { %s9945_s10 = smov [#allocation18]   ;;  %s9875_s29 = scalar_lea.hbm %s12605_s8, 16 }
  0x8b   :  { %s116_s23 = sshll.u32 %s9945_s10, 4  ;;  %p9876_p8 = scmp.ne.s32.totalorder %s12605_s8, %s9875_s29  ;;  %s117_s23 = int_to_ptr.vmem [resolvable:$true] %s116_s23 }
  0x8c   :  { %p9879_p9 = scmp.lt.u32.totalorder %s9875_s29, %s12605_s8 }
  0x8e   :  { %p9881_p10 = pnand %p9879_p9, %p9876_p8 }
  0x90   :  { %9884 = shalt.err (!%p9881_p10)
}
  0x91   :  { %s9885_s18 = scalar_lea.vmem %s117_s23, 16  ;;  %s9889_s6 = scalar_lea.vmem %s117_s23, 32 }
  0x92   :  { %p9886_p11 = scmp.ne.s32.totalorder %s117_s23, %s9885_s18  ;;  %p9890_p12 = scmp.lt.s32.totalorder %s117_s23, %s117_s23 }
  0x93   :  { %p9891_p13 = scmp.lt.s32.totalorder %s9889_s6, %s9885_s18 }
  0x95   :  { %p9892_p0 = por %p9891_p13, %p9890_p12 }
  0x97   :  { %p9893_p1 = pnand %p9892_p0, %p9886_p11 }
  0x99   :  { %9896 = shalt.err (!%p9893_p1)
}
  0x9a   :  { %119 = dma.hbm_to_vmem [thread:$0]  %s12605_s8, 16, %s117_s23, [#allocation17]  }
  0x9b   :  { %9919 = dma.done.wait [#allocation5], 4096  }
  0x9c   :  { %9920 = vsyncadd [#allocation5], 4294963200 }
  0x9d   :  { %9921 = dma.done.wait [#allocation8], 16512  }
  0x9e   :  { %9922 = vsyncadd [#allocation8], 4294950784 }
  0x9f   :  { %9923 = dma.done.wait [#allocation11], 16384  }
  0xa0   :  { %9924 = vsyncadd [#allocation11], 4294950912 }
  0xa1   :  { %9925 = dma.done.wait [#allocation14], 4112  }
  0xa2   :  { %9926 = vsyncadd [#allocation14], 4294963184 }
  0xa3   :  { %9927 = dma.done.wait [#allocation17], 32  }
  0xa4   :  { %9928 = vsyncadd [#allocation17], 4294967264  ;;  %v12607_v0 = vmov 0.0   ;;  %v180_v1 = vld [vmem:[#allocation7 + $0x8] sm:$0xff]  ;;  %v179_v3 = vld [vmem:[#allocation7] sm:$0xff]  ;;  %s9948_s8 = smov [#allocation19]  }
  0xa5   :  { %473 = vmatprep.mubr.f32.mxu1 %v12607_v0  ;;  %413 = vmatprep.mubr.f32.mxu0 %v12607_v0  ;;  %v188_v2 = vld [vmem:[#allocation7 + $0x48] sm:$0xff]  ;;  %v187_v5 = vld [vmem:[#allocation7 + $0x40] sm:$0xff]  ;;  %v182_v48 = vld [vmem:[#allocation7 + $0x18] sm:$0xff]  ;;  %s7211_s2 = sshll.u32 %s9948_s8, 4  ;;  %s7212_s2 = int_to_ptr.vmem [resolvable:$true] %s7211_s2 }
  0xa6   :  { %v7230_v4 = vpack.c.bf16 %v188_v2, %v180_v1  ;;  %v196_v6 = vld [vmem:[#allocation7 + $0x88] sm:$0xff]  ;;  %v7232_v8 = vpack.c.bf16 %v187_v5, %v179_v3  ;;  %v195_v10 = vld [vmem:[#allocation7 + $0x80] sm:$0xff]  ;;  %v190_v49 = vld [vmem:[#allocation7 + $0x58] sm:$0xff]  ;;  %s9897_s25 = scalar_lea.vmem %s7212_s2, 4096  ;;  %p9902_p3 = scmp.lt.s32.totalorder %s7212_s2, %s7212_s2 }
  0xa7   :  { %v204_v7 = vld [vmem:[#allocation7 + $0xc8] sm:$0xff]  ;;  %v203_v11 = vld [vmem:[#allocation7 + $0xc0] sm:$0xff]  ;;  %v7262_v53 = vpack.c.bf16 %v190_v49, %v182_v48  ;;  %v181_v54 = vld [vmem:[#allocation7 + $0x10] sm:$0xff]  ;;  %p9898_p2 = scmp.ne.s32.totalorder %s7212_s2, %s9897_s25  ;;  %p9903_p4 = scmp.lt.s32.totalorder %s9897_s25, %s9897_s25 }
  0xa8   :  { %v7234_v9 = vpack.c.bf16 %v204_v7, %v196_v6  ;;  %v212_v12 = vld [vmem:[#allocation7 + $0x108] sm:$0xff]  ;;  %8430 = vmatprep.subr.bf16.mxu1 %v7230_v4  ;;  %7231 = vmatprep.subr.bf16.mxu0 %v7230_v4  ;;  %v7236_v14 = vpack.c.bf16 %v203_v11, %v195_v10  ;;  %v211_v16 = vld [vmem:[#allocation7 + $0x100] sm:$0xff]  ;;  %v189_v55 = vld [vmem:[#allocation7 + $0x50] sm:$0xff] }
  0xa9   :  { %v220_v13 = vld [vmem:[#allocation7 + $0x148] sm:$0xff]  ;;  %8438 = vmatpush1.bf16.msra.mxu1 %v7232_v8  ;;  %7233 = vmatpush1.bf16.msra.mxu0 %v7232_v8  ;;  %v219_v17 = vld [vmem:[#allocation7 + $0x140] sm:$0xff]  ;;  %v198_v59 = vld [vmem:[#allocation7 + $0x98] sm:$0xff]  ;;  %v7264_v2 = vpack.c.bf16 %v189_v55, %v181_v54  ;;  %p9904_p5 = por %p9903_p4, %p9902_p3 }
  0xaa   :  { %8431 = vmatprep.subr.bf16.mxu1 %v7234_v9  ;;  %7235 = vmatprep.subr.bf16.mxu0 %v7234_v9  ;;  %v7238_v15 = vpack.c.bf16 %v220_v13, %v212_v12  ;;  %v228_v18 = vld [vmem:[#allocation7 + $0x188] sm:$0xff]  ;;  %v7240_v20 = vpack.c.bf16 %v219_v17, %v211_v16  ;;  %v227_v22 = vld [vmem:[#allocation7 + $0x180] sm:$0xff]  ;;  %v206_v60 = vld [vmem:[#allocation7 + $0xd8] sm:$0xff] }
  0xab   :  { %v236_v19 = vld [vmem:[#allocation7 + $0x1c8] sm:$0xff]  ;;  %v235_v23 = vld [vmem:[#allocation7 + $0x1c0] sm:$0xff]  ;;  %v10129_v63 = vld [vmem:[#allocation4 + $0x50] sm:$0xff]  ;;  %v7266_v6 = vpack.c.bf16 %v206_v60, %v198_v59  ;;  %p9905_p6 = pnand %p9904_p5, %p9898_p2 }
  0xac   :  { %v7242_v21 = vpack.c.bf16 %v236_v19, %v228_v18  ;;  %v244_v24 = vld [vmem:[#allocation7 + $0x208] sm:$0xff]  ;;  %v7244_v26 = vpack.c.bf16 %v235_v23, %v227_v22  ;;  %v243_v28 = vld [vmem:[#allocation7 + $0x200] sm:$0xff]  ;;  %v197_v4 = vld [vmem:[#allocation7 + $0x90] sm:$0xff] }
  0xad   :  { %8439 = vmatpush1.bf16.msra.mxu1 %v7236_v14  ;;  %7237 = vmatpush1.bf16.msra.mxu0 %v7236_v14  ;;  %v252_v25 = vld [vmem:[#allocation7 + $0x248] sm:$0xff]  ;;  %v251_v29 = vld [vmem:[#allocation7 + $0x240] sm:$0xff]  ;;  %v205_v5 = vld [vmem:[#allocation7 + $0xd0] sm:$0xff] }
  0xae   :  { %8432 = vmatprep.subr.bf16.mxu1 %v7238_v15  ;;  %7239 = vmatprep.subr.bf16.mxu0 %v7238_v15  ;;  %v7246_v27 = vpack.c.bf16 %v252_v25, %v244_v24  ;;  %v260_v30 = vld [vmem:[#allocation7 + $0x288] sm:$0xff]  ;;  %v7248_v32 = vpack.c.bf16 %v251_v29, %v243_v28  ;;  %v259_v34 = vld [vmem:[#allocation7 + $0x280] sm:$0xff]  ;;  %v214_v12 = vld [vmem:[#allocation7 + $0x118] sm:$0xff]  ;;  %v7268_v16 = vpack.c.bf16 %v205_v5, %v197_v4 }
  0xaf   :  { %v268_v31 = vld [vmem:[#allocation7 + $0x2c8] sm:$0xff]  ;;  %v267_v35 = vld [vmem:[#allocation7 + $0x2c0] sm:$0xff]  ;;  %v222_v13 = vld [vmem:[#allocation7 + $0x158] sm:$0xff] }
  0xb0   :  { %v7250_v33 = vpack.c.bf16 %v268_v31, %v260_v30  ;;  %v276_v36 = vld [vmem:[#allocation7 + $0x308] sm:$0xff]  ;;  %v7252_v38 = vpack.c.bf16 %v267_v35, %v259_v34  ;;  %v275_v40 = vld [vmem:[#allocation7 + $0x300] sm:$0xff]  ;;  %v10136_v14 = vld [vmem:[#allocation4 + $0x58] sm:$0xff]  ;;  %v7270_v22 = vpack.c.bf16 %v222_v13, %v214_v12 }
  0xb1   :  { %8440 = vmatpush1.bf16.msra.mxu1 %v7240_v20  ;;  %7241 = vmatpush1.bf16.msra.mxu0 %v7240_v20  ;;  %v284_v37 = vld [vmem:[#allocation7 + $0x348] sm:$0xff]  ;;  %v283_v41 = vld [vmem:[#allocation7 + $0x340] sm:$0xff]  ;;  %v213_v23 = vld [vmem:[#allocation7 + $0x110] sm:$0xff] }
  0xb2   :  { %8433 = vmatprep.subr.bf16.mxu1 %v7242_v21  ;;  %7243 = vmatprep.subr.bf16.mxu0 %v7242_v21  ;;  %v7254_v39 = vpack.c.bf16 %v284_v37, %v276_v36  ;;  %v292_v42 = vld [vmem:[#allocation7 + $0x388] sm:$0xff]  ;;  %v7256_v44 = vpack.c.bf16 %v283_v41, %v275_v40  ;;  %v291_v46 = vld [vmem:[#allocation7 + $0x380] sm:$0xff]  ;;  %v221_v24 = vld [vmem:[#allocation7 + $0x150] sm:$0xff] }
  0xb3   :  { %v300_v43 = vld [vmem:[#allocation7 + $0x3c8] sm:$0xff]  ;;  %v299_v47 = vld [vmem:[#allocation7 + $0x3c0] sm:$0xff]  ;;  %v10147_v29 = vld [vmem:[#allocation4 + $0x10] sm:$0xff] }
  0xb4   :  { %v7258_v45 = vpack.c.bf16 %v300_v43, %v292_v42  ;;  %v184_v50 = vld [vmem:[#allocation7 + $0x28] sm:$0xff]  ;;  %v7260_v52 = vpack.c.bf16 %v299_v47, %v291_v46  ;;  %v183_v57 = vld [vmem:[#allocation7 + $0x20] sm:$0xff]  ;;  %v229_v37 = vld [vmem:[#allocation7 + $0x190] sm:$0xff] }
  0xb5   :  { %8441 = vmatpush1.bf16.msra.mxu1 %v7244_v26  ;;  %7245 = vmatpush1.bf16.msra.mxu0 %v7244_v26  ;;  %v192_v51 = vld [vmem:[#allocation7 + $0x68] sm:$0xff]  ;;  %v191_v58 = vld [vmem:[#allocation7 + $0x60] sm:$0xff]  ;;  %v230_v26 = vld [vmem:[#allocation7 + $0x198] sm:$0xff] }
  0xb6   :  { %8434 = vmatprep.subr.bf16.mxu1 %v7246_v27  ;;  %7247 = vmatprep.subr.bf16.mxu0 %v7246_v27  ;;  %v7294_v56 = vpack.c.bf16 %v192_v51, %v184_v50  ;;  %v200_v61 = vld [vmem:[#allocation7 + $0xa8] sm:$0xff]  ;;  %v10131_v1 = vld [vmem:[#allocation4] sm:$0xff]  ;;  %v7296_v3 = vpack.c.bf16 %v191_v58, %v183_v57  ;;  %v238_v27 = vld [vmem:[#allocation7 + $0x1d8] sm:$0xff] }
  0xb7   :  { %v208_v62 = vld [vmem:[#allocation7 + $0xe8] sm:$0xff]  ;;  %v199_v8 = vld [vmem:[#allocation7 + $0xa0] sm:$0xff]  ;;  %v7274_v36 = vpack.c.bf16 %v238_v27, %v230_v26  ;;  %v246_v40 = vld [vmem:[#allocation7 + $0x218] sm:$0xff] }
  0xb8   :  { %v7298_v7 = vpack.c.bf16 %v208_v62, %v200_v61  ;;  %v207_v9 = vld [vmem:[#allocation7 + $0xe0] sm:$0xff]  ;;  %v216_v10 = vld [vmem:[#allocation7 + $0x128] sm:$0xff]  ;;  %v254_v41 = vld [vmem:[#allocation7 + $0x258] sm:$0xff] }
  0xb9   :  { %8442 = vmatpush1.bf16.msra.mxu1 %v7248_v32  ;;  %7249 = vmatpush1.bf16.msra.mxu0 %v7248_v32  ;;  %v224_v11 = vld [vmem:[#allocation7 + $0x168] sm:$0xff]  ;;  %v7300_v17 = vpack.c.bf16 %v207_v9, %v199_v8  ;;  %v215_v18 = vld [vmem:[#allocation7 + $0x120] sm:$0xff]  ;;  %v10155_v43 = vld [vmem:[#allocation4 + $0x18] sm:$0xff]  ;;  %v7278_v50 = vpack.c.bf16 %v254_v41, %v246_v40 }
  0xba   :  { %8435 = vmatprep.subr.bf16.mxu1 %v7250_v33  ;;  %7251 = vmatprep.subr.bf16.mxu0 %v7250_v33  ;;  %v10138_v15 = vld [vmem:[#allocation4 + $0x8] sm:$0xff]  ;;  %v223_v19 = vld [vmem:[#allocation7 + $0x160] sm:$0xff]  ;;  %v7302_v20 = vpack.c.bf16 %v224_v11, %v216_v10  ;;  %v7272_v33 = vpack.c.bf16 %v221_v24, %v213_v23  ;;  %v245_v51 = vld [vmem:[#allocation7 + $0x210] sm:$0xff] }
  0xbb   :  { %v232_v21 = vld [vmem:[#allocation7 + $0x1a8] sm:$0xff]  ;;  %v10145_v28 = vld [vmem:[#allocation4 + $0x60] sm:$0xff]  ;;  %v7304_v30 = vpack.c.bf16 %v223_v19, %v215_v18  ;;  %v262_v54 = vld [vmem:[#allocation7 + $0x298] sm:$0xff] }
  0xbc   :  { %v240_v25 = vld [vmem:[#allocation7 + $0x1e8] sm:$0xff]  ;;  %v231_v31 = vld [vmem:[#allocation7 + $0x1a0] sm:$0xff]  ;;  %v270_v55 = vld [vmem:[#allocation7 + $0x2d8] sm:$0xff] }
  0xbd   :  { %8443 = vmatpush1.bf16.msra.mxu1 %v7252_v38  ;;  %7253 = vmatpush1.bf16.msra.mxu0 %v7252_v38  ;;  %v239_v32 = vld [vmem:[#allocation7 + $0x1e0] sm:$0xff]  ;;  %v7306_v34 = vpack.c.bf16 %v240_v25, %v232_v21  ;;  %v248_v35 = vld [vmem:[#allocation7 + $0x228] sm:$0xff]  ;;  %v237_v38 = vld [vmem:[#allocation7 + $0x1d0] sm:$0xff] }
  0xbe   :  { %8436 = vmatprep.subr.bf16.mxu1 %v7254_v39  ;;  %7255 = vmatprep.subr.bf16.mxu0 %v7254_v39  ;;  %v256_v39 = vld [vmem:[#allocation7 + $0x268] sm:$0xff]  ;;  %v255_v46 = vld [vmem:[#allocation7 + $0x260] sm:$0xff]  ;;  %v7276_v47 = vpack.c.bf16 %v237_v38, %v229_v37  ;;  %v261_v4 = vld [vmem:[#allocation7 + $0x290] sm:$0xff] }
  0xbf   :  { %v10153_v42 = vld [vmem:[#allocation4 + $0x68] sm:$0xff]  ;;  %v7310_v48 = vpack.c.bf16 %v256_v39, %v248_v35  ;;  %v10163_v57 = vld [vmem:[#allocation4 + $0x20] sm:$0xff]  ;;  %v269_v5 = vld [vmem:[#allocation7 + $0x2d0] sm:$0xff] }
  0xc0   :  { %v264_v49 = vld [vmem:[#allocation7 + $0x2a8] sm:$0xff]  ;;  %v263_v59 = vld [vmem:[#allocation7 + $0x2a0] sm:$0xff]  ;;  %v286_v8 = vld [vmem:[#allocation7 + $0x358] sm:$0xff] }
  0xc1   :  { %8444 = vmatpush1.bf16.msra.mxu1 %v7256_v44  ;;  %7257 = vmatpush1.bf16.msra.mxu0 %v7256_v44  ;;  %v7308_v44 = vpack.c.bf16 %v239_v32, %v231_v31  ;;  %v271_v60 = vld [vmem:[#allocation7 + $0x2e0] sm:$0xff]  ;;  %v10169_v9 = vld [vmem:[#allocation4 + $0x78] sm:$0xff]  ;;  %v10171_v10 = vld [vmem:[#allocation4 + $0x28] sm:$0xff] }
  0xc2   :  { %8437 = vmatprep.subr.bf16.mxu1 %v7258_v45  ;;  %7259 = vmatprep.subr.bf16.mxu0 %v7258_v45  ;;  %v247_v45 = vld [vmem:[#allocation7 + $0x220] sm:$0xff]  ;;  %v7316_v11 = vpack.c.bf16 %v271_v60, %v263_v59  ;;  %v296_v18 = vld [vmem:[#allocation7 + $0x3a8] sm:$0xff]  ;;  %v285_v21 = vld [vmem:[#allocation7 + $0x350] sm:$0xff] }
  0xc3   :  { %v7312_v58 = vpack.c.bf16 %v255_v46, %v247_v45  ;;  %v279_v12 = vld [vmem:[#allocation7 + $0x320] sm:$0xff]  ;;  %v294_v23 = vld [vmem:[#allocation7 + $0x398] sm:$0xff]  ;;  %v10179_v26 = vld [vmem:[#allocation4 + $0x30] sm:$0xff] }
  0xc4   :  { %v287_v13 = vld [vmem:[#allocation7 + $0x360] sm:$0xff]  ;;  %v302_v24 = vld [vmem:[#allocation7 + $0x3d8] sm:$0xff]  ;;  %v293_v35 = vld [vmem:[#allocation7 + $0x390] sm:$0xff] }
  0xc5   :  { %8445 = vmatpush1.bf16.msra.mxu1 %v7260_v52  ;;  %7261 = vmatpush1.bf16.msra.mxu0 %v7260_v52  ;;  %v253_v52 = vld [vmem:[#allocation7 + $0x250] sm:$0xff]  ;;  %v10177_v25 = vld [vmem:[#allocation4 + $0x80] sm:$0xff]  ;;  %v7320_v27 = vpack.c.bf16 %v287_v13, %v279_v12  ;;  %v186_v37 = vld [vmem:[#allocation7 + $0x38] sm:$0xff] }
  0xc6   :  { %7263 = vmatprep.subr.bf16.mxu1 %v7262_v53  ;;  %7295 = vmatprep.subr.bf16.mxu0 %v7294_v56  ;;  %v272_v53 = vld [vmem:[#allocation7 + $0x2e8] sm:$0xff]  ;;  %v10161_v56 = vld [vmem:[#allocation4 + $0x70] sm:$0xff]  ;;  %v7280_v61 = vpack.c.bf16 %v253_v52, %v245_v51  ;;  %v303_v31 = vld [vmem:[#allocation7 + $0x3e0] sm:$0xff] }
  0xc7   :  { %v7314_v62 = vpack.c.bf16 %v272_v53, %v264_v49  ;;  %v194_v38 = vld [vmem:[#allocation7 + $0x78] sm:$0xff]  ;;  %v1634_v39 = vld [vmem:[#allocation10 + $0x8] sm:$0xff]  ;;  %v10185_v41 = vld [vmem:[#allocation4 + $0x88] sm:$0xff] }
  0xc8   :  { %474 = vmatmul.mubr.f32.vlgmr.msra.gmra.mrb[0].mxu1 %v10129_v63  ;;  %414 = vmatmul.mubr.f32.vlgmr.msra.gmra.mrb[0].mxu0 %v10131_v1  ;;  %v1638_v40 = vld [vmem:[#allocation10 + $0x28] sm:$0xff]  ;;  %v10204_v51 = vld [vmem:[#allocation4 + $0x98] sm:$0xff]  ;;  %v10206_v52 = vld [vmem:[#allocation4 + $0x48] sm:$0xff] }
  0xc9   :  { %7265 = vmatpush1.bf16.msra.mxu1 %v7264_v2  ;;  %479 = vmatprep.mubr.f32.mxu1 %v12607_v0  ;;  %v280_v2 = vld [vmem:[#allocation7 + $0x328] sm:$0xff]  ;;  %v10195_v49 = vld [vmem:[#allocation4 + $0x90] sm:$0xff]  ;;  %v10211_v59 = vld [vmem:[#allocation4 + $0xa0] sm:$0xff] }
  0xca   :  { %419 = vmatprep.mubr.f32.mxu0 %v12607_v0  ;;  %7297 = vmatpush1.bf16.msra.mxu0 %v7296_v3  ;;  %v7282_v3 = vpack.c.bf16 %v270_v55, %v262_v54  ;;  %v1633_v53 = vld [vmem:[#allocation10] sm:$0xff]  ;;  %v1642_v55 = vld [vmem:[#allocation10 + $0x48] sm:$0xff] }
  0xcb   :  { %7267 = vmatprep.subr.bf16.mxu1 %v7266_v6  ;;  %7299 = vmatprep.subr.bf16.mxu0 %v7298_v7  ;;  %v288_v6 = vld [vmem:[#allocation7 + $0x368] sm:$0xff]  ;;  %v278_v7 = vld [vmem:[#allocation7 + $0x318] sm:$0xff]  ;;  %v1658_v12 = vld [vmem:[#allocation10 + $0xc8] sm:$0xff] }
  0xcc   :  { %480 = vmatmul.mubr.f32.gmra.mrb[2].mxu1 %v10136_v14  ;;  %420 = vmatmul.mubr.f32.gmra.mrb[2].mxu0 %v10138_v15  ;;  %v7286_v19 = vpack.c.bf16 %v286_v8, %v278_v7  ;;  %v1637_v54 = vld [vmem:[#allocation10 + $0x20] sm:$0xff]  ;;  %v1662_v13 = vld [vmem:[#allocation10 + $0xe8] sm:$0xff] }
  0xcd   :  { %485 = vmatprep.mubr.f32.mxu1 %v12607_v0  ;;  %425 = vmatprep.mubr.f32.mxu0 %v12607_v0  ;;  %v10214_v60 = vpack.c.bf16 %v1637_v54, %v1633_v53  ;;  %v1649_v8 = vld [vmem:[#allocation10 + $0x80] sm:$0xff] }
  0xce   :  { %7269 = vmatpush1.bf16.msra.mxu1 %v7268_v16  ;;  %7301 = vmatpush1.bf16.msra.mxu0 %v7300_v17  ;;  %v7284_v16 = vpack.c.bf16 %v269_v5, %v261_v4  ;;  %v7318_v17 = vpack.c.bf16 %v288_v6, %v280_v2  ;;  %v1645_v2 = vld [vmem:[#allocation10 + $0x60] sm:$0xff]  ;;  %v1654_v4 = vld [vmem:[#allocation10 + $0xa8] sm:$0xff] }
  0xcf   :  { %7303 = vmatprep.subr.bf16.mxu0 %v7302_v20  ;;  %7271 = vmatprep.subr.bf16.mxu1 %v7270_v22  ;;  %v277_v20 = vld [vmem:[#allocation7 + $0x310] sm:$0xff]  ;;  %v304_v22 = vld [vmem:[#allocation7 + $0x3e8] sm:$0xff]  ;;  %12753 = vst [vmem:[#allocation27_spill] sm:$0xff] %v10214_v60 }
  0xd0   :  { %486 = vmatmul.mubr.f32.gmra.mrb[4].mxu1 %v10145_v28  ;;  %426 = vmatmul.mubr.f32.gmra.mrb[4].mxu0 %v10147_v29  ;;  %v7288_v32 = vpack.c.bf16 %v285_v21, %v277_v20  ;;  %v10221_v5 = vld [vmem:[#allocation4 + $0xa8] sm:$0xff]  ;;  %v1666_v21 = vld [vmem:[#allocation10 + $0x108] sm:$0xff] }
  0xd1   :  { %491 = vmatprep.mubr.f32.mxu1 %v12607_v0  ;;  %431 = vmatprep.mubr.f32.mxu0 %v12607_v0  ;;  %v1661_v20 = vld [vmem:[#allocation10 + $0xe0] sm:$0xff] }
  0xd2   :  { %7305 = vmatpush1.bf16.msra.mxu0 %v7304_v30  ;;  %7273 = vmatpush1.bf16.msra.mxu1 %v7272_v33  ;;  %v295_v30 = vld [vmem:[#allocation7 + $0x3a0] sm:$0xff]  ;;  %v7322_v33 = vpack.c.bf16 %v304_v22, %v296_v18  ;;  %v10240_v18 = vpack.c.bf16 %v1662_v13, %v1658_v12  ;;  %v1670_v22 = vld [vmem:[#allocation10 + $0x128] sm:$0xff]  ;;  %v1681_v53 = vld [vmem:[#allocation10 + $0x180] sm:$0xff] }
  0xd3   :  { %7307 = vmatprep.subr.bf16.mxu0 %v7306_v34  ;;  %7275 = vmatprep.subr.bf16.mxu1 %v7274_v36  ;;  %v7290_v34 = vpack.c.bf16 %v302_v24, %v294_v23  ;;  %v301_v36 = vld [vmem:[#allocation7 + $0x3d0] sm:$0xff]  ;;  %v7324_v45 = vpack.c.bf16 %v303_v31, %v295_v30  ;;  %v10245_v23 = vld [vmem:[#allocation4 + $0xb8] sm:$0xff]  ;;  %v1665_v30 = vld [vmem:[#allocation10 + $0x100] sm:$0xff] }
  0xd4   :  { %492 = vmatmul.mubr.f32.gmra.mrb[6].mxu1 %v10153_v42  ;;  %432 = vmatmul.mubr.f32.gmra.mrb[6].mxu0 %v10155_v43  ;;  %v7292_v46 = vpack.c.bf16 %v301_v36, %v293_v35  ;;  %12758 = vst [vmem:[#allocation32_spill] sm:$0xff] %v10240_v18  ;;  %v1669_v31 = vld [vmem:[#allocation10 + $0x120] sm:$0xff]  ;;  %v10303_v13 = vld [vmem:[#allocation4 + $0xe0] sm:$0xff] }
  0xd5   :  { %497 = vmatprep.mubr.f32.mxu1 %v12607_v0  ;;  %437 = vmatprep.mubr.f32.mxu0 %v12607_v0  ;;  %v10261_v35 = vpack.c.bf16 %v1669_v31, %v1665_v30  ;;  %v1685_v54 = vld [vmem:[#allocation10 + $0x1a0] sm:$0xff]  ;;  %v193_v30 = vld [vmem:[#allocation7 + $0x70] sm:$0xff]  ;;  %v202_v31 = vld [vmem:[#allocation7 + $0xb8] sm:$0xff] }
  0xd6   :  { %7309 = vmatpush1.bf16.msra.mxu0 %v7308_v44  ;;  %7277 = vmatpush1.bf16.msra.mxu1 %v7276_v47  ;;  %v10187_v44 = vld [vmem:[#allocation4 + $0x38] sm:$0xff]  ;;  %v7326_v47 = vpack.c.bf16 %v194_v38, %v186_v37  ;;  %v1673_v37 = vld [vmem:[#allocation10 + $0x140] sm:$0xff] }
  0xd7   :  { %7311 = vmatprep.subr.bf16.mxu0 %v7310_v48  ;;  %7279 = vmatprep.subr.bf16.mxu1 %v7278_v50  ;;  %v10189_v48 = vpack.c.bf16 %v1638_v40, %v1634_v39  ;;  %v10197_v50 = vld [vmem:[#allocation4 + $0x40] sm:$0xff]  ;;  %12761 = vst [vmem:[#allocation35_spill] sm:$0xff] %v10261_v35  ;;  %v1677_v38 = vld [vmem:[#allocation10 + $0x160] sm:$0xff]  ;;  %v1682_v39 = vld [vmem:[#allocation10 + $0x188] sm:$0xff] }
  0xd8   :  { %498 = vmatmul.mubr.f32.gmra.mrb[8].mxu1 %v10161_v56  ;;  %438 = vmatmul.mubr.f32.gmra.mrb[8].mxu0 %v10163_v57  ;;  %v1686_v40 = vld [vmem:[#allocation10 + $0x1a8] sm:$0xff] }
  0xd9   :  { %503 = vmatprep.mubr.f32.mxu1 %v12607_v0  ;;  %443 = vmatprep.mubr.f32.mxu0 %v12607_v0  ;;  %12752 = vst [vmem:[#allocation26_spill] sm:$0xff] %v10189_v48 }
  0xda   :  { %7313 = vmatpush1.bf16.msra.mxu0 %v7312_v58  ;;  %7281 = vmatpush1.bf16.msra.mxu1 %v7280_v61  ;;  %v1646_v58 = vld [vmem:[#allocation10 + $0x68] sm:$0xff] }
  0xdb   :  { %7315 = vmatprep.subr.bf16.mxu0 %v7314_v62  ;;  %7283 = vmatprep.subr.bf16.mxu1 %v7282_v3  ;;  %v10216_v61 = vpack.c.bf16 %v1646_v58, %v1642_v55  ;;  %v1641_v62 = vld [vmem:[#allocation10 + $0x40] sm:$0xff]  ;;  %v1650_v3 = vld [vmem:[#allocation10 + $0x88] sm:$0xff] }
  0xdc   :  { %504 = vmatmul.mubr.f32.gmra.mrb[10].mxu1 %v10169_v9  ;;  %444 = vmatmul.mubr.f32.gmra.mrb[10].mxu0 %v10171_v10  ;;  %v10225_v6 = vpack.c.bf16 %v1645_v2, %v1641_v62  ;;  %v10228_v7 = vpack.c.bf16 %v1654_v4, %v1650_v3  ;;  %v1690_v55 = vld [vmem:[#allocation10 + $0x1c8] sm:$0xff]  ;;  %v10285_v2 = vpack.c.bf16 %v1685_v54, %v1681_v53  ;;  %v1689_v4 = vld [vmem:[#allocation10 + $0x1c0] sm:$0xff]  ;;  %v226_v53 = vld [vmem:[#allocation7 + $0x178] sm:$0xff] }
  0xdd   :  { %509 = vmatprep.mubr.f32.mxu1 %v12607_v0  ;;  %449 = vmatprep.mubr.f32.mxu0 %v12607_v0  ;;  %12754 = vst [vmem:[#allocation28_spill] sm:$0xff] %v10216_v61  ;;  %v1694_v58 = vld [vmem:[#allocation10 + $0x1e8] sm:$0xff] }
  0xde   :  { %7317 = vmatpush1.bf16.msra.mxu0 %v7316_v11  ;;  %7285 = vmatpush1.bf16.msra.mxu1 %v7284_v16  ;;  %12755 = vst [vmem:[#allocation29_spill] sm:$0xff] %v10225_v6  ;;  %12756 = vst [vmem:[#allocation30_spill] sm:$0xff] %v10228_v7  ;;  %v1653_v11 = vld [vmem:[#allocation10 + $0xa0] sm:$0xff]  ;;  %v10233_v16 = vld [vmem:[#allocation4 + $0xb0] sm:$0xff]  ;;  %v10288_v3 = vpack.c.bf16 %v1694_v58, %v1690_v55 }
  0xdf   :  { %7319 = vmatprep.subr.bf16.mxu0 %v7318_v17  ;;  %7287 = vmatprep.subr.bf16.mxu1 %v7286_v19  ;;  %v10237_v17 = vpack.c.bf16 %v1653_v11, %v1649_v8  ;;  %v1657_v19 = vld [vmem:[#allocation10 + $0xc0] sm:$0xff]  ;;  %v10281_v62 = vld [vmem:[#allocation4 + $0xd0] sm:$0xff]  ;;  %12765 = vst [vmem:[#allocation39_spill] sm:$0xff] %v10285_v2  ;;  %v10293_v11 = vld [vmem:[#allocation4 + $0xd8] sm:$0xff] }
  0xe0   :  { %510 = vmatmul.mubr.f32.gmra.mrb[12].mxu1 %v10177_v25  ;;  %450 = vmatmul.mubr.f32.gmra.mrb[12].mxu0 %v10179_v26  ;;  %v10249_v24 = vpack.c.bf16 %v1661_v20, %v1657_v19  ;;  %12766 = vst [vmem:[#allocation40_spill] sm:$0xff] %v10288_v3  ;;  %v1693_v8 = vld [vmem:[#allocation10 + $0x1e0] sm:$0xff]  ;;  %v10316_v20 = vld [vmem:[#allocation4 + $0xf0] sm:$0xff] }
  0xe1   :  { %515 = vmatprep.mubr.f32.mxu1 %v12607_v0  ;;  %455 = vmatprep.mubr.f32.mxu0 %v12607_v0  ;;  %12757 = vst [vmem:[#allocation31_spill] sm:$0xff] %v10237_v17  ;;  %v10297_v12 = vpack.c.bf16 %v1693_v8, %v1689_v4  ;;  %v10310_v19 = vld [vmem:[#allocation4 + $0xe8] sm:$0xff]  ;;  %v217_v58 = vld [vmem:[#allocation7 + $0x130] sm:$0xff]  ;;  %v234_v8 = vld [vmem:[#allocation7 + $0x1b8] sm:$0xff] }
  0xe2   :  { %7321 = vmatpush1.bf16.msra.mxu0 %v7320_v27  ;;  %7289 = vmatpush1.bf16.msra.mxu1 %v7288_v32  ;;  %12759 = vst [vmem:[#allocation33_spill] sm:$0xff] %v10249_v24  ;;  %v10252_v27 = vpack.c.bf16 %v1670_v22, %v1666_v21  ;;  %v1674_v32 = vld [vmem:[#allocation10 + $0x148] sm:$0xff]  ;;  %v10322_v21 = vld [vmem:[#allocation4 + $0xf8] sm:$0xff] }
  0xe3   :  { %7323 = vmatprep.subr.bf16.mxu0 %v7322_v33  ;;  %7291 = vmatprep.subr.bf16.mxu1 %v7290_v34  ;;  %v1678_v33 = vld [vmem:[#allocation10 + $0x168] sm:$0xff]  ;;  %v10257_v34 = vld [vmem:[#allocation4 + $0xc0] sm:$0xff]  ;;  %12767 = vst [vmem:[#allocation41_spill] sm:$0xff] %v10297_v12 }
  0xe4   :  { %516 = vmatmul.mubr.f32.gmra.mrb[14].mxu1 %v10185_v41  ;;  %456 = vmatmul.mubr.f32.gmra.mrb[14].mxu0 %v10187_v44  ;;  %12760 = vst [vmem:[#allocation34_spill] sm:$0xff] %v10252_v27  ;;  %v10264_v36 = vpack.c.bf16 %v1678_v33, %v1674_v32  ;;  %v185_v22 = vld [vmem:[#allocation7 + $0x30] sm:$0xff]  ;;  %v210_v32 = vld [vmem:[#allocation7 + $0xf8] sm:$0xff] }
  0xe5   :  { %521 = vmatprep.mubr.f32.mxu1 %v12607_v0  ;;  %461 = vmatprep.mubr.f32.mxu0 %v12607_v0  ;;  %v7328_v33 = vpack.c.bf16 %v193_v30, %v185_v22  ;;  %v225_v4 = vld [vmem:[#allocation7 + $0x170] sm:$0xff] }
  0xe6   :  { %7325 = vmatpush1.bf16.msra.mxu0 %v7324_v45  ;;  %7293 = vmatpush1.bf16.msra.mxu1 %v7292_v46  ;;  %12762 = vst [vmem:[#allocation36_spill] sm:$0xff] %v10264_v36  ;;  %v10269_v45 = vld [vmem:[#allocation4 + $0xc8] sm:$0xff]  ;;  %v10273_v46 = vpack.c.bf16 %v1677_v38, %v1673_v37  ;;  %v7330_v37 = vpack.c.bf16 %v210_v32, %v202_v31  ;;  %v201_v38 = vld [vmem:[#allocation7 + $0xb0] sm:$0xff] }
  0xe7   :  { %7327 = vmatprep.subr.bf16.mxu1 %v7326_v47  ;;  %7359 = vmatprep.subr.bf16.mxu0 %v10189_v48  ;;  %v10276_v47 = vpack.c.bf16 %v1686_v40, %v1682_v39  ;;  %v209_v39 = vld [vmem:[#allocation7 + $0xf0] sm:$0xff]  ;;  %v218_v40 = vld [vmem:[#allocation7 + $0x138] sm:$0xff]  ;;  %v7336_v22 = vpack.c.bf16 %v225_v4, %v217_v58 }
  0xe8   :  { %522 = vmatmul.mubr.f32.gmra.mrb[16].mxu1 %v10195_v49  ;;  %462 = vmatmul.mubr.f32.gmra.mrb[16].mxu0 %v10197_v50  ;;  %12763 = vst [vmem:[#allocation37_spill] sm:$0xff] %v10273_v46  ;;  %v7332_v54 = vpack.c.bf16 %v209_v39, %v201_v38  ;;  %v7334_v55 = vpack.c.bf16 %v226_v53, %v218_v40  ;;  %v233_v31 = vld [vmem:[#allocation7 + $0x1b0] sm:$0xff]  ;;  %v266_v53 = vld [vmem:[#allocation7 + $0x2b8] sm:$0xff] }
  0xe9   :  { %527 = vmatprep.mubr.f32.mxu1 %v12607_v0  ;;  %467 = vmatprep.mubr.f32.mxu0 %v12607_v0  ;;  %12764 = vst [vmem:[#allocation38_spill] sm:$0xff] %v10276_v47  ;;  %v241_v32 = vld [vmem:[#allocation7 + $0x1f0] sm:$0xff] }
  0xea   :  { %v249_v39 = vld [vmem:[#allocation7 + $0x230] sm:$0xff] }
  0xeb   :  { %v257_v40 = vld [vmem:[#allocation7 + $0x270] sm:$0xff] }
  0xec   :  { %528 = vmatmul.mubr.f32.gmra.mrb[18].mxu1 %v10204_v51  ;;  %468 = vmatmul.mubr.f32.gmra.mrb[18].mxu0 %v10206_v52  ;;  %v265_v58 = vld [vmem:[#allocation7 + $0x2b0] sm:$0xff] }
  0xed   :  { %533 = vmatprep.mubr.f32.mxu1 %v12607_v0  ;;  %927 = vmatprep.mubr.f32.mxu0 %v12607_v0  ;;  %v273_v4 = vld [vmem:[#allocation7 + $0x2f0] sm:$0xff] }
  0xf0   :  { %534 = vmatmul.mubr.f32.gmra.mrb[20].mxu1 %v10211_v59  ;;  %928 = vmatmul.mubr.f32.vlgmr.msra.gmra.mrb[20].mxu0 %v10131_v1 }
  0xf1   :  { %539 = vmatprep.mubr.f32.mxu1 %v12607_v0  ;;  %933 = vmatprep.mubr.f32.mxu0 %v12607_v0 }
  0xf2   :  { %7361 = vmatpush1.bf16.msra.mxu0 %v10214_v60 }
  0xf3   :  { %7363 = vmatprep.subr.bf16.mxu0 %v10216_v61 }
  0xf4   :  { %540 = vmatmul.mubr.f32.gmra.mrb[22].mxu1 %v10221_v5  ;;  %934 = vmatmul.mubr.f32.gmra.mrb[22].mxu0 %v10138_v15 }
  0xf5   :  { %545 = vmatprep.mubr.f32.mxu1 %v12607_v0  ;;  %939 = vmatprep.mubr.f32.mxu0 %v12607_v0 }
  0xf6   :  { %7365 = vmatpush1.bf16.msra.mxu0 %v10225_v6 }
  0xf7   :  { %7367 = vmatprep.subr.bf16.mxu0 %v10228_v7 }
  0xf8   :  { %546 = vmatmul.mubr.f32.gmra.mrb[24].mxu1 %v10233_v16  ;;  %940 = vmatmul.mubr.f32.gmra.mrb[24].mxu0 %v10147_v29 }
  0xf9   :  { %551 = vmatprep.mubr.f32.mxu1 %v12607_v0  ;;  %945 = vmatprep.mubr.f32.mxu0 %v12607_v0 }
  0xfa   :  { %7369 = vmatpush1.bf16.msra.mxu0 %v10237_v17 }
  0xfb   :  { %7371 = vmatprep.subr.bf16.mxu0 %v10240_v18 }
  0xfc   :  { %552 = vmatmul.mubr.f32.gmra.mrb[26].mxu1 %v10245_v23  ;;  %946 = vmatmul.mubr.f32.gmra.mrb[26].mxu0 %v10155_v43 }
  0xfd   :  { %557 = vmatprep.mubr.f32.mxu1 %v12607_v0  ;;  %951 = vmatprep.mubr.f32.mxu0 %v12607_v0 }
  0xfe   :  { %7373 = vmatpush1.bf16.msra.mxu0 %v10249_v24 }
  0xff   :  { %7375 = vmatprep.subr.bf16.mxu0 %v10252_v27 }
 0x100   :  { %558 = vmatmul.mubr.f32.gmra.mrb[28].mxu1 %v10257_v34  ;;  %952 = vmatmul.mubr.f32.gmra.mrb[28].mxu0 %v10163_v57 }
 0x101   :  { %563 = vmatprep.mubr.f32.mxu1 %v12607_v0  ;;  %957 = vmatprep.mubr.f32.mxu0 %v12607_v0 }
 0x102   :  { %7377 = vmatpush1.bf16.msra.mxu0 %v10261_v35 }
 0x103   :  { %7379 = vmatprep.subr.bf16.mxu0 %v10264_v36 }
 0x104   :  { %564 = vmatmul.mubr.f32.gmra.mrb[30].mxu1 %v10269_v45  ;;  %958 = vmatmul.mubr.f32.gmra.mrb[30].mxu0 %v10171_v10 }
 0x105   :  { %569 = vmatprep.mubr.f32.mxu1 %v12607_v0  ;;  %963 = vmatprep.mubr.f32.mxu0 %v12607_v0 }
 0x106   :  { %7381 = vmatpush1.bf16.msra.mxu0 %v10273_v46 }
 0x107   :  { %7383 = vmatprep.subr.bf16.mxu0 %v10276_v47 }
 0x108   :  { %570 = vmatmul.mubr.f32.gmra.mrb[32].mxu1 %v10281_v62  ;;  %964 = vmatmul.mubr.f32.gmra.mrb[32].mxu0 %v10179_v26 }
 0x109   :  { %575 = vmatprep.mubr.f32.mxu1 %v12607_v0  ;;  %969 = vmatprep.mubr.f32.mxu0 %v12607_v0 }
 0x10a   :  { %7385 = vmatpush1.bf16.msra.mxu0 %v10285_v2 }
 0x10b   :  { %7387 = vmatprep.subr.bf16.mxu0 %v10288_v3 }
 0x10c   :  { %576 = vmatmul.mubr.f32.gmra.mrb[34].mxu1 %v10293_v11  ;;  %970 = vmatmul.mubr.f32.gmra.mrb[34].mxu0 %v10187_v44 }
 0x10d   :  { %581 = vmatprep.mubr.f32.mxu1 %v12607_v0  ;;  %975 = vmatprep.mubr.f32.mxu0 %v12607_v0 }
 0x10e   :  { %7389 = vmatpush1.bf16.msra.mxu0 %v10297_v12 }
 0x110   :  { %582 = vmatmul.mubr.f32.gmra.mrb[36].mxu1 %v10303_v13  ;;  %976 = vmatmul.mubr.f32.gmra.mrb[36].mxu0 %v10197_v50 }
 0x111   :  { %587 = vmatprep.mubr.f32.mxu1 %v12607_v0  ;;  %981 = vmatprep.mubr.f32.mxu0 %v12607_v0 }
 0x114   :  { %588 = vmatmul.mubr.f32.gmra.mrb[38].mxu1 %v10310_v19  ;;  %982 = vmatmul.mubr.f32.gmra.mrb[38].mxu0 %v10206_v52 }
 0x115   :  { %593 = vmatprep.mubr.f32.mxu1 %v12607_v0  ;;  %987 = vmatprep.mubr.f32.mxu0 %v12607_v0 }
 0x118   :  { %594 = vmatmul.mubr.f32.gmra.mrb[40].mxu1 %v10316_v20  ;;  %988 = vmatmul.mubr.f32.gmra.mrb[40].mxu0 %v10129_v63 }
 0x119   :  { %599 = vmatprep.mubr.f32.mxu1 %v12607_v0  ;;  %993 = vmatprep.mubr.f32.mxu0 %v12607_v0 }
 0x11c   :  { %600 = vmatmul.mubr.f32.gmra.mrb[42].mxu1 %v10322_v21  ;;  %994 = vmatmul.mubr.f32.gmra.mrb[42].mxu0 %v10136_v14 }
 0x11d   :  { %670 = vmatprep.mubr.f32.mxu1 %v12607_v0  ;;  %999 = vmatprep.mubr.f32.mxu0 %v12607_v0 }
 0x120   :  { %671 = vmatmul.mubr.f32.vlgmr.msra.gmra.mrb[44].mxu1 %v10131_v1  ;;  %1000 = vmatmul.mubr.f32.gmra.mrb[44].mxu0 %v10145_v28  ;;  %v242_v1 = vld [vmem:[#allocation7 + $0x1f8] sm:$0xff] }
 0x121   :  { %7329 = vmatpush1.bf16.msra.mxu1 %v7328_v33  ;;  %676 = vmatprep.mubr.f32.mxu1 %v12607_v0  ;;  %v7338_v30 = vpack.c.bf16 %v242_v1, %v234_v8  ;;  %v250_v33 = vld [vmem:[#allocation7 + $0x238] sm:$0xff]  ;;  %v7348_v1 = vpack.c.bf16 %v273_v4, %v265_v58  ;;  %v1713_v4 = vld [vmem:[#allocation12 + $0x80] sm:$0xff] }
 0x122   :  { %1005 = vmatprep.mubr.f32.mxu0 %v12607_v0  ;;  %7331 = vmatprep.subr.bf16.mxu1 %v7330_v37  ;;  %v7340_v37 = vpack.c.bf16 %v241_v32, %v233_v31  ;;  %v282_v8 = vld [vmem:[#allocation7 + $0x338] sm:$0xff]  ;;  %v289_v31 = vld [vmem:[#allocation7 + $0x370] sm:$0xff] }
 0x123   :  { %v298_v32 = vld [vmem:[#allocation7 + $0x3b8] sm:$0xff] }
 0x124   :  { %677 = vmatmul.mubr.f32.gmra.mrb[46].mxu1 %v10138_v15  ;;  %1006 = vmatmul.mubr.f32.gmra.mrb[46].mxu0 %v10153_v42  ;;  %v258_v15 = vld [vmem:[#allocation7 + $0x278] sm:$0xff] }
 0x125   :  { %682 = vmatprep.mubr.f32.mxu1 %v12607_v0  ;;  %1011 = vmatprep.mubr.f32.mxu0 %v12607_v0  ;;  %v7342_v38 = vpack.c.bf16 %v258_v15, %v250_v33 }
 0x126   :  { %7333 = vmatpush1.bf16.msra.mxu1 %v7332_v54  ;;  %v7344_v54 = vpack.c.bf16 %v257_v40, %v249_v39  ;;  %v1636_v39 = vld [vmem:[#allocation10 + $0x18] sm:$0xff] }
 0x127   :  { %7335 = vmatprep.subr.bf16.mxu1 %v7334_v55 }
 0x128   :  { %683 = vmatmul.mubr.f32.gmra.mrb[48].mxu1 %v10147_v29  ;;  %1012 = vmatmul.mubr.f32.gmra.mrb[48].mxu0 %v10161_v56  ;;  %v274_v29 = vld [vmem:[#allocation7 + $0x2f8] sm:$0xff] }
 0x129   :  { %688 = vmatprep.mubr.f32.mxu1 %v12607_v0  ;;  %1017 = vmatprep.mubr.f32.mxu0 %v12607_v0  ;;  %v7346_v55 = vpack.c.bf16 %v274_v29, %v266_v53  ;;  %v1709_v29 = vld [vmem:[#allocation12 + $0x60] sm:$0xff] }
 0x12a   :  { %7337 = vmatpush1.bf16.msra.mxu1 %v7336_v22 }
 0x12b   :  { %7339 = vmatprep.subr.bf16.mxu1 %v7338_v30  ;;  %v281_v30 = vld [vmem:[#allocation7 + $0x330] sm:$0xff] }
 0x12c   :  { %689 = vmatmul.mubr.f32.gmra.mrb[50].mxu1 %v10155_v43  ;;  %1018 = vmatmul.mubr.f32.gmra.mrb[50].mxu0 %v10169_v9  ;;  %v290_v43 = vld [vmem:[#allocation7 + $0x378] sm:$0xff]  ;;  %v7352_v33 = vpack.c.bf16 %v289_v31, %v281_v30  ;;  %v1721_v30 = vld [vmem:[#allocation12 + $0xc0] sm:$0xff] }
 0x12d   :  { %694 = vmatprep.mubr.f32.mxu1 %v12607_v0  ;;  %1023 = vmatprep.mubr.f32.mxu0 %v12607_v0  ;;  %v7350_v22 = vpack.c.bf16 %v290_v43, %v282_v8  ;;  %v1717_v8 = vld [vmem:[#allocation12 + $0xa0] sm:$0xff]  ;;  %v1726_v43 = vld [vmem:[#allocation12 + $0xe8] sm:$0xff] }
 0x12e   :  { %7341 = vmatpush1.bf16.msra.mxu1 %v7340_v37  ;;  %v297_v37 = vld [vmem:[#allocation7 + $0x3b0] sm:$0xff]  ;;  %v1725_v31 = vld [vmem:[#allocation12 + $0xe0] sm:$0xff] }
 0x12f   :  { %7343 = vmatprep.subr.bf16.mxu1 %v7342_v38  ;;  %v305_v38 = vld [vmem:[#allocation7 + $0x3f0] sm:$0xff] }
 0x130   :  { %695 = vmatmul.mubr.f32.gmra.mrb[52].mxu1 %v10163_v57  ;;  %1024 = vmatmul.mubr.f32.gmra.mrb[52].mxu0 %v10177_v25  ;;  %v306_v57 = vld [vmem:[#allocation7 + $0x3f8] sm:$0xff]  ;;  %v7356_v40 = vpack.c.bf16 %v305_v38, %v297_v37  ;;  %v1733_v37 = vld [vmem:[#allocation12 + $0x120] sm:$0xff]  ;;  %v1738_v38 = vld [vmem:[#allocation12 + $0x148] sm:$0xff] }
 0x131   :  { %700 = vmatprep.mubr.f32.mxu1 %v12607_v0  ;;  %1029 = vmatprep.mubr.f32.mxu0 %v12607_v0  ;;  %v7354_v15 = vpack.c.bf16 %v306_v57, %v298_v32  ;;  %v1734_v32 = vld [vmem:[#allocation12 + $0x128] sm:$0xff]  ;;  %v10444_v57 = vpack.c.bf16 %v1725_v31, %v1721_v30  ;;  %v1635_v31 = vld [vmem:[#allocation10 + $0x10] sm:$0xff] }
 0x132   :  { %7345 = vmatpush1.bf16.msra.mxu1 %v7344_v54  ;;  %v1714_v54 = vld [vmem:[#allocation12 + $0x88] sm:$0xff] }
 0x133   :  { %7347 = vmatprep.subr.bf16.mxu1 %v7346_v55 }
 0x134   :  { %701 = vmatmul.mubr.f32.gmra.mrb[54].mxu1 %v10171_v10  ;;  %1030 = vmatmul.mubr.f32.gmra.mrb[54].mxu0 %v10185_v41  ;;  %v1640_v10 = vld [vmem:[#allocation10 + $0x38] sm:$0xff] }
 0x135   :  { %706 = vmatprep.mubr.f32.mxu1 %v12607_v0  ;;  %1035 = vmatprep.mubr.f32.mxu0 %v12607_v0  ;;  %v10357_v53 = vpack.c.bf16 %v1640_v10, %v1636_v39  ;;  %v1742_v39 = vld [vmem:[#allocation12 + $0x168] sm:$0xff] }
 0x136   :  { %7349 = vmatpush1.bf16.msra.mxu1 %v7348_v1  ;;  %v10434_v1 = vpack.c.bf16 %v1717_v8, %v1713_v4 }
 0x137   :  { %7351 = vmatprep.subr.bf16.mxu1 %v7350_v22  ;;  %12768 = vst [vmem:[#allocation42_spill] sm:$0xff] %v10357_v53 }
 0x138   :  { %707 = vmatmul.mubr.f32.gmra.mrb[56].mxu1 %v10179_v26  ;;  %1036 = vmatmul.mubr.f32.gmra.mrb[56].mxu0 %v10195_v49 }
 0x139   :  { %712 = vmatprep.mubr.f32.mxu1 %v12607_v0  ;;  %1041 = vmatprep.mubr.f32.mxu0 %v12607_v0 }
 0x13a   :  { %7353 = vmatpush1.bf16.msra.mxu1 %v7352_v33 }
 0x13b   :  { %7355 = vmatprep.subr.bf16.mxu1 %v7354_v15  ;;  %v1729_v15 = vld [vmem:[#allocation12 + $0x100] sm:$0xff] }
 0x13c   :  { %713 = vmatmul.mubr.f32.gmra.mrb[58].mxu1 %v10187_v44  ;;  %1042 = vmatmul.mubr.f32.gmra.mrb[58].mxu0 %v10204_v51  ;;  %v10454_v10 = vpack.c.bf16 %v1733_v37, %v1729_v15  ;;  %v1644_v15 = vld [vmem:[#allocation10 + $0x58] sm:$0xff] }
 0x13d   :  { %718 = vmatprep.mubr.f32.mxu1 %v12607_v0  ;;  %1047 = vmatprep.mubr.f32.mxu0 %v12607_v0  ;;  %v1648_v37 = vld [vmem:[#allocation10 + $0x78] sm:$0xff] }
 0x13e   :  { %7357 = vmatpush1.bf16.msra.mxu1 %v7356_v40  ;;  %v10457_v40 = vpack.c.bf16 %v1742_v39, %v1738_v38 }
 0x13f   :  { %7391 = vmatprep.subr.bf16.mxu1 %v10357_v53 }
 0x140   :  { %719 = vmatmul.mubr.f32.gmra.mrb[60].mxu1 %v10197_v50  ;;  %1048 = vmatmul.mubr.f32.gmra.mrb[60].mxu0 %v10211_v59 }
 0x141   :  { %724 = vmatprep.mubr.f32.mxu1 %v12607_v0  ;;  %1053 = vmatprep.mubr.f32.mxu0 %v12607_v0 }
 0x144   :  { %725 = vmatmul.mubr.f32.gmra.mrb[62].mxu1 %v10206_v52  ;;  %1054 = vmatmul.mubr.f32.gmra.mrb[62].mxu0 %v10221_v5 }
 0x145   :  { %730 = vmatprep.mubr.f32.mxu1 %v12607_v0  ;;  %1059 = vmatprep.mubr.f32.mxu0 %v12607_v0 }
 0x148   :  { %731 = vmatmul.mubr.f32.gmra.mrb[64].mxu1 %v10129_v63  ;;  %1060 = vmatmul.mubr.f32.gmra.mrb[64].mxu0 %v10233_v16  ;;  %v1698_v63 = vld [vmem:[#allocation12 + $0x8] sm:$0xff] }
 0x149   :  { %736 = vmatprep.mubr.f32.mxu1 %v12607_v0  ;;  %1065 = vmatprep.mubr.f32.mxu0 %v12607_v0 }
 0x14c   :  { %737 = vmatmul.mubr.f32.gmra.mrb[66].mxu1 %v10136_v14  ;;  %1066 = vmatmul.mubr.f32.gmra.mrb[66].mxu0 %v10245_v23  ;;  %v1702_v14 = vld [vmem:[#allocation12 + $0x28] sm:$0xff] }
 0x14d   :  { %742 = vmatprep.mubr.f32.mxu1 %v12607_v0  ;;  %1071 = vmatprep.mubr.f32.mxu0 %v12607_v0 }
 0x150   :  { %743 = vmatmul.mubr.f32.gmra.mrb[68].mxu1 %v10145_v28  ;;  %1072 = vmatmul.mubr.f32.gmra.mrb[68].mxu0 %v10257_v34  ;;  %v10404_v28 = vpack.c.bf16 %v1702_v14, %v1698_v63  ;;  %v1737_v63 = vld [vmem:[#allocation12 + $0x140] sm:$0xff] }
 0x151   :  { %748 = vmatprep.mubr.f32.mxu1 %v12607_v0  ;;  %1077 = vmatprep.mubr.f32.mxu0 %v12607_v0  ;;  %v1741_v14 = vld [vmem:[#allocation12 + $0x160] sm:$0xff] }
 0x152   :  { %12769 = vst [vmem:[#allocation43_spill] sm:$0xff] %v10404_v28  ;;  %7423 = vmatprep.subr.bf16.mxu0 %v10404_v28 }
 0x154   :  { %749 = vmatmul.mubr.f32.gmra.mrb[70].mxu1 %v10153_v42  ;;  %1078 = vmatmul.mubr.f32.gmra.mrb[70].mxu0 %v10269_v45  ;;  %v1697_v42 = vld [vmem:[#allocation12] sm:$0xff] }
 0x155   :  { %754 = vmatprep.mubr.f32.mxu1 %v12607_v0  ;;  %1083 = vmatprep.mubr.f32.mxu0 %v12607_v0 }
 0x158   :  { %755 = vmatmul.mubr.f32.gmra.mrb[72].mxu1 %v10161_v56  ;;  %1084 = vmatmul.mubr.f32.gmra.mrb[72].mxu0 %v10281_v62  ;;  %v1701_v56 = vld [vmem:[#allocation12 + $0x20] sm:$0xff] }
 0x159   :  { %760 = vmatprep.mubr.f32.mxu1 %v12607_v0  ;;  %1089 = vmatprep.mubr.f32.mxu0 %v12607_v0  ;;  %v10415_v26 = vpack.c.bf16 %v1701_v56, %v1697_v42  ;;  %v1746_v42 = vld [vmem:[#allocation12 + $0x188] sm:$0xff] }
 0x15a   :  { %v1750_v56 = vld [vmem:[#allocation12 + $0x1a8] sm:$0xff] }
 0x15c   :  { %761 = vmatmul.mubr.f32.gmra.mrb[74].mxu1 %v10169_v9  ;;  %1090 = vmatmul.mubr.f32.gmra.mrb[74].mxu0 %v10293_v11  ;;  %v1706_v9 = vld [vmem:[#allocation12 + $0x48] sm:$0xff] }
 0x15d   :  { %766 = vmatprep.mubr.f32.mxu1 %v12607_v0  ;;  %1095 = vmatprep.mubr.f32.mxu0 %v12607_v0 }
 0x160   :  { %767 = vmatmul.mubr.f32.gmra.mrb[76].mxu1 %v10177_v25  ;;  %1096 = vmatmul.mubr.f32.gmra.mrb[76].mxu0 %v10303_v13  ;;  %v1710_v25 = vld [vmem:[#allocation12 + $0x68] sm:$0xff] }
 0x161   :  { %772 = vmatprep.mubr.f32.mxu1 %v12607_v0  ;;  %1101 = vmatprep.mubr.f32.mxu0 %v12607_v0 }
 0x164   :  { %773 = vmatmul.mubr.f32.gmra.mrb[78].mxu1 %v10185_v41  ;;  %1102 = vmatmul.mubr.f32.gmra.mrb[78].mxu0 %v10310_v19  ;;  %v10417_v41 = vpack.c.bf16 %v1710_v25, %v1706_v9  ;;  %v10462_v9 = vpack.c.bf16 %v1741_v14, %v1737_v63  ;;  %v10465_v25 = vpack.c.bf16 %v1750_v56, %v1746_v42  ;;  %v1643_v14 = vld [vmem:[#allocation10 + $0x50] sm:$0xff] }
 0x165   :  { %778 = vmatprep.mubr.f32.mxu1 %v12607_v0  ;;  %1107 = vmatprep.mubr.f32.mxu0 %v12607_v0  ;;  %v10512_v63 = vpack.c.bf16 %v1648_v37, %v1644_v15  ;;  %v1647_v42 = vld [vmem:[#allocation10 + $0x70] sm:$0xff]  ;;  %v1660_v37 = vld [vmem:[#allocation10 + $0xd8] sm:$0xff] }
 0x167   :  { %12775 = vst [vmem:[#allocation49_spill] sm:$0xff] %v10512_v63 }
 0x168   :  { %779 = vmatmul.mubr.f32.gmra.mrb[80].mxu1 %v10195_v49  ;;  %1108 = vmatmul.mubr.f32.gmra.mrb[80].mxu0 %v10316_v20  ;;  %v1705_v49 = vld [vmem:[#allocation12 + $0x40] sm:$0xff] }
 0x169   :  { %784 = vmatprep.mubr.f32.mxu1 %v12607_v0  ;;  %1113 = vmatprep.mubr.f32.mxu0 %v12607_v0  ;;  %v10424_v55 = vpack.c.bf16 %v1709_v29, %v1705_v49  ;;  %v1745_v49 = vld [vmem:[#allocation12 + $0x180] sm:$0xff] }
 0x16a   :  { %v1749_v29 = vld [vmem:[#allocation12 + $0x1a0] sm:$0xff] }
 0x16b   :  { %v10470_v4 = vpack.c.bf16 %v1749_v29, %v1745_v49  ;;  %v1652_v49 = vld [vmem:[#allocation10 + $0x98] sm:$0xff] }
 0x16c   :  { %785 = vmatmul.mubr.f32.gmra.mrb[82].mxu1 %v10204_v51  ;;  %1114 = vmatmul.mubr.f32.gmra.mrb[82].mxu0 %v10322_v21  ;;  %v1718_v51 = vld [vmem:[#allocation12 + $0xa8] sm:$0xff]  ;;  %v1656_v29 = vld [vmem:[#allocation10 + $0xb8] sm:$0xff] }
 0x16d   :  { %790 = vmatprep.mubr.f32.mxu1 %v12607_v0  ;;  %1841 = vmatprep.mubr.f32.mxu0 %v12607_v0  ;;  %v10427_v58 = vpack.c.bf16 %v1718_v51, %v1714_v54  ;;  %v1754_v54 = vld [vmem:[#allocation12 + $0x1c8] sm:$0xff] }
 0x16e   :  { %v1758_v51 = vld [vmem:[#allocation12 + $0x1e8] sm:$0xff] }
 0x16f   :  { %v10473_v8 = vpack.c.bf16 %v1758_v51, %v1754_v54  ;;  %v9680_v51 = vld [vmem:[#allocation4] sm:$0xff] }
 0x170   :  { %791 = vmatmul.mubr.f32.gmra.mrb[84].mxu1 %v10211_v59  ;;  %1842 = vmatmul.mubr.f32.vlgmr.msra.gmra.mrb[0].mxu0 %v12607_v0  ;;  %v1722_v59 = vld [vmem:[#allocation12 + $0xc8] sm:$0xff] }
 0x171   :  { %796 = vmatprep.mubr.f32.mxu1 %v12607_v0  ;;  %1847 = vmatprep.mubr.f32.mxu0 %v12607_v0  ;;  %v10437_v22 = vpack.c.bf16 %v1726_v43, %v1722_v59  ;;  %12770 = vst [vmem:[#allocation44_spill] sm:$0xff] %v10473_v8  ;;  %v1753_v59 = vld [vmem:[#allocation12 + $0x1c0] sm:$0xff] }
 0x172   :  { %7425 = vmatpush1.bf16.msra.mxu0 %v10415_v26  ;;  %v1757_v43 = vld [vmem:[#allocation12 + $0x1e0] sm:$0xff] }
 0x173   :  { %7427 = vmatprep.subr.bf16.mxu0 %v10417_v41  ;;  %v10478_v30 = vpack.c.bf16 %v1757_v43, %v1753_v59  ;;  %v10523_v59 = vpack.c.bf16 %v1647_v42, %v1643_v14  ;;  %v10526_v43 = vpack.c.bf16 %v1656_v29, %v1652_v49  ;;  %v1659_v49 = vld [vmem:[#allocation10 + $0xd0] sm:$0xff] }
 0x174   :  { %797 = vmatmul.mubr.f32.gmra.mrb[86].mxu1 %v10221_v5  ;;  %1848 = vmatmul.mubr.f32.gmra.mrb[2].mxu0 %v12607_v0  ;;  %v1730_v5 = vld [vmem:[#allocation12 + $0x108] sm:$0xff]  ;;  %v1663_v29 = vld [vmem:[#allocation10 + $0xf0] sm:$0xff] }
 0x175   :  { %802 = vmatprep.mubr.f32.mxu1 %v12607_v0  ;;  %1853 = vmatprep.mubr.f32.mxu0 %v12607_v0  ;;  %v10447_v33 = vpack.c.bf16 %v1734_v32, %v1730_v5  ;;  %12771 = vst [vmem:[#allocation45_spill] sm:$0xff] %v10478_v30  ;;  %v1639_v5 = vld [vmem:[#allocation10 + $0x30] sm:$0xff]  ;;  %12778 = vst [vmem:[#allocation52_spill] sm:$0xff] %v10523_v59 }
 0x176   :  { %7429 = vmatpush1.bf16.msra.mxu0 %v10424_v55  ;;  %v10509_v39 = vpack.c.bf16 %v1639_v5, %v1635_v31  ;;  %12779 = vst [vmem:[#allocation53_spill] sm:$0xff] %v10526_v43  ;;  %v1651_v31 = vld [vmem:[#allocation10 + $0x90] sm:$0xff] }
 0x177   :  { %7431 = vmatprep.subr.bf16.mxu0 %v10427_v58  ;;  %v1655_v5 = vld [vmem:[#allocation10 + $0xb0] sm:$0xff] }
 0x178   :  { %803 = vmatmul.mubr.f32.gmra.mrb[88].mxu1 %v10233_v16  ;;  %1854 = vmatmul.mubr.f32.gmra.mrb[4].mxu0 %v12607_v0  ;;  %12774 = vst [vmem:[#allocation48_spill] sm:$0xff] %v10509_v39  ;;  %v10536_v14 = vpack.c.bf16 %v1655_v5, %v1651_v31  ;;  %v12786_v31 = vmov 0.0  }
 0x179   :  { %808 = vmatprep.mubr.f32.mxu1 %v12607_v0  ;;  %1859 = vmatprep.mubr.f32.mxu0 %v12607_v0 }
 0x17a   :  { %7433 = vmatpush1.bf16.msra.mxu0 %v10434_v1  ;;  %12782 = vst [vmem:[#allocation56_spill] sm:$0xff] %v10536_v14 }
 0x17b   :  { %7435 = vmatprep.subr.bf16.mxu0 %v10437_v22 }
 0x17c   :  { %809 = vmatmul.mubr.f32.gmra.mrb[90].mxu1 %v10245_v23  ;;  %1860 = vmatmul.mubr.f32.gmra.mrb[6].mxu0 %v12607_v0 }
 0x17d   :  { %814 = vmatprep.mubr.f32.mxu1 %v12607_v0  ;;  %2052 = vmatprep.mubr.f32.mxu0 %v12607_v0 }
 0x17e   :  { %7437 = vmatpush1.bf16.msra.mxu0 %v10444_v57 }
 0x17f   :  { %7439 = vmatprep.subr.bf16.mxu0 %v10447_v33 }
 0x180   :  { %815 = vmatmul.mubr.f32.gmra.mrb[92].mxu1 %v10257_v34 }
 0x181   :  { %820 = vmatprep.mubr.f32.mxu1 %v12607_v0 }
 0x182   :  { %7441 = vmatpush1.bf16.msra.mxu0 %v10454_v10 }
 0x183   :  { %7443 = vmatprep.subr.bf16.mxu0 %v10457_v40 }
 0x184   :  { %821 = vmatmul.mubr.f32.gmra.mrb[94].mxu1 %v10269_v45 }
 0x185   :  { %826 = vmatprep.mubr.f32.mxu1 %v12607_v0 }
 0x186   :  { %7445 = vmatpush1.bf16.msra.mxu0 %v10462_v9 }
 0x187   :  { %7447 = vmatprep.subr.bf16.mxu0 %v10465_v25 }
 0x188   :  { %827 = vmatmul.mubr.f32.gmra.mrb[96].mxu1 %v10281_v62 }
 0x189   :  { %832 = vmatprep.mubr.f32.mxu1 %v12607_v0 }
 0x18a   :  { %7449 = vmatpush1.bf16.msra.mxu0 %v10470_v4 }
 0x18b   :  { %7451 = vmatprep.subr.bf16.mxu0 %v10473_v8 }
 0x18c   :  { %833 = vmatmul.mubr.f32.gmra.mrb[98].mxu1 %v10293_v11 }
 0x18d   :  { %838 = vmatprep.mubr.f32.mxu1 %v12607_v0 }
 0x18e   :  { %7453 = vmatpush1.bf16.msra.mxu0 %v10478_v30 }
 0x18f   :  { %7487 = vmatprep.subr.bf16.mxu0 %v10189_v48 }
 0x190   :  { %839 = vmatmul.mubr.f32.gmra.mrb[100].mxu1 %v10303_v13 }
 0x191   :  { %844 = vmatprep.mubr.f32.mxu1 %v12607_v0  ;;  %2053 = vmatmul.mubr.f32.vlgmr.msra.gmra.mrb[76].mxu0 %v12607_v0 }
 0x192   :  { %2058 = vmatprep.mubr.f32.mxu0 %v12607_v0  ;;  %7489 = vmatpush1.bf16.msra.mxu0 %v10214_v60 }
 0x193   :  { %7491 = vmatprep.subr.bf16.mxu0 %v10216_v61 }
 0x194   :  { %845 = vmatmul.mubr.f32.gmra.mrb[102].mxu1 %v10310_v19 }
 0x195   :  { %850 = vmatprep.mubr.f32.mxu1 %v12607_v0  ;;  %2059 = vmatmul.mubr.f32.gmra.mrb[78].mxu0 %v12607_v0 }
 0x196   :  { %2064 = vmatprep.mubr.f32.mxu0 %v12607_v0  ;;  %7493 = vmatpush1.bf16.msra.mxu0 %v10225_v6 }
 0x197   :  { %7495 = vmatprep.subr.bf16.mxu0 %v10228_v7 }
 0x198   :  { %851 = vmatmul.mubr.f32.gmra.mrb[104].mxu1 %v10316_v20 }
 0x199   :  { %856 = vmatprep.mubr.f32.mxu1 %v12607_v0  ;;  %2065 = vmatmul.mubr.f32.gmra.mrb[80].mxu0 %v12607_v0 }
 0x19a   :  { %2070 = vmatprep.mubr.f32.mxu0 %v12607_v0  ;;  %7497 = vmatpush1.bf16.msra.mxu0 %v10237_v17 }
 0x19b   :  { %v10502_v32 = vpop.f32.mrb[0].mxu1  ;;  %7499 = vmatprep.subr.bf16.mxu0 %v10240_v18 }
 0x19c   :  { %12772 = vst [vmem:[#allocation46_spill] sm:$0xff] %v10502_v32  ;;  %v10505_v38 = vpop.f32.mrb[1].mxu1  ;;  %857 = vmatmul.mubr.f32.gmra.mrb[106].mxu1 %v10322_v21 }
 0x19d   :  { %12773 = vst [vmem:[#allocation47_spill] sm:$0xff] %v10505_v38  ;;  %1184 = vmatprep.mubr.f32.mxu1 %v12607_v0  ;;  %2071 = vmatmul.mubr.f32.gmra.mrb[82].mxu0 %v12607_v0  ;;  %v1668_v38 = vld [vmem:[#allocation10 + $0x118] sm:$0xff] }
 0x19e   :  { %7501 = vmatpush1.bf16.msra.mxu0 %v10249_v24  ;;  %2416 = vmatprep.mubr.f32.mxu0 %v12607_v0  ;;  %v1759_v24 = vld [vmem:[#allocation12 + $0x1f0] sm:$0xff] }
 0x19f   :  { %v10516_v56 = vpop.f32.mrb[2].mxu1  ;;  %7503 = vmatprep.subr.bf16.mxu0 %v10252_v27 }
 0x1a0   :  { %12776 = vst [vmem:[#allocation50_spill] sm:$0xff] %v10516_v56  ;;  %v10519_v54 = vpop.f32.mrb[3].mxu1  ;;  %1185 = vmatmul.mubr.f32.vlgmr.msra.gmra.mrb[108].mxu1 %v9680_v51  ;;  %v9681_v56 = vld [vmem:[#allocation4 + $0x8] sm:$0xff] }
 0x1a1   :  { %12777 = vst [vmem:[#allocation51_spill] sm:$0xff] %v10519_v54  ;;  %7393 = vmatpush1.bf16.msra.mxu1 %v10509_v39  ;;  %1190 = vmatprep.mubr.f32.mxu1 %v12607_v0  ;;  %v1664_v54 = vld [vmem:[#allocation10 + $0xf8] sm:$0xff] }
 0x1a2   :  { %7395 = vmatprep.subr.bf16.mxu1 %v10512_v63  ;;  %7505 = vmatpush1.bf16.msra.mxu0 %v10261_v35  ;;  %v10539_v42 = vpack.c.bf16 %v1664_v54, %v1660_v37  ;;  %v10549_v54 = vpack.c.bf16 %v1663_v29, %v1659_v49  ;;  %v1667_v37 = vld [vmem:[#allocation10 + $0x110] sm:$0xff]  ;;  %v1704_v35 = vld [vmem:[#allocation12 + $0x38] sm:$0xff] }
 0x1a3   :  { %v10529_v15 = vpop.f32.mrb[4].mxu1  ;;  %7507 = vmatprep.subr.bf16.mxu0 %v10264_v36  ;;  %v1675_v49 = vld [vmem:[#allocation10 + $0x150] sm:$0xff] }
 0x1a4   :  { %12780 = vst [vmem:[#allocation54_spill] sm:$0xff] %v10529_v15  ;;  %v10532_v51 = vpop.f32.mrb[5].mxu1  ;;  %1191 = vmatmul.mubr.f32.gmra.mrb[110].mxu1 %v9681_v56  ;;  %12783 = vst [vmem:[#allocation57_spill] sm:$0xff] %v10539_v42  ;;  %v1679_v29 = vld [vmem:[#allocation10 + $0x170] sm:$0xff] }
 0x1a5   :  { %12781 = vst [vmem:[#allocation55_spill] sm:$0xff] %v10532_v51  ;;  %1196 = vmatprep.mubr.f32.mxu1 %v12607_v0  ;;  %7397 = vmatpush1.bf16.msra.mxu1 %v10523_v59  ;;  %v1672_v51 = vld [vmem:[#allocation10 + $0x138] sm:$0xff]  ;;  %v9682_v0 = vld [vmem:[#allocation4 + $0x10] sm:$0xff]  ;;  %12787 = vst [vmem:[#allocation60_spill] sm:$0xff] %v10549_v54 }
 0x1a6   :  { %7399 = vmatprep.subr.bf16.mxu1 %v10526_v43  ;;  %7509 = vmatpush1.bf16.msra.mxu0 %v10273_v46  ;;  %v10552_v5 = vpack.c.bf16 %v1672_v51, %v1668_v38  ;;  %v9683_v46 = vld [vmem:[#allocation4 + $0x18] sm:$0xff] }
 0x1a7   :  { %v10542_v15 = vpop.f32.mrb[6].mxu1  ;;  %7511 = vmatprep.subr.bf16.mxu0 %v10276_v47  ;;  %v1676_v47 = vld [vmem:[#allocation10 + $0x158] sm:$0xff] }
 0x1a8   :  { %12784 = vst [vmem:[#allocation58_spill] sm:$0xff] %v10542_v15  ;;  %v10545_v56 = vpop.f32.mrb[7].mxu1  ;;  %1197 = vmatmul.mubr.f32.gmra.mrb[112].mxu1 %v9682_v0  ;;  %12788 = vst [vmem:[#allocation61_spill] sm:$0xff] %v10552_v5  ;;  %v1671_v15 = vld [vmem:[#allocation10 + $0x130] sm:$0xff] }
 0x1a9   :  { %12785 = vst [vmem:[#allocation59_spill] sm:$0xff] %v10545_v56  ;;  %1202 = vmatprep.mubr.f32.mxu1 %v12786_v31  ;;  %7401 = vmatpush1.bf16.msra.mxu1 %v10536_v14  ;;  %v1680_v56 = vld [vmem:[#allocation10 + $0x178] sm:$0xff]  ;;  %v10562_v38 = vpack.c.bf16 %v1671_v15, %v1667_v37  ;;  %v1687_v37 = vld [vmem:[#allocation10 + $0x1b0] sm:$0xff] }
 0x1aa   :  { %7403 = vmatprep.subr.bf16.mxu1 %v10539_v42  ;;  %7513 = vmatpush1.bf16.msra.mxu0 %v10285_v2  ;;  %v10565_v51 = vpack.c.bf16 %v1680_v56, %v1676_v47  ;;  %v9684_v2 = vld [vmem:[#allocation4 + $0x20] sm:$0xff]  ;;  %v10575_v47 = vpack.c.bf16 %v1679_v29, %v1675_v49  ;;  %v1683_v56 = vld [vmem:[#allocation10 + $0x190] sm:$0xff] }
 0x1ab   :  { %v10555_v32 = vpop.f32.mrb[8].mxu1  ;;  %7515 = vmatprep.subr.bf16.mxu0 %v10288_v3  ;;  %12791 = vst [vmem:[#allocation64_spill] sm:$0xff] %v10562_v38  ;;  %v1684_v3 = vld [vmem:[#allocation10 + $0x198] sm:$0xff]  ;;  %v1695_v49 = vld [vmem:[#allocation10 + $0x1f0] sm:$0xff] }
 0x1ac   :  { %12789 = vst [vmem:[#allocation62_spill] sm:$0xff] %v10555_v32  ;;  %v10558_v0 = vpop.f32.mrb[9].mxu1  ;;  %1203 = vmatmul.mubr.f32.gmra.mrb[114].mxu1 %v9683_v46  ;;  %12792 = vst [vmem:[#allocation65_spill] sm:$0xff] %v10565_v51 }
 0x1ad   :  { %12790 = vst [vmem:[#allocation63_spill] sm:$0xff] %v10558_v0  ;;  %1208 = vmatprep.mubr.f32.mxu1 %v12786_v31  ;;  %7405 = vmatpush1.bf16.msra.mxu1 %v10549_v54  ;;  %v1688_v0 = vld [vmem:[#allocation10 + $0x1b8] sm:$0xff]  ;;  %12795 = vst [vmem:[#allocation68_spill] sm:$0xff] %v10575_v47 }
 0x1ae   :  { %7407 = vmatprep.subr.bf16.mxu1 %v10552_v5  ;;  %7517 = vmatpush1.bf16.msra.mxu0 %v10297_v12  ;;  %v10578_v15 = vpack.c.bf16 %v1688_v0, %v1684_v3  ;;  %v1692_v12 = vld [vmem:[#allocation10 + $0x1d8] sm:$0xff]  ;;  %v1691_v0 = vld [vmem:[#allocation10 + $0x1d0] sm:$0xff] }
 0x1af   :  { %v10568_v32 = vpop.f32.mrb[10].mxu1  ;;  %7551 = vmatprep.subr.bf16.mxu0 %v10404_v28  ;;  %v1696_v28 = vld [vmem:[#allocation10 + $0x1f8] sm:$0xff] }
 0x1b0   :  { %12793 = vst [vmem:[#allocation66_spill] sm:$0xff] %v10568_v32  ;;  %v10571_v46 = vpop.f32.mrb[11].mxu1  ;;  %1209 = vmatmul.mubr.f32.gmra.mrb[116].mxu1 %v9684_v2  ;;  %12796 = vst [vmem:[#allocation69_spill] sm:$0xff] %v10578_v15  ;;  %v10586_v2 = vpack.c.bf16 %v1687_v37, %v1683_v56  ;;  %v10589_v3 = vpack.c.bf16 %v1696_v28, %v1692_v12 }
 0x1b1   :  { %12794 = vst [vmem:[#allocation67_spill] sm:$0xff] %v10571_v46  ;;  %1214 = vmatprep.mubr.f32.mxu1 %v12786_v31  ;;  %7409 = vmatpush1.bf16.msra.mxu1 %v10562_v38  ;;  %v9685_v46 = vld [vmem:[#allocation4 + $0x28] sm:$0xff] }
 0x1b2   :  { %7411 = vmatprep.subr.bf16.mxu1 %v10565_v51  ;;  %12799 = vst [vmem:[#allocation72_spill] sm:$0xff] %v10586_v2  ;;  %12800 = vst [vmem:[#allocation73_spill] sm:$0xff] %v10589_v3 }
 0x1b3   :  { %v10580_v32 = vpop.f32.mrb[12].mxu1 }
 0x1b4   :  { %12797 = vst [vmem:[#allocation70_spill] sm:$0xff] %v10580_v32  ;;  %v10582_v36 = vpop.f32.mrb[13].mxu1  ;;  %1215 = vmatmul.mubr.f32.gmra.mrb[118].mxu1 %v9685_v46  ;;  %v1700_v32 = vld [vmem:[#allocation12 + $0x18] sm:$0xff]  ;;  %v10597_v46 = vpack.c.bf16 %v1695_v49, %v1691_v0  ;;  %v9687_v49 = vld [vmem:[#allocation4 + $0x50] sm:$0xff] }
 0x1b5   :  { %12798 = vst [vmem:[#allocation71_spill] sm:$0xff] %v10582_v36  ;;  %1220 = vmatprep.mubr.f32.mxu1 %v12786_v31  ;;  %7413 = vmatpush1.bf16.msra.mxu1 %v10575_v47  ;;  %v9686_v36 = vld [vmem:[#allocation4 + $0x30] sm:$0xff]  ;;  %v10600_v12 = vpack.c.bf16 %v1704_v35, %v1700_v32 }
 0x1b6   :  { %7415 = vmatprep.subr.bf16.mxu1 %v10578_v15  ;;  %12803 = vst [vmem:[#allocation76_spill] sm:$0xff] %v10597_v46 }
 0x1b7   :  { %v10591_v29 = vpop.f32.mrb[14].mxu1  ;;  %12804 = vst [vmem:[#allocation77_spill] sm:$0xff] %v10600_v12 }
 0x1b8   :  { %12801 = vst [vmem:[#allocation74_spill] sm:$0xff] %v10591_v29  ;;  %v10593_v27 = vpop.f32.mrb[15].mxu1  ;;  %1221 = vmatmul.mubr.f32.gmra.mrb[120].mxu1 %v9686_v36  ;;  %v1755_v29 = vld [vmem:[#allocation12 + $0x1d0] sm:$0xff] }
 0x1b9   :  { %12802 = vst [vmem:[#allocation75_spill] sm:$0xff] %v10593_v27  ;;  %1226 = vmatprep.mubr.f32.mxu1 %v12786_v31  ;;  %7417 = vmatpush1.bf16.msra.mxu1 %v10586_v2  ;;  %v1760_v27 = vld [vmem:[#allocation12 + $0x1f8] sm:$0xff] }
 0x1ba   :  { %7419 = vmatprep.subr.bf16.mxu1 %v10589_v3 }
 0x1bb   :  { %v10602_v28 = vpop.f32.mrb[16].mxu1 }
 0x1bc   :  { %12805 = vst [vmem:[#allocation78_spill] sm:$0xff] %v10602_v28  ;;  %v10604_v56 = vpop.f32.mrb[17].mxu1  ;;  %1227 = vmatmul.mubr.f32.gmra.mrb[122].mxu1 %v10187_v44  ;;  %v1756_v28 = vld [vmem:[#allocation12 + $0x1d8] sm:$0xff] }
 0x1bd   :  { %12806 = vst [vmem:[#allocation79_spill] sm:$0xff] %v10604_v56  ;;  %1232 = vmatprep.mubr.f32.mxu1 %v12786_v31  ;;  %7421 = vmatpush1.bf16.msra.mxu1 %v10597_v46 }
 0x1be   :  { %7455 = vmatprep.subr.bf16.mxu1 %v10600_v12 }
 0x1bf   :  { %v10610_v36 = vpop.f32.mrb[18].mxu1 }
 0x1c0   :  { %12807 = vst [vmem:[#allocation80_spill] sm:$0xff] %v10610_v36  ;;  %v10612_v37 = vpop.f32.mrb[19].mxu1  ;;  %1233 = vmatmul.mubr.f32.gmra.mrb[124].mxu1 %v10197_v50  ;;  %v9688_v36 = vld [vmem:[#allocation4 + $0x58] sm:$0xff] }
 0x1c1   :  { %12808 = vst [vmem:[#allocation81_spill] sm:$0xff] %v10612_v37  ;;  %1238 = vmatprep.mubr.f32.mxu1 %v12786_v31 }
 0x1c3   :  { %v10616_v35 = vpop.f32.mrb[20].mxu1 }
 0x1c4   :  { %12809 = vst [vmem:[#allocation82_spill] sm:$0xff] %v10616_v35  ;;  %v10618_v32 = vpop.f32.mrb[21].mxu1  ;;  %1239 = vmatmul.mubr.f32.gmra.mrb[126].mxu1 %v10206_v52  ;;  %v9689_v35 = vld [vmem:[#allocation4 + $0x60] sm:$0xff] }
 0x1c5   :  { %12810 = vst [vmem:[#allocation83_spill] sm:$0xff] %v10618_v32  ;;  %1244 = vmatprep.mubr.f32.mxu1 %v12786_v31 }
 0x1c7   :  { %v10622_v44 = vpop.f32.mrb[22].mxu1 }
 0x1c8   :  { %12811 = vst [vmem:[#allocation84_spill] sm:$0xff] %v10622_v44  ;;  %v10624_v0 = vpop.f32.mrb[23].mxu1  ;;  %1245 = vmatmul.mubr.f32.gmra.mrb[128].mxu1 %v9687_v49  ;;  %v9690_v44 = vld [vmem:[#allocation4 + $0x68] sm:$0xff] }
 0x1c9   :  { %12812 = vst [vmem:[#allocation85_spill] sm:$0xff] %v10624_v0  ;;  %1250 = vmatprep.mubr.f32.mxu1 %v12786_v31 }
 0x1cb   :  { %v10627_v37 = vpop.f32.mrb[24].mxu1 }
 0x1cc   :  { %12813 = vst [vmem:[#allocation86_spill] sm:$0xff] %v10627_v37  ;;  %v10629_v50 = vpop.f32.mrb[25].mxu1  ;;  %1251 = vmatmul.mubr.f32.gmra.mrb[130].mxu1 %v9688_v36  ;;  %v9691_v37 = vld [vmem:[#allocation4 + $0x70] sm:$0xff] }
 0x1cd   :  { %12814 = vst [vmem:[#allocation87_spill] sm:$0xff] %v10629_v50  ;;  %1256 = vmatprep.mubr.f32.mxu1 %v12786_v31 }
 0x1cf   :  { %v10632_v32 = vpop.f32.mrb[26].mxu1 }
 0x1d0   :  { %12815 = vst [vmem:[#allocation88_spill] sm:$0xff] %v10632_v32  ;;  %v10634_v52 = vpop.f32.mrb[27].mxu1  ;;  %1257 = vmatmul.mubr.f32.gmra.mrb[132].mxu1 %v9689_v35  ;;  %v9692_v32 = vld [vmem:[#allocation4 + $0x78] sm:$0xff] }
 0x1d1   :  { %12816 = vst [vmem:[#allocation89_spill] sm:$0xff] %v10634_v52  ;;  %1262 = vmatprep.mubr.f32.mxu1 %v12786_v31 }
 0x1d3   :  { %v10637_v0 = vpop.f32.mrb[28].mxu1 }
 0x1d4   :  { %12817 = vst [vmem:[#allocation90_spill] sm:$0xff] %v10637_v0  ;;  %v10639_v49 = vpop.f32.mrb[29].mxu1  ;;  %1263 = vmatmul.mubr.f32.gmra.mrb[134].mxu1 %v9690_v44  ;;  %v9693_v0 = vld [vmem:[#allocation4 + $0x80] sm:$0xff] }
 0x1d5   :  { %12818 = vst [vmem:[#allocation91_spill] sm:$0xff] %v10639_v49  ;;  %1268 = vmatprep.mubr.f32.mxu1 %v12786_v31 }
 0x1d7   :  { %v10642_v50 = vpop.f32.mrb[30].mxu1 }
 0x1d8   :  { %12819 = vst [vmem:[#allocation92_spill] sm:$0xff] %v10642_v50  ;;  %v10644_v36 = vpop.f32.mrb[31].mxu1  ;;  %1269 = vmatmul.mubr.f32.gmra.mrb[136].mxu1 %v9691_v37  ;;  %v9694_v50 = vld [vmem:[#allocation4 + $0x88] sm:$0xff] }
 0x1d9   :  { %12820 = vst [vmem:[#allocation93_spill] sm:$0xff] %v10644_v36  ;;  %1274 = vmatprep.mubr.f32.mxu1 %v12786_v31 }
 0x1db   :  { %v10647_v52 = vpop.f32.mrb[32].mxu1 }
 0x1dc   :  { %12821 = vst [vmem:[#allocation94_spill] sm:$0xff] %v10647_v52  ;;  %v10649_v35 = vpop.f32.mrb[33].mxu1  ;;  %1275 = vmatmul.mubr.f32.gmra.mrb[138].mxu1 %v9692_v32  ;;  %v9695_v52 = vld [vmem:[#allocation4 + $0x90] sm:$0xff] }
 0x1dd   :  { %12822 = vst [vmem:[#allocation95_spill] sm:$0xff] %v10649_v35  ;;  %1280 = vmatprep.mubr.f32.mxu1 %v12786_v31 }
 0x1df   :  { %v10652_v49 = vpop.f32.mrb[34].mxu1 }
 0x1e0   :  { %12823 = vst [vmem:[#allocation96_spill] sm:$0xff] %v10652_v49  ;;  %v10654_v44 = vpop.f32.mrb[35].mxu1  ;;  %1281 = vmatmul.mubr.f32.gmra.mrb[140].mxu1 %v9693_v0  ;;  %v9696_v49 = vld [vmem:[#allocation4 + $0x98] sm:$0xff] }
 0x1e1   :  { %12824 = vst [vmem:[#allocation97_spill] sm:$0xff] %v10654_v44  ;;  %1286 = vmatprep.mubr.f32.mxu1 %v12786_v31 }
 0x1e3   :  { %v10657_v36 = vpop.f32.mrb[36].mxu1 }
 0x1e4   :  { %12825 = vst [vmem:[#allocation98_spill] sm:$0xff] %v10657_v36  ;;  %v10659_v37 = vpop.f32.mrb[37].mxu1  ;;  %1287 = vmatmul.mubr.f32.gmra.mrb[142].mxu1 %v9694_v50  ;;  %v9697_v36 = vld [vmem:[#allocation4 + $0xa0] sm:$0xff] }
 0x1e5   :  { %12826 = vst [vmem:[#allocation99_spill] sm:$0xff] %v10659_v37  ;;  %1292 = vmatprep.mubr.f32.mxu1 %v12786_v31 }
 0x1e7   :  { %v10662_v35 = vpop.f32.mrb[38].mxu1 }
 0x1e8   :  { %12827 = vst [vmem:[#allocation100_spill] sm:$0xff] %v10662_v35  ;;  %v10664_v32 = vpop.f32.mrb[39].mxu1  ;;  %1293 = vmatmul.mubr.f32.gmra.mrb[144].mxu1 %v9695_v52  ;;  %v1716_v52 = vld [vmem:[#allocation12 + $0x98] sm:$0xff] }
 0x1e9   :  { %12828 = vst [vmem:[#allocation101_spill] sm:$0xff] %v10664_v32  ;;  %1298 = vmatprep.mubr.f32.mxu1 %v12786_v31  ;;  %v9698_v32 = vld [vmem:[#allocation4 + $0xa8] sm:$0xff] }
 0x1eb   :  { %v10667_v44 = vpop.f32.mrb[40].mxu1 }
 0x1ec   :  { %12829 = vst [vmem:[#allocation102_spill] sm:$0xff] %v10667_v44  ;;  %v10669_v0 = vpop.f32.mrb[41].mxu1  ;;  %1299 = vmatmul.mubr.f32.gmra.mrb[146].mxu1 %v9696_v49  ;;  %v1720_v49 = vld [vmem:[#allocation12 + $0xb8] sm:$0xff]  ;;  %v1743_v44 = vld [vmem:[#allocation12 + $0x170] sm:$0xff] }
 0x1ed   :  { %12830 = vst [vmem:[#allocation103_spill] sm:$0xff] %v10669_v0  ;;  %1304 = vmatprep.mubr.f32.mxu1 %v12786_v31 }
 0x1ef   :  { %v10672_v37 = vpop.f32.mrb[42].mxu1 }
 0x1f0   :  { %12831 = vst [vmem:[#allocation104_spill] sm:$0xff] %v10672_v37  ;;  %v10674_v50 = vpop.f32.mrb[43].mxu1  ;;  %1305 = vmatmul.mubr.f32.gmra.mrb[148].mxu1 %v9697_v36  ;;  %v1715_v36 = vld [vmem:[#allocation12 + $0x90] sm:$0xff] }
 0x1f1   :  { %12832 = vst [vmem:[#allocation105_spill] sm:$0xff] %v10674_v50  ;;  %1310 = vmatprep.mubr.f32.mxu1 %v12786_v31  ;;  %v1735_v37 = vld [vmem:[#allocation12 + $0x130] sm:$0xff] }
 0x1f4   :  { %1311 = vmatmul.mubr.f32.gmra.mrb[150].mxu1 %v9698_v32  ;;  %v1719_v32 = vld [vmem:[#allocation12 + $0xb0] sm:$0xff] }
 0x1f5   :  { %1316 = vmatprep.mubr.f32.mxu1 %v12786_v31 }
 0x1f8   :  { %1317 = vmatmul.mubr.f32.gmra.mrb[152].mxu1 %v10233_v16  ;;  %v1699_v16 = vld [vmem:[#allocation12 + $0x10] sm:$0xff] }
 0x1f9   :  { %1322 = vmatprep.mubr.f32.mxu1 %v12786_v31 }
 0x1fc   :  { %1323 = vmatmul.mubr.f32.gmra.mrb[154].mxu1 %v10245_v23  ;;  %v1703_v23 = vld [vmem:[#allocation12 + $0x30] sm:$0xff] }
 0x1fd   :  { %1328 = vmatprep.mubr.f32.mxu1 %v12786_v31 }
 0x200   :  { %1329 = vmatmul.mubr.f32.gmra.mrb[156].mxu1 %v10257_v34  ;;  %v1708_v34 = vld [vmem:[#allocation12 + $0x58] sm:$0xff] }
 0x201   :  { %1334 = vmatprep.mubr.f32.mxu1 %v12786_v31 }
 0x204   :  { %1335 = vmatmul.mubr.f32.gmra.mrb[158].mxu1 %v10269_v45  ;;  %v1712_v45 = vld [vmem:[#allocation12 + $0x78] sm:$0xff] }
 0x205   :  { %1340 = vmatprep.mubr.f32.mxu1 %v12786_v31 }
 0x208   :  { %1341 = vmatmul.mubr.f32.gmra.mrb[160].mxu1 %v10281_v62  ;;  %v10698_v62 = vpack.c.bf16 %v1703_v23, %v1699_v16  ;;  %v1724_v16 = vld [vmem:[#allocation12 + $0xd8] sm:$0xff] }
 0x209   :  { %1346 = vmatprep.mubr.f32.mxu1 %v12786_v31  ;;  %v1728_v23 = vld [vmem:[#allocation12 + $0xf8] sm:$0xff] }
 0x20c   :  { %1347 = vmatmul.mubr.f32.gmra.mrb[162].mxu1 %v10293_v11  ;;  %v10700_v11 = vpack.c.bf16 %v1712_v45, %v1708_v34  ;;  %v10713_v34 = vpack.c.bf16 %v1719_v32, %v1715_v36  ;;  %v10716_v45 = vpack.c.bf16 %v1728_v23, %v1724_v16  ;;  %v1731_v32 = vld [vmem:[#allocation12 + $0x110] sm:$0xff]  ;;  %v1740_v16 = vld [vmem:[#allocation12 + $0x158] sm:$0xff] }
 0x20d   :  { %1352 = vmatprep.mubr.f32.mxu1 %v12786_v31  ;;  %v1744_v23 = vld [vmem:[#allocation12 + $0x178] sm:$0xff]  ;;  %v10728_v0 = vpack.c.bf16 %v1735_v37, %v1731_v32  ;;  %v1747_v37 = vld [vmem:[#allocation12 + $0x190] sm:$0xff] }
 0x20e   :  { %v1751_v32 = vld [vmem:[#allocation12 + $0x1b0] sm:$0xff] }
 0x210   :  { %1353 = vmatmul.mubr.f32.gmra.mrb[164].mxu1 %v10303_v13  ;;  %v1707_v13 = vld [vmem:[#allocation12 + $0x50] sm:$0xff] }
 0x211   :  { %1358 = vmatprep.mubr.f32.mxu1 %v12786_v31 }
 0x214   :  { %1359 = vmatmul.mubr.f32.gmra.mrb[166].mxu1 %v10310_v19  ;;  %v1711_v19 = vld [vmem:[#allocation12 + $0x70] sm:$0xff] }
 0x215   :  { %1364 = vmatprep.mubr.f32.mxu1 %v12786_v31 }
 0x218   :  { %1365 = vmatmul.mubr.f32.gmra.mrb[168].mxu1 %v10316_v20  ;;  %v10705_v20 = vpack.c.bf16 %v1711_v19, %v1707_v13  ;;  %v1723_v13 = vld [vmem:[#allocation12 + $0xd0] sm:$0xff] }
 0x219   :  { %1370 = vmatprep.mubr.f32.mxu1 %v12786_v31  ;;  %v1727_v19 = vld [vmem:[#allocation12 + $0xf0] sm:$0xff] }
 0x21a   :  { %v10721_v50 = vpack.c.bf16 %v1727_v19, %v1723_v13  ;;  %v10732_v13 = vpack.c.bf16 %v1744_v23, %v1740_v16  ;;  %v1739_v19 = vld [vmem:[#allocation12 + $0x150] sm:$0xff]  ;;  %v10741_v16 = vpack.c.bf16 %v1751_v32, %v1747_v37  ;;  %v10744_v23 = vpack.c.bf16 %v1760_v27, %v1756_v28 }
 0x21b   :  { %v10735_v35 = vpack.c.bf16 %v1743_v44, %v1739_v19  ;;  %v10747_v44 = vpack.c.bf16 %v1759_v24, %v1755_v29 }
 0x21c   :  { %1371 = vmatmul.mubr.f32.gmra.mrb[170].mxu1 %v10322_v21  ;;  %v10708_v21 = vpack.c.bf16 %v1720_v49, %v1716_v52  ;;  %v1732_v52 = vld [vmem:[#allocation12 + $0x118] sm:$0xff]  ;;  %12833 = vst [vmem:[#allocation106_spill] sm:$0xff] %v10744_v23 }
 0x21d   :  { %1930 = vmatprep.mubr.f32.mxu1 %v12786_v31  ;;  %v1736_v49 = vld [vmem:[#allocation12 + $0x138] sm:$0xff]  ;;  %12834 = vst [vmem:[#allocation107_spill] sm:$0xff] %v10747_v44 }
 0x21e   :  { %v10724_v36 = vpack.c.bf16 %v1736_v49, %v1732_v52  ;;  %v1748_v52 = vld [vmem:[#allocation12 + $0x198] sm:$0xff] }
 0x21f   :  { %v1752_v49 = vld [vmem:[#allocation12 + $0x1b8] sm:$0xff] }
 0x220   :  { %1931 = vmatmul.mubr.f32.vlgmr.msra.gmra.mrb[44].mxu1 %v12786_v31  ;;  %v10738_v56 = vpack.c.bf16 %v1752_v49, %v1748_v52 }
 0x221   :  { %7457 = vmatpush1.bf16.msra.mxu1 %v10698_v62  ;;  %1936 = vmatprep.mubr.f32.mxu1 %v12786_v31 }
 0x222   :  { %7459 = vmatprep.subr.bf16.mxu1 %v10700_v11 }
 0x224   :  { %1937 = vmatmul.mubr.f32.gmra.mrb[46].mxu1 %v12786_v31 }
 0x225   :  { %7461 = vmatpush1.bf16.msra.mxu1 %v10705_v20  ;;  %1942 = vmatprep.mubr.f32.mxu1 %v12786_v31 }
 0x226   :  { %7463 = vmatprep.subr.bf16.mxu1 %v10708_v21 }
 0x228   :  { %1943 = vmatmul.mubr.f32.gmra.mrb[48].mxu1 %v12786_v31 }
 0x229   :  { %7465 = vmatpush1.bf16.msra.mxu1 %v10713_v34  ;;  %1948 = vmatprep.mubr.f32.mxu1 %v12786_v31 }
 0x22a   :  { %7467 = vmatprep.subr.bf16.mxu1 %v10716_v45 }
 0x22c   :  { %1949 = vmatmul.mubr.f32.gmra.mrb[50].mxu1 %v12786_v31 }
 0x22d   :  { %7469 = vmatpush1.bf16.msra.mxu1 %v10721_v50  ;;  %2141 = vmatprep.mubr.f32.mxu1 %v12786_v31 }
 0x22e   :  { %7471 = vmatprep.subr.bf16.mxu1 %v10724_v36 }
 0x231   :  { %7473 = vmatpush1.bf16.msra.mxu1 %v10728_v0 }
 0x232   :  { %7475 = vmatprep.subr.bf16.mxu1 %v10732_v13 }
 0x235   :  { %7477 = vmatpush1.bf16.msra.mxu1 %v10735_v35 }
 0x236   :  { %7479 = vmatprep.subr.bf16.mxu1 %v10738_v56 }
 0x239   :  { %7481 = vmatpush1.bf16.msra.mxu1 %v10741_v16 }
 0x23a   :  { %7483 = vmatprep.subr.bf16.mxu1 %v10744_v23 }
 0x23d   :  { %7485 = vmatpush1.bf16.msra.mxu1 %v10747_v44 }
 0x23e   :  { %7519 = vmatprep.subr.bf16.mxu1 %v10357_v53 }
 0x240   :  { %2142 = vmatmul.mubr.f32.vlgmr.msra.gmra.mrb[164].mxu1 %v12786_v31 }
 0x241   :  { %2147 = vmatprep.mubr.f32.mxu1 %v12786_v31  ;;  %7521 = vmatpush1.bf16.msra.mxu1 %v10509_v39 }
 0x242   :  { %7523 = vmatprep.subr.bf16.mxu1 %v10512_v63 }
 0x243   :  { %v1843_v27 = vpop.f32.mrb[0].mxu0 }
 0x244   :  { %2148 = vmatmul.mubr.f32.gmra.mrb[166].mxu1 %v12786_v31  ;;  %v1845_v28 = vpop.f32.mrb[1].mxu0 }
 0x245   :  { %2153 = vmatprep.mubr.f32.mxu1 %v12786_v31  ;;  %7525 = vmatpush1.bf16.msra.mxu1 %v10523_v59 }
 0x246   :  { %7527 = vmatprep.subr.bf16.mxu1 %v10526_v43 }
 0x247   :  { %v1849_v24 = vpop.f32.mrb[2].mxu0 }
 0x248   :  { %2154 = vmatmul.mubr.f32.gmra.mrb[168].mxu1 %v12786_v31  ;;  %v1851_v29 = vpop.f32.mrb[3].mxu0 }
 0x249   :  { %2159 = vmatprep.mubr.f32.mxu1 %v12786_v31  ;;  %7529 = vmatpush1.bf16.msra.mxu1 %v10536_v14 }
 0x24a   :  { %7531 = vmatprep.subr.bf16.mxu1 %v10539_v42  ;;  %v10795_v42 = vld [vmem:[#allocation9] sm:$0xff] }
 0x24b   :  { %v1855_v19 = vpop.f32.mrb[4].mxu0 }
 0x24c   :  { %2160 = vmatmul.mubr.f32.gmra.mrb[170].mxu1 %v12786_v31  ;;  %v1857_v52 = vpop.f32.mrb[5].mxu0 }
 0x24d   :  { %7533 = vmatpush1.bf16.msra.mxu1 %v10549_v54  ;;  %2505 = vmatprep.mubr.f32.mxu1 %v12786_v31 }
 0x24e   :  { %7535 = vmatprep.subr.bf16.mxu1 %v10552_v5 }
 0x24f   :  { %v1861_v49 = vpop.f32.mrb[6].mxu0 }
 0x250   :  { %v1863_v37 = vpop.f32.mrb[7].mxu0 }
 0x251   :  { %7537 = vmatpush1.bf16.msra.mxu1 %v10562_v38 }
 0x252   :  { %7539 = vmatprep.subr.bf16.mxu1 %v10565_v51 }
 0x255   :  { %7541 = vmatpush1.bf16.msra.mxu1 %v10575_v47 }
 0x256   :  { %7543 = vmatprep.subr.bf16.mxu1 %v10578_v15 }
 0x259   :  { %7545 = vmatpush1.bf16.msra.mxu1 %v10586_v2 }
 0x25a   :  { %7547 = vmatprep.subr.bf16.mxu1 %v10589_v3  ;;  %v309_v3 = vlaneseq }
 0x25d   :  { %7549 = vmatpush1.bf16.msra.mxu1 %v10597_v46  ;;  %v10792_v46 = vshrl.u32 %v309_v3, 7 }
 0x25e   :  { %7583 = vmatprep.subr.bf16.mxu1 %v10600_v12 }
 0x25f   :  { %v315_v12 = vsub.s32 1, %v10792_v46  ;;  %v311_v18 = vsub.s32 0, %v10792_v46 }
 0x261   :  { %v10799_v14 = vrot.slane %v10795_v42, %v315_v12  ;;  %v10803_v43 = vrot.slane %v10795_v42, %v311_v18  ;;  %v319_v12 = vsub.s32 2, %v10792_v46 }
 0x263   :  { %12835 = vst [vmem:[#allocation108_spill] sm:$0xff] %v10799_v14  ;;  %v8447_v17 = vadd.f32 %v1845_v28, %v10799_v14  ;;  %12836 = vst [vmem:[#allocation109_spill] sm:$0xff] %v10803_v43  ;;  %v8446_v7 = vadd.f32 %v1843_v27, %v10803_v43  ;;  %v8449_v3 = vadd.f32 %v1851_v29, %v10799_v14  ;;  %v323_v28 = vsub.s32 3, %v10792_v46 }
 0x264   :  { %v10776_v32 = vpop.f32.mrb[76].mxu0  ;;  %v8448_v63 = vadd.f32 %v1849_v24, %v10803_v43  ;;  %v8451_v39 = vadd.f32 %v1857_v52, %v10799_v14  ;;  %v8450_v60 = vadd.f32 %v1855_v19, %v10803_v43 }
 0x265   :  { %v10778_v5 = vpop.f32.mrb[77].mxu0  ;;  %v2183_v59 = vmul.f32 0.5, %v8447_v17  ;;  %v2182_v6 = vmul.f32 0.5, %v8446_v7  ;;  %v2185_v61 = vmul.f32 0.5, %v8449_v3  ;;  %v8453_v17 = vadd.f32 %v1863_v37, %v10799_v14 }
 0x266   :  { %v2184_v18 = vmul.f32 0.5, %v8448_v63  ;;  %v2187_v27 = vmul.f32 0.5, %v8451_v39  ;;  %v10814_v7 = vrot.slane %v10795_v42, %v319_v12  ;;  %v2186_v24 = vmul.f32 0.5, %v8450_v60 }
 0x267   :  { %8976 = vtanh.f32 %v2183_v59  ;;  %v8452_v59 = vadd.f32 %v1861_v49, %v10803_v43  ;;  %v10818_v29 = vrot.slane %v10795_v42, %v323_v28  ;;  %v2189_v52 = vmul.f32 0.5, %v8453_v17 }
 0x268   :  { %v10780_v54 = vpop.f32.mrb[78].mxu0  ;;  %8978 = vtanh.f32 %v2182_v6  ;;  %12837 = vst [vmem:[#allocation110_spill] sm:$0xff] %v10814_v7 }
 0x269   :  { %v10782_v38 = vpop.f32.mrb[79].mxu0  ;;  %8980 = vtanh.f32 %v2185_v61  ;;  %v2188_v37 = vmul.f32 0.5, %v8452_v59 }
 0x26a   :  { %8982 = vtanh.f32 %v2184_v18 }
 0x26b   :  { %8984 = vtanh.f32 %v2187_v27 }
 0x26c   :  { %v10784_v51 = vpop.f32.mrb[80].mxu0  ;;  %8986 = vtanh.f32 %v2186_v24  ;;  %v331_v24 = vsub.s32 5, %v10792_v46 }
 0x26d   :  { %v10786_v47 = vpop.f32.mrb[81].mxu0 }
 0x270   :  { %v10788_v15 = vpop.f32.mrb[82].mxu0 }
 0x271   :  { %v10790_v2 = vpop.f32.mrb[83].mxu0  ;;  %v8977_v61 = vpop.eup %8976 }
 0x272   :  { %v8979_v3 = vpop.eup %8978  ;;  %v2199_v49 = vmul.f32 0.5, %v8977_v61 }
 0x273   :  { %v8981_v18 = vpop.eup %8980 }
 0x274   :  { %v8983_v14 = vpop.eup %8982 }
 0x275   :  { %v8985_v53 = vpop.eup %8984 }
 0x2f3   :  { %v1932_v19 = vpop.f32.mrb[44].mxu1 }
 0x2f4   :  { %v8554_v6 = vadd.f32 %v1932_v19, %v10814_v7  ;;  %v1934_v63 = vpop.f32.mrb[45].mxu1  ;;  %v2198_v19 = vmul.f32 0.5, %v8979_v3  ;;  %v2200_v3 = vmul.f32 0.5, %v8983_v14 }
 0x2f5   :  { %v8555_v39 = vadd.f32 %v1934_v63, %v10818_v29  ;;  %v2207_v63 = vadd.f32 0.5, %v2199_v49 }
 0x2f6   :  { %8988 = vtanh.f32 %v8554_v6  ;;  %v2201_v6 = vmul.f32 0.5, %v8981_v18 }
 0x2f7   :  { %8990 = vtanh.f32 %v2189_v52  ;;  %v1938_v60 = vpop.f32.mrb[46].mxu1  ;;  %v2218_v17 = vmul.f32 0.5, %v8555_v39  ;;  %v8987_v39 = vpop.eup %8986  ;;  %v2234_v18 = vmul.f32 0.0, %v2207_v63 }
 0x2f8   :  { %v8556_v12 = vadd.f32 %v1938_v60, %v10814_v7  ;;  %v1940_v28 = vpop.f32.mrb[47].mxu1  ;;  %8992 = vtanh.f32 %v2188_v37  ;;  %v327_v37 = vsub.s32 4, %v10792_v46  ;;  %v2209_v44 = vadd.f32 0.5, %v2201_v6 }
 0x2f9   :  { %v8557_v27 = vadd.f32 %v1940_v28, %v10818_v29  ;;  %v10829_v28 = vrot.slane %v10795_v42, %v331_v24  ;;  %v2202_v8 = vmul.f32 0.5, %v8987_v39  ;;  %v2208_v24 = vadd.f32 0.5, %v2200_v3 }
 0x2fa   :  { %8994 = vtanh.f32 %v8556_v12  ;;  %v2206_v12 = vadd.f32 0.5, %v2198_v19  ;;  %v10834_v14 = vrot.slane %v10795_v42, %v327_v37 }
 0x2fb   :  { %v1944_v59 = vpop.f32.mrb[48].mxu1  ;;  %8996 = vtanh.f32 %v2218_v17  ;;  %v2219_v61 = vmul.f32 0.5, %v8557_v27  ;;  %v8675_v63 = vadd.f32 %v10778_v5, %v10829_v28  ;;  %v8677_v5 = vadd.f32 %v10782_v38, %v10829_v28 }
 0x2fc   :  { %v8558_v52 = vadd.f32 %v1944_v59, %v10814_v7  ;;  %v1946_v43 = vpop.f32.mrb[49].mxu1  ;;  %v8674_v37 = vadd.f32 %v10776_v32, %v10834_v14 }
 0x2fd   :  { %v8559_v60 = vadd.f32 %v1946_v43, %v10818_v29  ;;  %v2203_v43 = vmul.f32 0.5, %v8985_v53 }
 0x2fe   :  { %8998 = vtanh.f32 %v8558_v52 }
 0x2ff   :  { %v1950_v48 = vpop.f32.mrb[50].mxu1  ;;  %v2220_v59 = vmul.f32 0.5, %v8559_v60  ;;  %9000 = vtanh.f32 %v2219_v61  ;;  %v2211_v61 = vadd.f32 0.5, %v2203_v43  ;;  %v2254_v43 = vmul.f32 0.5, %v8674_v37 }
 0x300   :  { %v8989_v49 = vpop.eup %8988  ;;  %v8560_v17 = vadd.f32 %v1950_v48, %v10814_v7  ;;  %v1952_v27 = vpop.f32.mrb[51].mxu1 }
 0x301   :  { %v8991_v30 = vpop.eup %8990  ;;  %v2238_v23 = vmul.f32 %v8989_v49, %v2206_v12  ;;  %v8561_v52 = vadd.f32 %v1952_v27, %v10818_v29  ;;  %v2235_v12 = vmul.f32 0.0, %v2209_v44  ;;  %v2210_v49 = vadd.f32 0.5, %v2202_v8 }
 0x302   :  { %9002 = vtanh.f32 %v8560_v17  ;;  %v8993_v19 = vpop.eup %8992  ;;  %v2205_v60 = vmul.f32 0.5, %v8991_v30  ;;  %v2255_v27 = vmul.f32 0.5, %v8675_v63  ;;  %v2236_v44 = vmul.f32 0.0, %v2211_v61 }
 0x303   :  { %v10838_v6 = vadd.f32 %v2238_v23, %v2234_v18  ;;  %9004 = vtanh.f32 %v2220_v59  ;;  %v2221_v53 = vmul.f32 0.5, %v8561_v52  ;;  %v2204_v3 = vmul.f32 0.5, %v8993_v19 }
 0x304   :  { %v8995_v48 = vpop.eup %8994  ;;  %v2213_v18 = vadd.f32 0.5, %v2205_v60  ;;  %v8676_v8 = vadd.f32 %v10780_v54, %v10834_v14  ;;  %v8679_v60 = vadd.f32 %v10786_v47, %v10829_v28  ;;  %v339_v54 = vsub.s32 7, %v10792_v46 }
 0x305   :  { %9006 = vtanh.f32 %v10838_v6  ;;  %v2239_v39 = vmul.f32 %v8995_v48, %v2208_v24  ;;  %v8997_v17 = vpop.eup %8996  ;;  %v2212_v19 = vadd.f32 0.5, %v2204_v3  ;;  %v2257_v24 = vmul.f32 0.5, %v8677_v5 }
 0x306   :  { %9008 = vtanh.f32 %v2221_v53  ;;  %v2226_v32 = vmul.f32 0.5, %v8997_v17  ;;  %v2237_v48 = vmul.f32 0.0, %v2213_v18  ;;  %v335_v53 = vsub.s32 6, %v10792_v46 }
 0x307   :  { %v10845_v23 = vadd.f32 %v2239_v39, %v2235_v12  ;;  %v8678_v12 = vadd.f32 %v10784_v51, %v10834_v14  ;;  %v2259_v47 = vmul.f32 0.5, %v8679_v60  ;;  %v8681_v5 = vadd.f32 %v10790_v2, %v10829_v28 }
 0x308   :  { %v8999_v30 = vpop.eup %8998  ;;  %v2230_v37 = vadd.f32 0.5, %v2226_v32  ;;  %v10866_v51 = vrot.slane %v10795_v42, %v335_v53  ;;  %v8680_v18 = vadd.f32 %v10788_v15, %v10834_v14 }
 0x309   :  { %v2240_v59 = vmul.f32 %v8999_v30, %v2210_v49  ;;  %9010 = vtanh.f32 %v10845_v23  ;;  %v9001_v52 = vpop.eup %9000  ;;  %v2256_v49 = vmul.f32 0.5, %v8676_v8  ;;  %v2258_v46 = vmul.f32 0.5, %v8678_v12 }
 0x30a   :  { %9012 = vtanh.f32 %v2255_v27  ;;  %v2227_v17 = vmul.f32 0.5, %v9001_v52  ;;  %v2261_v15 = vmul.f32 0.5, %v8681_v5 }
 0x30b   :  { %v10850_v63 = vadd.f32 %v2240_v59, %v2236_v44  ;;  %v10871_v44 = vrot.slane %v10795_v42, %v339_v54 }
 0x30c   :  { %v9003_v38 = vpop.eup %9002 }
 0x30d   :  { %v2241_v61 = vmul.f32 %v9003_v38, %v2212_v19  ;;  %9014 = vtanh.f32 %v10850_v63  ;;  %v9005_v39 = vpop.eup %9004  ;;  %v2260_v38 = vmul.f32 0.5, %v8680_v18 }
 0x30e   :  { %9016 = vtanh.f32 %v2254_v43  ;;  %v2231_v43 = vadd.f32 0.5, %v2227_v17  ;;  %v2228_v8 = vmul.f32 0.5, %v9005_v39 }
 0x30f   :  { %v9007_v3 = vpop.eup %9006  ;;  %9018 = vtanh.f32 %v2257_v24  ;;  %v10859_v27 = vadd.f32 %v2241_v61, %v2237_v48 }
 0x310   :  { %v10863_v30 = vmul.f32 %v9007_v3, %v2230_v37  ;;  %v9009_v59 = vpop.eup %9008  ;;  %v2232_v60 = vadd.f32 0.5, %v2228_v8 }
 0x311   :  { %9020 = vtanh.f32 %v10859_v27  ;;  %v2229_v53 = vmul.f32 0.5, %v9009_v59 }
 0x312   :  { %12838 = vst [vmem:[#allocation111_spill] sm:$0xff] %v10863_v30  ;;  %9022 = vtanh.f32 %v2256_v49  ;;  %2417 = vmatmul.mubr.f32.vlgmr.msra.gmra.mrb[8].mxu0 %v10863_v30  ;;  %2506 = vmatmul.mubr.f32.vlgmr.msra.gmra.mrb[52].mxu1 %v10863_v30  ;;  %v12864_v30 = vld [vmem:[#allocation57_spill] sm:$0xff] }
 0x313   :  { %v9011_v2 = vpop.eup %9010  ;;  %v2143_v32 = vpop.f32.mrb[164].mxu1  ;;  %7553 = vmatpush1.bf16.msra.mxu0 %v10415_v26  ;;  %7585 = vmatpush1.bf16.msra.mxu1 %v10698_v62  ;;  %9024 = vtanh.f32 %v2259_v47 }
 0x314   :  { %v8738_v42 = vadd.f32 %v2143_v32, %v10866_v51  ;;  %v2145_v52 = vpop.f32.mrb[165].mxu1  ;;  %2422 = vmatprep.mubr.f32.mxu0 %v12786_v31  ;;  %2511 = vmatprep.mubr.f32.mxu1 %v12786_v31  ;;  %v10881_v19 = vmul.f32 %v9011_v2, %v2231_v43  ;;  %v9013_v24 = vpop.eup %9012  ;;  %9026 = vtanh.f32 %v2258_v46  ;;  %v2233_v46 = vadd.f32 0.5, %v2229_v53 }
 0x315   :  { %v8739_v48 = vadd.f32 %v2145_v52, %v10871_v44  ;;  %7555 = vmatprep.subr.bf16.mxu0 %v10417_v41  ;;  %7587 = vmatprep.subr.bf16.mxu1 %v10700_v11  ;;  %v2271_v39 = vmul.f32 0.5, %v9013_v24 }
 0x316   :  { %12839 = vst [vmem:[#allocation112_spill] sm:$0xff] %v10881_v19  ;;  %9028 = vtanh.f32 %v8738_v42  ;;  %2423 = vmatmul.mubr.f32.gmra.mrb[10].mxu0 %v10881_v19  ;;  %2512 = vmatmul.mubr.f32.gmra.mrb[54].mxu1 %v10881_v19  ;;  %v12863_v19 = vld [vmem:[#allocation32_spill] sm:$0xff] }
 0x317   :  { %v9015_v12 = vpop.eup %9014  ;;  %v2149_v61 = vpop.f32.mrb[166].mxu1  ;;  %7557 = vmatpush1.bf16.msra.mxu0 %v10424_v55  ;;  %7589 = vmatpush1.bf16.msra.mxu1 %v10705_v20  ;;  %9030 = vtanh.f32 %v2261_v15  ;;  %v2290_v47 = vmul.f32 0.5, %v8739_v48  ;;  %v2279_v2 = vadd.f32 0.5, %v2271_v39 }
 0x318   :  { %v9017_v54 = vpop.eup %9016  ;;  %v8740_v49 = vadd.f32 %v2149_v61, %v10866_v51  ;;  %v2151_v37 = vpop.f32.mrb[167].mxu1  ;;  %2428 = vmatprep.mubr.f32.mxu0 %v12786_v31  ;;  %2517 = vmatprep.mubr.f32.mxu1 %v12786_v31  ;;  %v10893_v17 = vmul.f32 %v9015_v12, %v2232_v60  ;;  %9032 = vtanh.f32 %v2260_v38 }
 0x319   :  { %v9019_v3 = vpop.eup %9018  ;;  %v8741_v5 = vadd.f32 %v2151_v37, %v10871_v44  ;;  %7559 = vmatprep.subr.bf16.mxu0 %v10427_v58  ;;  %7591 = vmatprep.subr.bf16.mxu1 %v10708_v21  ;;  %v2270_v59 = vmul.f32 0.5, %v9017_v54  ;;  %v2306_v39 = vmul.f32 0.0, %v2279_v2 }
 0x31a   :  { %12840 = vst [vmem:[#allocation113_spill] sm:$0xff] %v10893_v17  ;;  %9034 = vtanh.f32 %v8740_v49  ;;  %2429 = vmatmul.mubr.f32.gmra.mrb[12].mxu0 %v10893_v17  ;;  %2518 = vmatmul.mubr.f32.gmra.mrb[56].mxu1 %v10893_v17  ;;  %v2273_v32 = vmul.f32 0.5, %v9019_v3  ;;  %v12859_v17 = vld [vmem:[#allocation53_spill] sm:$0xff] }
 0x31b   :  { %v9021_v18 = vpop.eup %9020  ;;  %v2155_v43 = vpop.f32.mrb[168].mxu1  ;;  %7561 = vmatpush1.bf16.msra.mxu0 %v10434_v1  ;;  %7593 = vmatpush1.bf16.msra.mxu1 %v10713_v34  ;;  %9036 = vtanh.f32 %v2290_v47  ;;  %v2291_v24 = vmul.f32 0.5, %v8741_v5  ;;  %v2278_v53 = vadd.f32 0.5, %v2270_v59 }
 0x31c   :  { %v9023_v8 = vpop.eup %9022  ;;  %v8742_v15 = vadd.f32 %v2155_v43, %v10866_v51  ;;  %v2157_v42 = vpop.f32.mrb[169].mxu1  ;;  %2434 = vmatprep.mubr.f32.mxu0 %v12786_v31  ;;  %2523 = vmatprep.mubr.f32.mxu1 %v12786_v31  ;;  %v10905_v52 = vmul.f32 %v9021_v18, %v2233_v46  ;;  %v2281_v49 = vadd.f32 0.5, %v2273_v32 }
 0x31d   :  { %v8743_v38 = vadd.f32 %v2157_v42, %v10871_v44  ;;  %7563 = vmatprep.subr.bf16.mxu0 %v10437_v22  ;;  %7595 = vmatprep.subr.bf16.mxu1 %v10716_v45  ;;  %v9025_v48 = vpop.eup %9024  ;;  %v2272_v12 = vmul.f32 0.5, %v9023_v8 }
 0x31e   :  { %12841 = vst [vmem:[#allocation114_spill] sm:$0xff] %v10905_v52  ;;  %9038 = vtanh.f32 %v8742_v15  ;;  %2435 = vmatmul.mubr.f32.gmra.mrb[14].mxu0 %v10905_v52  ;;  %2524 = vmatmul.mubr.f32.gmra.mrb[58].mxu1 %v10905_v52  ;;  %v9027_v60 = vpop.eup %9026  ;;  %v2275_v5 = vmul.f32 0.5, %v9025_v48  ;;  %v2307_v42 = vmul.f32 0.0, %v2281_v49  ;;  %v12858_v52 = vld [vmem:[#allocation30_spill] sm:$0xff] }
 0x31f   :  { %v2161_v61 = vpop.f32.mrb[170].mxu1  ;;  %7565 = vmatpush1.bf16.msra.mxu0 %v10444_v57  ;;  %7597 = vmatpush1.bf16.msra.mxu1 %v10721_v50  ;;  %v2292_v37 = vmul.f32 0.5, %v8743_v38  ;;  %9040 = vtanh.f32 %v2291_v24  ;;  %v2280_v8 = vadd.f32 0.5, %v2272_v12  ;;  %v2274_v2 = vmul.f32 0.5, %v9027_v60 }
 0x320   :  { %v9029_v54 = vpop.eup %9028  ;;  %v8744_v3 = vadd.f32 %v2161_v61, %v10866_v51  ;;  %v2163_v47 = vpop.f32.mrb[171].mxu1  ;;  %7567 = vmatprep.subr.bf16.mxu0 %v10447_v33  ;;  %7599 = vmatprep.subr.bf16.mxu1 %v10724_v36  ;;  %v2283_v38 = vadd.f32 0.5, %v2275_v5 }
 0x321   :  { %v2310_v46 = vmul.f32 %v9029_v54, %v2278_v53  ;;  %v8745_v18 = vadd.f32 %v2163_v47, %v10871_v44  ;;  %2627 = vmatprep.mubr.f32.mxu0 %v12786_v31  ;;  %2716 = vmatprep.mubr.f32.mxu1 %v12786_v31  ;;  %v9031_v59 = vpop.eup %9030  ;;  %v2282_v12 = vadd.f32 0.5, %v2274_v2 }
 0x322   :  { %9042 = vtanh.f32 %v8744_v3  ;;  %v9033_v43 = vpop.eup %9032  ;;  %v2277_v48 = vmul.f32 0.5, %v9031_v59  ;;  %v2308_v49 = vmul.f32 0.0, %v2283_v38 }
 0x323   :  { %v10920_v32 = vadd.f32 %v2310_v46, %v2306_v39  ;;  %7569 = vmatpush1.bf16.msra.mxu0 %v10454_v10  ;;  %7601 = vmatpush1.bf16.msra.mxu1 %v10728_v0  ;;  %9044 = vtanh.f32 %v2292_v37  ;;  %v2293_v24 = vmul.f32 0.5, %v8745_v18  ;;  %v2276_v61 = vmul.f32 0.5, %v9033_v43  ;;  %v12842_v43 = vld [vmem:[#allocation44_spill] sm:$0xff] }
 0x324   :  { %v9035_v15 = vpop.eup %9034  ;;  %7571 = vmatprep.subr.bf16.mxu0 %v10457_v40  ;;  %7603 = vmatprep.subr.bf16.mxu1 %v10732_v13  ;;  %v2285_v37 = vadd.f32 0.5, %v2277_v48 }
 0x325   :  { %9046 = vtanh.f32 %v10920_v32  ;;  %v2311_v53 = vmul.f32 %v9035_v15, %v2280_v8  ;;  %v9037_v60 = vpop.eup %9036  ;;  %v2284_v46 = vadd.f32 0.5, %v2276_v61  ;;  %v12843_v8 = vld [vmem:[#allocation106_spill] sm:$0xff] }
 0x326   :  { %9048 = vtanh.f32 %v2293_v24  ;;  %v2298_v47 = vmul.f32 0.5, %v9037_v60  ;;  %v2309_v2 = vmul.f32 0.0, %v2285_v37  ;;  %v12845_v60 = vld [vmem:[#allocation45_spill] sm:$0xff] }
 0x327   :  { %v10927_v54 = vadd.f32 %v2311_v53, %v2307_v42  ;;  %7573 = vmatpush1.bf16.msra.mxu0 %v10462_v9  ;;  %7605 = vmatpush1.bf16.msra.mxu1 %v10735_v35 }
 0x328   :  { %v9039_v39 = vpop.eup %9038  ;;  %7575 = vmatprep.subr.bf16.mxu0 %v10465_v25  ;;  %7607 = vmatprep.subr.bf16.mxu1 %v10738_v56  ;;  %v2302_v24 = vadd.f32 0.5, %v2298_v47 }
 0x329   :  { %v2312_v3 = vmul.f32 %v9039_v39, %v2282_v12  ;;  %9050 = vtanh.f32 %v10927_v54  ;;  %v9041_v5 = vpop.eup %9040  ;;  %v12846_v12 = vld [vmem:[#allocation107_spill] sm:$0xff]  ;;  %v12848_v39 = vld [vmem:[#allocation26_spill] sm:$0xff] }
 0x32a   :  { %v2299_v38 = vmul.f32 0.5, %v9041_v5 }
 0x32b   :  { %v10934_v18 = vadd.f32 %v2312_v3, %v2308_v49  ;;  %7577 = vmatpush1.bf16.msra.mxu0 %v10470_v4  ;;  %7609 = vmatpush1.bf16.msra.mxu1 %v10741_v16  ;;  %v12849_v49 = vld [vmem:[#allocation42_spill] sm:$0xff] }
 0x32c   :  { %v9043_v59 = vpop.eup %9042  ;;  %7579 = vmatprep.subr.bf16.mxu0 %v12842_v43  ;;  %7611 = vmatprep.subr.bf16.mxu1 %v12843_v8  ;;  %v2303_v3 = vadd.f32 0.5, %v2299_v38 }
 0x32d   :  { %v2313_v15 = vmul.f32 %v9043_v59, %v2284_v46  ;;  %9052 = vtanh.f32 %v10934_v18  ;;  %v9045_v42 = vpop.eup %9044  ;;  %v12851_v59 = vld [vmem:[#allocation27_spill] sm:$0xff] }
 0x32e   :  { %v2300_v46 = vmul.f32 0.5, %v9045_v42 }
 0x32f   :  { %v9047_v48 = vpop.eup %9046  ;;  %v10941_v53 = vadd.f32 %v2313_v15, %v2309_v2  ;;  %7581 = vmatpush1.bf16.msra.mxu0 %v12845_v60  ;;  %7613 = vmatpush1.bf16.msra.mxu1 %v12846_v12  ;;  %v12852_v2 = vld [vmem:[#allocation48_spill] sm:$0xff] }
 0x330   :  { %v10945_v61 = vmul.f32 %v9047_v48, %v2302_v24  ;;  %7615 = vmatprep.subr.bf16.mxu0 %v12848_v39  ;;  %7647 = vmatprep.subr.bf16.mxu1 %v12849_v49  ;;  %v9049_v37 = vpop.eup %9048  ;;  %v12853_v15 = vld [vmem:[#allocation28_spill] sm:$0xff]  ;;  %v12854_v24 = vld [vmem:[#allocation49_spill] sm:$0xff]  ;;  %v2304_v42 = vadd.f32 0.5, %v2300_v46 }
 0x331   :  { %12844 = vst [vmem:[#allocation115_spill] sm:$0xff] %v10941_v53  ;;  %9054 = vtanh.f32 %v10941_v53  ;;  %v2301_v38 = vmul.f32 0.5, %v9049_v37 }
 0x332   :  { %12847 = vst [vmem:[#allocation116_spill] sm:$0xff] %v10945_v61  ;;  %2628 = vmatmul.mubr.f32.vlgmr.msra.gmra.mrb[68].mxu0 %v10945_v61  ;;  %2717 = vmatmul.mubr.f32.vlgmr.msra.gmra.mrb[156].mxu1 %v10945_v61  ;;  %v12857_v61 = vld [vmem:[#allocation52_spill] sm:$0xff] }
 0x333   :  { %v9051_v47 = vpop.eup %9050  ;;  %2633 = vmatprep.mubr.f32.mxu0 %v12786_v31  ;;  %2722 = vmatprep.mubr.f32.mxu1 %v12786_v31  ;;  %v2305_v37 = vadd.f32 0.5, %v2301_v38  ;;  %v12865_v38 = vld [vmem:[#allocation33_spill] sm:$0xff] }
 0x334   :  { %v10954_v5 = vmul.f32 %v9051_v47, %v2303_v3  ;;  %7617 = vmatpush1.bf16.msra.mxu0 %v12851_v59  ;;  %7649 = vmatpush1.bf16.msra.mxu1 %v12852_v2  ;;  %v12856_v47 = vld [vmem:[#allocation29_spill] sm:$0xff] }
 0x335   :  { %7619 = vmatprep.subr.bf16.mxu0 %v12853_v15  ;;  %7651 = vmatprep.subr.bf16.mxu1 %v12854_v24  ;;  %v12886_v24 = vld [vmem:[#allocation108_spill] sm:$0xff] }
 0x336   :  { %12850 = vst [vmem:[#allocation117_spill] sm:$0xff] %v10954_v5  ;;  %2634 = vmatmul.mubr.f32.gmra.mrb[70].mxu0 %v10954_v5  ;;  %2723 = vmatmul.mubr.f32.gmra.mrb[158].mxu1 %v10954_v5  ;;  %v12862_v5 = vld [vmem:[#allocation56_spill] sm:$0xff] }
 0x337   :  { %v9053_v48 = vpop.eup %9052  ;;  %2639 = vmatprep.mubr.f32.mxu0 %v12786_v31  ;;  %2728 = vmatprep.mubr.f32.mxu1 %v12786_v31 }
 0x338   :  { %v10964_v3 = vmul.f32 %v9053_v48, %v2304_v42  ;;  %7621 = vmatpush1.bf16.msra.mxu0 %v12856_v47  ;;  %7653 = vmatpush1.bf16.msra.mxu1 %v12857_v61  ;;  %v12861_v48 = vld [vmem:[#allocation31_spill] sm:$0xff]  ;;  %v12885_v61 = vld [vmem:[#allocation109_spill] sm:$0xff] }
 0x339   :  { %7623 = vmatprep.subr.bf16.mxu0 %v12858_v52  ;;  %7655 = vmatprep.subr.bf16.mxu1 %v12859_v17  ;;  %v12874_v17 = vld [vmem:[#allocation68_spill] sm:$0xff]  ;;  %v12875_v52 = vld [vmem:[#allocation38_spill] sm:$0xff] }
 0x33a   :  { %12855 = vst [vmem:[#allocation118_spill] sm:$0xff] %v10964_v3  ;;  %2640 = vmatmul.mubr.f32.gmra.mrb[72].mxu0 %v10964_v3  ;;  %2729 = vmatmul.mubr.f32.gmra.mrb[160].mxu1 %v10964_v3  ;;  %v12868_v3 = vld [vmem:[#allocation61_spill] sm:$0xff] }
 0x33b   :  { %v9055_v46 = vpop.eup %9054  ;;  %2645 = vmatprep.mubr.f32.mxu0 %v12786_v31  ;;  %2734 = vmatprep.mubr.f32.mxu1 %v12786_v31 }
 0x33c   :  { %v10974_v42 = vmul.f32 %v9055_v46, %v2305_v37  ;;  %7625 = vmatpush1.bf16.msra.mxu0 %v12861_v48  ;;  %7657 = vmatpush1.bf16.msra.mxu1 %v12862_v5  ;;  %v12866_v37 = vld [vmem:[#allocation60_spill] sm:$0xff]  ;;  %v12867_v46 = vld [vmem:[#allocation34_spill] sm:$0xff]  ;;  %v12869_v5 = vld [vmem:[#allocation35_spill] sm:$0xff] }
 0x33d   :  { %7627 = vmatprep.subr.bf16.mxu0 %v12863_v19  ;;  %7659 = vmatprep.subr.bf16.mxu1 %v12864_v30  ;;  %v12870_v19 = vld [vmem:[#allocation64_spill] sm:$0xff]  ;;  %v12872_v48 = vld [vmem:[#allocation65_spill] sm:$0xff] }
 0x33e   :  { %12860 = vst [vmem:[#allocation119_spill] sm:$0xff] %v10974_v42  ;;  %2646 = vmatmul.mubr.f32.gmra.mrb[74].mxu0 %v10974_v42  ;;  %2735 = vmatmul.mubr.f32.gmra.mrb[162].mxu1 %v10974_v42  ;;  %v12871_v30 = vld [vmem:[#allocation36_spill] sm:$0xff]  ;;  %v12873_v42 = vld [vmem:[#allocation37_spill] sm:$0xff] }
 0x33f   :  { %2992 = vmatprep.mubr.f32.mxu0 %v12786_v31  ;;  %3081 = vmatprep.mubr.f32.mxu1 %v12786_v31 }
 0x340   :  { %7629 = vmatpush1.bf16.msra.mxu0 %v12865_v38  ;;  %7661 = vmatpush1.bf16.msra.mxu1 %v12866_v37  ;;  %v12876_v38 = vld [vmem:[#allocation69_spill] sm:$0xff]  ;;  %v12877_v37 = vld [vmem:[#allocation39_spill] sm:$0xff] }
 0x341   :  { %7631 = vmatprep.subr.bf16.mxu0 %v12867_v46  ;;  %7663 = vmatprep.subr.bf16.mxu1 %v12868_v3  ;;  %v12878_v46 = vld [vmem:[#allocation72_spill] sm:$0xff] }
 0x342   :  { %v12879_v3 = vld [vmem:[#allocation40_spill] sm:$0xff] }
 0x344   :  { %7633 = vmatpush1.bf16.msra.mxu0 %v12869_v5  ;;  %7665 = vmatpush1.bf16.msra.mxu1 %v12870_v19  ;;  %v12880_v5 = vld [vmem:[#allocation73_spill] sm:$0xff] }
 0x345   :  { %7635 = vmatprep.subr.bf16.mxu0 %v12871_v30  ;;  %7667 = vmatprep.subr.bf16.mxu1 %v12872_v48  ;;  %v12881_v19 = vld [vmem:[#allocation41_spill] sm:$0xff]  ;;  %v12882_v30 = vld [vmem:[#allocation76_spill] sm:$0xff]  ;;  %v12883_v48 = vld [vmem:[#allocation43_spill] sm:$0xff] }
 0x348   :  { %7637 = vmatpush1.bf16.msra.mxu0 %v12873_v42  ;;  %7669 = vmatpush1.bf16.msra.mxu1 %v12874_v17  ;;  %v12884_v42 = vld [vmem:[#allocation77_spill] sm:$0xff] }
 0x349   :  { %7639 = vmatprep.subr.bf16.mxu0 %v12875_v52  ;;  %7671 = vmatprep.subr.bf16.mxu1 %v12876_v38 }
 0x34c   :  { %7641 = vmatpush1.bf16.msra.mxu0 %v12877_v37  ;;  %7673 = vmatpush1.bf16.msra.mxu1 %v12878_v46 }
 0x34d   :  { %7643 = vmatprep.subr.bf16.mxu0 %v12879_v3  ;;  %7675 = vmatprep.subr.bf16.mxu1 %v12880_v5 }
 0x350   :  { %7645 = vmatpush1.bf16.msra.mxu0 %v12881_v19  ;;  %7677 = vmatpush1.bf16.msra.mxu1 %v12882_v30 }
 0x351   :  { %7679 = vmatprep.subr.bf16.mxu0 %v12883_v48  ;;  %7711 = vmatprep.subr.bf16.mxu1 %v12884_v42 }
 0x3e5   :  { %v2418_v17 = vpop.f32.mrb[8].mxu0  ;;  %v2507_v52 = vpop.f32.mrb[52].mxu1 }
 0x3e6   :  { %v8454_v38 = vadd.f32 %v2418_v17, %v12885_v61  ;;  %v2420_v47 = vpop.f32.mrb[9].mxu0  ;;  %v2509_v37 = vpop.f32.mrb[53].mxu1  ;;  %v8562_v3 = vadd.f32 %v2507_v52, %v10814_v7 }
 0x3e7   :  { %v8455_v46 = vadd.f32 %v2420_v47, %v12886_v24  ;;  %v8563_v17 = vadd.f32 %v2509_v37, %v10818_v29 }
 0x3e8   :  { %v2757_v15 = vmul.f32 0.5, %v8454_v38 }
 0x3e9   :  { %v2758_v5 = vmul.f32 0.5, %v8455_v46  ;;  %v2424_v2 = vpop.f32.mrb[10].mxu0  ;;  %v2513_v19 = vpop.f32.mrb[54].mxu1 }
 0x3ea   :  { %9056 = vtanh.f32 %v2757_v15  ;;  %v8456_v30 = vadd.f32 %v2424_v2, %v12885_v61  ;;  %v2426_v48 = vpop.f32.mrb[11].mxu0  ;;  %v2515_v59 = vpop.f32.mrb[55].mxu1  ;;  %v8564_v47 = vadd.f32 %v2513_v19, %v10814_v7 }
 0x3eb   :  { %9058 = vtanh.f32 %v2758_v5  ;;  %v8457_v42 = vadd.f32 %v2426_v48, %v12886_v24  ;;  %v2793_v5 = vmul.f32 0.5, %v8563_v17  ;;  %v8565_v48 = vadd.f32 %v2515_v59, %v10818_v29 }
 0x3ec   :  { %v2759_v49 = vmul.f32 0.5, %v8456_v30  ;;  %9060 = vtanh.f32 %v8562_v3 }
 0x3ed   :  { %v2760_v38 = vmul.f32 0.5, %v8457_v42  ;;  %v2430_v39 = vpop.f32.mrb[12].mxu0  ;;  %v2519_v52 = vpop.f32.mrb[56].mxu1  ;;  %v2794_v17 = vmul.f32 0.5, %v8565_v48 }
 0x3ee   :  { %9062 = vtanh.f32 %v2759_v49  ;;  %v8458_v46 = vadd.f32 %v2430_v39, %v12885_v61  ;;  %v2432_v15 = vpop.f32.mrb[13].mxu0  ;;  %v2521_v12 = vpop.f32.mrb[57].mxu1  ;;  %v8566_v30 = vadd.f32 %v2519_v52, %v10814_v7 }
 0x3ef   :  { %9064 = vtanh.f32 %v2760_v38  ;;  %v8459_v2 = vadd.f32 %v2432_v15, %v12886_v24 }
 0x3f0   :  { %v2761_v60 = vmul.f32 0.5, %v8458_v46  ;;  %9066 = vtanh.f32 %v8564_v47  ;;  %v8567_v47 = vadd.f32 %v2521_v12, %v10818_v29 }
 0x3f1   :  { %v2762_v3 = vmul.f32 0.5, %v8459_v2  ;;  %v2436_v19 = vpop.f32.mrb[14].mxu0  ;;  %v2525_v42 = vpop.f32.mrb[58].mxu1 }
 0x3f2   :  { %9068 = vtanh.f32 %v2761_v60  ;;  %v8460_v49 = vadd.f32 %v2436_v19, %v12885_v61  ;;  %v2438_v37 = vpop.f32.mrb[15].mxu0  ;;  %v2527_v39 = vpop.f32.mrb[59].mxu1  ;;  %v8568_v60 = vadd.f32 %v2525_v42, %v10814_v7 }
 0x3f3   :  { %9070 = vtanh.f32 %v2762_v3  ;;  %v8461_v38 = vadd.f32 %v2438_v37, %v12886_v24 }
 0x3f4   :  { %v9057_v53 = vpop.eup %9056  ;;  %9072 = vtanh.f32 %v2793_v5  ;;  %v2763_v15 = vmul.f32 0.5, %v8460_v49  ;;  %v2795_v49 = vmul.f32 0.5, %v8567_v47 }
 0x3f5   :  { %v9059_v59 = vpop.eup %9058  ;;  %v2773_v46 = vmul.f32 0.5, %v9057_v53  ;;  %9074 = vtanh.f32 %v8566_v30  ;;  %v2764_v52 = vmul.f32 0.5, %v8461_v38  ;;  %v8569_v53 = vadd.f32 %v2527_v39, %v10818_v29 }
 0x3f6   :  { %v2774_v2 = vmul.f32 0.5, %v9059_v59  ;;  %9076 = vtanh.f32 %v2763_v15  ;;  %v9061_v19 = vpop.eup %9060 }
 0x3f7   :  { %v2781_v61 = vadd.f32 0.5, %v2773_v46  ;;  %9078 = vtanh.f32 %v2764_v52 }
 0x3f8   :  { %v9063_v3 = vpop.eup %9062  ;;  %v2782_v8 = vadd.f32 0.5, %v2774_v2  ;;  %9080 = vtanh.f32 %v2794_v17  ;;  %v2796_v17 = vmul.f32 0.5, %v8569_v53 }
 0x3f9   :  { %v9065_v37 = vpop.eup %9064  ;;  %v2813_v5 = vmul.f32 %v9061_v19, %v2781_v61  ;;  %v2775_v48 = vmul.f32 0.5, %v9063_v3  ;;  %9082 = vtanh.f32 %v8568_v60 }
 0x3fa   :  { %v2809_v30 = vmul.f32 %v2782_v8, %v10838_v6  ;;  %v2776_v12 = vmul.f32 0.5, %v9065_v37  ;;  %v9067_v38 = vpop.eup %9066  ;;  %9084 = vtanh.f32 %v2795_v49 }
 0x3fb   :  { %v2783_v15 = vadd.f32 0.5, %v2775_v48 }
 0x3fc   :  { %v9069_v59 = vpop.eup %9068  ;;  %v11021_v42 = vadd.f32 %v2813_v5, %v2809_v30  ;;  %v2784_v46 = vadd.f32 0.5, %v2776_v12 }
 0x3fd   :  { %v9071_v52 = vpop.eup %9070  ;;  %v2814_v7 = vmul.f32 %v9067_v38, %v2783_v15  ;;  %v2777_v2 = vmul.f32 0.5, %v9069_v59 }
 0x3fe   :  { %v9073_v61 = vpop.eup %9072  ;;  %9086 = vtanh.f32 %v11021_v42  ;;  %v2810_v39 = vmul.f32 %v2784_v46, %v10845_v23  ;;  %v2778_v47 = vmul.f32 0.5, %v9071_v52 }
 0x3ff   :  { %v9075_v6 = vpop.eup %9074  ;;  %v2785_v8 = vadd.f32 0.5, %v2777_v2  ;;  %9088 = vtanh.f32 %v2796_v17  ;;  %v2801_v12 = vmul.f32 0.5, %v9073_v61 }
 0x400   :  { %v9077_v60 = vpop.eup %9076  ;;  %v11025_v19 = vadd.f32 %v2814_v7, %v2810_v39  ;;  %v2786_v3 = vadd.f32 0.5, %v2778_v47 }
 0x401   :  { %v9079_v37 = vpop.eup %9078  ;;  %v2815_v5 = vmul.f32 %v9075_v6, %v2785_v8  ;;  %v2779_v48 = vmul.f32 0.5, %v9077_v60 }
 0x402   :  { %v9081_v30 = vpop.eup %9080  ;;  %9090 = vtanh.f32 %v11025_v19  ;;  %v2811_v49 = vmul.f32 %v2786_v3, %v10850_v63  ;;  %v2780_v53 = vmul.f32 0.5, %v9079_v37  ;;  %v2805_v63 = vadd.f32 0.5, %v2801_v12 }
 0x403   :  { %v2787_v38 = vadd.f32 0.5, %v2779_v48  ;;  %v9083_v23 = vpop.eup %9082  ;;  %v2802_v8 = vmul.f32 0.5, %v9081_v30 }
 0x404   :  { %v11029_v15 = vadd.f32 %v2815_v5, %v2811_v49  ;;  %v2788_v59 = vadd.f32 0.5, %v2780_v53  ;;  %v9085_v6 = vpop.eup %9084 }
 0x405   :  { %v2816_v46 = vmul.f32 %v9083_v23, %v2787_v38  ;;  %v2629_v7 = vpop.f32.mrb[68].mxu0  ;;  %v2718_v52 = vpop.f32.mrb[156].mxu1  ;;  %v2803_v38 = vmul.f32 0.5, %v9085_v6  ;;  %v2806_v30 = vadd.f32 0.5, %v2802_v8 }
 0x406   :  { %9092 = vtanh.f32 %v11029_v15  ;;  %v2812_v2 = vmul.f32 %v2788_v59, %v10859_v27  ;;  %v8666_v17 = vadd.f32 %v2629_v7, %v10834_v14  ;;  %v2631_v39 = vpop.f32.mrb[69].mxu0  ;;  %v2720_v47 = vpop.f32.mrb[157].mxu1  ;;  %v8730_v7 = vadd.f32 %v2718_v52, %v10866_v51 }
 0x407   :  { %v8667_v61 = vadd.f32 %v2631_v39, %v10829_v28 }
 0x408   :  { %v9087_v60 = vpop.eup %9086  ;;  %v11035_v3 = vadd.f32 %v2816_v46, %v2812_v2  ;;  %v2829_v37 = vmul.f32 0.5, %v8666_v17 }
 0x409   :  { %v11037_v5 = vmul.f32 %v9087_v60, %v2805_v63  ;;  %v2830_v48 = vmul.f32 0.5, %v8667_v61  ;;  %v2635_v49 = vpop.f32.mrb[70].mxu0  ;;  %v2724_v53 = vpop.f32.mrb[158].mxu1  ;;  %v2807_v61 = vadd.f32 0.5, %v2803_v38 }
 0x40a   :  { %9094 = vtanh.f32 %v11035_v3  ;;  %v8668_v27 = vadd.f32 %v2635_v49, %v10834_v14  ;;  %v2637_v23 = vpop.f32.mrb[71].mxu0  ;;  %v2726_v59 = vpop.f32.mrb[159].mxu1  ;;  %v8732_v39 = vadd.f32 %v2724_v53, %v10866_v51  ;;  %v8731_v53 = vadd.f32 %v2720_v47, %v10871_v44 }
 0x40b   :  { %12887 = vst [vmem:[#allocation108_spill] sm:$0xff] %v11037_v5  ;;  %v9089_v12 = vpop.eup %9088  ;;  %9096 = vtanh.f32 %v2829_v37  ;;  %v8669_v46 = vadd.f32 %v2637_v23, %v10829_v28  ;;  %2993 = vmatmul.mubr.f32.vlgmr.msra.gmra.mrb[16].mxu0 %v11037_v5  ;;  %3082 = vmatmul.mubr.f32.vlgmr.msra.gmra.mrb[60].mxu1 %v11037_v5  ;;  %v12913_v5 = vld [vmem:[#allocation57_spill] sm:$0xff] }
 0x40c   :  { %v9091_v2 = vpop.eup %9090  ;;  %9098 = vtanh.f32 %v2830_v48  ;;  %v2831_v17 = vmul.f32 0.5, %v8668_v27  ;;  %7681 = vmatpush1.bf16.msra.mxu0 %v10415_v26  ;;  %7713 = vmatpush1.bf16.msra.mxu1 %v10698_v62  ;;  %v2804_v49 = vmul.f32 0.5, %v9089_v12 }
 0x40d   :  { %v2832_v6 = vmul.f32 0.5, %v8669_v46  ;;  %v2641_v63 = vpop.f32.mrb[72].mxu0  ;;  %v2730_v8 = vpop.f32.mrb[160].mxu1  ;;  %2998 = vmatprep.mubr.f32.mxu0 %v12786_v31  ;;  %3087 = vmatprep.mubr.f32.mxu1 %v12786_v31  ;;  %v11050_v52 = vmul.f32 %v9091_v2, %v2806_v30 }
 0x40e   :  { %9100 = vtanh.f32 %v2831_v17  ;;  %v8670_v60 = vadd.f32 %v2641_v63, %v10834_v14  ;;  %v2643_v37 = vpop.f32.mrb[73].mxu0  ;;  %v2732_v48 = vpop.f32.mrb[161].mxu1  ;;  %7683 = vmatprep.subr.bf16.mxu0 %v10417_v41  ;;  %7715 = vmatprep.subr.bf16.mxu1 %v10700_v11  ;;  %v8734_v30 = vadd.f32 %v2730_v8, %v10866_v51  ;;  %v2865_v63 = vmul.f32 0.5, %v8731_v53 }
 0x40f   :  { %12888 = vst [vmem:[#allocation120_spill] sm:$0xff] %v11050_v52  ;;  %9102 = vtanh.f32 %v8730_v7  ;;  %v8671_v27 = vadd.f32 %v2643_v37, %v10829_v28  ;;  %2999 = vmatmul.mubr.f32.gmra.mrb[18].mxu0 %v11050_v52  ;;  %3088 = vmatmul.mubr.f32.gmra.mrb[62].mxu1 %v11050_v52  ;;  %v8733_v8 = vadd.f32 %v2726_v59, %v10871_v44  ;;  %v12912_v52 = vld [vmem:[#allocation32_spill] sm:$0xff] }
 0x410   :  { %v9093_v38 = vpop.eup %9092  ;;  %9104 = vtanh.f32 %v2832_v6  ;;  %v2833_v23 = vmul.f32 0.5, %v8670_v60  ;;  %7685 = vmatpush1.bf16.msra.mxu0 %v10424_v55  ;;  %7717 = vmatpush1.bf16.msra.mxu1 %v10705_v20 }
 0x411   :  { %9106 = vtanh.f32 %v8732_v39  ;;  %v2834_v12 = vmul.f32 0.5, %v8671_v27  ;;  %v2647_v7 = vpop.f32.mrb[74].mxu0  ;;  %v2736_v46 = vpop.f32.mrb[162].mxu1  ;;  %3004 = vmatprep.mubr.f32.mxu0 %v12786_v31  ;;  %3093 = vmatprep.mubr.f32.mxu1 %v12786_v31  ;;  %v11064_v47 = vmul.f32 %v9093_v38, %v2807_v61  ;;  %v2808_v39 = vadd.f32 0.5, %v2804_v49 }
 0x412   :  { %9108 = vtanh.f32 %v2833_v23  ;;  %v8672_v2 = vadd.f32 %v2647_v7, %v10834_v14  ;;  %v2649_v17 = vpop.f32.mrb[75].mxu0  ;;  %v2738_v6 = vpop.f32.mrb[163].mxu1  ;;  %7687 = vmatprep.subr.bf16.mxu0 %v10427_v58  ;;  %7719 = vmatprep.subr.bf16.mxu1 %v10708_v21  ;;  %v8735_v23 = vadd.f32 %v2732_v48, %v10871_v44 }
 0x413   :  { %12889 = vst [vmem:[#allocation121_spill] sm:$0xff] %v11064_v47  ;;  %v8673_v60 = vadd.f32 %v2649_v17, %v10829_v28  ;;  %3005 = vmatmul.mubr.f32.gmra.mrb[84].mxu0 %v11064_v47  ;;  %3094 = vmatmul.mubr.f32.gmra.mrb[64].mxu1 %v11064_v47  ;;  %9110 = vtanh.f32 %v2834_v12  ;;  %v8736_v12 = vadd.f32 %v2736_v46, %v10866_v51  ;;  %v12908_v47 = vld [vmem:[#allocation53_spill] sm:$0xff] }
 0x414   :  { %v9095_v61 = vpop.eup %9094  ;;  %v2835_v37 = vmul.f32 0.5, %v8672_v2  ;;  %7689 = vmatpush1.bf16.msra.mxu0 %v10434_v1  ;;  %7721 = vmatpush1.bf16.msra.mxu1 %v10713_v34  ;;  %9112 = vtanh.f32 %v8734_v30  ;;  %v2866_v30 = vmul.f32 0.5, %v8733_v8 }
 0x415   :  { %v9097_v27 = vpop.eup %9096  ;;  %v2836_v38 = vmul.f32 0.5, %v8673_v60  ;;  %3010 = vmatprep.mubr.f32.mxu0 %v12786_v31  ;;  %3099 = vmatprep.mubr.f32.mxu1 %v12786_v31  ;;  %v11077_v59 = vmul.f32 %v9095_v61, %v2808_v39  ;;  %v2867_v60 = vmul.f32 0.5, %v8735_v23  ;;  %v8737_v61 = vadd.f32 %v2738_v6, %v10871_v44 }
 0x416   :  { %v9099_v49 = vpop.eup %9098  ;;  %v2845_v53 = vmul.f32 0.5, %v9097_v27  ;;  %9114 = vtanh.f32 %v2835_v37  ;;  %7691 = vmatprep.subr.bf16.mxu0 %v10437_v22  ;;  %7723 = vmatprep.subr.bf16.mxu1 %v10716_v45 }
 0x417   :  { %12890 = vst [vmem:[#allocation122_spill] sm:$0xff] %v11077_v59  ;;  %v2846_v7 = vmul.f32 0.5, %v9099_v49  ;;  %9116 = vtanh.f32 %v2865_v63  ;;  %3011 = vmatmul.mubr.f32.gmra.mrb[86].mxu0 %v11077_v59  ;;  %3100 = vmatmul.mubr.f32.gmra.mrb[66].mxu1 %v11077_v59  ;;  %v12907_v59 = vld [vmem:[#allocation30_spill] sm:$0xff] }
 0x418   :  { %v9101_v2 = vpop.eup %9100  ;;  %v2853_v17 = vadd.f32 0.5, %v2845_v53  ;;  %9118 = vtanh.f32 %v2836_v38  ;;  %7693 = vmatpush1.bf16.msra.mxu0 %v10444_v57  ;;  %7725 = vmatpush1.bf16.msra.mxu1 %v10721_v50 }
 0x419   :  { %v9103_v48 = vpop.eup %9102  ;;  %v2854_v46 = vadd.f32 0.5, %v2846_v7  ;;  %v2847_v39 = vmul.f32 0.5, %v9101_v2  ;;  %7695 = vmatprep.subr.bf16.mxu0 %v10447_v33  ;;  %7727 = vmatprep.subr.bf16.mxu1 %v10724_v36  ;;  %9120 = vtanh.f32 %v8736_v12 }
 0x41a   :  { %v9105_v63 = vpop.eup %9104  ;;  %v2885_v8 = vmul.f32 %v9103_v48, %v2853_v17  ;;  %3203 = vmatprep.mubr.f32.mxu0 %v12786_v31  ;;  %3292 = vmatprep.mubr.f32.mxu1 %v12786_v31  ;;  %9122 = vtanh.f32 %v2866_v30 }
 0x41b   :  { %v9107_v37 = vpop.eup %9106  ;;  %v2881_v27 = vmul.f32 %v2854_v46, %v10920_v32  ;;  %v2855_v38 = vadd.f32 0.5, %v2847_v39  ;;  %v2848_v49 = vmul.f32 0.5, %v9105_v63  ;;  %9124 = vtanh.f32 %v2867_v60 }
 0x41c   :  { %v9109_v53 = vpop.eup %9108  ;;  %7697 = vmatpush1.bf16.msra.mxu0 %v10454_v10  ;;  %7729 = vmatpush1.bf16.msra.mxu1 %v10728_v0  ;;  %v2868_v32 = vmul.f32 0.5, %v8737_v61 }
 0x41d   :  { %v11095_v7 = vadd.f32 %v2885_v8, %v2881_v27  ;;  %v2856_v23 = vadd.f32 0.5, %v2848_v49  ;;  %v2886_v12 = vmul.f32 %v9107_v37, %v2855_v38  ;;  %v2849_v6 = vmul.f32 0.5, %v9109_v53  ;;  %7699 = vmatprep.subr.bf16.mxu0 %v10457_v40  ;;  %7731 = vmatprep.subr.bf16.mxu1 %v10732_v13  ;;  %v9111_v2 = vpop.eup %9110 }
 0x41e   :  { %v9113_v17 = vpop.eup %9112  ;;  %v2850_v46 = vmul.f32 0.5, %v9111_v2 }
 0x41f   :  { %9126 = vtanh.f32 %v11095_v7  ;;  %v2882_v30 = vmul.f32 %v2856_v23, %v10927_v54  ;;  %v2857_v48 = vadd.f32 0.5, %v2849_v6 }
 0x420   :  { %v9115_v39 = vpop.eup %9114  ;;  %7701 = vmatpush1.bf16.msra.mxu0 %v10462_v9  ;;  %7733 = vmatpush1.bf16.msra.mxu1 %v10735_v35  ;;  %v2858_v37 = vadd.f32 0.5, %v2850_v46  ;;  %9128 = vtanh.f32 %v2868_v32  ;;  %v12891_v32 = vld [vmem:[#allocation106_spill] sm:$0xff] }
 0x421   :  { %v9117_v63 = vpop.eup %9116  ;;  %v11103_v8 = vadd.f32 %v2886_v12, %v2882_v30  ;;  %v2887_v27 = vmul.f32 %v9113_v17, %v2857_v48  ;;  %v2851_v38 = vmul.f32 0.5, %v9115_v39  ;;  %7703 = vmatprep.subr.bf16.mxu0 %v10465_v25  ;;  %7735 = vmatprep.subr.bf16.mxu1 %v10738_v56 }
 0x422   :  { %v9119_v60 = vpop.eup %9118  ;;  %v2883_v54 = vmul.f32 %v2858_v37, %v10934_v18  ;;  %v2873_v23 = vmul.f32 0.5, %v9117_v63  ;;  %v12892_v18 = vld [vmem:[#allocation115_spill] sm:$0xff]  ;;  %v12893_v63 = vld [vmem:[#allocation45_spill] sm:$0xff] }
 0x423   :  { %9130 = vtanh.f32 %v11103_v8  ;;  %v2859_v61 = vadd.f32 0.5, %v2851_v38  ;;  %v2852_v49 = vmul.f32 0.5, %v9119_v60  ;;  %v9121_v53 = vpop.eup %9120  ;;  %v12894_v37 = vld [vmem:[#allocation107_spill] sm:$0xff]  ;;  %v12896_v60 = vld [vmem:[#allocation26_spill] sm:$0xff] }
 0x424   :  { %7705 = vmatpush1.bf16.msra.mxu0 %v10470_v4  ;;  %7737 = vmatpush1.bf16.msra.mxu1 %v10741_v16  ;;  %v9123_v12 = vpop.eup %9122  ;;  %v11111_v6 = vadd.f32 %v2887_v27, %v2883_v54  ;;  %v2877_v46 = vadd.f32 0.5, %v2873_v23  ;;  %v12897_v54 = vld [vmem:[#allocation42_spill] sm:$0xff] }
 0x425   :  { %v2860_v2 = vadd.f32 0.5, %v2852_v49  ;;  %v2888_v17 = vmul.f32 %v9121_v53, %v2859_v61  ;;  %7707 = vmatprep.subr.bf16.mxu0 %v12842_v43  ;;  %7739 = vmatprep.subr.bf16.mxu1 %v12891_v32  ;;  %v9125_v48 = vpop.eup %9124  ;;  %v2874_v39 = vmul.f32 0.5, %v9123_v12 }
 0x426   :  { %9132 = vtanh.f32 %v11111_v6 }
 0x427   :  { %v2884_v30 = vmul.f32 %v2860_v2, %v12892_v18  ;;  %v2878_v53 = vadd.f32 0.5, %v2874_v39  ;;  %v2875_v2 = vmul.f32 0.5, %v9125_v48  ;;  %v12901_v18 = vld [vmem:[#allocation48_spill] sm:$0xff] }
 0x428   :  { %7709 = vmatpush1.bf16.msra.mxu0 %v12893_v63  ;;  %7741 = vmatpush1.bf16.msra.mxu1 %v12894_v37 }
 0x429   :  { %v9127_v38 = vpop.eup %9126  ;;  %v11119_v27 = vadd.f32 %v2888_v17, %v2884_v30  ;;  %7743 = vmatprep.subr.bf16.mxu0 %v12896_v60  ;;  %7775 = vmatprep.subr.bf16.mxu1 %v12897_v54  ;;  %v12900_v17 = vld [vmem:[#allocation27_spill] sm:$0xff]  ;;  %v12902_v30 = vld [vmem:[#allocation28_spill] sm:$0xff]  ;;  %v2879_v48 = vadd.f32 0.5, %v2875_v2 }
 0x42a   :  { %v11123_v61 = vmul.f32 %v9127_v38, %v2877_v46  ;;  %v9129_v49 = vpop.eup %9128  ;;  %v12903_v46 = vld [vmem:[#allocation49_spill] sm:$0xff] }
 0x42b   :  { %12895 = vst [vmem:[#allocation115_spill] sm:$0xff] %v11119_v27  ;;  %9134 = vtanh.f32 %v11119_v27  ;;  %v2876_v39 = vmul.f32 0.5, %v9129_v49 }
 0x42c   :  { %12898 = vst [vmem:[#allocation123_spill] sm:$0xff] %v11123_v61  ;;  %3204 = vmatmul.mubr.f32.vlgmr.msra.gmra.mrb[60].mxu0 %v11123_v61  ;;  %3293 = vmatmul.mubr.f32.vlgmr.msra.gmra.mrb[148].mxu1 %v11123_v61  ;;  %v12906_v61 = vld [vmem:[#allocation52_spill] sm:$0xff] }
 0x42d   :  { %v9131_v23 = vpop.eup %9130  ;;  %3209 = vmatprep.mubr.f32.mxu0 %v12786_v31  ;;  %3298 = vmatprep.mubr.f32.mxu1 %v12786_v31  ;;  %v2880_v49 = vadd.f32 0.5, %v2876_v39  ;;  %v12914_v39 = vld [vmem:[#allocation33_spill] sm:$0xff] }
 0x42e   :  { %v11130_v12 = vmul.f32 %v9131_v23, %v2878_v53  ;;  %7745 = vmatpush1.bf16.msra.mxu0 %v12900_v17  ;;  %7777 = vmatpush1.bf16.msra.mxu1 %v12901_v18  ;;  %v12905_v23 = vld [vmem:[#allocation29_spill] sm:$0xff] }
 0x42f   :  { %7747 = vmatprep.subr.bf16.mxu0 %v12902_v30  ;;  %7779 = vmatprep.subr.bf16.mxu1 %v12903_v46 }
 0x430   :  { %12899 = vst [vmem:[#allocation124_spill] sm:$0xff] %v11130_v12  ;;  %3210 = vmatmul.mubr.f32.gmra.mrb[62].mxu0 %v11130_v12  ;;  %3299 = vmatmul.mubr.f32.gmra.mrb[150].mxu1 %v11130_v12  ;;  %v9133_v38 = vpop.eup %9132  ;;  %v12911_v12 = vld [vmem:[#allocation56_spill] sm:$0xff] }
 0x431   :  { %3215 = vmatprep.mubr.f32.mxu0 %v12786_v31  ;;  %3304 = vmatprep.mubr.f32.mxu1 %v12786_v31  ;;  %v11140_v53 = vmul.f32 %v9133_v38, %v2879_v48  ;;  %v12910_v38 = vld [vmem:[#allocation31_spill] sm:$0xff] }
 0x432   :  { %7749 = vmatpush1.bf16.msra.mxu0 %v12905_v23  ;;  %7781 = vmatpush1.bf16.msra.mxu1 %v12906_v61  ;;  %v12934_v61 = vld [vmem:[#allocation109_spill] sm:$0xff] }
 0x433   :  { %12904 = vst [vmem:[#allocation125_spill] sm:$0xff] %v11140_v53  ;;  %7751 = vmatprep.subr.bf16.mxu0 %v12907_v59  ;;  %7783 = vmatprep.subr.bf16.mxu1 %v12908_v47  ;;  %v12923_v47 = vld [vmem:[#allocation68_spill] sm:$0xff]  ;;  %v12924_v59 = vld [vmem:[#allocation38_spill] sm:$0xff] }
 0x434   :  { %3216 = vmatmul.mubr.f32.gmra.mrb[64].mxu0 %v11140_v53  ;;  %3305 = vmatmul.mubr.f32.gmra.mrb[152].mxu1 %v11140_v53  ;;  %v12917_v53 = vld [vmem:[#allocation61_spill] sm:$0xff] }
 0x435   :  { %v9135_v2 = vpop.eup %9134  ;;  %3221 = vmatprep.mubr.f32.mxu0 %v12786_v31  ;;  %3310 = vmatprep.mubr.f32.mxu1 %v12786_v31 }
 0x436   :  { %v11150_v48 = vmul.f32 %v9135_v2, %v2880_v49  ;;  %7753 = vmatpush1.bf16.msra.mxu0 %v12910_v38  ;;  %7785 = vmatpush1.bf16.msra.mxu1 %v12911_v12  ;;  %v12915_v49 = vld [vmem:[#allocation60_spill] sm:$0xff]  ;;  %v12916_v2 = vld [vmem:[#allocation34_spill] sm:$0xff]  ;;  %v12918_v12 = vld [vmem:[#allocation35_spill] sm:$0xff] }
 0x437   :  { %7755 = vmatprep.subr.bf16.mxu0 %v12912_v52  ;;  %7787 = vmatprep.subr.bf16.mxu1 %v12913_v5  ;;  %v12919_v52 = vld [vmem:[#allocation64_spill] sm:$0xff]  ;;  %v12921_v38 = vld [vmem:[#allocation65_spill] sm:$0xff] }
 0x438   :  { %12909 = vst [vmem:[#allocation126_spill] sm:$0xff] %v11150_v48  ;;  %3222 = vmatmul.mubr.f32.gmra.mrb[66].mxu0 %v11150_v48  ;;  %3311 = vmatmul.mubr.f32.gmra.mrb[154].mxu1 %v11150_v48  ;;  %v12920_v5 = vld [vmem:[#allocation36_spill] sm:$0xff]  ;;  %v12922_v48 = vld [vmem:[#allocation37_spill] sm:$0xff] }
 0x439   :  { %3568 = vmatprep.mubr.f32.mxu0 %v12786_v31  ;;  %3657 = vmatprep.mubr.f32.mxu1 %v12786_v31 }
 0x43a   :  { %7757 = vmatpush1.bf16.msra.mxu0 %v12914_v39  ;;  %7789 = vmatpush1.bf16.msra.mxu1 %v12915_v49  ;;  %v12925_v39 = vld [vmem:[#allocation69_spill] sm:$0xff]  ;;  %v12926_v49 = vld [vmem:[#allocation39_spill] sm:$0xff] }
 0x43b   :  { %7759 = vmatprep.subr.bf16.mxu0 %v12916_v2  ;;  %7791 = vmatprep.subr.bf16.mxu1 %v12917_v53  ;;  %v12927_v2 = vld [vmem:[#allocation72_spill] sm:$0xff] }
 0x43c   :  { %v12928_v53 = vld [vmem:[#allocation40_spill] sm:$0xff] }
 0x43e   :  { %7761 = vmatpush1.bf16.msra.mxu0 %v12918_v12  ;;  %7793 = vmatpush1.bf16.msra.mxu1 %v12919_v52  ;;  %v12929_v12 = vld [vmem:[#allocation73_spill] sm:$0xff] }
 0x43f   :  { %7763 = vmatprep.subr.bf16.mxu0 %v12920_v5  ;;  %7795 = vmatprep.subr.bf16.mxu1 %v12921_v38  ;;  %v12930_v52 = vld [vmem:[#allocation41_spill] sm:$0xff]  ;;  %v12931_v5 = vld [vmem:[#allocation76_spill] sm:$0xff]  ;;  %v12932_v38 = vld [vmem:[#allocation43_spill] sm:$0xff] }
 0x442   :  { %7765 = vmatpush1.bf16.msra.mxu0 %v12922_v48  ;;  %7797 = vmatpush1.bf16.msra.mxu1 %v12923_v47  ;;  %v12933_v48 = vld [vmem:[#allocation77_spill] sm:$0xff] }
 0x443   :  { %7767 = vmatprep.subr.bf16.mxu0 %v12924_v59  ;;  %7799 = vmatprep.subr.bf16.mxu1 %v12925_v39 }
 0x446   :  { %7769 = vmatpush1.bf16.msra.mxu0 %v12926_v49  ;;  %7801 = vmatpush1.bf16.msra.mxu1 %v12927_v2 }
 0x447   :  { %7771 = vmatprep.subr.bf16.mxu0 %v12928_v53  ;;  %7803 = vmatprep.subr.bf16.mxu1 %v12929_v12  ;;  %v12935_v53 = vld [vmem:[#allocation110_spill] sm:$0xff] }
 0x44a   :  { %7773 = vmatpush1.bf16.msra.mxu0 %v12930_v52  ;;  %7805 = vmatpush1.bf16.msra.mxu1 %v12931_v5 }
 0x44b   :  { %7807 = vmatprep.subr.bf16.mxu0 %v12932_v38  ;;  %7839 = vmatprep.subr.bf16.mxu1 %v12933_v48 }
 0x4de   :  { %v2994_v47 = vpop.f32.mrb[16].mxu0  ;;  %v3083_v59 = vpop.f32.mrb[60].mxu1 }
 0x4df   :  { %v8462_v39 = vadd.f32 %v2994_v47, %v12934_v61  ;;  %v2996_v23 = vpop.f32.mrb[17].mxu0  ;;  %v3085_v49 = vpop.f32.mrb[61].mxu1  ;;  %v8570_v30 = vadd.f32 %v3083_v59, %v12935_v53  ;;  %v12936_v47 = vld [vmem:[#allocation46_spill] sm:$0xff] }
 0x4e0   :  { %v8463_v2 = vadd.f32 %v2996_v23, %v12886_v24  ;;  %v476_v54 = vadd.f32 %v12936_v47, %v12934_v61  ;;  %v8571_v60 = vadd.f32 %v3085_v49, %v10818_v29  ;;  %v12938_v47 = vld [vmem:[#allocation50_spill] sm:$0xff] }
 0x4e1   :  { %v3333_v46 = vmul.f32 0.5, %v8462_v39  ;;  %v12937_v39 = vld [vmem:[#allocation47_spill] sm:$0xff]  ;;  %v482_v32 = vadd.f32 %v12938_v47, %v12934_v61 }
 0x4e2   :  { %v3334_v12 = vmul.f32 0.5, %v8463_v2  ;;  %v3000_v18 = vpop.f32.mrb[18].mxu0  ;;  %v3089_v52 = vpop.f32.mrb[62].mxu1  ;;  %v478_v59 = vadd.f32 %v12937_v39, %v12886_v24  ;;  %v3369_v49 = vmul.f32 0.5, %v8571_v60 }
 0x4e3   :  { %9136 = vtanh.f32 %v3333_v46  ;;  %v8464_v5 = vadd.f32 %v3000_v18, %v12934_v61  ;;  %v3002_v38 = vpop.f32.mrb[19].mxu0  ;;  %v3091_v17 = vpop.f32.mrb[63].mxu1  ;;  %v8572_v2 = vadd.f32 %v3089_v52, %v12935_v53 }
 0x4e4   :  { %9138 = vtanh.f32 %v3334_v12  ;;  %v8465_v48 = vadd.f32 %v3002_v38, %v12886_v24 }
 0x4e5   :  { %v3335_v23 = vmul.f32 0.5, %v8464_v5  ;;  %9140 = vtanh.f32 %v8570_v30  ;;  %v8573_v5 = vadd.f32 %v3091_v17, %v10818_v29  ;;  %v12939_v30 = vld [vmem:[#allocation51_spill] sm:$0xff] }
 0x4e6   :  { %v3336_v46 = vmul.f32 0.5, %v8465_v48  ;;  %v3006_v37 = vpop.f32.mrb[84].mxu0  ;;  %v3095_v18 = vpop.f32.mrb[64].mxu1  ;;  %v484_v39 = vadd.f32 %v12939_v30, %v12886_v24 }
 0x4e7   :  { %9142 = vtanh.f32 %v3335_v23  ;;  %v3114_v63 = vadd.f32 %v3006_v37, %v476_v54  ;;  %v3008_v12 = vpop.f32.mrb[85].mxu0  ;;  %v3097_v27 = vpop.f32.mrb[65].mxu1  ;;  %v8574_v52 = vadd.f32 %v3095_v18, %v12935_v53  ;;  %v3370_v60 = vmul.f32 0.5, %v8573_v5 }
 0x4e8   :  { %9144 = vtanh.f32 %v3336_v46  ;;  %v3115_v38 = vadd.f32 %v3008_v12, %v478_v59 }
 0x4e9   :  { %v3337_v43 = vmul.f32 0.5, %v3114_v63  ;;  %9146 = vtanh.f32 %v8572_v2  ;;  %v8575_v2 = vadd.f32 %v3097_v27, %v10818_v29 }
 0x4ea   :  { %v3338_v48 = vmul.f32 0.5, %v3115_v38  ;;  %v3012_v23 = vpop.f32.mrb[86].mxu0  ;;  %v3101_v37 = vpop.f32.mrb[66].mxu1 }
 0x4eb   :  { %9148 = vtanh.f32 %v3337_v43  ;;  %v3118_v54 = vadd.f32 %v3012_v23, %v482_v32  ;;  %v3014_v46 = vpop.f32.mrb[87].mxu0  ;;  %v3103_v59 = vpop.f32.mrb[67].mxu1  ;;  %v8576_v38 = vadd.f32 %v3101_v37, %v12935_v53 }
 0x4ec   :  { %9150 = vtanh.f32 %v3338_v48  ;;  %v3119_v12 = vadd.f32 %v3014_v46, %v484_v39  ;;  %v8577_v46 = vadd.f32 %v3103_v59, %v10818_v29 }
 0x4ed   :  { %v9137_v47 = vpop.eup %9136  ;;  %9152 = vtanh.f32 %v3369_v49  ;;  %v3339_v17 = vmul.f32 0.5, %v3118_v54  ;;  %v3371_v54 = vmul.f32 0.5, %v8575_v2 }
 0x4ee   :  { %v9139_v63 = vpop.eup %9138  ;;  %v3349_v61 = vmul.f32 0.5, %v9137_v47  ;;  %9154 = vtanh.f32 %v8574_v52  ;;  %v3340_v30 = vmul.f32 0.5, %v3119_v12 }
 0x4ef   :  { %v3350_v18 = vmul.f32 0.5, %v9139_v63  ;;  %9156 = vtanh.f32 %v3339_v17  ;;  %v9141_v43 = vpop.eup %9140 }
 0x4f0   :  { %v3357_v32 = vadd.f32 0.5, %v3349_v61  ;;  %9158 = vtanh.f32 %v3340_v30 }
 0x4f1   :  { %v9143_v23 = vpop.eup %9142  ;;  %v3358_v48 = vadd.f32 0.5, %v3350_v18  ;;  %9160 = vtanh.f32 %v3370_v60  ;;  %v3372_v60 = vmul.f32 0.5, %v8577_v46 }
 0x4f2   :  { %v9145_v39 = vpop.eup %9144  ;;  %v3389_v49 = vmul.f32 %v9141_v43, %v3357_v32  ;;  %v3351_v5 = vmul.f32 0.5, %v9143_v23  ;;  %9162 = vtanh.f32 %v8576_v38 }
 0x4f3   :  { %v3385_v52 = vmul.f32 %v3358_v48, %v11021_v42  ;;  %v3352_v27 = vmul.f32 0.5, %v9145_v39  ;;  %v9147_v12 = vpop.eup %9146  ;;  %9164 = vtanh.f32 %v3371_v54 }
 0x4f4   :  { %v3359_v47 = vadd.f32 0.5, %v3351_v5 }
 0x4f5   :  { %v9149_v17 = vpop.eup %9148  ;;  %v11201_v37 = vadd.f32 %v3389_v49, %v3385_v52  ;;  %v3360_v61 = vadd.f32 0.5, %v3352_v27 }
 0x4f6   :  { %v9151_v63 = vpop.eup %9150  ;;  %v3390_v30 = vmul.f32 %v9147_v12, %v3359_v47  ;;  %v3353_v18 = vmul.f32 0.5, %v9149_v17 }
 0x4f7   :  { %v9153_v43 = vpop.eup %9152  ;;  %9166 = vtanh.f32 %v11201_v37  ;;  %v3386_v59 = vmul.f32 %v3360_v61, %v11025_v19  ;;  %v3354_v2 = vmul.f32 0.5, %v9151_v63 }
 0x4f8   :  { %v9155_v42 = vpop.eup %9154  ;;  %v3361_v32 = vadd.f32 0.5, %v3353_v18  ;;  %9168 = vtanh.f32 %v3372_v60  ;;  %v3377_v27 = vmul.f32 0.5, %v9153_v43 }
 0x4f9   :  { %v9157_v38 = vpop.eup %9156  ;;  %v11205_v23 = vadd.f32 %v3390_v30, %v3386_v59  ;;  %v3362_v48 = vadd.f32 0.5, %v3354_v2 }
 0x4fa   :  { %v9159_v39 = vpop.eup %9158  ;;  %v3391_v49 = vmul.f32 %v9155_v42, %v3361_v32  ;;  %v3355_v5 = vmul.f32 0.5, %v9157_v38  ;;  %v3381_v59 = vadd.f32 0.5, %v3377_v27 }
 0x4fb   :  { %v9161_v52 = vpop.eup %9160  ;;  %9170 = vtanh.f32 %v11205_v23  ;;  %v3387_v54 = vmul.f32 %v3362_v48, %v11029_v15  ;;  %v3356_v46 = vmul.f32 0.5, %v9159_v39 }
 0x4fc   :  { %v3363_v12 = vadd.f32 0.5, %v3355_v5  ;;  %v9163_v19 = vpop.eup %9162  ;;  %v3378_v2 = vmul.f32 0.5, %v9161_v52 }
 0x4fd   :  { %v11209_v47 = vadd.f32 %v3391_v49, %v3387_v54  ;;  %v3364_v17 = vadd.f32 0.5, %v3356_v46  ;;  %v9165_v60 = vpop.eup %9164 }
 0x4fe   :  { %v3392_v61 = vmul.f32 %v9163_v19, %v3363_v12  ;;  %v3382_v27 = vadd.f32 0.5, %v3378_v2  ;;  %v3379_v12 = vmul.f32 0.5, %v9165_v60 }
 0x4ff   :  { %9172 = vtanh.f32 %v11209_v47  ;;  %v3388_v63 = vmul.f32 %v3364_v17, %v11035_v3  ;;  %v3205_v30 = vpop.f32.mrb[60].mxu0  ;;  %v3294_v18 = vpop.f32.mrb[148].mxu1 }
 0x500   :  { %v8658_v42 = vadd.f32 %v3205_v30, %v10834_v14  ;;  %v3207_v15 = vpop.f32.mrb[61].mxu0  ;;  %v3296_v32 = vpop.f32.mrb[149].mxu1  ;;  %v8722_v3 = vadd.f32 %v3294_v18, %v10866_v51 }
 0x501   :  { %v9167_v43 = vpop.eup %9166  ;;  %v11214_v38 = vadd.f32 %v3392_v61, %v3388_v63  ;;  %v8659_v48 = vadd.f32 %v3207_v15, %v10829_v28  ;;  %v8723_v18 = vadd.f32 %v3296_v32, %v10871_v44 }
 0x502   :  { %v11217_v39 = vmul.f32 %v9167_v43, %v3381_v59  ;;  %v3405_v49 = vmul.f32 0.5, %v8658_v42  ;;  %v9169_v52 = vpop.eup %9168 }
 0x503   :  { %9174 = vtanh.f32 %v11214_v38  ;;  %v3406_v5 = vmul.f32 0.5, %v8659_v48  ;;  %v3211_v54 = vpop.f32.mrb[62].mxu0  ;;  %v3300_v46 = vpop.f32.mrb[150].mxu1  ;;  %v3383_v48 = vadd.f32 0.5, %v3379_v12 }
 0x504   :  { %12940 = vst [vmem:[#allocation110_spill] sm:$0xff] %v11217_v39  ;;  %9176 = vtanh.f32 %v3405_v49  ;;  %v8660_v19 = vadd.f32 %v3211_v54, %v10834_v14  ;;  %v3213_v17 = vpop.f32.mrb[63].mxu0  ;;  %v3302_v61 = vpop.f32.mrb[151].mxu1  ;;  %3569 = vmatmul.mubr.f32.vlgmr.msra.gmra.mrb[88].mxu0 %v11217_v39  ;;  %3658 = vmatmul.mubr.f32.vlgmr.msra.gmra.mrb[68].mxu1 %v11217_v39  ;;  %v8724_v2 = vadd.f32 %v3300_v46, %v10866_v51  ;;  %v3380_v49 = vmul.f32 0.5, %v9169_v52  ;;  %v12966_v39 = vld [vmem:[#allocation32_spill] sm:$0xff] }
 0x505   :  { %v9171_v63 = vpop.eup %9170  ;;  %9178 = vtanh.f32 %v3406_v5  ;;  %v8661_v30 = vadd.f32 %v3213_v17, %v10829_v28  ;;  %7809 = vmatpush1.bf16.msra.mxu0 %v10415_v26  ;;  %7841 = vmatpush1.bf16.msra.mxu1 %v10698_v62  ;;  %v8725_v52 = vadd.f32 %v3302_v61, %v10871_v44 }
 0x506   :  { %v3407_v60 = vmul.f32 0.5, %v8660_v19  ;;  %3574 = vmatprep.mubr.f32.mxu0 %v12786_v31  ;;  %3663 = vmatprep.mubr.f32.mxu1 %v12786_v31  ;;  %v11230_v59 = vmul.f32 %v9171_v63, %v3382_v27  ;;  %9180 = vtanh.f32 %v8722_v3  ;;  %v3441_v27 = vmul.f32 0.5, %v8723_v18 }
 0x507   :  { %v3408_v42 = vmul.f32 0.5, %v8661_v30  ;;  %v3217_v15 = vpop.f32.mrb[64].mxu0  ;;  %v3306_v43 = vpop.f32.mrb[152].mxu1  ;;  %7811 = vmatprep.subr.bf16.mxu0 %v10417_v41  ;;  %7843 = vmatprep.subr.bf16.mxu1 %v10700_v11  ;;  %v3384_v18 = vadd.f32 0.5, %v3380_v49  ;;  %v3442_v49 = vmul.f32 0.5, %v8725_v52 }
 0x508   :  { %12941 = vst [vmem:[#allocation46_spill] sm:$0xff] %v11230_v59  ;;  %9182 = vtanh.f32 %v3407_v60  ;;  %v8662_v32 = vadd.f32 %v3217_v15, %v10834_v14  ;;  %v3219_v5 = vpop.f32.mrb[65].mxu0  ;;  %v3308_v54 = vpop.f32.mrb[153].mxu1  ;;  %3575 = vmatmul.mubr.f32.gmra.mrb[90].mxu0 %v11230_v59  ;;  %3664 = vmatmul.mubr.f32.gmra.mrb[70].mxu1 %v11230_v59  ;;  %v8726_v17 = vadd.f32 %v3306_v43, %v10866_v51  ;;  %v12962_v59 = vld [vmem:[#allocation53_spill] sm:$0xff] }
 0x509   :  { %v9173_v3 = vpop.eup %9172  ;;  %9184 = vtanh.f32 %v3408_v42  ;;  %v8663_v46 = vadd.f32 %v3219_v5, %v10829_v28  ;;  %7813 = vmatpush1.bf16.msra.mxu0 %v10424_v55  ;;  %7845 = vmatpush1.bf16.msra.mxu1 %v10705_v20 }
 0x50a   :  { %v3409_v12 = vmul.f32 0.5, %v8662_v32  ;;  %3580 = vmatprep.mubr.f32.mxu0 %v12786_v31  ;;  %3669 = vmatprep.mubr.f32.mxu1 %v12786_v31  ;;  %v11244_v19 = vmul.f32 %v9173_v3, %v3383_v48  ;;  %9186 = vtanh.f32 %v8724_v2 }
 0x50b   :  { %v3410_v63 = vmul.f32 0.5, %v8663_v46  ;;  %v3223_v30 = vpop.f32.mrb[66].mxu0  ;;  %v3312_v60 = vpop.f32.mrb[154].mxu1  ;;  %7815 = vmatprep.subr.bf16.mxu0 %v10427_v58  ;;  %7847 = vmatprep.subr.bf16.mxu1 %v10708_v21 }
 0x50c   :  { %12942 = vst [vmem:[#allocation47_spill] sm:$0xff] %v11244_v19  ;;  %9188 = vtanh.f32 %v3409_v12  ;;  %v8664_v61 = vadd.f32 %v3223_v30, %v10834_v14  ;;  %v3225_v42 = vpop.f32.mrb[67].mxu0  ;;  %v3314_v15 = vpop.f32.mrb[155].mxu1  ;;  %3581 = vmatmul.mubr.f32.gmra.mrb[92].mxu0 %v11244_v19  ;;  %3670 = vmatmul.mubr.f32.gmra.mrb[72].mxu1 %v11244_v19  ;;  %v8727_v12 = vadd.f32 %v3308_v54, %v10871_v44  ;;  %v12961_v19 = vld [vmem:[#allocation30_spill] sm:$0xff] }
 0x50d   :  { %v9175_v2 = vpop.eup %9174  ;;  %9190 = vtanh.f32 %v3410_v63  ;;  %v8665_v43 = vadd.f32 %v3225_v42, %v10829_v28  ;;  %7817 = vmatpush1.bf16.msra.mxu0 %v10434_v1  ;;  %7849 = vmatpush1.bf16.msra.mxu1 %v10713_v34 }
 0x50e   :  { %v9177_v48 = vpop.eup %9176  ;;  %9192 = vtanh.f32 %v3441_v27  ;;  %v3411_v32 = vmul.f32 0.5, %v8664_v61  ;;  %3586 = vmatprep.mubr.f32.mxu0 %v12786_v31  ;;  %3675 = vmatprep.mubr.f32.mxu1 %v12786_v31  ;;  %v11257_v5 = vmul.f32 %v9175_v2, %v3384_v18  ;;  %v8728_v27 = vadd.f32 %v3312_v60, %v10866_v51 }
 0x50f   :  { %v9179_v3 = vpop.eup %9178  ;;  %v3421_v46 = vmul.f32 0.5, %v9177_v48  ;;  %9194 = vtanh.f32 %v8726_v17  ;;  %v3412_v63 = vmul.f32 0.5, %v8665_v43  ;;  %7819 = vmatprep.subr.bf16.mxu0 %v10437_v22  ;;  %7851 = vmatprep.subr.bf16.mxu1 %v10716_v45  ;;  %v3443_v2 = vmul.f32 0.5, %v8727_v12 }
 0x510   :  { %12943 = vst [vmem:[#allocation50_spill] sm:$0xff] %v11257_v5  ;;  %v3422_v30 = vmul.f32 0.5, %v9179_v3  ;;  %9196 = vtanh.f32 %v3411_v32  ;;  %3587 = vmatmul.mubr.f32.gmra.mrb[94].mxu0 %v11257_v5  ;;  %3676 = vmatmul.mubr.f32.gmra.mrb[74].mxu1 %v11257_v5  ;;  %v9181_v52 = vpop.eup %9180  ;;  %v8729_v43 = vadd.f32 %v3314_v15, %v10871_v44 }
 0x511   :  { %v3429_v18 = vadd.f32 0.5, %v3421_v46  ;;  %9198 = vtanh.f32 %v3412_v63  ;;  %7821 = vmatpush1.bf16.msra.mxu0 %v10444_v57  ;;  %7853 = vmatpush1.bf16.msra.mxu1 %v10721_v50 }
 0x512   :  { %v9183_v54 = vpop.eup %9182  ;;  %v3430_v17 = vadd.f32 0.5, %v3422_v30  ;;  %9200 = vtanh.f32 %v3442_v49  ;;  %7823 = vmatprep.subr.bf16.mxu0 %v10447_v33  ;;  %7855 = vmatprep.subr.bf16.mxu1 %v10724_v36 }
 0x513   :  { %v9185_v61 = vpop.eup %9184  ;;  %v3461_v60 = vmul.f32 %v9181_v52, %v3429_v18  ;;  %v3423_v42 = vmul.f32 0.5, %v9183_v54  ;;  %3779 = vmatprep.mubr.f32.mxu0 %v12786_v31  ;;  %3868 = vmatprep.mubr.f32.mxu1 %v12786_v31  ;;  %9202 = vtanh.f32 %v8728_v27 }
 0x514   :  { %v3457_v48 = vmul.f32 %v3430_v17, %v11095_v7  ;;  %v3424_v32 = vmul.f32 0.5, %v9185_v61  ;;  %v9187_v3 = vpop.eup %9186  ;;  %9204 = vtanh.f32 %v3443_v2  ;;  %v3444_v7 = vmul.f32 0.5, %v8729_v43 }
 0x515   :  { %v3431_v49 = vadd.f32 0.5, %v3423_v42  ;;  %7825 = vmatpush1.bf16.msra.mxu0 %v10454_v10  ;;  %7857 = vmatpush1.bf16.msra.mxu1 %v10728_v0 }
 0x516   :  { %v9189_v46 = vpop.eup %9188  ;;  %v11275_v63 = vadd.f32 %v3461_v60, %v3457_v48  ;;  %v3432_v12 = vadd.f32 0.5, %v3424_v32  ;;  %7827 = vmatprep.subr.bf16.mxu0 %v10457_v40  ;;  %7859 = vmatprep.subr.bf16.mxu1 %v10732_v13 }
 0x517   :  { %v9191_v15 = vpop.eup %9190  ;;  %v3462_v30 = vmul.f32 %v9187_v3, %v3431_v49  ;;  %v3425_v52 = vmul.f32 0.5, %v9189_v46 }
 0x518   :  { %v9193_v27 = vpop.eup %9192  ;;  %9206 = vtanh.f32 %v11275_v63  ;;  %v3458_v18 = vmul.f32 %v3432_v12, %v11103_v8  ;;  %v3426_v54 = vmul.f32 0.5, %v9191_v15 }
 0x519   :  { %v9195_v17 = vpop.eup %9194  ;;  %v3433_v61 = vadd.f32 0.5, %v3425_v52  ;;  %7829 = vmatpush1.bf16.msra.mxu0 %v10462_v9  ;;  %7861 = vmatpush1.bf16.msra.mxu1 %v10735_v35  ;;  %9208 = vtanh.f32 %v3444_v7  ;;  %v3449_v46 = vmul.f32 0.5, %v9193_v27 }
 0x51a   :  { %v9197_v60 = vpop.eup %9196  ;;  %v11283_v42 = vadd.f32 %v3462_v30, %v3458_v18  ;;  %v3434_v48 = vadd.f32 0.5, %v3426_v54  ;;  %7831 = vmatprep.subr.bf16.mxu0 %v10465_v25  ;;  %7863 = vmatprep.subr.bf16.mxu1 %v10738_v56  ;;  %v12944_v18 = vld [vmem:[#allocation44_spill] sm:$0xff]  ;;  %v12945_v54 = vld [vmem:[#allocation106_spill] sm:$0xff] }
 0x51b   :  { %v9199_v2 = vpop.eup %9198  ;;  %v3463_v43 = vmul.f32 %v9195_v17, %v3433_v61  ;;  %v3427_v32 = vmul.f32 0.5, %v9197_v60  ;;  %v12946_v17 = vld [vmem:[#allocation115_spill] sm:$0xff]  ;;  %v3453_v27 = vadd.f32 0.5, %v3449_v46 }
 0x51c   :  { %v9201_v8 = vpop.eup %9200  ;;  %9210 = vtanh.f32 %v11283_v42  ;;  %v3459_v3 = vmul.f32 %v3434_v48, %v11111_v6  ;;  %v3428_v49 = vmul.f32 0.5, %v9199_v2  ;;  %v12947_v48 = vld [vmem:[#allocation45_spill] sm:$0xff]  ;;  %v12948_v2 = vld [vmem:[#allocation107_spill] sm:$0xff] }
 0x51d   :  { %v3435_v12 = vadd.f32 0.5, %v3427_v32  ;;  %7833 = vmatpush1.bf16.msra.mxu0 %v10470_v4  ;;  %7865 = vmatpush1.bf16.msra.mxu1 %v10741_v16  ;;  %v9203_v15 = vpop.eup %9202  ;;  %v3450_v60 = vmul.f32 0.5, %v9201_v8 }
 0x51e   :  { %v11291_v30 = vadd.f32 %v3463_v43, %v3459_v3  ;;  %v3436_v52 = vadd.f32 0.5, %v3428_v49  ;;  %7835 = vmatprep.subr.bf16.mxu0 %v12944_v18  ;;  %7867 = vmatprep.subr.bf16.mxu1 %v12945_v54  ;;  %v9205_v61 = vpop.eup %9204  ;;  %v12950_v3 = vld [vmem:[#allocation26_spill] sm:$0xff] }
 0x51f   :  { %v3464_v7 = vmul.f32 %v9203_v15, %v3435_v12  ;;  %v12951_v49 = vld [vmem:[#allocation42_spill] sm:$0xff]  ;;  %v3454_v15 = vadd.f32 0.5, %v3450_v60 }
 0x520   :  { %9212 = vtanh.f32 %v11291_v30  ;;  %v3460_v6 = vmul.f32 %v3436_v52, %v12946_v17  ;;  %v3451_v52 = vmul.f32 0.5, %v9205_v61  ;;  %v12955_v17 = vld [vmem:[#allocation48_spill] sm:$0xff] }
 0x521   :  { %7837 = vmatpush1.bf16.msra.mxu0 %v12947_v48  ;;  %7869 = vmatpush1.bf16.msra.mxu1 %v12948_v2 }
 0x522   :  { %v9207_v32 = vpop.eup %9206  ;;  %v11299_v43 = vadd.f32 %v3464_v7, %v3460_v6  ;;  %7871 = vmatprep.subr.bf16.mxu0 %v12950_v3  ;;  %7903 = vmatprep.subr.bf16.mxu1 %v12951_v49  ;;  %v12954_v7 = vld [vmem:[#allocation27_spill] sm:$0xff]  ;;  %v12956_v6 = vld [vmem:[#allocation28_spill] sm:$0xff]  ;;  %v3455_v61 = vadd.f32 0.5, %v3451_v52 }
 0x523   :  { %v11303_v5 = vmul.f32 %v9207_v32, %v3453_v27  ;;  %v9209_v12 = vpop.eup %9208  ;;  %v12957_v27 = vld [vmem:[#allocation49_spill] sm:$0xff] }
 0x524   :  { %12949 = vst [vmem:[#allocation51_spill] sm:$0xff] %v11299_v43  ;;  %9214 = vtanh.f32 %v11299_v43  ;;  %v3452_v60 = vmul.f32 0.5, %v9209_v12 }
 0x525   :  { %12952 = vst [vmem:[#allocation115_spill] sm:$0xff] %v11303_v5  ;;  %3780 = vmatmul.mubr.f32.vlgmr.msra.gmra.mrb[52].mxu0 %v11303_v5  ;;  %3869 = vmatmul.mubr.f32.vlgmr.msra.gmra.mrb[140].mxu1 %v11303_v5  ;;  %v12960_v5 = vld [vmem:[#allocation52_spill] sm:$0xff] }
 0x526   :  { %v9211_v8 = vpop.eup %9210  ;;  %3785 = vmatprep.mubr.f32.mxu0 %v12786_v31  ;;  %3874 = vmatprep.mubr.f32.mxu1 %v12786_v31  ;;  %v3456_v12 = vadd.f32 0.5, %v3452_v60  ;;  %v12968_v60 = vld [vmem:[#allocation33_spill] sm:$0xff] }
 0x527   :  { %v11310_v46 = vmul.f32 %v9211_v8, %v3454_v15  ;;  %7873 = vmatpush1.bf16.msra.mxu0 %v12954_v7  ;;  %7905 = vmatpush1.bf16.msra.mxu1 %v12955_v17  ;;  %v12959_v8 = vld [vmem:[#allocation29_spill] sm:$0xff] }
 0x528   :  { %7875 = vmatprep.subr.bf16.mxu0 %v12956_v6  ;;  %7907 = vmatprep.subr.bf16.mxu1 %v12957_v27 }
 0x529   :  { %12953 = vst [vmem:[#allocation127_spill] sm:$0xff] %v11310_v46  ;;  %3786 = vmatmul.mubr.f32.gmra.mrb[54].mxu0 %v11310_v46  ;;  %3875 = vmatmul.mubr.f32.gmra.mrb[142].mxu1 %v11310_v46  ;;  %v12965_v46 = vld [vmem:[#allocation56_spill] sm:$0xff] }
 0x52a   :  { %v9213_v32 = vpop.eup %9212  ;;  %3791 = vmatprep.mubr.f32.mxu0 %v12786_v31  ;;  %3880 = vmatprep.mubr.f32.mxu1 %v12786_v31 }
 0x52b   :  { %v11320_v15 = vmul.f32 %v9213_v32, %v3455_v61  ;;  %7877 = vmatpush1.bf16.msra.mxu0 %v12959_v8  ;;  %7909 = vmatpush1.bf16.msra.mxu1 %v12960_v5  ;;  %v12964_v32 = vld [vmem:[#allocation31_spill] sm:$0xff]  ;;  %v12978_v5 = vld [vmem:[#allocation38_spill] sm:$0xff] }
 0x52c   :  { %7879 = vmatprep.subr.bf16.mxu0 %v12961_v19  ;;  %7911 = vmatprep.subr.bf16.mxu1 %v12962_v59  ;;  %v12967_v19 = vld [vmem:[#allocation57_spill] sm:$0xff]  ;;  %v12977_v59 = vld [vmem:[#allocation68_spill] sm:$0xff] }
 0x52d   :  { %12958 = vst [vmem:[#allocation128_spill] sm:$0xff] %v11320_v15  ;;  %3792 = vmatmul.mubr.f32.gmra.mrb[56].mxu0 %v11320_v15  ;;  %3881 = vmatmul.mubr.f32.gmra.mrb[144].mxu1 %v11320_v15  ;;  %v12971_v15 = vld [vmem:[#allocation61_spill] sm:$0xff] }
 0x52e   :  { %v9215_v52 = vpop.eup %9214  ;;  %3797 = vmatprep.mubr.f32.mxu0 %v12786_v31  ;;  %3886 = vmatprep.mubr.f32.mxu1 %v12786_v31 }
 0x52f   :  { %v11330_v61 = vmul.f32 %v9215_v52, %v3456_v12  ;;  %7881 = vmatpush1.bf16.msra.mxu0 %v12964_v32  ;;  %7913 = vmatpush1.bf16.msra.mxu1 %v12965_v46  ;;  %v12969_v12 = vld [vmem:[#allocation60_spill] sm:$0xff]  ;;  %v12970_v52 = vld [vmem:[#allocation34_spill] sm:$0xff]  ;;  %v12972_v46 = vld [vmem:[#allocation35_spill] sm:$0xff] }
 0x530   :  { %7883 = vmatprep.subr.bf16.mxu0 %v12966_v39  ;;  %7915 = vmatprep.subr.bf16.mxu1 %v12967_v19  ;;  %v12973_v39 = vld [vmem:[#allocation64_spill] sm:$0xff]  ;;  %v12975_v32 = vld [vmem:[#allocation65_spill] sm:$0xff] }
 0x531   :  { %12963 = vst [vmem:[#allocation129_spill] sm:$0xff] %v11330_v61  ;;  %3798 = vmatmul.mubr.f32.gmra.mrb[58].mxu0 %v11330_v61  ;;  %3887 = vmatmul.mubr.f32.gmra.mrb[146].mxu1 %v11330_v61  ;;  %v12974_v19 = vld [vmem:[#allocation36_spill] sm:$0xff]  ;;  %v12976_v61 = vld [vmem:[#allocation37_spill] sm:$0xff] }
 0x532   :  { %4143 = vmatprep.mubr.f32.mxu0 %v12786_v31  ;;  %4232 = vmatprep.mubr.f32.mxu1 %v12786_v31 }
 0x533   :  { %7885 = vmatpush1.bf16.msra.mxu0 %v12968_v60  ;;  %7917 = vmatpush1.bf16.msra.mxu1 %v12969_v12  ;;  %v12979_v60 = vld [vmem:[#allocation69_spill] sm:$0xff]  ;;  %v12980_v12 = vld [vmem:[#allocation39_spill] sm:$0xff] }
 0x534   :  { %7887 = vmatprep.subr.bf16.mxu0 %v12970_v52  ;;  %7919 = vmatprep.subr.bf16.mxu1 %v12971_v15  ;;  %v12981_v52 = vld [vmem:[#allocation72_spill] sm:$0xff] }
 0x535   :  { %v12982_v15 = vld [vmem:[#allocation40_spill] sm:$0xff] }
 0x537   :  { %7889 = vmatpush1.bf16.msra.mxu0 %v12972_v46  ;;  %7921 = vmatpush1.bf16.msra.mxu1 %v12973_v39  ;;  %v12983_v46 = vld [vmem:[#allocation73_spill] sm:$0xff] }
 0x538   :  { %7891 = vmatprep.subr.bf16.mxu0 %v12974_v19  ;;  %7923 = vmatprep.subr.bf16.mxu1 %v12975_v32  ;;  %v12984_v39 = vld [vmem:[#allocation41_spill] sm:$0xff]  ;;  %v12985_v19 = vld [vmem:[#allocation76_spill] sm:$0xff]  ;;  %v12986_v32 = vld [vmem:[#allocation43_spill] sm:$0xff] }
 0x53b   :  { %7893 = vmatpush1.bf16.msra.mxu0 %v12976_v61  ;;  %7925 = vmatpush1.bf16.msra.mxu1 %v12977_v59  ;;  %v12987_v61 = vld [vmem:[#allocation77_spill] sm:$0xff] }
 0x53c   :  { %7895 = vmatprep.subr.bf16.mxu0 %v12978_v5  ;;  %7927 = vmatprep.subr.bf16.mxu1 %v12979_v60  ;;  %v12988_v59 = vld [vmem:[#allocation109_spill] sm:$0xff]  ;;  %v12989_v5 = vld [vmem:[#allocation54_spill] sm:$0xff]  ;;  %v12990_v60 = vld [vmem:[#allocation55_spill] sm:$0xff] }
 0x53d   :  { %v488_v8 = vadd.f32 %v12989_v5, %v12988_v59 }
 0x53f   :  { %7897 = vmatpush1.bf16.msra.mxu0 %v12980_v12  ;;  %7929 = vmatpush1.bf16.msra.mxu1 %v12981_v52  ;;  %v490_v12 = vadd.f32 %v12990_v60, %v12886_v24 }
 0x540   :  { %7899 = vmatprep.subr.bf16.mxu0 %v12982_v15  ;;  %7931 = vmatprep.subr.bf16.mxu1 %v12983_v46 }
 0x543   :  { %7901 = vmatpush1.bf16.msra.mxu0 %v12984_v39  ;;  %7933 = vmatpush1.bf16.msra.mxu1 %v12985_v19  ;;  %v12991_v39 = vld [vmem:[#allocation58_spill] sm:$0xff] }
 0x544   :  { %7935 = vmatprep.subr.bf16.mxu0 %v12986_v32  ;;  %7967 = vmatprep.subr.bf16.mxu1 %v12987_v61  ;;  %v494_v7 = vadd.f32 %v12991_v39, %v12988_v59  ;;  %v12992_v32 = vld [vmem:[#allocation59_spill] sm:$0xff] }
 0x545   :  { %v496_v49 = vadd.f32 %v12992_v32, %v12886_v24 }
 0x5d7   :  { %v3570_v27 = vpop.f32.mrb[88].mxu0  ;;  %v3659_v52 = vpop.f32.mrb[68].mxu1 }
 0x5d8   :  { %v3682_v6 = vadd.f32 %v3570_v27, %v488_v8  ;;  %v3572_v15 = vpop.f32.mrb[89].mxu0  ;;  %v3661_v17 = vpop.f32.mrb[69].mxu1  ;;  %v8578_v61 = vadd.f32 %v3659_v52, %v12935_v53 }
 0x5d9   :  { %v3683_v46 = vadd.f32 %v3572_v15, %v490_v12  ;;  %v12993_v15 = vld [vmem:[#allocation62_spill] sm:$0xff]  ;;  %v8579_v39 = vadd.f32 %v3661_v17, %v10818_v29  ;;  %v12994_v12 = vld [vmem:[#allocation63_spill] sm:$0xff] }
 0x5da   :  { %v3909_v19 = vmul.f32 0.5, %v3682_v6  ;;  %v500_v8 = vadd.f32 %v12993_v15, %v12988_v59  ;;  %v502_v32 = vadd.f32 %v12994_v12, %v12886_v24 }
 0x5db   :  { %v3910_v3 = vmul.f32 0.5, %v3683_v46  ;;  %v3576_v5 = vpop.f32.mrb[90].mxu0  ;;  %v3665_v2 = vpop.f32.mrb[70].mxu1  ;;  %v3945_v17 = vmul.f32 0.5, %v8579_v39 }
 0x5dc   :  { %9216 = vtanh.f32 %v3909_v19  ;;  %v3686_v60 = vadd.f32 %v3576_v5, %v494_v7  ;;  %v3578_v48 = vpop.f32.mrb[91].mxu0  ;;  %v3667_v43 = vpop.f32.mrb[71].mxu1  ;;  %v8580_v46 = vadd.f32 %v3665_v2, %v12935_v53 }
 0x5dd   :  { %9218 = vtanh.f32 %v3910_v3  ;;  %v3687_v27 = vadd.f32 %v3578_v48, %v496_v49  ;;  %v12995_v49 = vld [vmem:[#allocation66_spill] sm:$0xff] }
 0x5de   :  { %v3911_v6 = vmul.f32 0.5, %v3686_v60  ;;  %9220 = vtanh.f32 %v8578_v61  ;;  %v506_v15 = vadd.f32 %v12995_v49, %v12988_v59  ;;  %v8581_v60 = vadd.f32 %v3667_v43, %v10818_v29  ;;  %v12996_v61 = vld [vmem:[#allocation67_spill] sm:$0xff] }
 0x5df   :  { %v3912_v52 = vmul.f32 0.5, %v3687_v27  ;;  %v3582_v54 = vpop.f32.mrb[92].mxu0  ;;  %v3671_v19 = vpop.f32.mrb[72].mxu1  ;;  %v508_v12 = vadd.f32 %v12996_v61, %v12886_v24 }
 0x5e0   :  { %9222 = vtanh.f32 %v3911_v6  ;;  %v3690_v7 = vadd.f32 %v3582_v54, %v500_v8  ;;  %v3584_v5 = vpop.f32.mrb[93].mxu0  ;;  %v3673_v3 = vpop.f32.mrb[73].mxu1  ;;  %v8582_v2 = vadd.f32 %v3671_v19, %v12935_v53  ;;  %v3946_v39 = vmul.f32 0.5, %v8581_v60 }
 0x5e1   :  { %9224 = vtanh.f32 %v3912_v52  ;;  %v3691_v48 = vadd.f32 %v3584_v5, %v502_v32 }
 0x5e2   :  { %v3913_v18 = vmul.f32 0.5, %v3690_v7  ;;  %9226 = vtanh.f32 %v8580_v46  ;;  %v8583_v46 = vadd.f32 %v3673_v3, %v10818_v29 }
 0x5e3   :  { %v3914_v27 = vmul.f32 0.5, %v3691_v48  ;;  %v3588_v6 = vpop.f32.mrb[94].mxu0  ;;  %v3677_v54 = vpop.f32.mrb[74].mxu1 }
 0x5e4   :  { %9228 = vtanh.f32 %v3913_v18  ;;  %v3694_v8 = vadd.f32 %v3588_v6, %v506_v15  ;;  %v3590_v52 = vpop.f32.mrb[95].mxu0  ;;  %v3679_v32 = vpop.f32.mrb[75].mxu1  ;;  %v8584_v48 = vadd.f32 %v3677_v54, %v12935_v53 }
 0x5e5   :  { %9230 = vtanh.f32 %v3914_v27  ;;  %v3695_v5 = vadd.f32 %v3590_v52, %v508_v12  ;;  %v8585_v52 = vadd.f32 %v3679_v32, %v10818_v29 }
 0x5e6   :  { %v9217_v49 = vpop.eup %9216  ;;  %9232 = vtanh.f32 %v3945_v17  ;;  %v3915_v43 = vmul.f32 0.5, %v3694_v8  ;;  %v3947_v8 = vmul.f32 0.5, %v8583_v46 }
 0x5e7   :  { %v9219_v7 = vpop.eup %9218  ;;  %v3925_v59 = vmul.f32 0.5, %v9217_v49  ;;  %9234 = vtanh.f32 %v8582_v2  ;;  %v3916_v61 = vmul.f32 0.5, %v3695_v5 }
 0x5e8   :  { %v3926_v19 = vmul.f32 0.5, %v9219_v7  ;;  %9236 = vtanh.f32 %v3915_v43  ;;  %v9221_v18 = vpop.eup %9220 }
 0x5e9   :  { %v3933_v15 = vadd.f32 0.5, %v3925_v59  ;;  %9238 = vtanh.f32 %v3916_v61 }
 0x5ea   :  { %v9223_v6 = vpop.eup %9222  ;;  %v3934_v27 = vadd.f32 0.5, %v3926_v19  ;;  %9240 = vtanh.f32 %v3946_v39  ;;  %v3948_v39 = vmul.f32 0.5, %v8585_v52 }
 0x5eb   :  { %v9225_v12 = vpop.eup %9224  ;;  %v3965_v17 = vmul.f32 %v9221_v18, %v3933_v15  ;;  %v3927_v60 = vmul.f32 0.5, %v9223_v6  ;;  %9242 = vtanh.f32 %v8584_v48 }
 0x5ec   :  { %v3961_v2 = vmul.f32 %v3934_v27, %v11201_v37  ;;  %v3928_v3 = vmul.f32 0.5, %v9225_v12  ;;  %v9227_v5 = vpop.eup %9226  ;;  %9244 = vtanh.f32 %v3947_v8 }
 0x5ed   :  { %v3935_v49 = vadd.f32 0.5, %v3927_v60 }
 0x5ee   :  { %v9229_v43 = vpop.eup %9228  ;;  %v11385_v54 = vadd.f32 %v3965_v17, %v3961_v2  ;;  %v3936_v59 = vadd.f32 0.5, %v3928_v3 }
 0x5ef   :  { %v9231_v7 = vpop.eup %9230  ;;  %v3966_v61 = vmul.f32 %v9227_v5, %v3935_v49  ;;  %v3929_v19 = vmul.f32 0.5, %v9229_v43 }
 0x5f0   :  { %v9233_v18 = vpop.eup %9232  ;;  %9246 = vtanh.f32 %v11385_v54  ;;  %v3962_v32 = vmul.f32 %v3936_v59, %v11205_v23  ;;  %v3930_v46 = vmul.f32 0.5, %v9231_v7 }
 0x5f1   :  { %v9235_v37 = vpop.eup %9234  ;;  %v3937_v15 = vadd.f32 0.5, %v3929_v19  ;;  %9248 = vtanh.f32 %v3948_v39  ;;  %v3953_v3 = vmul.f32 0.5, %v9233_v18 }
 0x5f2   :  { %v9237_v48 = vpop.eup %9236  ;;  %v11389_v6 = vadd.f32 %v3966_v61, %v3962_v32  ;;  %v3938_v27 = vadd.f32 0.5, %v3930_v46 }
 0x5f3   :  { %v9239_v12 = vpop.eup %9238  ;;  %v3967_v17 = vmul.f32 %v9235_v37, %v3937_v15  ;;  %v3931_v60 = vmul.f32 0.5, %v9237_v48  ;;  %v3957_v32 = vadd.f32 0.5, %v3953_v3 }
 0x5f4   :  { %v9241_v2 = vpop.eup %9240  ;;  %9250 = vtanh.f32 %v11389_v6  ;;  %v3963_v8 = vmul.f32 %v3938_v27, %v11209_v47  ;;  %v3932_v52 = vmul.f32 0.5, %v9239_v12 }
 0x5f5   :  { %v3939_v5 = vadd.f32 0.5, %v3931_v60  ;;  %v9243_v23 = vpop.eup %9242  ;;  %v3954_v46 = vmul.f32 0.5, %v9241_v2 }
 0x5f6   :  { %v11393_v49 = vadd.f32 %v3967_v17, %v3963_v8  ;;  %v3940_v43 = vadd.f32 0.5, %v3932_v52  ;;  %v9245_v39 = vpop.eup %9244 }
 0x5f7   :  { %v3968_v59 = vmul.f32 %v9243_v23, %v3939_v5  ;;  %v3958_v3 = vadd.f32 0.5, %v3954_v46  ;;  %v3955_v5 = vmul.f32 0.5, %v9245_v39 }
 0x5f8   :  { %9252 = vtanh.f32 %v11393_v49  ;;  %v3964_v7 = vmul.f32 %v3940_v43, %v11214_v38  ;;  %v3781_v61 = vpop.f32.mrb[52].mxu0  ;;  %v3870_v19 = vpop.f32.mrb[140].mxu1 }
 0x5f9   :  { %v8650_v37 = vadd.f32 %v3781_v61, %v10834_v14  ;;  %v3783_v47 = vpop.f32.mrb[53].mxu0  ;;  %v3872_v15 = vpop.f32.mrb[141].mxu1  ;;  %v8714_v38 = vadd.f32 %v3870_v19, %v10866_v51 }
 0x5fa   :  { %v9247_v18 = vpop.eup %9246  ;;  %v11398_v48 = vadd.f32 %v3968_v59, %v3964_v7  ;;  %v8651_v27 = vadd.f32 %v3783_v47, %v10829_v28  ;;  %v8715_v19 = vadd.f32 %v3872_v15, %v10871_v44 }
 0x5fb   :  { %v11401_v12 = vmul.f32 %v9247_v18, %v3957_v32  ;;  %v3981_v17 = vmul.f32 0.5, %v8650_v37  ;;  %v9249_v2 = vpop.eup %9248 }
 0x5fc   :  { %9254 = vtanh.f32 %v11398_v48  ;;  %v3982_v60 = vmul.f32 0.5, %v8651_v27  ;;  %v3787_v8 = vpop.f32.mrb[54].mxu0  ;;  %v3876_v52 = vpop.f32.mrb[142].mxu1  ;;  %v3959_v27 = vadd.f32 0.5, %v3955_v5 }
 0x5fd   :  { %12997 = vst [vmem:[#allocation54_spill] sm:$0xff] %v11401_v12  ;;  %9256 = vtanh.f32 %v3981_v17  ;;  %v8652_v23 = vadd.f32 %v3787_v8, %v10834_v14  ;;  %v3789_v43 = vpop.f32.mrb[55].mxu0  ;;  %v3878_v59 = vpop.f32.mrb[143].mxu1  ;;  %4144 = vmatmul.mubr.f32.vlgmr.msra.gmra.mrb[96].mxu0 %v11401_v12  ;;  %4233 = vmatmul.mubr.f32.vlgmr.msra.gmra.mrb[76].mxu1 %v11401_v12  ;;  %v8716_v46 = vadd.f32 %v3876_v52, %v10866_v51  ;;  %v3956_v17 = vmul.f32 0.5, %v9249_v2  ;;  %v13023_v12 = vld [vmem:[#allocation32_spill] sm:$0xff] }
 0x5fe   :  { %v9251_v7 = vpop.eup %9250  ;;  %9258 = vtanh.f32 %v3982_v60  ;;  %v8653_v61 = vadd.f32 %v3789_v43, %v10829_v28  ;;  %7937 = vmatpush1.bf16.msra.mxu0 %v10415_v26  ;;  %7969 = vmatpush1.bf16.msra.mxu1 %v10698_v62  ;;  %v8717_v2 = vadd.f32 %v3878_v59, %v10871_v44 }
 0x5ff   :  { %v3983_v39 = vmul.f32 0.5, %v8652_v23  ;;  %4149 = vmatprep.mubr.f32.mxu0 %v12786_v31  ;;  %4238 = vmatprep.mubr.f32.mxu1 %v12786_v31  ;;  %v11414_v32 = vmul.f32 %v9251_v7, %v3958_v3  ;;  %9260 = vtanh.f32 %v8714_v38  ;;  %v4017_v3 = vmul.f32 0.5, %v8715_v19 }
 0x600   :  { %v3984_v37 = vmul.f32 0.5, %v8653_v61  ;;  %v3793_v47 = vpop.f32.mrb[56].mxu0  ;;  %v3882_v18 = vpop.f32.mrb[144].mxu1  ;;  %7939 = vmatprep.subr.bf16.mxu0 %v10417_v41  ;;  %7971 = vmatprep.subr.bf16.mxu1 %v10700_v11  ;;  %v3960_v19 = vadd.f32 0.5, %v3956_v17  ;;  %v4018_v17 = vmul.f32 0.5, %v8717_v2 }
 0x601   :  { %12998 = vst [vmem:[#allocation55_spill] sm:$0xff] %v11414_v32  ;;  %9262 = vtanh.f32 %v3983_v39  ;;  %v8654_v15 = vadd.f32 %v3793_v47, %v10834_v14  ;;  %v3795_v60 = vpop.f32.mrb[57].mxu0  ;;  %v3884_v8 = vpop.f32.mrb[145].mxu1  ;;  %4150 = vmatmul.mubr.f32.gmra.mrb[98].mxu0 %v11414_v32  ;;  %4239 = vmatmul.mubr.f32.gmra.mrb[78].mxu1 %v11414_v32  ;;  %v8718_v43 = vadd.f32 %v3882_v18, %v10866_v51  ;;  %v13019_v32 = vld [vmem:[#allocation53_spill] sm:$0xff] }
 0x602   :  { %v9253_v38 = vpop.eup %9252  ;;  %9264 = vtanh.f32 %v3984_v37  ;;  %v8655_v52 = vadd.f32 %v3795_v60, %v10829_v28  ;;  %7941 = vmatpush1.bf16.msra.mxu0 %v10424_v55  ;;  %7973 = vmatpush1.bf16.msra.mxu1 %v10705_v20 }
 0x603   :  { %v3985_v5 = vmul.f32 0.5, %v8654_v15  ;;  %4155 = vmatprep.mubr.f32.mxu0 %v12786_v31  ;;  %4244 = vmatprep.mubr.f32.mxu1 %v12786_v31  ;;  %v11428_v23 = vmul.f32 %v9253_v38, %v3959_v27  ;;  %9266 = vtanh.f32 %v8716_v46 }
 0x604   :  { %v3986_v7 = vmul.f32 0.5, %v8655_v52  ;;  %v3799_v61 = vpop.f32.mrb[58].mxu0  ;;  %v3888_v39 = vpop.f32.mrb[146].mxu1  ;;  %7943 = vmatprep.subr.bf16.mxu0 %v10427_v58  ;;  %7975 = vmatprep.subr.bf16.mxu1 %v10708_v21 }
 0x605   :  { %12999 = vst [vmem:[#allocation58_spill] sm:$0xff] %v11428_v23  ;;  %9268 = vtanh.f32 %v3985_v5  ;;  %v8656_v59 = vadd.f32 %v3799_v61, %v10834_v14  ;;  %v3801_v37 = vpop.f32.mrb[59].mxu0  ;;  %v3890_v47 = vpop.f32.mrb[147].mxu1  ;;  %4156 = vmatmul.mubr.f32.gmra.mrb[100].mxu0 %v11428_v23  ;;  %4245 = vmatmul.mubr.f32.gmra.mrb[80].mxu1 %v11428_v23  ;;  %v8719_v5 = vadd.f32 %v3884_v8, %v10871_v44  ;;  %v13018_v23 = vld [vmem:[#allocation30_spill] sm:$0xff] }
 0x606   :  { %v9255_v46 = vpop.eup %9254  ;;  %9270 = vtanh.f32 %v3986_v7  ;;  %v8657_v18 = vadd.f32 %v3801_v37, %v10829_v28  ;;  %7945 = vmatpush1.bf16.msra.mxu0 %v10434_v1  ;;  %7977 = vmatpush1.bf16.msra.mxu1 %v10713_v34 }
 0x607   :  { %v9257_v27 = vpop.eup %9256  ;;  %9272 = vtanh.f32 %v4017_v3  ;;  %v3987_v15 = vmul.f32 0.5, %v8656_v59  ;;  %4161 = vmatprep.mubr.f32.mxu0 %v12786_v31  ;;  %4250 = vmatprep.mubr.f32.mxu1 %v12786_v31  ;;  %v11441_v60 = vmul.f32 %v9255_v46, %v3960_v19  ;;  %v8720_v3 = vadd.f32 %v3888_v39, %v10866_v51 }
 0x608   :  { %v9259_v38 = vpop.eup %9258  ;;  %v3997_v52 = vmul.f32 0.5, %v9257_v27  ;;  %9274 = vtanh.f32 %v8718_v43  ;;  %v3988_v7 = vmul.f32 0.5, %v8657_v18  ;;  %7947 = vmatprep.subr.bf16.mxu0 %v10437_v22  ;;  %7979 = vmatprep.subr.bf16.mxu1 %v10716_v45  ;;  %v4019_v46 = vmul.f32 0.5, %v8719_v5 }
 0x609   :  { %13000 = vst [vmem:[#allocation59_spill] sm:$0xff] %v11441_v60  ;;  %v3998_v61 = vmul.f32 0.5, %v9259_v38  ;;  %9276 = vtanh.f32 %v3987_v15  ;;  %4162 = vmatmul.mubr.f32.gmra.mrb[102].mxu0 %v11441_v60  ;;  %4251 = vmatmul.mubr.f32.gmra.mrb[82].mxu1 %v11441_v60  ;;  %v9261_v2 = vpop.eup %9260  ;;  %v8721_v18 = vadd.f32 %v3890_v47, %v10871_v44 }
 0x60a   :  { %v4005_v19 = vadd.f32 0.5, %v3997_v52  ;;  %9278 = vtanh.f32 %v3988_v7  ;;  %7949 = vmatpush1.bf16.msra.mxu0 %v10444_v57  ;;  %7981 = vmatpush1.bf16.msra.mxu1 %v10721_v50 }
 0x60b   :  { %v9263_v8 = vpop.eup %9262  ;;  %v4006_v43 = vadd.f32 0.5, %v3998_v61  ;;  %9280 = vtanh.f32 %v4018_v17  ;;  %7951 = vmatprep.subr.bf16.mxu0 %v10447_v33  ;;  %7983 = vmatprep.subr.bf16.mxu1 %v10724_v36 }
 0x60c   :  { %v9265_v59 = vpop.eup %9264  ;;  %v4037_v39 = vmul.f32 %v9261_v2, %v4005_v19  ;;  %v3999_v37 = vmul.f32 0.5, %v9263_v8  ;;  %4353 = vmatprep.mubr.f32.mxu0 %v12786_v31  ;;  %4442 = vmatprep.mubr.f32.mxu1 %v12786_v31  ;;  %9282 = vtanh.f32 %v8720_v3 }
 0x60d   :  { %v4033_v27 = vmul.f32 %v4006_v43, %v11275_v63  ;;  %v4000_v15 = vmul.f32 0.5, %v9265_v59  ;;  %v9267_v38 = vpop.eup %9266  ;;  %9284 = vtanh.f32 %v4019_v46  ;;  %v4020_v63 = vmul.f32 0.5, %v8721_v18 }
 0x60e   :  { %v4007_v17 = vadd.f32 0.5, %v3999_v37  ;;  %7953 = vmatpush1.bf16.msra.mxu0 %v10454_v10  ;;  %7985 = vmatpush1.bf16.msra.mxu1 %v10728_v0 }
 0x60f   :  { %v9269_v52 = vpop.eup %9268  ;;  %v11459_v7 = vadd.f32 %v4037_v39, %v4033_v27  ;;  %v4008_v5 = vadd.f32 0.5, %v4000_v15  ;;  %7955 = vmatprep.subr.bf16.mxu0 %v10457_v40  ;;  %7987 = vmatprep.subr.bf16.mxu1 %v10732_v13 }
 0x610   :  { %v9271_v47 = vpop.eup %9270  ;;  %v4038_v61 = vmul.f32 %v9267_v38, %v4007_v17  ;;  %v4001_v2 = vmul.f32 0.5, %v9269_v52 }
 0x611   :  { %v9273_v3 = vpop.eup %9272  ;;  %9286 = vtanh.f32 %v11459_v7  ;;  %v4034_v19 = vmul.f32 %v4008_v5, %v11283_v42  ;;  %v4002_v8 = vmul.f32 0.5, %v9271_v47 }
 0x612   :  { %v9275_v43 = vpop.eup %9274  ;;  %v4009_v59 = vadd.f32 0.5, %v4001_v2  ;;  %7957 = vmatpush1.bf16.msra.mxu0 %v10462_v9  ;;  %7989 = vmatpush1.bf16.msra.mxu1 %v10735_v35  ;;  %9288 = vtanh.f32 %v4020_v63  ;;  %v4025_v52 = vmul.f32 0.5, %v9273_v3 }
 0x613   :  { %v9277_v39 = vpop.eup %9276  ;;  %v11467_v37 = vadd.f32 %v4038_v61, %v4034_v19  ;;  %v4010_v27 = vadd.f32 0.5, %v4002_v8  ;;  %7959 = vmatprep.subr.bf16.mxu0 %v10465_v25  ;;  %7991 = vmatprep.subr.bf16.mxu1 %v10738_v56  ;;  %v13001_v19 = vld [vmem:[#allocation44_spill] sm:$0xff]  ;;  %v13002_v8 = vld [vmem:[#allocation106_spill] sm:$0xff] }
 0x614   :  { %v9279_v46 = vpop.eup %9278  ;;  %v4039_v18 = vmul.f32 %v9275_v43, %v4009_v59  ;;  %v4003_v15 = vmul.f32 0.5, %v9277_v39  ;;  %v13003_v43 = vld [vmem:[#allocation51_spill] sm:$0xff]  ;;  %v4029_v3 = vadd.f32 0.5, %v4025_v52 }
 0x615   :  { %v9281_v42 = vpop.eup %9280  ;;  %9290 = vtanh.f32 %v11467_v37  ;;  %v4035_v38 = vmul.f32 %v4010_v27, %v11291_v30  ;;  %v4004_v17 = vmul.f32 0.5, %v9279_v46  ;;  %v13004_v27 = vld [vmem:[#allocation45_spill] sm:$0xff]  ;;  %v13005_v46 = vld [vmem:[#allocation107_spill] sm:$0xff] }
 0x616   :  { %v4011_v5 = vadd.f32 0.5, %v4003_v15  ;;  %7961 = vmatpush1.bf16.msra.mxu0 %v10470_v4  ;;  %7993 = vmatpush1.bf16.msra.mxu1 %v10741_v16  ;;  %v9283_v47 = vpop.eup %9282  ;;  %v4026_v39 = vmul.f32 0.5, %v9281_v42 }
 0x617   :  { %v11475_v61 = vadd.f32 %v4039_v18, %v4035_v38  ;;  %v4012_v2 = vadd.f32 0.5, %v4004_v17  ;;  %7963 = vmatprep.subr.bf16.mxu0 %v13001_v19  ;;  %7995 = vmatprep.subr.bf16.mxu1 %v13002_v8  ;;  %v9285_v59 = vpop.eup %9284  ;;  %v13007_v38 = vld [vmem:[#allocation26_spill] sm:$0xff] }
 0x618   :  { %v4040_v63 = vmul.f32 %v9283_v47, %v4011_v5  ;;  %v13008_v17 = vld [vmem:[#allocation42_spill] sm:$0xff]  ;;  %v4030_v47 = vadd.f32 0.5, %v4026_v39 }
 0x619   :  { %9292 = vtanh.f32 %v11475_v61  ;;  %v4036_v30 = vmul.f32 %v4012_v2, %v13003_v43  ;;  %v4027_v2 = vmul.f32 0.5, %v9285_v59  ;;  %v13012_v43 = vld [vmem:[#allocation48_spill] sm:$0xff] }
 0x61a   :  { %7965 = vmatpush1.bf16.msra.mxu0 %v13004_v27  ;;  %7997 = vmatpush1.bf16.msra.mxu1 %v13005_v46 }
 0x61b   :  { %v9287_v15 = vpop.eup %9286  ;;  %v11483_v18 = vadd.f32 %v4040_v63, %v4036_v30  ;;  %7999 = vmatprep.subr.bf16.mxu0 %v13007_v38  ;;  %8031 = vmatprep.subr.bf16.mxu1 %v13008_v17  ;;  %v13011_v63 = vld [vmem:[#allocation27_spill] sm:$0xff]  ;;  %v13013_v30 = vld [vmem:[#allocation28_spill] sm:$0xff]  ;;  %v4031_v59 = vadd.f32 0.5, %v4027_v2 }
 0x61c   :  { %v11487_v60 = vmul.f32 %v9287_v15, %v4029_v3  ;;  %v9289_v5 = vpop.eup %9288  ;;  %v13014_v3 = vld [vmem:[#allocation49_spill] sm:$0xff] }
 0x61d   :  { %13006 = vst [vmem:[#allocation62_spill] sm:$0xff] %v11483_v18  ;;  %9294 = vtanh.f32 %v11483_v18  ;;  %v4028_v39 = vmul.f32 0.5, %v9289_v5 }
 0x61e   :  { %13009 = vst [vmem:[#allocation63_spill] sm:$0xff] %v11487_v60  ;;  %4354 = vmatmul.mubr.f32.vlgmr.msra.gmra.mrb[44].mxu0 %v11487_v60  ;;  %4443 = vmatmul.mubr.f32.vlgmr.msra.gmra.mrb[132].mxu1 %v11487_v60  ;;  %v13017_v60 = vld [vmem:[#allocation52_spill] sm:$0xff] }
 0x61f   :  { %v9291_v42 = vpop.eup %9290  ;;  %4359 = vmatprep.mubr.f32.mxu0 %v12786_v31  ;;  %4448 = vmatprep.mubr.f32.mxu1 %v12786_v31  ;;  %v4032_v5 = vadd.f32 0.5, %v4028_v39  ;;  %v13025_v39 = vld [vmem:[#allocation33_spill] sm:$0xff] }
 0x620   :  { %v11494_v52 = vmul.f32 %v9291_v42, %v4030_v47  ;;  %8001 = vmatpush1.bf16.msra.mxu0 %v13011_v63  ;;  %8033 = vmatpush1.bf16.msra.mxu1 %v13012_v43  ;;  %v13016_v42 = vld [vmem:[#allocation29_spill] sm:$0xff] }
 0x621   :  { %8003 = vmatprep.subr.bf16.mxu0 %v13013_v30  ;;  %8035 = vmatprep.subr.bf16.mxu1 %v13014_v3 }
 0x622   :  { %13010 = vst [vmem:[#allocation66_spill] sm:$0xff] %v11494_v52  ;;  %4360 = vmatmul.mubr.f32.gmra.mrb[46].mxu0 %v11494_v52  ;;  %4449 = vmatmul.mubr.f32.gmra.mrb[134].mxu1 %v11494_v52  ;;  %v13022_v52 = vld [vmem:[#allocation56_spill] sm:$0xff] }
 0x623   :  { %v9293_v15 = vpop.eup %9292  ;;  %4365 = vmatprep.mubr.f32.mxu0 %v12786_v31  ;;  %4454 = vmatprep.mubr.f32.mxu1 %v12786_v31 }
 0x624   :  { %v11504_v47 = vmul.f32 %v9293_v15, %v4031_v59  ;;  %8005 = vmatpush1.bf16.msra.mxu0 %v13016_v42  ;;  %8037 = vmatpush1.bf16.msra.mxu1 %v13017_v60  ;;  %v13021_v15 = vld [vmem:[#allocation31_spill] sm:$0xff]  ;;  %v13035_v60 = vld [vmem:[#allocation38_spill] sm:$0xff] }
 0x625   :  { %8007 = vmatprep.subr.bf16.mxu0 %v13018_v23  ;;  %8039 = vmatprep.subr.bf16.mxu1 %v13019_v32  ;;  %v13024_v23 = vld [vmem:[#allocation57_spill] sm:$0xff]  ;;  %v13034_v32 = vld [vmem:[#allocation68_spill] sm:$0xff] }
 0x626   :  { %13015 = vst [vmem:[#allocation67_spill] sm:$0xff] %v11504_v47  ;;  %4366 = vmatmul.mubr.f32.gmra.mrb[48].mxu0 %v11504_v47  ;;  %4455 = vmatmul.mubr.f32.gmra.mrb[136].mxu1 %v11504_v47  ;;  %v13028_v47 = vld [vmem:[#allocation61_spill] sm:$0xff] }
 0x627   :  { %v9295_v2 = vpop.eup %9294  ;;  %4371 = vmatprep.mubr.f32.mxu0 %v12786_v31  ;;  %4460 = vmatprep.mubr.f32.mxu1 %v12786_v31 }
 0x628   :  { %v11514_v59 = vmul.f32 %v9295_v2, %v4032_v5  ;;  %8009 = vmatpush1.bf16.msra.mxu0 %v13021_v15  ;;  %8041 = vmatpush1.bf16.msra.mxu1 %v13022_v52  ;;  %v13026_v5 = vld [vmem:[#allocation60_spill] sm:$0xff]  ;;  %v13027_v2 = vld [vmem:[#allocation34_spill] sm:$0xff]  ;;  %v13029_v52 = vld [vmem:[#allocation35_spill] sm:$0xff] }
 0x629   :  { %8011 = vmatprep.subr.bf16.mxu0 %v13023_v12  ;;  %8043 = vmatprep.subr.bf16.mxu1 %v13024_v23  ;;  %v13030_v12 = vld [vmem:[#allocation64_spill] sm:$0xff]  ;;  %v13032_v15 = vld [vmem:[#allocation65_spill] sm:$0xff] }
 0x62a   :  { %13020 = vst [vmem:[#allocation51_spill] sm:$0xff] %v11514_v59  ;;  %4372 = vmatmul.mubr.f32.gmra.mrb[50].mxu0 %v11514_v59  ;;  %4461 = vmatmul.mubr.f32.gmra.mrb[138].mxu1 %v11514_v59  ;;  %v13031_v23 = vld [vmem:[#allocation36_spill] sm:$0xff]  ;;  %v13033_v59 = vld [vmem:[#allocation37_spill] sm:$0xff] }
 0x62b   :  { %4715 = vmatprep.mubr.f32.mxu0 %v12786_v31  ;;  %4804 = vmatprep.mubr.f32.mxu1 %v12786_v31 }
 0x62c   :  { %8013 = vmatpush1.bf16.msra.mxu0 %v13025_v39  ;;  %8045 = vmatpush1.bf16.msra.mxu1 %v13026_v5  ;;  %v13036_v39 = vld [vmem:[#allocation69_spill] sm:$0xff]  ;;  %v13037_v5 = vld [vmem:[#allocation39_spill] sm:$0xff] }
 0x62d   :  { %8015 = vmatprep.subr.bf16.mxu0 %v13027_v2  ;;  %8047 = vmatprep.subr.bf16.mxu1 %v13028_v47  ;;  %v13038_v2 = vld [vmem:[#allocation72_spill] sm:$0xff] }
 0x62e   :  { %v13039_v47 = vld [vmem:[#allocation40_spill] sm:$0xff] }
 0x630   :  { %8017 = vmatpush1.bf16.msra.mxu0 %v13029_v52  ;;  %8049 = vmatpush1.bf16.msra.mxu1 %v13030_v12  ;;  %v13040_v52 = vld [vmem:[#allocation73_spill] sm:$0xff] }
 0x631   :  { %8019 = vmatprep.subr.bf16.mxu0 %v13031_v23  ;;  %8051 = vmatprep.subr.bf16.mxu1 %v13032_v15  ;;  %v13041_v12 = vld [vmem:[#allocation41_spill] sm:$0xff]  ;;  %v13042_v23 = vld [vmem:[#allocation76_spill] sm:$0xff]  ;;  %v13043_v15 = vld [vmem:[#allocation43_spill] sm:$0xff] }
 0x634   :  { %8021 = vmatpush1.bf16.msra.mxu0 %v13033_v59  ;;  %8053 = vmatpush1.bf16.msra.mxu1 %v13034_v32  ;;  %v13044_v59 = vld [vmem:[#allocation77_spill] sm:$0xff] }
 0x635   :  { %8023 = vmatprep.subr.bf16.mxu0 %v13035_v60  ;;  %8055 = vmatprep.subr.bf16.mxu1 %v13036_v39  ;;  %v13045_v32 = vld [vmem:[#allocation109_spill] sm:$0xff]  ;;  %v13046_v60 = vld [vmem:[#allocation70_spill] sm:$0xff]  ;;  %v13047_v39 = vld [vmem:[#allocation71_spill] sm:$0xff] }
 0x636   :  { %v512_v42 = vadd.f32 %v13046_v60, %v13045_v32 }
 0x638   :  { %8025 = vmatpush1.bf16.msra.mxu0 %v13037_v5  ;;  %8057 = vmatpush1.bf16.msra.mxu1 %v13038_v2  ;;  %v514_v5 = vadd.f32 %v13047_v39, %v12886_v24 }
 0x639   :  { %8027 = vmatprep.subr.bf16.mxu0 %v13039_v47  ;;  %8059 = vmatprep.subr.bf16.mxu1 %v13040_v52 }
 0x63c   :  { %8029 = vmatpush1.bf16.msra.mxu0 %v13041_v12  ;;  %8061 = vmatpush1.bf16.msra.mxu1 %v13042_v23  ;;  %v13048_v12 = vld [vmem:[#allocation74_spill] sm:$0xff] }
 0x63d   :  { %8063 = vmatprep.subr.bf16.mxu0 %v13043_v15  ;;  %8095 = vmatprep.subr.bf16.mxu1 %v13044_v59  ;;  %v518_v63 = vadd.f32 %v13048_v12, %v13045_v32  ;;  %v13049_v15 = vld [vmem:[#allocation75_spill] sm:$0xff] }
 0x63e   :  { %v520_v17 = vadd.f32 %v13049_v15, %v12886_v24 }
 0x6d0   :  { %v4145_v3 = vpop.f32.mrb[96].mxu0  ;;  %v4234_v2 = vpop.f32.mrb[76].mxu1 }
 0x6d1   :  { %v4257_v30 = vadd.f32 %v4145_v3, %v512_v42  ;;  %v4147_v47 = vpop.f32.mrb[97].mxu0  ;;  %v4236_v43 = vpop.f32.mrb[77].mxu1  ;;  %v8586_v59 = vadd.f32 %v4234_v2, %v12935_v53 }
 0x6d2   :  { %v4258_v52 = vadd.f32 %v4147_v47, %v514_v5  ;;  %v13050_v47 = vld [vmem:[#allocation78_spill] sm:$0xff]  ;;  %v8587_v12 = vadd.f32 %v4236_v43, %v10818_v29  ;;  %v13051_v5 = vld [vmem:[#allocation79_spill] sm:$0xff] }
 0x6d3   :  { %v4483_v23 = vmul.f32 0.5, %v4257_v30  ;;  %v524_v42 = vadd.f32 %v13050_v47, %v13045_v32  ;;  %v526_v15 = vadd.f32 %v13051_v5, %v12886_v24 }
 0x6d4   :  { %v4484_v38 = vmul.f32 0.5, %v4258_v52  ;;  %v4151_v60 = vpop.f32.mrb[98].mxu0  ;;  %v4240_v46 = vpop.f32.mrb[78].mxu1  ;;  %v4519_v43 = vmul.f32 0.5, %v8587_v12 }
 0x6d5   :  { %9296 = vtanh.f32 %v4483_v23  ;;  %v4261_v39 = vadd.f32 %v4151_v60, %v518_v63  ;;  %v4153_v27 = vpop.f32.mrb[99].mxu0  ;;  %v4242_v18 = vpop.f32.mrb[79].mxu1  ;;  %v8588_v52 = vadd.f32 %v4240_v46, %v12935_v53 }
 0x6d6   :  { %9298 = vtanh.f32 %v4484_v38  ;;  %v4262_v3 = vadd.f32 %v4153_v27, %v520_v17  ;;  %v13052_v17 = vld [vmem:[#allocation80_spill] sm:$0xff] }
 0x6d7   :  { %v4485_v30 = vmul.f32 0.5, %v4261_v39  ;;  %9300 = vtanh.f32 %v8586_v59  ;;  %v530_v47 = vadd.f32 %v13052_v17, %v13045_v32  ;;  %v8589_v39 = vadd.f32 %v4242_v18, %v10818_v29  ;;  %v13053_v59 = vld [vmem:[#allocation81_spill] sm:$0xff] }
 0x6d8   :  { %v4486_v2 = vmul.f32 0.5, %v4262_v3  ;;  %v4157_v8 = vpop.f32.mrb[100].mxu0  ;;  %v4246_v23 = vpop.f32.mrb[80].mxu1  ;;  %v532_v5 = vadd.f32 %v13053_v59, %v12886_v24 }
 0x6d9   :  { %9302 = vtanh.f32 %v4485_v30  ;;  %v4265_v63 = vadd.f32 %v4157_v8, %v524_v42  ;;  %v4159_v60 = vpop.f32.mrb[101].mxu0  ;;  %v4248_v38 = vpop.f32.mrb[81].mxu1  ;;  %v8590_v46 = vadd.f32 %v4246_v23, %v12935_v53  ;;  %v4520_v12 = vmul.f32 0.5, %v8589_v39 }
 0x6da   :  { %9304 = vtanh.f32 %v4486_v2  ;;  %v4266_v27 = vadd.f32 %v4159_v60, %v526_v15 }
 0x6db   :  { %v4487_v19 = vmul.f32 0.5, %v4265_v63  ;;  %9306 = vtanh.f32 %v8588_v52  ;;  %v8591_v52 = vadd.f32 %v4248_v38, %v10818_v29 }
 0x6dc   :  { %v4488_v3 = vmul.f32 0.5, %v4266_v27  ;;  %v4163_v30 = vpop.f32.mrb[102].mxu0  ;;  %v4252_v8 = vpop.f32.mrb[82].mxu1 }
 0x6dd   :  { %9308 = vtanh.f32 %v4487_v19  ;;  %v4269_v42 = vadd.f32 %v4163_v30, %v530_v47  ;;  %v4165_v2 = vpop.f32.mrb[103].mxu0  ;;  %v4254_v15 = vpop.f32.mrb[83].mxu1  ;;  %v8592_v27 = vadd.f32 %v4252_v8, %v12935_v53 }
 0x6de   :  { %9310 = vtanh.f32 %v4488_v3  ;;  %v4270_v60 = vadd.f32 %v4165_v2, %v532_v5  ;;  %v8593_v2 = vadd.f32 %v4254_v15, %v10818_v29 }
 0x6df   :  { %v9297_v17 = vpop.eup %9296  ;;  %9312 = vtanh.f32 %v4519_v43  ;;  %v4489_v18 = vmul.f32 0.5, %v4269_v42  ;;  %v4521_v42 = vmul.f32 0.5, %v8591_v52 }
 0x6e0   :  { %v9299_v63 = vpop.eup %9298  ;;  %v4499_v32 = vmul.f32 0.5, %v9297_v17  ;;  %9314 = vtanh.f32 %v8590_v46  ;;  %v4490_v59 = vmul.f32 0.5, %v4270_v60 }
 0x6e1   :  { %v4500_v23 = vmul.f32 0.5, %v9299_v63  ;;  %9316 = vtanh.f32 %v4489_v18  ;;  %v9301_v19 = vpop.eup %9300 }
 0x6e2   :  { %v4507_v47 = vadd.f32 0.5, %v4499_v32  ;;  %9318 = vtanh.f32 %v4490_v59 }
 0x6e3   :  { %v9303_v30 = vpop.eup %9302  ;;  %v4508_v3 = vadd.f32 0.5, %v4500_v23  ;;  %9320 = vtanh.f32 %v4520_v12  ;;  %v4522_v12 = vmul.f32 0.5, %v8593_v2 }
 0x6e4   :  { %v9305_v5 = vpop.eup %9304  ;;  %v4539_v43 = vmul.f32 %v9301_v19, %v4507_v47  ;;  %v4501_v39 = vmul.f32 0.5, %v9303_v30  ;;  %9322 = vtanh.f32 %v8592_v27 }
 0x6e5   :  { %v4535_v46 = vmul.f32 %v4508_v3, %v11385_v54  ;;  %v4502_v38 = vmul.f32 0.5, %v9305_v5  ;;  %v9307_v60 = vpop.eup %9306  ;;  %9324 = vtanh.f32 %v4521_v42 }
 0x6e6   :  { %v4509_v17 = vadd.f32 0.5, %v4501_v39 }
 0x6e7   :  { %v9309_v18 = vpop.eup %9308  ;;  %v11569_v8 = vadd.f32 %v4539_v43, %v4535_v46  ;;  %v4510_v32 = vadd.f32 0.5, %v4502_v38 }
 0x6e8   :  { %v9311_v63 = vpop.eup %9310  ;;  %v4540_v59 = vmul.f32 %v9307_v60, %v4509_v17  ;;  %v4503_v23 = vmul.f32 0.5, %v9309_v18 }
 0x6e9   :  { %v9313_v19 = vpop.eup %9312  ;;  %9326 = vtanh.f32 %v11569_v8  ;;  %v4536_v15 = vmul.f32 %v4510_v32, %v11389_v6  ;;  %v4504_v52 = vmul.f32 0.5, %v9311_v63 }
 0x6ea   :  { %v9315_v54 = vpop.eup %9314  ;;  %v4511_v47 = vadd.f32 0.5, %v4503_v23  ;;  %9328 = vtanh.f32 %v4522_v12  ;;  %v4527_v38 = vmul.f32 0.5, %v9313_v19 }
 0x6eb   :  { %v9317_v27 = vpop.eup %9316  ;;  %v11573_v30 = vadd.f32 %v4540_v59, %v4536_v15  ;;  %v4512_v3 = vadd.f32 0.5, %v4504_v52 }
 0x6ec   :  { %v9319_v5 = vpop.eup %9318  ;;  %v4541_v43 = vmul.f32 %v9315_v54, %v4511_v47  ;;  %v4505_v39 = vmul.f32 0.5, %v9317_v27  ;;  %v4531_v15 = vadd.f32 0.5, %v4527_v38 }
 0x6ed   :  { %v9321_v46 = vpop.eup %9320  ;;  %9330 = vtanh.f32 %v11573_v30  ;;  %v4537_v42 = vmul.f32 %v4512_v3, %v11393_v49  ;;  %v4506_v2 = vmul.f32 0.5, %v9319_v5 }
 0x6ee   :  { %v4513_v60 = vadd.f32 0.5, %v4505_v39  ;;  %v9323_v6 = vpop.eup %9322  ;;  %v4528_v52 = vmul.f32 0.5, %v9321_v46 }
 0x6ef   :  { %v11577_v17 = vadd.f32 %v4541_v43, %v4537_v42  ;;  %v4514_v18 = vadd.f32 0.5, %v4506_v2  ;;  %v9325_v12 = vpop.eup %9324 }
 0x6f0   :  { %v4542_v32 = vmul.f32 %v9323_v6, %v4513_v60  ;;  %v4532_v38 = vadd.f32 0.5, %v4528_v52  ;;  %v4529_v60 = vmul.f32 0.5, %v9325_v12 }
 0x6f1   :  { %9332 = vtanh.f32 %v11577_v17  ;;  %v4538_v63 = vmul.f32 %v4514_v18, %v11398_v48  ;;  %v4355_v59 = vpop.f32.mrb[44].mxu0  ;;  %v4444_v23 = vpop.f32.mrb[132].mxu1 }
 0x6f2   :  { %v8642_v54 = vadd.f32 %v4355_v59, %v10834_v14  ;;  %v4357_v49 = vpop.f32.mrb[45].mxu0  ;;  %v4446_v47 = vpop.f32.mrb[133].mxu1  ;;  %v8706_v48 = vadd.f32 %v4444_v23, %v10866_v51 }
 0x6f3   :  { %v9327_v19 = vpop.eup %9326  ;;  %v11582_v27 = vadd.f32 %v4542_v32, %v4538_v63  ;;  %v8643_v3 = vadd.f32 %v4357_v49, %v10829_v28  ;;  %v8707_v23 = vadd.f32 %v4446_v47, %v10871_v44 }
 0x6f4   :  { %v11585_v5 = vmul.f32 %v9327_v19, %v4531_v15  ;;  %v4555_v43 = vmul.f32 0.5, %v8642_v54  ;;  %v9329_v46 = vpop.eup %9328 }
 0x6f5   :  { %9334 = vtanh.f32 %v11582_v27  ;;  %v4556_v39 = vmul.f32 0.5, %v8643_v3  ;;  %v4361_v42 = vpop.f32.mrb[46].mxu0  ;;  %v4450_v2 = vpop.f32.mrb[134].mxu1  ;;  %v4533_v3 = vadd.f32 0.5, %v4529_v60 }
 0x6f6   :  { %13054 = vst [vmem:[#allocation70_spill] sm:$0xff] %v11585_v5  ;;  %9336 = vtanh.f32 %v4555_v43  ;;  %v8644_v6 = vadd.f32 %v4361_v42, %v10834_v14  ;;  %v4363_v18 = vpop.f32.mrb[47].mxu0  ;;  %v4452_v32 = vpop.f32.mrb[135].mxu1  ;;  %4716 = vmatmul.mubr.f32.vlgmr.msra.gmra.mrb[104].mxu0 %v11585_v5  ;;  %4805 = vmatmul.mubr.f32.vlgmr.msra.gmra.mrb[84].mxu1 %v11585_v5  ;;  %v8708_v52 = vadd.f32 %v4450_v2, %v10866_v51  ;;  %v4530_v43 = vmul.f32 0.5, %v9329_v46  ;;  %v13076_v5 = vld [vmem:[#allocation53_spill] sm:$0xff] }
 0x6f7   :  { %v9331_v63 = vpop.eup %9330  ;;  %9338 = vtanh.f32 %v4556_v39  ;;  %v8645_v59 = vadd.f32 %v4363_v18, %v10829_v28  ;;  %8065 = vmatpush1.bf16.msra.mxu0 %v10415_v26  ;;  %8097 = vmatpush1.bf16.msra.mxu1 %v10698_v62  ;;  %v8709_v46 = vadd.f32 %v4452_v32, %v10871_v44 }
 0x6f8   :  { %v4557_v12 = vmul.f32 0.5, %v8644_v6  ;;  %4721 = vmatprep.mubr.f32.mxu0 %v12786_v31  ;;  %4810 = vmatprep.mubr.f32.mxu1 %v12786_v31  ;;  %v11598_v15 = vmul.f32 %v9331_v63, %v4532_v38  ;;  %9340 = vtanh.f32 %v8706_v48  ;;  %v4591_v38 = vmul.f32 0.5, %v8707_v23 }
 0x6f9   :  { %v4558_v54 = vmul.f32 0.5, %v8645_v59  ;;  %v4367_v49 = vpop.f32.mrb[48].mxu0  ;;  %v4456_v19 = vpop.f32.mrb[136].mxu1  ;;  %8067 = vmatprep.subr.bf16.mxu0 %v10417_v41  ;;  %8099 = vmatprep.subr.bf16.mxu1 %v10700_v11  ;;  %v4534_v23 = vadd.f32 0.5, %v4530_v43  ;;  %v4592_v43 = vmul.f32 0.5, %v8709_v46 }
 0x6fa   :  { %13055 = vst [vmem:[#allocation71_spill] sm:$0xff] %v11598_v15  ;;  %9342 = vtanh.f32 %v4557_v12  ;;  %v8646_v47 = vadd.f32 %v4367_v49, %v10834_v14  ;;  %v4369_v39 = vpop.f32.mrb[49].mxu0  ;;  %v4458_v42 = vpop.f32.mrb[137].mxu1  ;;  %4722 = vmatmul.mubr.f32.gmra.mrb[106].mxu0 %v11598_v15  ;;  %4811 = vmatmul.mubr.f32.gmra.mrb[86].mxu1 %v11598_v15  ;;  %v8710_v18 = vadd.f32 %v4456_v19, %v10866_v51  ;;  %v13075_v15 = vld [vmem:[#allocation30_spill] sm:$0xff] }
 0x6fb   :  { %v9333_v48 = vpop.eup %9332  ;;  %9344 = vtanh.f32 %v4558_v54  ;;  %v8647_v2 = vadd.f32 %v4369_v39, %v10829_v28  ;;  %8069 = vmatpush1.bf16.msra.mxu0 %v10424_v55  ;;  %8101 = vmatpush1.bf16.msra.mxu1 %v10705_v20 }
 0x6fc   :  { %v4559_v60 = vmul.f32 0.5, %v8646_v47  ;;  %4727 = vmatprep.mubr.f32.mxu0 %v12786_v31  ;;  %4816 = vmatprep.mubr.f32.mxu1 %v12786_v31  ;;  %v11612_v6 = vmul.f32 %v9333_v48, %v4533_v3  ;;  %9346 = vtanh.f32 %v8708_v52 }
 0x6fd   :  { %v4560_v63 = vmul.f32 0.5, %v8647_v2  ;;  %v4373_v59 = vpop.f32.mrb[50].mxu0  ;;  %v4462_v12 = vpop.f32.mrb[138].mxu1  ;;  %8071 = vmatprep.subr.bf16.mxu0 %v10427_v58  ;;  %8103 = vmatprep.subr.bf16.mxu1 %v10708_v21 }
 0x6fe   :  { %13056 = vst [vmem:[#allocation74_spill] sm:$0xff] %v11612_v6  ;;  %9348 = vtanh.f32 %v4559_v60  ;;  %v8648_v32 = vadd.f32 %v4373_v59, %v10834_v14  ;;  %v4375_v54 = vpop.f32.mrb[51].mxu0  ;;  %v4464_v49 = vpop.f32.mrb[139].mxu1  ;;  %4728 = vmatmul.mubr.f32.gmra.mrb[108].mxu0 %v11612_v6  ;;  %4817 = vmatmul.mubr.f32.gmra.mrb[88].mxu1 %v11612_v6  ;;  %v8711_v60 = vadd.f32 %v4458_v42, %v10871_v44  ;;  %v13074_v6 = vld [vmem:[#allocation52_spill] sm:$0xff] }
 0x6ff   :  { %v9335_v52 = vpop.eup %9334  ;;  %9350 = vtanh.f32 %v4560_v63  ;;  %v8649_v19 = vadd.f32 %v4375_v54, %v10829_v28  ;;  %8073 = vmatpush1.bf16.msra.mxu0 %v10434_v1  ;;  %8105 = vmatpush1.bf16.msra.mxu1 %v10713_v34 }
 0x700   :  { %v9337_v3 = vpop.eup %9336  ;;  %9352 = vtanh.f32 %v4591_v38  ;;  %v4561_v47 = vmul.f32 0.5, %v8648_v32  ;;  %4733 = vmatprep.mubr.f32.mxu0 %v12786_v31  ;;  %4822 = vmatprep.mubr.f32.mxu1 %v12786_v31  ;;  %v11625_v39 = vmul.f32 %v9335_v52, %v4534_v23  ;;  %v8712_v38 = vadd.f32 %v4462_v12, %v10866_v51 }
 0x701   :  { %v9339_v48 = vpop.eup %9338  ;;  %v4571_v2 = vmul.f32 0.5, %v9337_v3  ;;  %9354 = vtanh.f32 %v8710_v18  ;;  %v4562_v63 = vmul.f32 0.5, %v8649_v19  ;;  %8075 = vmatprep.subr.bf16.mxu0 %v10437_v22  ;;  %8107 = vmatprep.subr.bf16.mxu1 %v10716_v45  ;;  %v4593_v52 = vmul.f32 0.5, %v8711_v60 }
 0x702   :  { %13057 = vst [vmem:[#allocation75_spill] sm:$0xff] %v11625_v39  ;;  %v4572_v59 = vmul.f32 0.5, %v9339_v48  ;;  %9356 = vtanh.f32 %v4561_v47  ;;  %4734 = vmatmul.mubr.f32.gmra.mrb[110].mxu0 %v11625_v39  ;;  %4823 = vmatmul.mubr.f32.gmra.mrb[90].mxu1 %v11625_v39  ;;  %v9341_v46 = vpop.eup %9340  ;;  %v8713_v19 = vadd.f32 %v4464_v49, %v10871_v44 }
 0x703   :  { %v4579_v23 = vadd.f32 0.5, %v4571_v2  ;;  %9358 = vtanh.f32 %v4562_v63  ;;  %8077 = vmatpush1.bf16.msra.mxu0 %v10444_v57  ;;  %8109 = vmatpush1.bf16.msra.mxu1 %v10721_v50 }
 0x704   :  { %v9343_v42 = vpop.eup %9342  ;;  %v4580_v18 = vadd.f32 0.5, %v4572_v59  ;;  %9360 = vtanh.f32 %v4592_v43  ;;  %8079 = vmatprep.subr.bf16.mxu0 %v10447_v33  ;;  %8111 = vmatprep.subr.bf16.mxu1 %v10724_v36 }
 0x705   :  { %v9345_v32 = vpop.eup %9344  ;;  %v4611_v12 = vmul.f32 %v9341_v46, %v4579_v23  ;;  %v4573_v54 = vmul.f32 0.5, %v9343_v42  ;;  %4925 = vmatprep.mubr.f32.mxu0 %v12786_v31  ;;  %5014 = vmatprep.mubr.f32.mxu1 %v12786_v31  ;;  %9362 = vtanh.f32 %v8712_v38 }
 0x706   :  { %v4607_v3 = vmul.f32 %v4580_v18, %v11459_v7  ;;  %v4574_v47 = vmul.f32 0.5, %v9345_v32  ;;  %v9347_v48 = vpop.eup %9346  ;;  %9364 = vtanh.f32 %v4593_v52  ;;  %v4594_v7 = vmul.f32 0.5, %v8713_v19 }
 0x707   :  { %v4581_v43 = vadd.f32 0.5, %v4573_v54  ;;  %8081 = vmatpush1.bf16.msra.mxu0 %v10454_v10  ;;  %8113 = vmatpush1.bf16.msra.mxu1 %v10728_v0 }
 0x708   :  { %v9349_v2 = vpop.eup %9348  ;;  %v11643_v63 = vadd.f32 %v4611_v12, %v4607_v3  ;;  %v4582_v60 = vadd.f32 0.5, %v4574_v47  ;;  %8083 = vmatprep.subr.bf16.mxu0 %v10457_v40  ;;  %8115 = vmatprep.subr.bf16.mxu1 %v10732_v13 }
 0x709   :  { %v9351_v49 = vpop.eup %9350  ;;  %v4612_v59 = vmul.f32 %v9347_v48, %v4581_v43  ;;  %v4575_v46 = vmul.f32 0.5, %v9349_v2 }
 0x70a   :  { %v9353_v38 = vpop.eup %9352  ;;  %9366 = vtanh.f32 %v11643_v63  ;;  %v4608_v23 = vmul.f32 %v4582_v60, %v11467_v37  ;;  %v4576_v42 = vmul.f32 0.5, %v9351_v49 }
 0x70b   :  { %v9355_v18 = vpop.eup %9354  ;;  %v4583_v32 = vadd.f32 0.5, %v4575_v46  ;;  %8085 = vmatpush1.bf16.msra.mxu0 %v10462_v9  ;;  %8117 = vmatpush1.bf16.msra.mxu1 %v10735_v35  ;;  %9368 = vtanh.f32 %v4594_v7  ;;  %v4599_v2 = vmul.f32 0.5, %v9353_v38 }
 0x70c   :  { %v9357_v12 = vpop.eup %9356  ;;  %v11651_v54 = vadd.f32 %v4612_v59, %v4608_v23  ;;  %v4584_v3 = vadd.f32 0.5, %v4576_v42  ;;  %8087 = vmatprep.subr.bf16.mxu0 %v10465_v25  ;;  %8119 = vmatprep.subr.bf16.mxu1 %v10738_v56  ;;  %v13058_v23 = vld [vmem:[#allocation44_spill] sm:$0xff]  ;;  %v13059_v42 = vld [vmem:[#allocation106_spill] sm:$0xff] }
 0x70d   :  { %v9359_v52 = vpop.eup %9358  ;;  %v4613_v19 = vmul.f32 %v9355_v18, %v4583_v32  ;;  %v4577_v47 = vmul.f32 0.5, %v9357_v12  ;;  %v13060_v18 = vld [vmem:[#allocation62_spill] sm:$0xff]  ;;  %v4603_v38 = vadd.f32 0.5, %v4599_v2 }
 0x70e   :  { %v9361_v37 = vpop.eup %9360  ;;  %9370 = vtanh.f32 %v11651_v54  ;;  %v4609_v48 = vmul.f32 %v4584_v3, %v11475_v61  ;;  %v4578_v43 = vmul.f32 0.5, %v9359_v52  ;;  %v13061_v3 = vld [vmem:[#allocation45_spill] sm:$0xff]  ;;  %v13062_v52 = vld [vmem:[#allocation107_spill] sm:$0xff] }
 0x70f   :  { %v4585_v60 = vadd.f32 0.5, %v4577_v47  ;;  %8089 = vmatpush1.bf16.msra.mxu0 %v10470_v4  ;;  %8121 = vmatpush1.bf16.msra.mxu1 %v10741_v16  ;;  %v9363_v49 = vpop.eup %9362  ;;  %v4600_v12 = vmul.f32 0.5, %v9361_v37 }
 0x710   :  { %v11659_v59 = vadd.f32 %v4613_v19, %v4609_v48  ;;  %v4586_v46 = vadd.f32 0.5, %v4578_v43  ;;  %8091 = vmatprep.subr.bf16.mxu0 %v13058_v23  ;;  %8123 = vmatprep.subr.bf16.mxu1 %v13059_v42  ;;  %v9365_v32 = vpop.eup %9364  ;;  %v13064_v48 = vld [vmem:[#allocation26_spill] sm:$0xff] }
 0x711   :  { %v4614_v7 = vmul.f32 %v9363_v49, %v4585_v60  ;;  %v13065_v43 = vld [vmem:[#allocation42_spill] sm:$0xff]  ;;  %v4604_v49 = vadd.f32 0.5, %v4600_v12 }
 0x712   :  { %9372 = vtanh.f32 %v11659_v59  ;;  %v4610_v61 = vmul.f32 %v4586_v46, %v13060_v18  ;;  %v4601_v46 = vmul.f32 0.5, %v9365_v32  ;;  %v13069_v18 = vld [vmem:[#allocation48_spill] sm:$0xff] }
 0x713   :  { %8093 = vmatpush1.bf16.msra.mxu0 %v13061_v3  ;;  %8125 = vmatpush1.bf16.msra.mxu1 %v13062_v52 }
 0x714   :  { %v9367_v47 = vpop.eup %9366  ;;  %v11667_v19 = vadd.f32 %v4614_v7, %v4610_v61  ;;  %8127 = vmatprep.subr.bf16.mxu0 %v13064_v48  ;;  %8159 = vmatprep.subr.bf16.mxu1 %v13065_v43  ;;  %v13068_v7 = vld [vmem:[#allocation27_spill] sm:$0xff]  ;;  %v13070_v61 = vld [vmem:[#allocation28_spill] sm:$0xff]  ;;  %v4605_v32 = vadd.f32 0.5, %v4601_v46 }
 0x715   :  { %v11671_v39 = vmul.f32 %v9367_v47, %v4603_v38  ;;  %v9369_v60 = vpop.eup %9368  ;;  %v13071_v38 = vld [vmem:[#allocation49_spill] sm:$0xff] }
 0x716   :  { %13063 = vst [vmem:[#allocation78_spill] sm:$0xff] %v11667_v19  ;;  %9374 = vtanh.f32 %v11667_v19  ;;  %v4602_v12 = vmul.f32 0.5, %v9369_v60 }
 0x717   :  { %13066 = vst [vmem:[#allocation79_spill] sm:$0xff] %v11671_v39  ;;  %4926 = vmatmul.mubr.f32.vlgmr.msra.gmra.mrb[36].mxu0 %v11671_v39  ;;  %5015 = vmatmul.mubr.f32.vlgmr.msra.gmra.mrb[124].mxu1 %v11671_v39  ;;  %v13080_v39 = vld [vmem:[#allocation32_spill] sm:$0xff] }
 0x718   :  { %v9371_v37 = vpop.eup %9370  ;;  %4931 = vmatprep.mubr.f32.mxu0 %v12786_v31  ;;  %5020 = vmatprep.mubr.f32.mxu1 %v12786_v31  ;;  %v4606_v60 = vadd.f32 0.5, %v4602_v12  ;;  %v13082_v12 = vld [vmem:[#allocation33_spill] sm:$0xff] }
 0x719   :  { %v11678_v2 = vmul.f32 %v9371_v37, %v4604_v49  ;;  %8129 = vmatpush1.bf16.msra.mxu0 %v13068_v7  ;;  %8161 = vmatpush1.bf16.msra.mxu1 %v13069_v18  ;;  %v13073_v37 = vld [vmem:[#allocation29_spill] sm:$0xff] }
 0x71a   :  { %8131 = vmatprep.subr.bf16.mxu0 %v13070_v61  ;;  %8163 = vmatprep.subr.bf16.mxu1 %v13071_v38 }
 0x71b   :  { %13067 = vst [vmem:[#allocation80_spill] sm:$0xff] %v11678_v2  ;;  %4932 = vmatmul.mubr.f32.gmra.mrb[38].mxu0 %v11678_v2  ;;  %5021 = vmatmul.mubr.f32.gmra.mrb[126].mxu1 %v11678_v2  ;;  %v13079_v2 = vld [vmem:[#allocation56_spill] sm:$0xff] }
 0x71c   :  { %v9373_v47 = vpop.eup %9372  ;;  %4937 = vmatprep.mubr.f32.mxu0 %v12786_v31  ;;  %5026 = vmatprep.mubr.f32.mxu1 %v12786_v31 }
 0x71d   :  { %v11688_v49 = vmul.f32 %v9373_v47, %v4605_v32  ;;  %8133 = vmatpush1.bf16.msra.mxu0 %v13073_v37  ;;  %8165 = vmatpush1.bf16.msra.mxu1 %v13074_v6  ;;  %v13078_v47 = vld [vmem:[#allocation31_spill] sm:$0xff]  ;;  %v13092_v6 = vld [vmem:[#allocation38_spill] sm:$0xff] }
 0x71e   :  { %8135 = vmatprep.subr.bf16.mxu0 %v13075_v15  ;;  %8167 = vmatprep.subr.bf16.mxu1 %v13076_v5  ;;  %v13081_v15 = vld [vmem:[#allocation57_spill] sm:$0xff]  ;;  %v13091_v5 = vld [vmem:[#allocation68_spill] sm:$0xff] }
 0x71f   :  { %13072 = vst [vmem:[#allocation81_spill] sm:$0xff] %v11688_v49  ;;  %4938 = vmatmul.mubr.f32.gmra.mrb[40].mxu0 %v11688_v49  ;;  %5027 = vmatmul.mubr.f32.gmra.mrb[128].mxu1 %v11688_v49  ;;  %v13085_v49 = vld [vmem:[#allocation61_spill] sm:$0xff] }
 0x720   :  { %v9375_v46 = vpop.eup %9374  ;;  %4943 = vmatprep.mubr.f32.mxu0 %v12786_v31  ;;  %5032 = vmatprep.mubr.f32.mxu1 %v12786_v31 }
 0x721   :  { %v11698_v32 = vmul.f32 %v9375_v46, %v4606_v60  ;;  %8137 = vmatpush1.bf16.msra.mxu0 %v13078_v47  ;;  %8169 = vmatpush1.bf16.msra.mxu1 %v13079_v2  ;;  %v13083_v60 = vld [vmem:[#allocation60_spill] sm:$0xff]  ;;  %v13084_v46 = vld [vmem:[#allocation34_spill] sm:$0xff]  ;;  %v13086_v2 = vld [vmem:[#allocation35_spill] sm:$0xff] }
 0x722   :  { %8139 = vmatprep.subr.bf16.mxu0 %v13080_v39  ;;  %8171 = vmatprep.subr.bf16.mxu1 %v13081_v15  ;;  %v13087_v39 = vld [vmem:[#allocation64_spill] sm:$0xff]  ;;  %v13089_v47 = vld [vmem:[#allocation65_spill] sm:$0xff] }
 0x723   :  { %13077 = vst [vmem:[#allocation62_spill] sm:$0xff] %v11698_v32  ;;  %4944 = vmatmul.mubr.f32.gmra.mrb[42].mxu0 %v11698_v32  ;;  %5033 = vmatmul.mubr.f32.gmra.mrb[130].mxu1 %v11698_v32  ;;  %v13088_v15 = vld [vmem:[#allocation36_spill] sm:$0xff]  ;;  %v13090_v32 = vld [vmem:[#allocation37_spill] sm:$0xff] }
 0x724   :  { %5287 = vmatprep.mubr.f32.mxu0 %v12786_v31  ;;  %5376 = vmatprep.mubr.f32.mxu1 %v12786_v31 }
 0x725   :  { %8141 = vmatpush1.bf16.msra.mxu0 %v13082_v12  ;;  %8173 = vmatpush1.bf16.msra.mxu1 %v13083_v60  ;;  %v13093_v12 = vld [vmem:[#allocation69_spill] sm:$0xff]  ;;  %v13094_v60 = vld [vmem:[#allocation39_spill] sm:$0xff] }
 0x726   :  { %8143 = vmatprep.subr.bf16.mxu0 %v13084_v46  ;;  %8175 = vmatprep.subr.bf16.mxu1 %v13085_v49  ;;  %v13095_v46 = vld [vmem:[#allocation72_spill] sm:$0xff] }
 0x727   :  { %v13096_v49 = vld [vmem:[#allocation40_spill] sm:$0xff] }
 0x729   :  { %8145 = vmatpush1.bf16.msra.mxu0 %v13086_v2  ;;  %8177 = vmatpush1.bf16.msra.mxu1 %v13087_v39  ;;  %v13097_v2 = vld [vmem:[#allocation73_spill] sm:$0xff] }
 0x72a   :  { %8147 = vmatprep.subr.bf16.mxu0 %v13088_v15  ;;  %8179 = vmatprep.subr.bf16.mxu1 %v13089_v47  ;;  %v13098_v39 = vld [vmem:[#allocation41_spill] sm:$0xff]  ;;  %v13099_v15 = vld [vmem:[#allocation76_spill] sm:$0xff]  ;;  %v13100_v47 = vld [vmem:[#allocation43_spill] sm:$0xff] }
 0x72d   :  { %8149 = vmatpush1.bf16.msra.mxu0 %v13090_v32  ;;  %8181 = vmatpush1.bf16.msra.mxu1 %v13091_v5  ;;  %v13101_v32 = vld [vmem:[#allocation77_spill] sm:$0xff] }
 0x72e   :  { %8151 = vmatprep.subr.bf16.mxu0 %v13092_v6  ;;  %8183 = vmatprep.subr.bf16.mxu1 %v13093_v12  ;;  %v13102_v5 = vld [vmem:[#allocation109_spill] sm:$0xff]  ;;  %v13103_v6 = vld [vmem:[#allocation82_spill] sm:$0xff]  ;;  %v13104_v12 = vld [vmem:[#allocation83_spill] sm:$0xff] }
 0x72f   :  { %v536_v37 = vadd.f32 %v13103_v6, %v13102_v5 }
 0x731   :  { %8153 = vmatpush1.bf16.msra.mxu0 %v13094_v60  ;;  %8185 = vmatpush1.bf16.msra.mxu1 %v13095_v46  ;;  %v538_v60 = vadd.f32 %v13104_v12, %v12886_v24 }
 0x732   :  { %8155 = vmatprep.subr.bf16.mxu0 %v13096_v49  ;;  %8187 = vmatprep.subr.bf16.mxu1 %v13097_v2 }
 0x735   :  { %8157 = vmatpush1.bf16.msra.mxu0 %v13098_v39  ;;  %8189 = vmatpush1.bf16.msra.mxu1 %v13099_v15  ;;  %v13105_v39 = vld [vmem:[#allocation84_spill] sm:$0xff] }
 0x736   :  { %8191 = vmatprep.subr.bf16.mxu0 %v13100_v47  ;;  %8223 = vmatprep.subr.bf16.mxu1 %v13101_v32  ;;  %v542_v7 = vadd.f32 %v13105_v39, %v13102_v5  ;;  %v13106_v47 = vld [vmem:[#allocation85_spill] sm:$0xff] }
 0x737   :  { %v544_v43 = vadd.f32 %v13106_v47, %v12886_v24 }
 0x7c9   :  { %v4717_v38 = vpop.f32.mrb[104].mxu0  ;;  %v4806_v46 = vpop.f32.mrb[84].mxu1 }
 0x7ca   :  { %v4829_v61 = vadd.f32 %v4717_v38, %v536_v37  ;;  %v4719_v49 = vpop.f32.mrb[105].mxu0  ;;  %v4808_v18 = vpop.f32.mrb[85].mxu1  ;;  %v8594_v32 = vadd.f32 %v4806_v46, %v12935_v53 }
 0x7cb   :  { %v4830_v2 = vadd.f32 %v4719_v49, %v538_v60  ;;  %v13107_v49 = vld [vmem:[#allocation86_spill] sm:$0xff]  ;;  %v8595_v39 = vadd.f32 %v4808_v18, %v10818_v29  ;;  %v13108_v60 = vld [vmem:[#allocation87_spill] sm:$0xff] }
 0x7cc   :  { %v5055_v15 = vmul.f32 0.5, %v4829_v61  ;;  %v548_v37 = vadd.f32 %v13107_v49, %v13102_v5  ;;  %v550_v47 = vadd.f32 %v13108_v60, %v12886_v24 }
 0x7cd   :  { %v5056_v48 = vmul.f32 0.5, %v4830_v2  ;;  %v4723_v6 = vpop.f32.mrb[106].mxu0  ;;  %v4812_v52 = vpop.f32.mrb[86].mxu1  ;;  %v5091_v18 = vmul.f32 0.5, %v8595_v39 }
 0x7ce   :  { %9376 = vtanh.f32 %v5055_v15  ;;  %v4833_v12 = vadd.f32 %v4723_v6, %v542_v7  ;;  %v4725_v3 = vpop.f32.mrb[107].mxu0  ;;  %v4814_v19 = vpop.f32.mrb[87].mxu1  ;;  %v8596_v2 = vadd.f32 %v4812_v52, %v12935_v53 }
 0x7cf   :  { %9378 = vtanh.f32 %v5056_v48  ;;  %v4834_v38 = vadd.f32 %v4725_v3, %v544_v43  ;;  %v13109_v43 = vld [vmem:[#allocation88_spill] sm:$0xff] }
 0x7d0   :  { %v5057_v61 = vmul.f32 0.5, %v4833_v12  ;;  %9380 = vtanh.f32 %v8594_v32  ;;  %v554_v49 = vadd.f32 %v13109_v43, %v13102_v5  ;;  %v8597_v12 = vadd.f32 %v4814_v19, %v10818_v29  ;;  %v13110_v32 = vld [vmem:[#allocation89_spill] sm:$0xff] }
 0x7d1   :  { %v5058_v46 = vmul.f32 0.5, %v4834_v38  ;;  %v4729_v42 = vpop.f32.mrb[108].mxu0  ;;  %v4818_v15 = vpop.f32.mrb[88].mxu1  ;;  %v556_v60 = vadd.f32 %v13110_v32, %v12886_v24 }
 0x7d2   :  { %9382 = vtanh.f32 %v5057_v61  ;;  %v4837_v7 = vadd.f32 %v4729_v42, %v548_v37  ;;  %v4731_v6 = vpop.f32.mrb[109].mxu0  ;;  %v4820_v48 = vpop.f32.mrb[89].mxu1  ;;  %v8598_v52 = vadd.f32 %v4818_v15, %v12935_v53  ;;  %v5092_v39 = vmul.f32 0.5, %v8597_v12 }
 0x7d3   :  { %9384 = vtanh.f32 %v5058_v46  ;;  %v4838_v3 = vadd.f32 %v4731_v6, %v550_v47 }
 0x7d4   :  { %v5059_v23 = vmul.f32 0.5, %v4837_v7  ;;  %9386 = vtanh.f32 %v8596_v2  ;;  %v8599_v2 = vadd.f32 %v4820_v48, %v10818_v29 }
 0x7d5   :  { %v5060_v38 = vmul.f32 0.5, %v4838_v3  ;;  %v4735_v61 = vpop.f32.mrb[110].mxu0  ;;  %v4824_v42 = vpop.f32.mrb[90].mxu1 }
 0x7d6   :  { %9388 = vtanh.f32 %v5059_v23  ;;  %v4841_v37 = vadd.f32 %v4735_v61, %v554_v49  ;;  %v4737_v46 = vpop.f32.mrb[111].mxu0  ;;  %v4826_v47 = vpop.f32.mrb[91].mxu1  ;;  %v8600_v3 = vadd.f32 %v4824_v42, %v12935_v53 }
 0x7d7   :  { %9390 = vtanh.f32 %v5060_v38  ;;  %v4842_v6 = vadd.f32 %v4737_v46, %v556_v60  ;;  %v8601_v46 = vadd.f32 %v4826_v47, %v10818_v29 }
 0x7d8   :  { %v9377_v43 = vpop.eup %9376  ;;  %9392 = vtanh.f32 %v5091_v18  ;;  %v5061_v19 = vmul.f32 0.5, %v4841_v37  ;;  %v5093_v37 = vmul.f32 0.5, %v8599_v2 }
 0x7d9   :  { %v9379_v7 = vpop.eup %9378  ;;  %v5071_v5 = vmul.f32 0.5, %v9377_v43  ;;  %9394 = vtanh.f32 %v8598_v52  ;;  %v5062_v32 = vmul.f32 0.5, %v4842_v6 }
 0x7da   :  { %v5072_v15 = vmul.f32 0.5, %v9379_v7  ;;  %9396 = vtanh.f32 %v5061_v19  ;;  %v9381_v23 = vpop.eup %9380 }
 0x7db   :  { %v5079_v49 = vadd.f32 0.5, %v5071_v5  ;;  %9398 = vtanh.f32 %v5062_v32 }
 0x7dc   :  { %v9383_v61 = vpop.eup %9382  ;;  %v5080_v38 = vadd.f32 0.5, %v5072_v15  ;;  %9400 = vtanh.f32 %v5092_v39  ;;  %v5094_v39 = vmul.f32 0.5, %v8601_v46 }
 0x7dd   :  { %v9385_v60 = vpop.eup %9384  ;;  %v5111_v18 = vmul.f32 %v9381_v23, %v5079_v49  ;;  %v5073_v12 = vmul.f32 0.5, %v9383_v61  ;;  %9402 = vtanh.f32 %v8600_v3 }
 0x7de   :  { %v5107_v52 = vmul.f32 %v5080_v38, %v11569_v8  ;;  %v5074_v48 = vmul.f32 0.5, %v9385_v60  ;;  %v9387_v6 = vpop.eup %9386  ;;  %9404 = vtanh.f32 %v5093_v37 }
 0x7df   :  { %v5081_v43 = vadd.f32 0.5, %v5073_v12 }
 0x7e0   :  { %v9389_v19 = vpop.eup %9388  ;;  %v11753_v42 = vadd.f32 %v5111_v18, %v5107_v52  ;;  %v5082_v5 = vadd.f32 0.5, %v5074_v48 }
 0x7e1   :  { %v9391_v7 = vpop.eup %9390  ;;  %v5112_v32 = vmul.f32 %v9387_v6, %v5081_v43  ;;  %v5075_v15 = vmul.f32 0.5, %v9389_v19 }
 0x7e2   :  { %v9393_v23 = vpop.eup %9392  ;;  %9406 = vtanh.f32 %v11753_v42  ;;  %v5108_v47 = vmul.f32 %v5082_v5, %v11573_v30  ;;  %v5076_v2 = vmul.f32 0.5, %v9391_v7 }
 0x7e3   :  { %v9395_v8 = vpop.eup %9394  ;;  %v5083_v49 = vadd.f32 0.5, %v5075_v15  ;;  %9408 = vtanh.f32 %v5094_v39  ;;  %v5099_v48 = vmul.f32 0.5, %v9393_v23 }
 0x7e4   :  { %v9397_v3 = vpop.eup %9396  ;;  %v11757_v61 = vadd.f32 %v5112_v32, %v5108_v47  ;;  %v5084_v38 = vadd.f32 0.5, %v5076_v2 }
 0x7e5   :  { %v9399_v60 = vpop.eup %9398  ;;  %v5113_v18 = vmul.f32 %v9395_v8, %v5083_v49  ;;  %v5077_v12 = vmul.f32 0.5, %v9397_v3  ;;  %v5103_v47 = vadd.f32 0.5, %v5099_v48 }
 0x7e6   :  { %v9401_v52 = vpop.eup %9400  ;;  %9410 = vtanh.f32 %v11757_v61  ;;  %v5109_v37 = vmul.f32 %v5084_v38, %v11577_v17  ;;  %v5078_v46 = vmul.f32 0.5, %v9399_v60 }
 0x7e7   :  { %v5085_v6 = vadd.f32 0.5, %v5077_v12  ;;  %v9403_v30 = vpop.eup %9402  ;;  %v5100_v2 = vmul.f32 0.5, %v9401_v52 }
 0x7e8   :  { %v11761_v43 = vadd.f32 %v5113_v18, %v5109_v37  ;;  %v5086_v19 = vadd.f32 0.5, %v5078_v46  ;;  %v9405_v39 = vpop.eup %9404 }
 0x7e9   :  { %v5114_v5 = vmul.f32 %v9403_v30, %v5085_v6  ;;  %v5104_v48 = vadd.f32 0.5, %v5100_v2  ;;  %v5101_v6 = vmul.f32 0.5, %v9405_v39 }
 0x7ea   :  { %9412 = vtanh.f32 %v11761_v43  ;;  %v5110_v7 = vmul.f32 %v5086_v19, %v11582_v27  ;;  %v4927_v32 = vpop.f32.mrb[36].mxu0  ;;  %v5016_v15 = vpop.f32.mrb[124].mxu1 }
 0x7eb   :  { %v8634_v8 = vadd.f32 %v4927_v32, %v10834_v14  ;;  %v4929_v17 = vpop.f32.mrb[37].mxu0  ;;  %v5018_v49 = vpop.f32.mrb[125].mxu1  ;;  %v8698_v27 = vadd.f32 %v5016_v15, %v10866_v51 }
 0x7ec   :  { %v9407_v23 = vpop.eup %9406  ;;  %v11766_v3 = vadd.f32 %v5114_v5, %v5110_v7  ;;  %v8635_v38 = vadd.f32 %v4929_v17, %v10829_v28  ;;  %v8699_v15 = vadd.f32 %v5018_v49, %v10871_v44 }
 0x7ed   :  { %v11769_v60 = vmul.f32 %v9407_v23, %v5103_v47  ;;  %v5127_v18 = vmul.f32 0.5, %v8634_v8  ;;  %v9409_v52 = vpop.eup %9408 }
 0x7ee   :  { %9414 = vtanh.f32 %v11766_v3  ;;  %v5128_v12 = vmul.f32 0.5, %v8635_v38  ;;  %v4933_v37 = vpop.f32.mrb[38].mxu0  ;;  %v5022_v46 = vpop.f32.mrb[126].mxu1  ;;  %v5105_v38 = vadd.f32 0.5, %v5101_v6 }
 0x7ef   :  { %13111 = vst [vmem:[#allocation82_spill] sm:$0xff] %v11769_v60  ;;  %9416 = vtanh.f32 %v5127_v18  ;;  %v8636_v30 = vadd.f32 %v4933_v37, %v10834_v14  ;;  %v4935_v19 = vpop.f32.mrb[39].mxu0  ;;  %v5024_v5 = vpop.f32.mrb[127].mxu1  ;;  %5288 = vmatmul.mubr.f32.vlgmr.msra.gmra.mrb[112].mxu0 %v11769_v60  ;;  %5377 = vmatmul.mubr.f32.vlgmr.msra.gmra.mrb[92].mxu1 %v11769_v60  ;;  %v8700_v2 = vadd.f32 %v5022_v46, %v10866_v51  ;;  %v5102_v18 = vmul.f32 0.5, %v9409_v52 }
 0x7f0   :  { %v9411_v7 = vpop.eup %9410  ;;  %9418 = vtanh.f32 %v5128_v12  ;;  %v8637_v32 = vadd.f32 %v4935_v19, %v10829_v28  ;;  %8193 = vmatpush1.bf16.msra.mxu0 %v10415_v26  ;;  %8225 = vmatpush1.bf16.msra.mxu1 %v10698_v62  ;;  %v8701_v52 = vadd.f32 %v5024_v5, %v10871_v44 }
 0x7f1   :  { %v5129_v39 = vmul.f32 0.5, %v8636_v30  ;;  %5293 = vmatprep.mubr.f32.mxu0 %v12786_v31  ;;  %5382 = vmatprep.mubr.f32.mxu1 %v12786_v31  ;;  %v11782_v47 = vmul.f32 %v9411_v7, %v5104_v48  ;;  %9420 = vtanh.f32 %v8698_v27  ;;  %v5163_v48 = vmul.f32 0.5, %v8699_v15 }
 0x7f2   :  { %v5130_v8 = vmul.f32 0.5, %v8637_v32  ;;  %v4939_v17 = vpop.f32.mrb[40].mxu0  ;;  %v5028_v23 = vpop.f32.mrb[128].mxu1  ;;  %8195 = vmatprep.subr.bf16.mxu0 %v10417_v41  ;;  %8227 = vmatprep.subr.bf16.mxu1 %v10700_v11  ;;  %v5106_v15 = vadd.f32 0.5, %v5102_v18  ;;  %v5164_v18 = vmul.f32 0.5, %v8701_v52 }
 0x7f3   :  { %13112 = vst [vmem:[#allocation83_spill] sm:$0xff] %v11782_v47  ;;  %9422 = vtanh.f32 %v5129_v39  ;;  %v8638_v49 = vadd.f32 %v4939_v17, %v10834_v14  ;;  %v4941_v12 = vpop.f32.mrb[41].mxu0  ;;  %v5030_v37 = vpop.f32.mrb[129].mxu1  ;;  %5294 = vmatmul.mubr.f32.gmra.mrb[114].mxu0 %v11782_v47  ;;  %5383 = vmatmul.mubr.f32.gmra.mrb[94].mxu1 %v11782_v47  ;;  %v8702_v19 = vadd.f32 %v5028_v23, %v10866_v51 }
 0x7f4   :  { %v9413_v27 = vpop.eup %9412  ;;  %9424 = vtanh.f32 %v5130_v8  ;;  %v8639_v46 = vadd.f32 %v4941_v12, %v10829_v28  ;;  %8197 = vmatpush1.bf16.msra.mxu0 %v10424_v55  ;;  %8229 = vmatpush1.bf16.msra.mxu1 %v10705_v20 }
 0x7f5   :  { %v5131_v6 = vmul.f32 0.5, %v8638_v49  ;;  %5299 = vmatprep.mubr.f32.mxu0 %v12786_v31  ;;  %5388 = vmatprep.mubr.f32.mxu1 %v12786_v31  ;;  %v11796_v30 = vmul.f32 %v9413_v27, %v5105_v38  ;;  %9426 = vtanh.f32 %v8700_v2 }
 0x7f6   :  { %v5132_v7 = vmul.f32 0.5, %v8639_v46  ;;  %v4945_v32 = vpop.f32.mrb[42].mxu0  ;;  %v5034_v39 = vpop.f32.mrb[130].mxu1  ;;  %8199 = vmatprep.subr.bf16.mxu0 %v10427_v58  ;;  %8231 = vmatprep.subr.bf16.mxu1 %v10708_v21 }
 0x7f7   :  { %13113 = vst [vmem:[#allocation84_spill] sm:$0xff] %v11796_v30  ;;  %9428 = vtanh.f32 %v5131_v6  ;;  %v8640_v5 = vadd.f32 %v4945_v32, %v10834_v14  ;;  %v4947_v8 = vpop.f32.mrb[43].mxu0  ;;  %v5036_v17 = vpop.f32.mrb[131].mxu1  ;;  %5300 = vmatmul.mubr.f32.gmra.mrb[116].mxu0 %v11796_v30  ;;  %5389 = vmatmul.mubr.f32.gmra.mrb[96].mxu1 %v11796_v30  ;;  %v8703_v6 = vadd.f32 %v5030_v37, %v10871_v44 }
 0x7f8   :  { %v9415_v2 = vpop.eup %9414  ;;  %9430 = vtanh.f32 %v5132_v7  ;;  %v8641_v23 = vadd.f32 %v4947_v8, %v10829_v28  ;;  %8201 = vmatpush1.bf16.msra.mxu0 %v10434_v1  ;;  %8233 = vmatpush1.bf16.msra.mxu1 %v10713_v34 }
 0x7f9   :  { %v9417_v38 = vpop.eup %9416  ;;  %9432 = vtanh.f32 %v5163_v48  ;;  %v5133_v49 = vmul.f32 0.5, %v8640_v5  ;;  %5305 = vmatprep.mubr.f32.mxu0 %v12786_v31  ;;  %5394 = vmatprep.mubr.f32.mxu1 %v12786_v31  ;;  %v11809_v12 = vmul.f32 %v9415_v2, %v5106_v15  ;;  %v8704_v48 = vadd.f32 %v5034_v39, %v10866_v51 }
 0x7fa   :  { %v9419_v27 = vpop.eup %9418  ;;  %v5143_v46 = vmul.f32 0.5, %v9417_v38  ;;  %9434 = vtanh.f32 %v8702_v19  ;;  %v5134_v7 = vmul.f32 0.5, %v8641_v23  ;;  %8203 = vmatprep.subr.bf16.mxu0 %v10437_v22  ;;  %8235 = vmatprep.subr.bf16.mxu1 %v10716_v45  ;;  %v5165_v2 = vmul.f32 0.5, %v8703_v6 }
 0x7fb   :  { %13114 = vst [vmem:[#allocation85_spill] sm:$0xff] %v11809_v12  ;;  %v5144_v32 = vmul.f32 0.5, %v9419_v27  ;;  %9436 = vtanh.f32 %v5133_v49  ;;  %5306 = vmatmul.mubr.f32.gmra.mrb[118].mxu0 %v11809_v12  ;;  %5395 = vmatmul.mubr.f32.gmra.mrb[98].mxu1 %v11809_v12  ;;  %v9421_v52 = vpop.eup %9420  ;;  %v8705_v23 = vadd.f32 %v5036_v17, %v10871_v44 }
 0x7fc   :  { %v5151_v15 = vadd.f32 0.5, %v5143_v46  ;;  %9438 = vtanh.f32 %v5134_v7  ;;  %8205 = vmatpush1.bf16.msra.mxu0 %v10444_v57  ;;  %8237 = vmatpush1.bf16.msra.mxu1 %v10721_v50 }
 0x7fd   :  { %v9423_v37 = vpop.eup %9422  ;;  %v5152_v19 = vadd.f32 0.5, %v5144_v32  ;;  %9440 = vtanh.f32 %v5164_v18  ;;  %8207 = vmatprep.subr.bf16.mxu0 %v10447_v33  ;;  %8239 = vmatprep.subr.bf16.mxu1 %v10724_v36 }
 0x7fe   :  { %v9425_v5 = vpop.eup %9424  ;;  %v5183_v39 = vmul.f32 %v9421_v52, %v5151_v15  ;;  %v5145_v8 = vmul.f32 0.5, %v9423_v37  ;;  %5497 = vmatprep.mubr.f32.mxu0 %v12786_v31  ;;  %5586 = vmatprep.mubr.f32.mxu1 %v12786_v31  ;;  %9442 = vtanh.f32 %v8704_v48 }
 0x7ff   :  { %v5179_v38 = vmul.f32 %v5152_v19, %v11643_v63  ;;  %v5146_v49 = vmul.f32 0.5, %v9425_v5  ;;  %v9427_v27 = vpop.eup %9426  ;;  %9444 = vtanh.f32 %v5165_v2  ;;  %v5166_v63 = vmul.f32 0.5, %v8705_v23 }
 0x800   :  { %v5153_v18 = vadd.f32 0.5, %v5145_v8  ;;  %8209 = vmatpush1.bf16.msra.mxu0 %v10454_v10  ;;  %8241 = vmatpush1.bf16.msra.mxu1 %v10728_v0 }
 0x801   :  { %v9429_v46 = vpop.eup %9428  ;;  %v11827_v7 = vadd.f32 %v5183_v39, %v5179_v38  ;;  %v5154_v6 = vadd.f32 0.5, %v5146_v49  ;;  %8211 = vmatprep.subr.bf16.mxu0 %v10457_v40  ;;  %8243 = vmatprep.subr.bf16.mxu1 %v10732_v13 }
 0x802   :  { %v9431_v17 = vpop.eup %9430  ;;  %v5184_v32 = vmul.f32 %v9427_v27, %v5153_v18  ;;  %v5147_v52 = vmul.f32 0.5, %v9429_v46 }
 0x803   :  { %v9433_v48 = vpop.eup %9432  ;;  %9446 = vtanh.f32 %v11827_v7  ;;  %v5180_v15 = vmul.f32 %v5154_v6, %v11651_v54  ;;  %v5148_v37 = vmul.f32 0.5, %v9431_v17 }
 0x804   :  { %v9435_v19 = vpop.eup %9434  ;;  %v5155_v5 = vadd.f32 0.5, %v5147_v52  ;;  %8213 = vmatpush1.bf16.msra.mxu0 %v10462_v9  ;;  %8245 = vmatpush1.bf16.msra.mxu1 %v10735_v35  ;;  %9448 = vtanh.f32 %v5166_v63  ;;  %v5171_v46 = vmul.f32 0.5, %v9433_v48 }
 0x805   :  { %v9437_v39 = vpop.eup %9436  ;;  %v11835_v8 = vadd.f32 %v5184_v32, %v5180_v15  ;;  %v5156_v38 = vadd.f32 0.5, %v5148_v37  ;;  %8215 = vmatprep.subr.bf16.mxu0 %v10465_v25  ;;  %8247 = vmatprep.subr.bf16.mxu1 %v10738_v56  ;;  %v13115_v15 = vld [vmem:[#allocation44_spill] sm:$0xff]  ;;  %v13116_v37 = vld [vmem:[#allocation106_spill] sm:$0xff] }
 0x806   :  { %v9439_v2 = vpop.eup %9438  ;;  %v5185_v23 = vmul.f32 %v9435_v19, %v5155_v5  ;;  %v5149_v49 = vmul.f32 0.5, %v9437_v39  ;;  %v13117_v19 = vld [vmem:[#allocation78_spill] sm:$0xff]  ;;  %v5175_v48 = vadd.f32 0.5, %v5171_v46 }
 0x807   :  { %v9441_v54 = vpop.eup %9440  ;;  %9450 = vtanh.f32 %v11835_v8  ;;  %v5181_v27 = vmul.f32 %v5156_v38, %v11659_v59  ;;  %v5150_v18 = vmul.f32 0.5, %v9439_v2  ;;  %v13118_v38 = vld [vmem:[#allocation45_spill] sm:$0xff]  ;;  %v13119_v2 = vld [vmem:[#allocation107_spill] sm:$0xff] }
 0x808   :  { %v5157_v6 = vadd.f32 0.5, %v5149_v49  ;;  %8217 = vmatpush1.bf16.msra.mxu0 %v10470_v4  ;;  %8249 = vmatpush1.bf16.msra.mxu1 %v10741_v16  ;;  %v9443_v17 = vpop.eup %9442  ;;  %v5172_v39 = vmul.f32 0.5, %v9441_v54 }
 0x809   :  { %v11843_v32 = vadd.f32 %v5185_v23, %v5181_v27  ;;  %v5158_v52 = vadd.f32 0.5, %v5150_v18  ;;  %8219 = vmatprep.subr.bf16.mxu0 %v13115_v15  ;;  %8251 = vmatprep.subr.bf16.mxu1 %v13116_v37  ;;  %v9445_v5 = vpop.eup %9444  ;;  %v13121_v27 = vld [vmem:[#allocation26_spill] sm:$0xff] }
 0x80a   :  { %v5186_v63 = vmul.f32 %v9443_v17, %v5157_v6  ;;  %v13122_v18 = vld [vmem:[#allocation42_spill] sm:$0xff]  ;;  %v5176_v17 = vadd.f32 0.5, %v5172_v39 }
 0x80b   :  { %9452 = vtanh.f32 %v11843_v32  ;;  %v5182_v59 = vmul.f32 %v5158_v52, %v13117_v19  ;;  %v5173_v52 = vmul.f32 0.5, %v9445_v5  ;;  %v13126_v19 = vld [vmem:[#allocation48_spill] sm:$0xff] }
 0x80c   :  { %8221 = vmatpush1.bf16.msra.mxu0 %v13118_v38  ;;  %8253 = vmatpush1.bf16.msra.mxu1 %v13119_v2 }
 0x80d   :  { %v9447_v49 = vpop.eup %9446  ;;  %v11851_v23 = vadd.f32 %v5186_v63, %v5182_v59  ;;  %8255 = vmatprep.subr.bf16.mxu0 %v13121_v27  ;;  %8287 = vmatprep.subr.bf16.mxu1 %v13122_v18  ;;  %v13125_v63 = vld [vmem:[#allocation27_spill] sm:$0xff]  ;;  %v13127_v59 = vld [vmem:[#allocation28_spill] sm:$0xff]  ;;  %v5177_v5 = vadd.f32 0.5, %v5173_v52  ;;  %v13130_v18 = vld [vmem:[#allocation29_spill] sm:$0xff] }
 0x80e   :  { %v11855_v12 = vmul.f32 %v9447_v49, %v5175_v48  ;;  %v9449_v6 = vpop.eup %9448  ;;  %v13128_v48 = vld [vmem:[#allocation49_spill] sm:$0xff] }
 0x80f   :  { %13120 = vst [vmem:[#allocation86_spill] sm:$0xff] %v11851_v23  ;;  %9454 = vtanh.f32 %v11851_v23  ;;  %v5174_v39 = vmul.f32 0.5, %v9449_v6 }
 0x810   :  { %13123 = vst [vmem:[#allocation87_spill] sm:$0xff] %v11855_v12  ;;  %5498 = vmatmul.mubr.f32.vlgmr.msra.gmra.mrb[28].mxu0 %v11855_v12  ;;  %5587 = vmatmul.mubr.f32.vlgmr.msra.gmra.mrb[116].mxu1 %v11855_v12 }
 0x811   :  { %v9451_v54 = vpop.eup %9450  ;;  %5503 = vmatprep.mubr.f32.mxu0 %v12786_v31  ;;  %5592 = vmatprep.mubr.f32.mxu1 %v12786_v31  ;;  %v5178_v6 = vadd.f32 0.5, %v5174_v39  ;;  %v13139_v39 = vld [vmem:[#allocation33_spill] sm:$0xff] }
 0x812   :  { %v11862_v46 = vmul.f32 %v9451_v54, %v5176_v17  ;;  %8257 = vmatpush1.bf16.msra.mxu0 %v13125_v63  ;;  %8289 = vmatpush1.bf16.msra.mxu1 %v13126_v19  ;;  %v13131_v17 = vld [vmem:[#allocation52_spill] sm:$0xff]  ;;  %v13132_v54 = vld [vmem:[#allocation30_spill] sm:$0xff]  ;;  %v13133_v63 = vld [vmem:[#allocation53_spill] sm:$0xff] }
 0x813   :  { %8259 = vmatprep.subr.bf16.mxu0 %v13127_v59  ;;  %8291 = vmatprep.subr.bf16.mxu1 %v13128_v48  ;;  %v13135_v59 = vld [vmem:[#allocation31_spill] sm:$0xff]  ;;  %v13136_v48 = vld [vmem:[#allocation56_spill] sm:$0xff] }
 0x814   :  { %13124 = vst [vmem:[#allocation88_spill] sm:$0xff] %v11862_v46  ;;  %5504 = vmatmul.mubr.f32.gmra.mrb[30].mxu0 %v11862_v46  ;;  %5593 = vmatmul.mubr.f32.gmra.mrb[118].mxu1 %v11862_v46 }
 0x815   :  { %v9453_v49 = vpop.eup %9452  ;;  %5509 = vmatprep.mubr.f32.mxu0 %v12786_v31  ;;  %5598 = vmatprep.mubr.f32.mxu1 %v12786_v31 }
 0x816   :  { %v11872_v27 = vmul.f32 %v9453_v49, %v5177_v5  ;;  %8261 = vmatpush1.bf16.msra.mxu0 %v13130_v18  ;;  %8293 = vmatpush1.bf16.msra.mxu1 %v13131_v17  ;;  %v13137_v5 = vld [vmem:[#allocation32_spill] sm:$0xff]  ;;  %v13138_v49 = vld [vmem:[#allocation57_spill] sm:$0xff]  ;;  %v13141_v17 = vld [vmem:[#allocation34_spill] sm:$0xff] }
 0x817   :  { %8263 = vmatprep.subr.bf16.mxu0 %v13132_v54  ;;  %8295 = vmatprep.subr.bf16.mxu1 %v13133_v63  ;;  %v13140_v18 = vld [vmem:[#allocation60_spill] sm:$0xff]  ;;  %v13142_v54 = vld [vmem:[#allocation61_spill] sm:$0xff]  ;;  %v13143_v63 = vld [vmem:[#allocation35_spill] sm:$0xff] }
 0x818   :  { %13129 = vst [vmem:[#allocation89_spill] sm:$0xff] %v11872_v27  ;;  %5510 = vmatmul.mubr.f32.gmra.mrb[32].mxu0 %v11872_v27  ;;  %5599 = vmatmul.mubr.f32.gmra.mrb[120].mxu1 %v11872_v27 }
 0x819   :  { %v9455_v52 = vpop.eup %9454  ;;  %5515 = vmatprep.mubr.f32.mxu0 %v12786_v31  ;;  %5604 = vmatprep.mubr.f32.mxu1 %v12786_v31 }
 0x81a   :  { %v11882_v19 = vmul.f32 %v9455_v52, %v5178_v6  ;;  %8265 = vmatpush1.bf16.msra.mxu0 %v13135_v59  ;;  %8297 = vmatpush1.bf16.msra.mxu1 %v13136_v48  ;;  %v13144_v6 = vld [vmem:[#allocation64_spill] sm:$0xff]  ;;  %v13146_v59 = vld [vmem:[#allocation65_spill] sm:$0xff] }
 0x81b   :  { %8267 = vmatprep.subr.bf16.mxu0 %v13137_v5  ;;  %8299 = vmatprep.subr.bf16.mxu1 %v13138_v49  ;;  %v13145_v52 = vld [vmem:[#allocation36_spill] sm:$0xff]  ;;  %v13147_v48 = vld [vmem:[#allocation37_spill] sm:$0xff]  ;;  %v13149_v49 = vld [vmem:[#allocation38_spill] sm:$0xff] }
 0x81c   :  { %13134 = vst [vmem:[#allocation78_spill] sm:$0xff] %v11882_v19  ;;  %5516 = vmatmul.mubr.f32.gmra.mrb[34].mxu0 %v11882_v19  ;;  %5605 = vmatmul.mubr.f32.gmra.mrb[122].mxu1 %v11882_v19  ;;  %v13148_v5 = vld [vmem:[#allocation68_spill] sm:$0xff] }
 0x81d   :  { %5859 = vmatprep.mubr.f32.mxu0 %v12786_v31  ;;  %5948 = vmatprep.mubr.f32.mxu1 %v12786_v31 }
 0x81e   :  { %8269 = vmatpush1.bf16.msra.mxu0 %v13139_v39  ;;  %8301 = vmatpush1.bf16.msra.mxu1 %v13140_v18  ;;  %v13150_v39 = vld [vmem:[#allocation69_spill] sm:$0xff]  ;;  %v13151_v18 = vld [vmem:[#allocation39_spill] sm:$0xff] }
 0x81f   :  { %8271 = vmatprep.subr.bf16.mxu0 %v13141_v17  ;;  %8303 = vmatprep.subr.bf16.mxu1 %v13142_v54  ;;  %v13152_v17 = vld [vmem:[#allocation72_spill] sm:$0xff] }
 0x820   :  { %v13153_v54 = vld [vmem:[#allocation40_spill] sm:$0xff] }
 0x822   :  { %8273 = vmatpush1.bf16.msra.mxu0 %v13143_v63  ;;  %8305 = vmatpush1.bf16.msra.mxu1 %v13144_v6  ;;  %v13154_v63 = vld [vmem:[#allocation73_spill] sm:$0xff] }
 0x823   :  { %8275 = vmatprep.subr.bf16.mxu0 %v13145_v52  ;;  %8307 = vmatprep.subr.bf16.mxu1 %v13146_v59  ;;  %v13155_v6 = vld [vmem:[#allocation41_spill] sm:$0xff]  ;;  %v13156_v52 = vld [vmem:[#allocation76_spill] sm:$0xff]  ;;  %v13157_v59 = vld [vmem:[#allocation43_spill] sm:$0xff] }
 0x826   :  { %8277 = vmatpush1.bf16.msra.mxu0 %v13147_v48  ;;  %8309 = vmatpush1.bf16.msra.mxu1 %v13148_v5  ;;  %v13158_v48 = vld [vmem:[#allocation77_spill] sm:$0xff] }
 0x827   :  { %8279 = vmatprep.subr.bf16.mxu0 %v13149_v49  ;;  %8311 = vmatprep.subr.bf16.mxu1 %v13150_v39  ;;  %v13159_v5 = vld [vmem:[#allocation109_spill] sm:$0xff]  ;;  %v13160_v49 = vld [vmem:[#allocation90_spill] sm:$0xff]  ;;  %v13161_v39 = vld [vmem:[#allocation91_spill] sm:$0xff] }
 0x828   :  { %v560_v30 = vadd.f32 %v13160_v49, %v13159_v5 }
 0x82a   :  { %8281 = vmatpush1.bf16.msra.mxu0 %v13151_v18  ;;  %8313 = vmatpush1.bf16.msra.mxu1 %v13152_v17  ;;  %v562_v18 = vadd.f32 %v13161_v39, %v12886_v24 }
 0x82b   :  { %8283 = vmatprep.subr.bf16.mxu0 %v13153_v54  ;;  %8315 = vmatprep.subr.bf16.mxu1 %v13154_v63 }
 0x82e   :  { %8285 = vmatpush1.bf16.msra.mxu0 %v13155_v6  ;;  %8317 = vmatpush1.bf16.msra.mxu1 %v13156_v52  ;;  %v13162_v6 = vld [vmem:[#allocation92_spill] sm:$0xff] }
 0x82f   :  { %8319 = vmatprep.subr.bf16.mxu0 %v13157_v59  ;;  %8351 = vmatprep.subr.bf16.mxu1 %v13158_v48  ;;  %v566_v27 = vadd.f32 %v13162_v6, %v13159_v5  ;;  %v13163_v59 = vld [vmem:[#allocation93_spill] sm:$0xff]  ;;  %v13165_v6 = vld [vmem:[#allocation95_spill] sm:$0xff] }
 0x830   :  { %v568_v46 = vadd.f32 %v13163_v59, %v12886_v24  ;;  %v574_v59 = vadd.f32 %v13165_v6, %v12886_v24 }
 0x8c2   :  { %v5289_v47 = vpop.f32.mrb[112].mxu0  ;;  %v5378_v17 = vpop.f32.mrb[92].mxu1 }
 0x8c3   :  { %v5401_v60 = vadd.f32 %v5289_v47, %v560_v30  ;;  %v5291_v54 = vpop.f32.mrb[113].mxu0  ;;  %v5380_v19 = vpop.f32.mrb[93].mxu1  ;;  %v8602_v48 = vadd.f32 %v5378_v17, %v12935_v53  ;;  %v13164_v30 = vld [vmem:[#allocation94_spill] sm:$0xff] }
 0x8c4   :  { %v5402_v63 = vadd.f32 %v5291_v54, %v562_v18  ;;  %v572_v18 = vadd.f32 %v13164_v30, %v13159_v5  ;;  %v8603_v54 = vadd.f32 %v5380_v19, %v10818_v29 }
 0x8c5   :  { %v5627_v52 = vmul.f32 0.5, %v5401_v60 }
 0x8c6   :  { %v5628_v12 = vmul.f32 0.5, %v5402_v63  ;;  %v5295_v49 = vpop.f32.mrb[114].mxu0  ;;  %v5384_v2 = vpop.f32.mrb[94].mxu1  ;;  %v5663_v19 = vmul.f32 0.5, %v8603_v54 }
 0x8c7   :  { %9456 = vtanh.f32 %v5627_v52  ;;  %v5405_v39 = vadd.f32 %v5295_v49, %v566_v27  ;;  %v5297_v38 = vpop.f32.mrb[115].mxu0  ;;  %v5386_v23 = vpop.f32.mrb[95].mxu1  ;;  %v8604_v17 = vadd.f32 %v5384_v2, %v12935_v53 }
 0x8c8   :  { %9458 = vtanh.f32 %v5628_v12  ;;  %v5406_v47 = vadd.f32 %v5297_v38, %v568_v46  ;;  %v13166_v46 = vld [vmem:[#allocation96_spill] sm:$0xff] }
 0x8c9   :  { %v5629_v60 = vmul.f32 0.5, %v5405_v39  ;;  %9460 = vtanh.f32 %v8602_v48  ;;  %v578_v30 = vadd.f32 %v13166_v46, %v13159_v5  ;;  %v8605_v39 = vadd.f32 %v5386_v23, %v10818_v29  ;;  %v13167_v48 = vld [vmem:[#allocation97_spill] sm:$0xff] }
 0x8ca   :  { %v5630_v63 = vmul.f32 0.5, %v5406_v47  ;;  %v5301_v37 = vpop.f32.mrb[116].mxu0  ;;  %v5390_v52 = vpop.f32.mrb[96].mxu1  ;;  %v580_v6 = vadd.f32 %v13167_v48, %v12886_v24 }
 0x8cb   :  { %9462 = vtanh.f32 %v5629_v60  ;;  %v5409_v27 = vadd.f32 %v5301_v37, %v572_v18  ;;  %v5303_v49 = vpop.f32.mrb[117].mxu0  ;;  %v5392_v12 = vpop.f32.mrb[97].mxu1  ;;  %v8606_v2 = vadd.f32 %v5390_v52, %v12935_v53  ;;  %v5664_v54 = vmul.f32 0.5, %v8605_v39 }
 0x8cc   :  { %9464 = vtanh.f32 %v5630_v63  ;;  %v5410_v38 = vadd.f32 %v5303_v49, %v574_v59 }
 0x8cd   :  { %v5631_v15 = vmul.f32 0.5, %v5409_v27  ;;  %9466 = vtanh.f32 %v8604_v17  ;;  %v8607_v17 = vadd.f32 %v5392_v12, %v10818_v29 }
 0x8ce   :  { %v5632_v47 = vmul.f32 0.5, %v5410_v38  ;;  %v5307_v60 = vpop.f32.mrb[118].mxu0  ;;  %v5396_v37 = vpop.f32.mrb[98].mxu1 }
 0x8cf   :  { %9468 = vtanh.f32 %v5631_v15  ;;  %v5413_v18 = vadd.f32 %v5307_v60, %v578_v30  ;;  %v5309_v63 = vpop.f32.mrb[119].mxu0  ;;  %v5398_v59 = vpop.f32.mrb[99].mxu1  ;;  %v8608_v38 = vadd.f32 %v5396_v37, %v12935_v53 }
 0x8d0   :  { %9470 = vtanh.f32 %v5632_v47  ;;  %v5414_v49 = vadd.f32 %v5309_v63, %v580_v6  ;;  %v8609_v63 = vadd.f32 %v5398_v59, %v10818_v29 }
 0x8d1   :  { %v9457_v46 = vpop.eup %9456  ;;  %9472 = vtanh.f32 %v5663_v19  ;;  %v5633_v23 = vmul.f32 0.5, %v5413_v18  ;;  %v5665_v18 = vmul.f32 0.5, %v8607_v17 }
 0x8d2   :  { %v9459_v27 = vpop.eup %9458  ;;  %v5643_v5 = vmul.f32 0.5, %v9457_v46  ;;  %9474 = vtanh.f32 %v8606_v2  ;;  %v5634_v48 = vmul.f32 0.5, %v5414_v49 }
 0x8d3   :  { %v5644_v52 = vmul.f32 0.5, %v9459_v27  ;;  %9476 = vtanh.f32 %v5633_v23  ;;  %v9461_v15 = vpop.eup %9460 }
 0x8d4   :  { %v5651_v30 = vadd.f32 0.5, %v5643_v5  ;;  %9478 = vtanh.f32 %v5634_v48 }
 0x8d5   :  { %v9463_v60 = vpop.eup %9462  ;;  %v5652_v47 = vadd.f32 0.5, %v5644_v52  ;;  %9480 = vtanh.f32 %v5664_v54  ;;  %v5666_v54 = vmul.f32 0.5, %v8609_v63 }
 0x8d6   :  { %v9465_v6 = vpop.eup %9464  ;;  %v5683_v19 = vmul.f32 %v9461_v15, %v5651_v30  ;;  %v5645_v39 = vmul.f32 0.5, %v9463_v60  ;;  %9482 = vtanh.f32 %v8608_v38 }
 0x8d7   :  { %v5679_v2 = vmul.f32 %v5652_v47, %v11753_v42  ;;  %v5646_v12 = vmul.f32 0.5, %v9465_v6  ;;  %v9467_v49 = vpop.eup %9466  ;;  %9484 = vtanh.f32 %v5665_v18 }
 0x8d8   :  { %v5653_v46 = vadd.f32 0.5, %v5645_v39 }
 0x8d9   :  { %v9469_v23 = vpop.eup %9468  ;;  %v11937_v37 = vadd.f32 %v5683_v19, %v5679_v2  ;;  %v5654_v5 = vadd.f32 0.5, %v5646_v12 }
 0x8da   :  { %v9471_v27 = vpop.eup %9470  ;;  %v5684_v48 = vmul.f32 %v9467_v49, %v5653_v46  ;;  %v5647_v52 = vmul.f32 0.5, %v9469_v23 }
 0x8db   :  { %v9473_v15 = vpop.eup %9472  ;;  %9486 = vtanh.f32 %v11937_v37  ;;  %v5680_v59 = vmul.f32 %v5654_v5, %v11757_v61  ;;  %v5648_v17 = vmul.f32 0.5, %v9471_v27 }
 0x8dc   :  { %v9475_v42 = vpop.eup %9474  ;;  %v5655_v30 = vadd.f32 0.5, %v5647_v52  ;;  %9488 = vtanh.f32 %v5666_v54  ;;  %v5671_v12 = vmul.f32 0.5, %v9473_v15 }
 0x8dd   :  { %v9477_v38 = vpop.eup %9476  ;;  %v11941_v60 = vadd.f32 %v5684_v48, %v5680_v59  ;;  %v5656_v47 = vadd.f32 0.5, %v5648_v17 }
 0x8de   :  { %v9479_v6 = vpop.eup %9478  ;;  %v5685_v19 = vmul.f32 %v9475_v42, %v5655_v30  ;;  %v5649_v39 = vmul.f32 0.5, %v9477_v38  ;;  %v5675_v59 = vadd.f32 0.5, %v5671_v12 }
 0x8df   :  { %v9481_v2 = vpop.eup %9480  ;;  %9490 = vtanh.f32 %v11941_v60  ;;  %v5681_v18 = vmul.f32 %v5656_v47, %v11761_v43  ;;  %v5650_v63 = vmul.f32 0.5, %v9479_v6 }
 0x8e0   :  { %v5657_v49 = vadd.f32 0.5, %v5649_v39  ;;  %v9483_v61 = vpop.eup %9482  ;;  %v5672_v17 = vmul.f32 0.5, %v9481_v2 }
 0x8e1   :  { %v11945_v46 = vadd.f32 %v5685_v19, %v5681_v18  ;;  %v5658_v23 = vadd.f32 0.5, %v5650_v63  ;;  %v9485_v54 = vpop.eup %9484 }
 0x8e2   :  { %v5686_v5 = vmul.f32 %v9483_v61, %v5657_v49  ;;  %v5676_v12 = vadd.f32 0.5, %v5672_v17  ;;  %v5673_v49 = vmul.f32 0.5, %v9485_v54 }
 0x8e3   :  { %9492 = vtanh.f32 %v11945_v46  ;;  %v5682_v27 = vmul.f32 %v5658_v23, %v11766_v3  ;;  %v5499_v48 = vpop.f32.mrb[28].mxu0  ;;  %v5588_v52 = vpop.f32.mrb[116].mxu1 }
 0x8e4   :  { %v8626_v42 = vadd.f32 %v5499_v48, %v10834_v14  ;;  %v5501_v43 = vpop.f32.mrb[29].mxu0  ;;  %v5590_v30 = vpop.f32.mrb[117].mxu1  ;;  %v8690_v3 = vadd.f32 %v5588_v52, %v10866_v51 }
 0x8e5   :  { %v9487_v15 = vpop.eup %9486  ;;  %v11950_v38 = vadd.f32 %v5686_v5, %v5682_v27  ;;  %v8627_v47 = vadd.f32 %v5501_v43, %v10829_v28  ;;  %v8691_v52 = vadd.f32 %v5590_v30, %v10871_v44 }
 0x8e6   :  { %v11953_v6 = vmul.f32 %v9487_v15, %v5675_v59  ;;  %v5699_v19 = vmul.f32 0.5, %v8626_v42  ;;  %v9489_v2 = vpop.eup %9488 }
 0x8e7   :  { %9494 = vtanh.f32 %v11950_v38  ;;  %v5700_v39 = vmul.f32 0.5, %v8627_v47  ;;  %v5505_v18 = vpop.f32.mrb[30].mxu0  ;;  %v5594_v63 = vpop.f32.mrb[118].mxu1 }
 0x8e8   :  { %9496 = vtanh.f32 %v5699_v19  ;;  %v8628_v61 = vadd.f32 %v5505_v18, %v10834_v14  ;;  %v5507_v23 = vpop.f32.mrb[31].mxu0  ;;  %v5596_v5 = vpop.f32.mrb[119].mxu1  ;;  %5860 = vmatmul.mubr.f32.vlgmr.msra.gmra.mrb[120].mxu0 %v11953_v6  ;;  %5949 = vmatmul.mubr.f32.vlgmr.msra.gmra.mrb[100].mxu1 %v11953_v6  ;;  %v8692_v17 = vadd.f32 %v5594_v63, %v10866_v51 }
 0x8e9   :  { %v9491_v27 = vpop.eup %9490  ;;  %9498 = vtanh.f32 %v5700_v39  ;;  %v8629_v48 = vadd.f32 %v5507_v23, %v10829_v28  ;;  %8321 = vmatpush1.bf16.msra.mxu0 %v10415_v26  ;;  %8353 = vmatpush1.bf16.msra.mxu1 %v10698_v62  ;;  %v5677_v26 = vadd.f32 0.5, %v5673_v49  ;;  %v5674_v62 = vmul.f32 0.5, %v9489_v2 }
 0x8ea   :  { %v5701_v54 = vmul.f32 0.5, %v8628_v61  ;;  %5865 = vmatprep.mubr.f32.mxu0 %v12786_v31  ;;  %5954 = vmatprep.mubr.f32.mxu1 %v12786_v31  ;;  %v11966_v59 = vmul.f32 %v9491_v27, %v5676_v12  ;;  %9500 = vtanh.f32 %v8690_v3 }
 0x8eb   :  { %v5702_v42 = vmul.f32 0.5, %v8629_v48  ;;  %v5511_v43 = vpop.f32.mrb[32].mxu0  ;;  %v5600_v15 = vpop.f32.mrb[120].mxu1  ;;  %8323 = vmatprep.subr.bf16.mxu0 %v10417_v41  ;;  %8355 = vmatprep.subr.bf16.mxu1 %v10700_v11  ;;  %v5735_v41 = vmul.f32 0.5, %v8691_v52  ;;  %v8693_v11 = vadd.f32 %v5596_v5, %v10871_v44 }
 0x8ec   :  { %9502 = vtanh.f32 %v5701_v54  ;;  %v8630_v30 = vadd.f32 %v5511_v43, %v10834_v14  ;;  %v5513_v47 = vpop.f32.mrb[33].mxu0  ;;  %v5602_v19 = vpop.f32.mrb[121].mxu1  ;;  %5866 = vmatmul.mubr.f32.gmra.mrb[122].mxu0 %v11966_v59  ;;  %5955 = vmatmul.mubr.f32.gmra.mrb[102].mxu1 %v11966_v59  ;;  %v8694_v2 = vadd.f32 %v5600_v15, %v10866_v51 }
 0x8ed   :  { %v9493_v3 = vpop.eup %9492  ;;  %9504 = vtanh.f32 %v5702_v42  ;;  %v8631_v39 = vadd.f32 %v5513_v47, %v10829_v28  ;;  %8325 = vmatpush1.bf16.msra.mxu0 %v10424_v55  ;;  %8357 = vmatpush1.bf16.msra.mxu1 %v10705_v20  ;;  %v5678_v55 = vadd.f32 0.5, %v5674_v62  ;;  %v8695_v43 = vadd.f32 %v5602_v19, %v10871_v44 }
 0x8ee   :  { %v5703_v18 = vmul.f32 0.5, %v8630_v30  ;;  %5871 = vmatprep.mubr.f32.mxu0 %v12786_v31  ;;  %5960 = vmatprep.mubr.f32.mxu1 %v12786_v31  ;;  %v11980_v63 = vmul.f32 %v9493_v3, %v5677_v26  ;;  %9506 = vtanh.f32 %v8692_v17 }
 0x8ef   :  { %v5704_v12 = vmul.f32 0.5, %v8631_v39  ;;  %v5517_v49 = vpop.f32.mrb[34].mxu0  ;;  %v5606_v61 = vpop.f32.mrb[122].mxu1  ;;  %8327 = vmatprep.subr.bf16.mxu0 %v10427_v58  ;;  %8359 = vmatprep.subr.bf16.mxu1 %v10708_v21  ;;  %v5736_v21 = vmul.f32 0.5, %v8693_v11  ;;  %v5737_v3 = vmul.f32 0.5, %v8695_v43 }
 0x8f0   :  { %9508 = vtanh.f32 %v5703_v18  ;;  %v8632_v20 = vadd.f32 %v5517_v49, %v10834_v14  ;;  %v5519_v23 = vpop.f32.mrb[35].mxu0  ;;  %v5608_v5 = vpop.f32.mrb[123].mxu1  ;;  %5872 = vmatmul.mubr.f32.gmra.mrb[124].mxu0 %v11980_v63  ;;  %5961 = vmatmul.mubr.f32.gmra.mrb[104].mxu1 %v11980_v63 }
 0x8f1   :  { %v9495_v27 = vpop.eup %9494  ;;  %9510 = vtanh.f32 %v5704_v12  ;;  %v8633_v48 = vadd.f32 %v5519_v23, %v10829_v28  ;;  %8329 = vmatpush1.bf16.msra.mxu0 %v10434_v1  ;;  %8361 = vmatpush1.bf16.msra.mxu1 %v10713_v34  ;;  %v8696_v34 = vadd.f32 %v5606_v61, %v10866_v51  ;;  %v8697_v39 = vadd.f32 %v5608_v5, %v10871_v44 }
 0x8f2   :  { %v9497_v58 = vpop.eup %9496  ;;  %9512 = vtanh.f32 %v5735_v41  ;;  %v5705_v52 = vmul.f32 0.5, %v8632_v20  ;;  %5877 = vmatprep.mubr.f32.mxu0 %v12786_v31  ;;  %5966 = vmatprep.mubr.f32.mxu1 %v12786_v31  ;;  %v11993_v54 = vmul.f32 %v9495_v27, %v5678_v55 }
 0x8f3   :  { %v9499_v17 = vpop.eup %9498  ;;  %v5715_v42 = vmul.f32 0.5, %v9497_v58  ;;  %9514 = vtanh.f32 %v8694_v2  ;;  %v5706_v15 = vmul.f32 0.5, %v8633_v48  ;;  %8331 = vmatprep.subr.bf16.mxu0 %v10437_v22  ;;  %8363 = vmatprep.subr.bf16.mxu1 %v10716_v45 }
 0x8f4   :  { %v5716_v1 = vmul.f32 0.5, %v9499_v17  ;;  %9516 = vtanh.f32 %v5705_v52  ;;  %5878 = vmatmul.mubr.f32.gmra.mrb[126].mxu0 %v11993_v54  ;;  %5967 = vmatmul.mubr.f32.gmra.mrb[106].mxu1 %v11993_v54  ;;  %v9501_v26 = vpop.eup %9500  ;;  %v13168_v17 = vld [vmem:[#allocation44_spill] sm:$0xff] }
 0x8f5   :  { %v5723_v62 = vadd.f32 0.5, %v5715_v42  ;;  %9518 = vtanh.f32 %v5706_v15  ;;  %8333 = vmatpush1.bf16.msra.mxu0 %v10444_v57  ;;  %8365 = vmatpush1.bf16.msra.mxu1 %v10721_v50  ;;  %v13169_v42 = vld [vmem:[#allocation106_spill] sm:$0xff] }
 0x8f6   :  { %v9503_v30 = vpop.eup %9502  ;;  %v5724_v47 = vadd.f32 0.5, %v5716_v1  ;;  %9520 = vtanh.f32 %v5736_v21  ;;  %8335 = vmatprep.subr.bf16.mxu0 %v10447_v33  ;;  %8367 = vmatprep.subr.bf16.mxu1 %v10724_v36  ;;  %v13170_v15 = vld [vmem:[#allocation86_spill] sm:$0xff] }
 0x8f7   :  { %v9505_v22 = vpop.eup %9504  ;;  %v5755_v45 = vmul.f32 %v9501_v26, %v5723_v62  ;;  %v5717_v19 = vmul.f32 0.5, %v9503_v30  ;;  %6069 = vmatprep.mubr.f32.mxu0 %v12786_v31  ;;  %6158 = vmatprep.mubr.f32.mxu1 %v12786_v31  ;;  %9522 = vtanh.f32 %v8696_v34  ;;  %v13171_v62 = vld [vmem:[#allocation45_spill] sm:$0xff] }
 0x8f8   :  { %v5751_v57 = vmul.f32 %v5724_v47, %v11827_v7  ;;  %v5718_v50 = vmul.f32 0.5, %v9505_v22  ;;  %v9507_v41 = vpop.eup %9506  ;;  %9524 = vtanh.f32 %v5737_v3  ;;  %v5738_v7 = vmul.f32 0.5, %v8697_v39 }
 0x8f9   :  { %v5725_v11 = vadd.f32 0.5, %v5717_v19  ;;  %8337 = vmatpush1.bf16.msra.mxu0 %v10454_v10  ;;  %8369 = vmatpush1.bf16.msra.mxu1 %v10728_v0 }
 0x8fa   :  { %v9509_v33 = vpop.eup %9508  ;;  %v12011_v36 = vadd.f32 %v5755_v45, %v5751_v57  ;;  %v5726_v18 = vadd.f32 0.5, %v5718_v50  ;;  %8339 = vmatprep.subr.bf16.mxu0 %v10457_v40  ;;  %8371 = vmatprep.subr.bf16.mxu1 %v10732_v13 }
 0x8fb   :  { %v9511_v2 = vpop.eup %9510  ;;  %v5756_v12 = vmul.f32 %v9507_v41, %v5725_v11  ;;  %v5719_v49 = vmul.f32 0.5, %v9509_v33 }
 0x8fc   :  { %v9513_v61 = vpop.eup %9512  ;;  %9526 = vtanh.f32 %v12011_v36  ;;  %v5752_v10 = vmul.f32 %v5726_v18, %v11835_v8  ;;  %v5720_v55 = vmul.f32 0.5, %v9511_v2 }
 0x8fd   :  { %v9515_v0 = vpop.eup %9514  ;;  %v5727_v20 = vadd.f32 0.5, %v5719_v49  ;;  %8341 = vmatpush1.bf16.msra.mxu0 %v10462_v9  ;;  %8373 = vmatpush1.bf16.msra.mxu1 %v10735_v35  ;;  %9528 = vtanh.f32 %v5738_v7  ;;  %v5743_v21 = vmul.f32 0.5, %v9513_v61  ;;  %v6416_v49 = vld [vmem:[#allocation13 + $0x8] sm:$0xff]  ;;  %v9947_v61 = vmov 0.0|0.0  }
 0x8fe   :  { %v9517_v40 = vpop.eup %9516  ;;  %v12019_v23 = vadd.f32 %v5756_v12, %v5752_v10  ;;  %v5728_v13 = vadd.f32 0.5, %v5720_v55  ;;  %8343 = vmatprep.subr.bf16.mxu0 %v10465_v25  ;;  %8375 = vmatprep.subr.bf16.mxu1 %v10738_v56  ;;  %v6415_v12 = vld [vmem:[#allocation13] sm:$0xff]  ;;  %v6417_v10 = vld [vmem:[#allocation13 + $0x10] sm:$0xff]  ;;  %v6418_v55 = vld [vmem:[#allocation13 + $0x18] sm:$0xff] }
 0x8ff   :  { %v9519_v5 = vpop.eup %9518  ;;  %v5757_v27 = vmul.f32 %v9515_v0, %v5727_v20  ;;  %v5721_v48 = vmul.f32 0.5, %v9517_v40  ;;  %v5747_v34 = vadd.f32 0.5, %v5743_v21  ;;  %v8383_v7 = vpack.c.bf16 %v6416_v49, %v6415_v12  ;;  %v6420_v20 = vld [vmem:[#allocation13 + $0x28] sm:$0xff]  ;;  %v6426_v21 = vld [vmem:[#allocation13 + $0x58] sm:$0xff] }
 0x900   :  { %v9521_v8 = vpop.eup %9520  ;;  %9530 = vtanh.f32 %v12019_v23  ;;  %v5753_v58 = vmul.f32 %v5728_v13, %v11843_v32  ;;  %v5722_v9 = vmul.f32 0.5, %v9519_v5  ;;  %v8386_v0 = vpack.c.bf16 %v6418_v55, %v6417_v10  ;;  %v6421_v13 = vld [vmem:[#allocation13 + $0x30] sm:$0xff]  ;;  %v6422_v5 = vld [vmem:[#allocation13 + $0x38] sm:$0xff]  ;;  %v6444_v10 = vld [vmem:[#allocation13 + $0xe8] sm:$0xff] }
 0x901   :  { %v5729_v35 = vadd.f32 0.5, %v5721_v48  ;;  %8345 = vmatpush1.bf16.msra.mxu0 %v10470_v4  ;;  %8377 = vmatpush1.bf16.msra.mxu1 %v10741_v16  ;;  %v9523_v52 = vpop.eup %9522  ;;  %v5744_v26 = vmul.f32 0.5, %v9521_v8  ;;  %v13172_v4 = vld [vmem:[#allocation107_spill] sm:$0xff]  ;;  %v6423_v48 = vld [vmem:[#allocation13 + $0x40] sm:$0xff]  ;;  %v6442_v12 = vld [vmem:[#allocation13 + $0xd8] sm:$0xff] }
 0x902   :  { %v12027_v25 = vadd.f32 %v5757_v27, %v5753_v58  ;;  %v5730_v56 = vadd.f32 0.5, %v5722_v9  ;;  %8347 = vmatprep.subr.bf16.mxu0 %v13168_v17  ;;  %8379 = vmatprep.subr.bf16.mxu1 %v13169_v42  ;;  %v9525_v1 = vpop.eup %9524  ;;  %v8392_v27 = vpack.c.bf16 %v6422_v5, %v6421_v13  ;;  %v6424_v8 = vld [vmem:[#allocation13 + $0x48] sm:$0xff]  ;;  %v6425_v9 = vld [vmem:[#allocation13 + $0x50] sm:$0xff] }
 0x903   :  { %v5758_v43 = vmul.f32 %v9523_v52, %v5729_v35  ;;  %v5748_v45 = vadd.f32 0.5, %v5744_v26  ;;  %v5745_v19 = vmul.f32 0.5, %v9525_v1  ;;  %v8395_v58 = vpack.c.bf16 %v6424_v8, %v6423_v48  ;;  %v6427_v52 = vld [vmem:[#allocation13 + $0x60] sm:$0xff]  ;;  %v6429_v42 = vld [vmem:[#allocation13 + $0x70] sm:$0xff]  ;;  %v6432_v1 = vld [vmem:[#allocation13 + $0x88] sm:$0xff] }
 0x904   :  { %9532 = vtanh.f32 %v12027_v25  ;;  %v5754_v32 = vmul.f32 %v5730_v56, %v13170_v15  ;;  %v8398_v35 = vpack.c.bf16 %v6426_v21, %v6425_v9  ;;  %v6428_v56 = vld [vmem:[#allocation13 + $0x68] sm:$0xff]  ;;  %v6433_v26 = vld [vmem:[#allocation13 + $0x90] sm:$0xff] }
 0x905   :  { %8349 = vmatpush1.bf16.msra.mxu0 %v13171_v62  ;;  %8381 = vmatpush1.bf16.msra.mxu1 %v13172_v4  ;;  %v5749_v57 = vadd.f32 0.5, %v5745_v19  ;;  %v8401_v17 = vpack.c.bf16 %v6428_v56, %v6427_v52  ;;  %v6434_v62 = vld [vmem:[#allocation13 + $0x98] sm:$0xff]  ;;  %v6437_v19 = vld [vmem:[#allocation13 + $0xb0] sm:$0xff]  ;;  %v13174_v13 = vld [vmem:[#allocation98_spill] sm:$0xff] }
 0x906   :  { %v9527_v16 = vpop.eup %9526  ;;  %v12035_v30 = vadd.f32 %v5758_v43, %v5754_v32  ;;  %8382 = vmatprep.subr.bf16.mxu0 %v9947_v61  ;;  %v6430_v43 = vld [vmem:[#allocation13 + $0x78] sm:$0xff]  ;;  %v6431_v32 = vld [vmem:[#allocation13 + $0x80] sm:$0xff]  ;;  %v8410_v4 = vpack.c.bf16 %v6434_v62, %v6433_v26 }
 0x907   :  { %v12037_v47 = vmul.f32 %v9527_v16, %v5747_v34  ;;  %v9529_v22 = vpop.eup %9528  ;;  %v8404_v15 = vpack.c.bf16 %v6430_v43, %v6429_v42  ;;  %v8407_v34 = vpack.c.bf16 %v6432_v1, %v6431_v32  ;;  %v6435_v16 = vld [vmem:[#allocation13 + $0xa0] sm:$0xff]  ;;  %v13176_v56 = vld [vmem:[#allocation100_spill] sm:$0xff] }
 0x908   :  { %9534 = vtanh.f32 %v12035_v30  ;;  %v5746_v50 = vmul.f32 0.5, %v9529_v22  ;;  %v6436_v22 = vld [vmem:[#allocation13 + $0xa8] sm:$0xff]  ;;  %v13177_v42 = vld [vmem:[#allocation101_spill] sm:$0xff] }
 0x909   :  { %6070 = vmatmul.mubr.f32.vlgmr.msra.gmra.mrb[20].mxu0 %v12037_v47  ;;  %6159 = vmatmul.mubr.f32.vlgmr.msra.gmra.mrb[108].mxu1 %v12037_v47  ;;  %v592_v43 = vadd.f32 %v13177_v42, %v12886_v24 }
 0x90a   :  { %v9531_v3 = vpop.eup %9530  ;;  %6075 = vmatprep.mubr.f32.mxu0 %v12786_v31  ;;  %6164 = vmatprep.mubr.f32.mxu1 %v12786_v31  ;;  %v5750_v33 = vadd.f32 0.5, %v5746_v50  ;;  %v6439_v50 = vld [vmem:[#allocation13 + $0xc0] sm:$0xff] }
 0x90b   :  { %v12044_v39 = vmul.f32 %v9531_v3, %v5748_v45  ;;  %8384 = vmatpush1.bf16.msra.mxu0 %v8383_v7  ;;  %v8413_v45 = vpack.c.bf16 %v6436_v22, %v6435_v16  ;;  %v6438_v3 = vld [vmem:[#allocation13 + $0xb8] sm:$0xff]  ;;  %v6443_v7 = vld [vmem:[#allocation13 + $0xe0] sm:$0xff] }
 0x90c   :  { %8385 = vmatprep.subr.bf16.mxu0 %v9947_v61  ;;  %v8425_v55 = vpack.c.bf16 %v6444_v10, %v6443_v7  ;;  %v13178_v22 = vld [vmem:[#allocation102_spill] sm:$0xff] }
 0x90d   :  { %6076 = vmatmul.mubr.f32.gmra.mrb[22].mxu0 %v12044_v39  ;;  %6165 = vmatmul.mubr.f32.gmra.mrb[110].mxu1 %v12044_v39 }
 0x90e   :  { %v9533_v41 = vpop.eup %9532  ;;  %6081 = vmatprep.mubr.f32.mxu0 %v12786_v31  ;;  %6170 = vmatprep.mubr.f32.mxu1 %v12786_v31 }
 0x90f   :  { %v12050_v11 = vmul.f32 %v9533_v41, %v5749_v57  ;;  %8387 = vmatpush1.bf16.msra.mxu0 %v8386_v0  ;;  %v8416_v57 = vpack.c.bf16 %v6438_v3, %v6437_v19  ;;  %v6440_v41 = vld [vmem:[#allocation13 + $0xc8] sm:$0xff]  ;;  %v6445_v0 = vld [vmem:[#allocation13 + $0xf0] sm:$0xff] }
 0x910   :  { %8388 = vmatprep.subr.bf16.mxu0 %v9947_v61 }
 0x911   :  { %6082 = vmatmul.mubr.f32.gmra.mrb[24].mxu0 %v12050_v11  ;;  %6171 = vmatmul.mubr.f32.gmra.mrb[112].mxu1 %v12050_v11 }
 0x912   :  { %v9535_v18 = vpop.eup %9534  ;;  %6087 = vmatprep.mubr.f32.mxu0 %v12786_v31  ;;  %6176 = vmatprep.mubr.f32.mxu1 %v12786_v31  ;;  %v6419_v31 = vld [vmem:[#allocation13 + $0x20] sm:$0xff] }
 0x913   :  { %v12056_v2 = vmul.f32 %v9535_v18, %v5750_v33  ;;  %v8389_v40 = vpack.c.bf16 %v6420_v20, %v6419_v31  ;;  %v8419_v33 = vpack.c.bf16 %v6440_v41, %v6439_v50  ;;  %v6441_v18 = vld [vmem:[#allocation13 + $0xd0] sm:$0xff]  ;;  %v6446_v31 = vld [vmem:[#allocation13 + $0xf8] sm:$0xff] }
 0x914   :  { %v8422_v49 = vpack.c.bf16 %v6442_v12, %v6441_v18  ;;  %v8428_v20 = vpack.c.bf16 %v6446_v31, %v6445_v0  ;;  %v13180_v0 = vld [vmem:[#allocation104_spill] sm:$0xff] }
 0x915   :  { %6088 = vmatmul.mubr.f32.gmra.mrb[26].mxu0 %v12056_v2  ;;  %6177 = vmatmul.mubr.f32.gmra.mrb[114].mxu1 %v12056_v2 }
 0x916   :  { %8390 = vmatpush1.bf16.msra.mxu0 %v8389_v40  ;;  %v13173_v40 = vld [vmem:[#allocation109_spill] sm:$0xff] }
 0x917   :  { %8391 = vmatprep.subr.bf16.mxu0 %v9947_v61  ;;  %v584_v5 = vadd.f32 %v13174_v13, %v13173_v40  ;;  %v602_v31 = vadd.f32 %v13180_v0, %v13173_v40 }
 0x91a   :  { %8393 = vmatpush1.bf16.msra.mxu0 %v8392_v27  ;;  %v13175_v27 = vld [vmem:[#allocation99_spill] sm:$0xff] }
 0x91b   :  { %8394 = vmatprep.subr.bf16.mxu0 %v9947_v61  ;;  %v586_v48 = vadd.f32 %v13175_v27, %v12886_v24  ;;  %v13181_v27 = vld [vmem:[#allocation105_spill] sm:$0xff] }
 0x91e   :  { %8396 = vmatpush1.bf16.msra.mxu0 %v8395_v58 }
 0x91f   :  { %8397 = vmatprep.subr.bf16.mxu0 %v9947_v61 }
 0x922   :  { %8399 = vmatpush1.bf16.msra.mxu0 %v8398_v35 }
 0x923   :  { %8400 = vmatprep.subr.bf16.mxu0 %v9947_v61 }
 0x926   :  { %8402 = vmatpush1.bf16.msra.mxu0 %v8401_v17  ;;  %v590_v17 = vadd.f32 %v13176_v56, %v13173_v40 }
 0x927   :  { %8403 = vmatprep.subr.bf16.mxu0 %v9947_v61 }
 0x92a   :  { %8405 = vmatpush1.bf16.msra.mxu0 %v8404_v15 }
 0x92b   :  { %8406 = vmatprep.subr.bf16.mxu0 %v9947_v61 }
 0x92e   :  { %8408 = vmatpush1.bf16.msra.mxu0 %v8407_v34 }
 0x92f   :  { %8409 = vmatprep.subr.bf16.mxu0 %v9947_v61 }
 0x932   :  { %8411 = vmatpush1.bf16.msra.mxu0 %v8410_v4 }
 0x933   :  { %8412 = vmatprep.subr.bf16.mxu0 %v9947_v61 }
 0x936   :  { %8414 = vmatpush1.bf16.msra.mxu0 %v8413_v45  ;;  %v596_v45 = vadd.f32 %v13178_v22, %v13173_v40 }
 0x937   :  { %8415 = vmatprep.subr.bf16.mxu0 %v9947_v61 }
 0x93a   :  { %8417 = vmatpush1.bf16.msra.mxu0 %v8416_v57  ;;  %v13179_v57 = vld [vmem:[#allocation103_spill] sm:$0xff] }
 0x93b   :  { %8418 = vmatprep.subr.bf16.mxu0 %v9947_v61  ;;  %v598_v50 = vadd.f32 %v13179_v57, %v12886_v24 }
 0x93e   :  { %8420 = vmatpush1.bf16.msra.mxu0 %v8419_v33 }
 0x93f   :  { %8421 = vmatprep.subr.bf16.mxu0 %v9947_v61 }
 0x942   :  { %8423 = vmatpush1.bf16.msra.mxu0 %v8422_v49 }
 0x943   :  { %8424 = vmatprep.subr.bf16.mxu0 %v9947_v61 }
 0x946   :  { %8426 = vmatpush1.bf16.msra.mxu0 %v8425_v55 }
 0x947   :  { %8427 = vmatprep.subr.bf16.mxu0 %v9947_v61 }
 0x94a   :  { %8429 = vmatpush1.bf16.msra.mxu0 %v8428_v20 }
 0x9bb   :  { %v5861_v8 = vpop.f32.mrb[120].mxu0  ;;  %v5950_v58 = vpop.f32.mrb[100].mxu1 }
 0x9bc   :  { %v5973_v9 = vadd.f32 %v5861_v8, %v584_v5  ;;  %v5863_v21 = vpop.f32.mrb[121].mxu0  ;;  %v5952_v35 = vpop.f32.mrb[101].mxu1  ;;  %v8610_v15 = vadd.f32 %v5950_v58, %v12935_v53 }
 0x9bd   :  { %v5974_v52 = vadd.f32 %v5863_v21, %v586_v48  ;;  %v8611_v19 = vadd.f32 %v5952_v35, %v10818_v29  ;;  %v604_v48 = vadd.f32 %v13181_v27, %v12886_v24 }
 0x9be   :  { %v6199_v61 = vmul.f32 0.5, %v5973_v9 }
 0x9bf   :  { %v6200_v32 = vmul.f32 0.5, %v5974_v52  ;;  %v5867_v1 = vpop.f32.mrb[122].mxu0  ;;  %v5956_v34 = vpop.f32.mrb[102].mxu1  ;;  %v6235_v20 = vmul.f32 0.5, %v8611_v19 }
 0x9c0   :  { %9536 = vtanh.f32 %v6199_v61  ;;  %v5977_v26 = vadd.f32 %v5867_v1, %v590_v17  ;;  %v5869_v62 = vpop.f32.mrb[123].mxu0  ;;  %v5958_v4 = vpop.f32.mrb[103].mxu1  ;;  %v8612_v41 = vadd.f32 %v5956_v34, %v12935_v53 }
 0x9c1   :  { %9538 = vtanh.f32 %v6200_v32  ;;  %v5978_v16 = vadd.f32 %v5869_v62, %v592_v43  ;;  %v8613_v13 = vadd.f32 %v5958_v4, %v10818_v29 }
 0x9c2   :  { %v6201_v3 = vmul.f32 0.5, %v5977_v26  ;;  %9540 = vtanh.f32 %v8610_v15 }
 0x9c3   :  { %v6202_v33 = vmul.f32 0.5, %v5978_v16  ;;  %v5873_v18 = vpop.f32.mrb[124].mxu0  ;;  %v5962_v12 = vpop.f32.mrb[104].mxu1  ;;  %v6236_v61 = vmul.f32 0.5, %v8613_v13 }
 0x9c4   :  { %9542 = vtanh.f32 %v6201_v3  ;;  %v5981_v49 = vadd.f32 %v5873_v18, %v596_v45  ;;  %v5875_v7 = vpop.f32.mrb[125].mxu0  ;;  %v5964_v10 = vpop.f32.mrb[105].mxu1  ;;  %v8614_v8 = vadd.f32 %v5962_v12, %v12935_v53 }
 0x9c5   :  { %9544 = vtanh.f32 %v6202_v33  ;;  %v5982_v55 = vadd.f32 %v5875_v7, %v598_v50  ;;  %v8615_v24 = vadd.f32 %v5964_v10, %v10818_v29 }
 0x9c6   :  { %v6203_v5 = vmul.f32 0.5, %v5981_v49  ;;  %9546 = vtanh.f32 %v8612_v41 }
 0x9c7   :  { %v6204_v58 = vmul.f32 0.5, %v5982_v55  ;;  %v5879_v9 = vpop.f32.mrb[126].mxu0  ;;  %v5968_v21 = vpop.f32.mrb[106].mxu1  ;;  %v6237_v3 = vmul.f32 0.5, %v8615_v24 }
 0x9c8   :  { %9548 = vtanh.f32 %v6203_v5  ;;  %v5985_v35 = vadd.f32 %v5879_v9, %v602_v31  ;;  %v5881_v52 = vpop.f32.mrb[127].mxu0  ;;  %v5970_v56 = vpop.f32.mrb[107].mxu1  ;;  %v8616_v34 = vadd.f32 %v5968_v21, %v12935_v53 }
 0x9c9   :  { %9550 = vtanh.f32 %v6204_v58  ;;  %v5986_v17 = vadd.f32 %v5881_v52, %v604_v48  ;;  %v8617_v57 = vadd.f32 %v5970_v56, %v10818_v29 }
 0x9ca   :  { %v9537_v40 = vpop.eup %9536  ;;  %9552 = vtanh.f32 %v6235_v20  ;;  %v6205_v42 = vmul.f32 0.5, %v5985_v35 }
 0x9cb   :  { %v9539_v43 = vpop.eup %9538  ;;  %v6215_v15 = vmul.f32 0.5, %v9537_v40  ;;  %9554 = vtanh.f32 %v8614_v8  ;;  %v6206_v32 = vmul.f32 0.5, %v5986_v17  ;;  %v6238_v0 = vmul.f32 0.5, %v8617_v57 }
 0x9cc   :  { %v6216_v1 = vmul.f32 0.5, %v9539_v43  ;;  %9556 = vtanh.f32 %v6205_v42  ;;  %v9541_v26 = vpop.eup %9540 }
 0x9cd   :  { %v6223_v62 = vadd.f32 0.5, %v6215_v15  ;;  %9558 = vtanh.f32 %v6206_v32 }
 0x9ce   :  { %v9543_v4 = vpop.eup %9542  ;;  %v6224_v16 = vadd.f32 0.5, %v6216_v1  ;;  %9560 = vtanh.f32 %v6236_v61 }
 0x9cf   :  { %v9545_v22 = vpop.eup %9544  ;;  %v6255_v45 = vmul.f32 %v9541_v26, %v6223_v62  ;;  %v6217_v19 = vmul.f32 0.5, %v9543_v4  ;;  %9562 = vtanh.f32 %v8616_v34 }
 0x9d0   :  { %v6251_v50 = vmul.f32 %v6224_v16, %v11937_v37  ;;  %v6218_v41 = vmul.f32 0.5, %v9545_v22  ;;  %v9547_v33 = vpop.eup %9546  ;;  %9564 = vtanh.f32 %v6237_v3 }
 0x9d1   :  { %v6225_v18 = vadd.f32 0.5, %v6217_v19 }
 0x9d2   :  { %v9549_v12 = vpop.eup %9548  ;;  %v6259_v53 = vadd.f32 %v6255_v45, %v6251_v50  ;;  %v6226_v49 = vadd.f32 0.5, %v6218_v41 }
 0x9d3   :  { %v9551_v7 = vpop.eup %9550  ;;  %v6256_v10 = vmul.f32 %v9547_v33, %v6225_v18  ;;  %v6219_v55 = vmul.f32 0.5, %v9549_v12 }
 0x9d4   :  { %v9553_v31 = vpop.eup %9552  ;;  %9566 = vtanh.f32 %v6259_v53  ;;  %v6252_v20 = vmul.f32 %v6226_v49, %v11941_v60  ;;  %v6220_v13 = vmul.f32 0.5, %v9551_v7 }
 0x9d5   :  { %v9555_v29 = vpop.eup %9554  ;;  %v6227_v5 = vadd.f32 0.5, %v6219_v55  ;;  %9568 = vtanh.f32 %v6238_v0  ;;  %v6243_v56 = vmul.f32 0.5, %v9553_v31 }
 0x9d6   :  { %v9557_v37 = vpop.eup %9556  ;;  %v6260_v27 = vadd.f32 %v6256_v10, %v6252_v20  ;;  %v6228_v48 = vadd.f32 0.5, %v6220_v13 }
 0x9d7   :  { %v9559_v8 = vpop.eup %9558  ;;  %v6257_v58 = vmul.f32 %v9555_v29, %v6227_v5  ;;  %v6221_v9 = vmul.f32 0.5, %v9557_v37  ;;  %v6247_v1 = vadd.f32 0.5, %v6243_v56 }
 0x9d8   :  { %v9561_v21 = vpop.eup %9560  ;;  %9570 = vtanh.f32 %v6260_v27  ;;  %v6253_v35 = vmul.f32 %v6228_v48, %v11945_v46  ;;  %v6222_v52 = vmul.f32 0.5, %v9559_v8 }
 0x9d9   :  { %v6229_v17 = vadd.f32 0.5, %v6221_v9  ;;  %v9563_v40 = vpop.eup %9562  ;;  %v6244_v34 = vmul.f32 0.5, %v9561_v21 }
 0x9da   :  { %v6261_v61 = vadd.f32 %v6257_v58, %v6253_v35  ;;  %v6230_v60 = vadd.f32 0.5, %v6222_v52  ;;  %v9565_v32 = vpop.eup %9564 }
 0x9db   :  { %v6258_v42 = vmul.f32 %v9563_v40, %v6229_v17  ;;  %v6248_v33 = vadd.f32 0.5, %v6244_v34  ;;  %v6245_v18 = vmul.f32 0.5, %v9565_v32 }
 0x9dc   :  { %9572 = vtanh.f32 %v6261_v61  ;;  %v6254_v43 = vmul.f32 %v6230_v60, %v11950_v38  ;;  %v6071_v15 = vpop.f32.mrb[20].mxu0  ;;  %v6160_v24 = vpop.f32.mrb[108].mxu1 }
 0x9dd   :  { %v8618_v26 = vadd.f32 %v6071_v15, %v10834_v14  ;;  %v6073_v62 = vpop.f32.mrb[21].mxu0  ;;  %v6162_v4 = vpop.f32.mrb[109].mxu1  ;;  %v8682_v3 = vadd.f32 %v6160_v24, %v10866_v51  ;;  %v6249_v37 = vadd.f32 0.5, %v6245_v18 }
 0x9de   :  { %v9567_v46 = vpop.eup %9566  ;;  %v6262_v16 = vadd.f32 %v6258_v42, %v6254_v43  ;;  %v8619_v22 = vadd.f32 %v6073_v62, %v10829_v28  ;;  %v8683_v55 = vadd.f32 %v6162_v4, %v10871_v44 }
 0x9df   :  { %v6271_v45 = vmul.f32 0.5, %v8618_v26  ;;  %v12106_v19 = vmul.f32 %v9567_v46, %v6247_v1  ;;  %v9569_v41 = vpop.eup %9568 }
 0x9e0   :  { %9574 = vtanh.f32 %v6262_v16  ;;  %v6272_v38 = vmul.f32 0.5, %v8619_v22  ;;  %v6077_v57 = vpop.f32.mrb[22].mxu0  ;;  %v6166_v50 = vpop.f32.mrb[110].mxu1  ;;  %v6246_v27 = vmul.f32 0.5, %v9569_v41  ;;  %v6307_v35 = vmul.f32 0.5, %v8683_v55 }
 0x9e1   :  { %9576 = vtanh.f32 %v6271_v45  ;;  %v8620_v12 = vadd.f32 %v6077_v57, %v10834_v14  ;;  %v6079_v53 = vpop.f32.mrb[23].mxu0  ;;  %v6168_v49 = vpop.f32.mrb[111].mxu1  ;;  %v8684_v20 = vadd.f32 %v6166_v50, %v10866_v51 }
 0x9e2   :  { %v9571_v7 = vpop.eup %9570  ;;  %9578 = vtanh.f32 %v6272_v38  ;;  %v8621_v10 = vadd.f32 %v6079_v53, %v10829_v28  ;;  %v8685_v52 = vadd.f32 %v6168_v49, %v10871_v44  ;;  %v6250_v43 = vadd.f32 0.5, %v6246_v27 }
 0x9e3   :  { %v6273_v0 = vmul.f32 0.5, %v8620_v12  ;;  %v12112_v31 = vmul.f32 %v9571_v7, %v6248_v33  ;;  %9580 = vtanh.f32 %v8682_v3 }
 0x9e4   :  { %v6274_v13 = vmul.f32 0.5, %v8621_v10  ;;  %v6083_v29 = vpop.f32.mrb[24].mxu0  ;;  %v6172_v5 = vpop.f32.mrb[112].mxu1  ;;  %v6308_v62 = vmul.f32 0.5, %v8685_v52 }
 0x9e5   :  { %9582 = vtanh.f32 %v6273_v0  ;;  %v8622_v48 = vadd.f32 %v6083_v29, %v10834_v14  ;;  %v6085_v8 = vpop.f32.mrb[25].mxu0  ;;  %v6174_v58 = vpop.f32.mrb[113].mxu1  ;;  %v8686_v40 = vadd.f32 %v6172_v5, %v10866_v51 }
 0x9e6   :  { %v9573_v9 = vpop.eup %9572  ;;  %9584 = vtanh.f32 %v6274_v13  ;;  %v8623_v21 = vadd.f32 %v6085_v8, %v10829_v28  ;;  %v8687_v45 = vadd.f32 %v6174_v58, %v10871_v44 }
 0x9e7   :  { %v6275_v56 = vmul.f32 0.5, %v8622_v48  ;;  %v12118_v17 = vmul.f32 %v9573_v9, %v6249_v37  ;;  %9586 = vtanh.f32 %v8684_v20 }
 0x9e8   :  { %v6276_v61 = vmul.f32 0.5, %v8623_v21  ;;  %v6089_v60 = vpop.f32.mrb[26].mxu0  ;;  %v6178_v42 = vpop.f32.mrb[114].mxu1  ;;  %v6309_v53 = vmul.f32 0.5, %v8687_v45 }
 0x9e9   :  { %9588 = vtanh.f32 %v6275_v56  ;;  %v8624_v15 = vadd.f32 %v6089_v60, %v10834_v14  ;;  %v6091_v24 = vpop.f32.mrb[27].mxu0  ;;  %v6180_v32 = vpop.f32.mrb[115].mxu1  ;;  %v8688_v14 = vadd.f32 %v6178_v42, %v10866_v51 }
 0x9ea   :  { %v9575_v1 = vpop.eup %9574  ;;  %9590 = vtanh.f32 %v6276_v61  ;;  %v8625_v34 = vadd.f32 %v6091_v24, %v10829_v28  ;;  %v8689_v49 = vadd.f32 %v6180_v32, %v10871_v44 }
 0x9eb   :  { %v9577_v26 = vpop.eup %9576  ;;  %9592 = vtanh.f32 %v6307_v35  ;;  %v6277_v4 = vmul.f32 0.5, %v8624_v15  ;;  %v12123_v46 = vmul.f32 %v9575_v1, %v6250_v43 }
 0x9ec   :  { %v9579_v16 = vpop.eup %9578  ;;  %v6287_v22 = vmul.f32 0.5, %v9577_v26  ;;  %9594 = vtanh.f32 %v8686_v40  ;;  %v6278_v3 = vmul.f32 0.5, %v8625_v34  ;;  %v6310_v27 = vmul.f32 0.5, %v8689_v49  ;;  %v13184_v49 = vld [vmem:[#allocation113_spill] sm:$0xff] }
 0x9ed   :  { %v6288_v38 = vmul.f32 0.5, %v9579_v16  ;;  %9596 = vtanh.f32 %v6277_v4  ;;  %v9581_v57 = vpop.eup %9580 }
 0x9ee   :  { %v6295_v50 = vadd.f32 0.5, %v6287_v22  ;;  %9598 = vtanh.f32 %v6278_v3 }
 0x9ef   :  { %v9583_v28 = vpop.eup %9582  ;;  %v6296_v41 = vadd.f32 0.5, %v6288_v38  ;;  %9600 = vtanh.f32 %v6308_v62 }
 0x9f0   :  { %v9585_v33 = vpop.eup %9584  ;;  %v6327_v18 = vmul.f32 %v9581_v57, %v6295_v50  ;;  %v6289_v12 = vmul.f32 0.5, %v9583_v28  ;;  %9602 = vtanh.f32 %v8688_v14  ;;  %v13182_v57 = vld [vmem:[#allocation111_spill] sm:$0xff] }
 0x9f1   :  { %v6323_v7 = vmul.f32 %v6296_v41, %v12011_v36  ;;  %v6290_v10 = vmul.f32 0.5, %v9585_v33  ;;  %v9587_v55 = vpop.eup %9586  ;;  %9604 = vtanh.f32 %v6309_v53 }
 0x9f2   :  { %v6297_v0 = vadd.f32 0.5, %v6289_v12 }
 0x9f3   :  { %v9589_v20 = vpop.eup %9588  ;;  %v6331_v51 = vadd.f32 %v6327_v18, %v6323_v7  ;;  %v6298_v13 = vadd.f32 0.5, %v6290_v10  ;;  %v13185_v10 = vld [vmem:[#allocation114_spill] sm:$0xff] }
 0x9f4   :  { %v9591_v29 = vpop.eup %9590  ;;  %v6328_v5 = vmul.f32 %v9587_v55, %v6297_v0  ;;  %v6291_v37 = vmul.f32 0.5, %v9589_v20  ;;  %v13186_v55 = vld [vmem:[#allocation108_spill] sm:$0xff]  ;;  %v13188_v20 = vld [vmem:[#allocation121_spill] sm:$0xff] }
 0x9f5   :  { %v9593_v48 = vpop.eup %9592  ;;  %9606 = vtanh.f32 %v6331_v51  ;;  %v6324_v8 = vmul.f32 %v6298_v13, %v12019_v23  ;;  %v6292_v58 = vmul.f32 0.5, %v9591_v29  ;;  %v13187_v0 = vld [vmem:[#allocation120_spill] sm:$0xff]  ;;  %v13189_v51 = vld [vmem:[#allocation122_spill] sm:$0xff]  ;;  %v13190_v13 = vld [vmem:[#allocation87_spill] sm:$0xff] }
 0x9f6   :  { %v9595_v44 = vpop.eup %9594  ;;  %v6299_v9 = vadd.f32 0.5, %v6291_v37  ;;  %9608 = vtanh.f32 %v6310_v27  ;;  %v6315_v43 = vmul.f32 0.5, %v9593_v48  ;;  %v13191_v29 = vld [vmem:[#allocation110_spill] sm:$0xff]  ;;  %v13194_v37 = vld [vmem:[#allocation89_spill] sm:$0xff]  ;;  %v13198_v48 = vld [vmem:[#allocation79_spill] sm:$0xff] }
 0x9f7   :  { %v9597_v36 = vpop.eup %9596  ;;  %v6332_v21 = vadd.f32 %v6328_v5, %v6324_v8  ;;  %v6300_v35 = vadd.f32 0.5, %v6292_v58  ;;  %v13192_v5 = vld [vmem:[#allocation88_spill] sm:$0xff]  ;;  %v13196_v27 = vld [vmem:[#allocation78_spill] sm:$0xff]  ;;  %v13201_v58 = vld [vmem:[#allocation55_spill] sm:$0xff] }
 0x9f8   :  { %v9599_v52 = vpop.eup %9598  ;;  %v6329_v56 = vmul.f32 %v9595_v44, %v6299_v9  ;;  %v6293_v40 = vmul.f32 0.5, %v9597_v36  ;;  %v6319_v62 = vadd.f32 0.5, %v6315_v43  ;;  %v13200_v8 = vld [vmem:[#allocation80_spill] sm:$0xff]  ;;  %v13202_v44 = vld [vmem:[#allocation81_spill] sm:$0xff]  ;;  %v13203_v9 = vld [vmem:[#allocation58_spill] sm:$0xff] }
 0x9f9   :  { %v9601_v61 = vpop.eup %9600  ;;  %9610 = vtanh.f32 %v6332_v21  ;;  %v6325_v60 = vmul.f32 %v6300_v35, %v12027_v25  ;;  %v6294_v42 = vmul.f32 0.5, %v9599_v52  ;;  %v13204_v36 = vld [vmem:[#allocation62_spill] sm:$0xff]  ;;  %v13205_v21 = vld [vmem:[#allocation59_spill] sm:$0xff] }
 0x9fa   :  { %v6301_v15 = vadd.f32 0.5, %v6293_v40  ;;  %v9603_v24 = vpop.eup %9602  ;;  %v6316_v4 = vmul.f32 0.5, %v9601_v61  ;;  %v13206_v35 = vld [vmem:[#allocation63_spill] sm:$0xff]  ;;  %v13207_v52 = vld [vmem:[#allocation70_spill] sm:$0xff] }
 0x9fb   :  { %v6333_v32 = vadd.f32 %v6329_v56, %v6325_v60  ;;  %v6302_v23 = vadd.f32 0.5, %v6294_v42  ;;  %v9605_v26 = vpop.eup %9604  ;;  %v13208_v56 = vld [vmem:[#allocation66_spill] sm:$0xff]  ;;  %v13209_v40 = vld [vmem:[#allocation71_spill] sm:$0xff] }
 0x9fc   :  { %v6330_v1 = vmul.f32 %v9603_v24, %v6301_v15  ;;  %v6320_v38 = vadd.f32 0.5, %v6316_v4  ;;  %v6317_v25 = vmul.f32 0.5, %v9605_v26  ;;  %v13210_v61 = vld [vmem:[#allocation67_spill] sm:$0xff]  ;;  %v13211_v60 = vld [vmem:[#allocation74_spill] sm:$0xff]  ;;  %v13220_v26 = vld [vmem:[#allocation129_spill] sm:$0xff] }
 0x9fd   :  { %9612 = vtanh.f32 %v6333_v32  ;;  %v6326_v34 = vmul.f32 %v6302_v23, %v12035_v30  ;;  %v13183_v30 = vld [vmem:[#allocation112_spill] sm:$0xff]  ;;  %v13212_v42 = vld [vmem:[#allocation51_spill] sm:$0xff]  ;;  %v13215_v24 = vld [vmem:[#allocation82_spill] sm:$0xff] }
 0x9fe   :  { %v6321_v28 = vadd.f32 0.5, %v6317_v25  ;;  %v13213_v43 = vld [vmem:[#allocation75_spill] sm:$0xff] }
 0x9ff   :  { %v9607_v16 = vpop.eup %9606  ;;  %v6334_v22 = vadd.f32 %v6330_v1, %v6326_v34  ;;  %v13214_v15 = vld [vmem:[#allocation115_spill] sm:$0xff]  ;;  %v13218_v1 = vld [vmem:[#allocation128_spill] sm:$0xff] }
 0xa00   :  { %v6339_v45 = vmul.f32 %v9607_v16, %v6319_v62  ;;  %v9609_v3 = vpop.eup %9608  ;;  %v13216_v32 = vld [vmem:[#allocation127_spill] sm:$0xff]  ;;  %v13219_v34 = vld [vmem:[#allocation84_spill] sm:$0xff]  ;;  %v13221_v62 = vld [vmem:[#allocation85_spill] sm:$0xff] }
 0xa01   :  { %9614 = vtanh.f32 %v6334_v22  ;;  %v6318_v41 = vmul.f32 0.5, %v9609_v3  ;;  %v13217_v23 = vld [vmem:[#allocation83_spill] sm:$0xff]  ;;  %v13223_v16 = vld [vmem:[#allocation124_spill] sm:$0xff]  ;;  %v13224_v22 = vld [vmem:[#allocation125_spill] sm:$0xff] }
 0xa02   :  { %6518 = vmatprep.mubr.f32.mxu0 %v6339_v45  ;;  %v13222_v4 = vld [vmem:[#allocation123_spill] sm:$0xff]  ;;  %v13225_v45 = vld [vmem:[#allocation126_spill] sm:$0xff]  ;;  %v13226_v3 = vld [vmem:[#allocation116_spill] sm:$0xff] }
 0xa03   :  { %v9611_v14 = vpop.eup %9610  ;;  %6519 = vmatmul.mubr.f32.vlgmr.msra.gmra.mrb[128].mxu0 %v13182_v57  ;;  %v6322_v12 = vadd.f32 0.5, %v6318_v41 }
 0xa04   :  { %v6340_v50 = vmul.f32 %v9611_v14, %v6320_v38  ;;  %v13227_v38 = vld [vmem:[#allocation117_spill] sm:$0xff] }
 0xa06   :  { %6523 = vmatprep.mubr.f32.mxu0 %v6340_v50 }
 0xa07   :  { %v9613_v33 = vpop.eup %9612  ;;  %6524 = vmatmul.mubr.f32.gmra.mrb[130].mxu0 %v13183_v30 }
 0xa08   :  { %v6341_v18 = vmul.f32 %v9613_v33, %v6321_v28 }
 0xa0a   :  { %6528 = vmatprep.mubr.f32.mxu0 %v6341_v18 }
 0xa0b   :  { %v9615_v53 = vpop.eup %9614  ;;  %6529 = vmatmul.mubr.f32.gmra.mrb[132].mxu0 %v13184_v49 }
 0xa0c   :  { %v6342_v7 = vmul.f32 %v9615_v53, %v6322_v12 }
 0xa0e   :  { %6533 = vmatprep.mubr.f32.mxu0 %v6342_v7 }
 0xa0f   :  { %6534 = vmatmul.mubr.f32.gmra.mrb[134].mxu0 %v13185_v10 }
 0xa10   :  { %6538 = vmatprep.mubr.f32.mxu0 %v12037_v47  ;;  %v13193_v47 = vld [vmem:[#allocation46_spill] sm:$0xff] }
 0xa13   :  { %6539 = vmatmul.mubr.f32.gmra.mrb[136].mxu0 %v13186_v55 }
 0xa14   :  { %6543 = vmatprep.mubr.f32.mxu0 %v12044_v39  ;;  %v13195_v39 = vld [vmem:[#allocation47_spill] sm:$0xff] }
 0xa17   :  { %6544 = vmatmul.mubr.f32.gmra.mrb[138].mxu0 %v13187_v0 }
 0xa18   :  { %6548 = vmatprep.mubr.f32.mxu0 %v12050_v11  ;;  %v13197_v11 = vld [vmem:[#allocation50_spill] sm:$0xff] }
 0xa1b   :  { %6549 = vmatmul.mubr.f32.gmra.mrb[140].mxu0 %v13188_v20 }
 0xa1c   :  { %6553 = vmatprep.mubr.f32.mxu0 %v12056_v2  ;;  %v13199_v2 = vld [vmem:[#allocation54_spill] sm:$0xff] }
 0xa1f   :  { %6554 = vmatmul.mubr.f32.gmra.mrb[142].mxu0 %v13189_v51 }
 0xa20   :  { %6558 = vmatprep.mubr.f32.mxu0 %v13190_v13 }
 0xa23   :  { %6559 = vmatmul.mubr.f32.gmra.mrb[144].mxu0 %v13191_v29 }
 0xa24   :  { %6563 = vmatprep.mubr.f32.mxu0 %v13192_v5 }
 0xa27   :  { %6564 = vmatmul.mubr.f32.gmra.mrb[146].mxu0 %v13193_v47 }
 0xa28   :  { %6568 = vmatprep.mubr.f32.mxu0 %v13194_v37 }
 0xa2b   :  { %6569 = vmatmul.mubr.f32.gmra.mrb[148].mxu0 %v13195_v39 }
 0xa2c   :  { %6573 = vmatprep.mubr.f32.mxu0 %v13196_v27 }
 0xa2f   :  { %6574 = vmatmul.mubr.f32.gmra.mrb[150].mxu0 %v13197_v11 }
 0xa30   :  { %6578 = vmatprep.mubr.f32.mxu0 %v13198_v48 }
 0xa33   :  { %6579 = vmatmul.mubr.f32.gmra.mrb[152].mxu0 %v13199_v2 }
 0xa34   :  { %6583 = vmatprep.mubr.f32.mxu0 %v13200_v8 }
 0xa37   :  { %6584 = vmatmul.mubr.f32.gmra.mrb[154].mxu0 %v13201_v58 }
 0xa38   :  { %6588 = vmatprep.mubr.f32.mxu0 %v13202_v44 }
 0xa3b   :  { %6589 = vmatmul.mubr.f32.gmra.mrb[156].mxu0 %v13203_v9 }
 0xa3c   :  { %6593 = vmatprep.mubr.f32.mxu0 %v13204_v36 }
 0xa3f   :  { %6594 = vmatmul.mubr.f32.gmra.mrb[158].mxu0 %v13205_v21 }
 0xa40   :  { %6598 = vmatprep.mubr.f32.mxu0 %v13206_v35 }
 0xa43   :  { %6599 = vmatmul.mubr.f32.gmra.mrb[160].mxu0 %v13207_v52 }
 0xa44   :  { %6603 = vmatprep.mubr.f32.mxu0 %v13208_v56 }
 0xa47   :  { %6604 = vmatmul.mubr.f32.gmra.mrb[162].mxu0 %v13209_v40 }
 0xa48   :  { %6608 = vmatprep.mubr.f32.mxu0 %v13210_v61 }
 0xa4b   :  { %6609 = vmatmul.mubr.f32.gmra.mrb[164].mxu0 %v13211_v60 }
 0xa4c   :  { %6613 = vmatprep.mubr.f32.mxu0 %v13212_v42 }
 0xa4f   :  { %6614 = vmatmul.mubr.f32.gmra.mrb[166].mxu0 %v13213_v43 }
 0xa50   :  { %6618 = vmatprep.mubr.f32.mxu0 %v13214_v15 }
 0xa53   :  { %6619 = vmatmul.mubr.f32.gmra.mrb[168].mxu0 %v13215_v24 }
 0xa54   :  { %6623 = vmatprep.mubr.f32.mxu0 %v13216_v32 }
 0xa57   :  { %6624 = vmatmul.mubr.f32.gmra.mrb[170].mxu0 %v13217_v23 }
 0xa58   :  { %6628 = vmatprep.mubr.f32.mxu0 %v13218_v1 }
 0xa5b   :  { %6629 = vmatmul.mubr.f32.gmra.mrb[172].mxu0 %v13219_v34 }
 0xa5c   :  { %6633 = vmatprep.mubr.f32.mxu0 %v13220_v26 }
 0xa5f   :  { %6634 = vmatmul.mubr.f32.gmra.mrb[174].mxu0 %v13221_v62 }
 0xa60   :  { %6638 = vmatprep.mubr.f32.mxu0 %v13222_v4 }
 0xa63   :  { %6639 = vmatmul.mubr.f32.gmra.mrb[176].mxu0 %v11953_v6  ;;  %v13228_v6 = vld [vmem:[#allocation118_spill] sm:$0xff] }
 0xa64   :  { %6643 = vmatprep.mubr.f32.mxu0 %v13223_v16 }
 0xa67   :  { %6644 = vmatmul.mubr.f32.gmra.mrb[178].mxu0 %v11966_v59  ;;  %v13229_v59 = vld [vmem:[#allocation119_spill] sm:$0xff] }
 0xa68   :  { %6648 = vmatprep.mubr.f32.mxu0 %v13224_v22 }
 0xa6b   :  { %6649 = vmatmul.mubr.f32.gmra.mrb[180].mxu0 %v11980_v63  ;;  %v12192_v63 = vld [vmem:[#allocation15] ss:$0 sm:$0xff] }
 0xa6c   :  { %6653 = vmatprep.mubr.f32.mxu0 %v13225_v45 }
 0xa6f   :  { %6654 = vmatmul.mubr.f32.gmra.mrb[182].mxu0 %v11993_v54 }
 0xa70   :  { %6658 = vmatprep.mubr.f32.mxu0 %v13226_v3 }
 0xa73   :  { %6659 = vmatmul.mubr.f32.gmra.mrb[184].mxu0 %v12106_v19 }
 0xa74   :  { %6663 = vmatprep.mubr.f32.mxu0 %v13227_v38 }
 0xa77   :  { %6664 = vmatmul.mubr.f32.gmra.mrb[186].mxu0 %v12112_v31 }
 0xa78   :  { %6668 = vmatprep.mubr.f32.mxu0 %v13228_v6 }
 0xa7b   :  { %6669 = vmatmul.mubr.f32.gmra.mrb[188].mxu0 %v12118_v17 }
 0xa7c   :  { %6673 = vmatprep.mubr.f32.mxu0 %v13229_v59 }
 0xa7f   :  { %6674 = vmatmul.mubr.f32.gmra.mrb[190].mxu0 %v12123_v46 }
 0xad6   :  { %v6520_v25 = vpop.f32.mrb[128].mxu0 }
 0xad7   :  { %v12195_v54 = vadd.f32 %v12192_v63, %v6520_v25  ;;  %v6522_v14 = vpop.f32.mrb[129].mxu0 }
 0xad9   :  { %6679 = vadd.xlane.f32.xlu0 %v12195_v54 }
 0xada   :  { %v6525_v19 = vpop.f32.mrb[130].mxu0 }
 0xadb   :  { %v12199_v31 = vadd.f32 %v12192_v63, %v6525_v19  ;;  %v6527_v57 = vpop.f32.mrb[131].mxu0 }
 0xadd   :  { %6681 = vadd.xlane.f32.xlu0 %v12199_v31 }
 0xade   :  { %v6530_v17 = vpop.f32.mrb[132].mxu0 }
 0xadf   :  { %v12203_v50 = vadd.f32 %v12192_v63, %v6530_v17  ;;  %v6532_v46 = vpop.f32.mrb[133].mxu0 }
 0xae1   :  { %6683 = vadd.xlane.f32.xlu1 %v12203_v50 }
 0xae2   :  { %v6535_v28 = vpop.f32.mrb[134].mxu0 }
 0xae3   :  { %v12207_v41 = vadd.f32 %v12192_v63, %v6535_v28  ;;  %v6537_v33 = vpop.f32.mrb[135].mxu0 }
 0xae5   :  { %6685 = vadd.xlane.f32.xlu1 %v12207_v41 }
 0xae6   :  { %v6540_v30 = vpop.f32.mrb[136].mxu0 }
 0xae7   :  { %v12211_v18 = vadd.f32 %v12192_v63, %v6540_v30  ;;  %v6542_v12 = vpop.f32.mrb[137].mxu0 }
 0xae9   :  { %6687 = vadd.xlane.f32.xlu0 %v12211_v18 }
 0xaea   :  { %v6545_v53 = vpop.f32.mrb[138].mxu0 }
 0xaeb   :  { %v12215_v49 = vadd.f32 %v12192_v63, %v6545_v53  ;;  %v6547_v7 = vpop.f32.mrb[139].mxu0 }
 0xaed   :  { %6689 = vadd.xlane.f32.xlu1 %v12215_v49 }
 0xaee   :  { %v6550_v10 = vpop.f32.mrb[140].mxu0 }
 0xaef   :  { %v12219_v55 = vadd.f32 %v12192_v63, %v6550_v10  ;;  %v6552_v0 = vpop.f32.mrb[141].mxu0 }
 0xaf1   :  { %6691 = vadd.xlane.f32.xlu0 %v12219_v55 }
 0xaf2   :  { %v6555_v20 = vpop.f32.mrb[142].mxu0 }
 0xaf3   :  { %v12223_v51 = vadd.f32 %v12192_v63, %v6555_v20  ;;  %v6557_v13 = vpop.f32.mrb[143].mxu0 }
 0xaf5   :  { %6693 = vadd.xlane.f32.xlu1 %v12223_v51 }
 0xaf6   :  { %v6560_v29 = vpop.f32.mrb[144].mxu0 }
 0xaf7   :  { %v12227_v5 = vadd.f32 %v12192_v63, %v6560_v29  ;;  %v6562_v47 = vpop.f32.mrb[145].mxu0 }
 0xaf9   :  { %6695 = vadd.xlane.f32.xlu0 %v12227_v5 }
 0xafa   :  { %v6565_v37 = vpop.f32.mrb[146].mxu0 }
 0xafb   :  { %v12231_v39 = vadd.f32 %v12192_v63, %v6565_v37  ;;  %v6567_v27 = vpop.f32.mrb[147].mxu0 }
 0xafd   :  { %6697 = vadd.xlane.f32.xlu1 %v12231_v39 }
 0xafe   :  { %v6570_v11 = vpop.f32.mrb[148].mxu0 }
 0xaff   :  { %v12235_v48 = vadd.f32 %v12192_v63, %v6570_v11  ;;  %v6572_v2 = vpop.f32.mrb[149].mxu0 }
 0xb01   :  { %6699 = vadd.xlane.f32.xlu0 %v12235_v48 }
 0xb02   :  { %v6575_v8 = vpop.f32.mrb[150].mxu0 }
 0xb03   :  { %v12239_v58 = vadd.f32 %v12192_v63, %v6575_v8  ;;  %v6577_v44 = vpop.f32.mrb[151].mxu0 }
 0xb05   :  { %6701 = vadd.xlane.f32.xlu1 %v12239_v58 }
 0xb06   :  { %v6580_v9 = vpop.f32.mrb[152].mxu0 }
 0xb07   :  { %v12243_v36 = vadd.f32 %v12192_v63, %v6580_v9  ;;  %v6582_v21 = vpop.f32.mrb[153].mxu0 }
 0xb09   :  { %6703 = vadd.xlane.f32.xlu0 %v12243_v36 }
 0xb0a   :  { %v6585_v35 = vpop.f32.mrb[154].mxu0 }
 0xb0b   :  { %v12247_v52 = vadd.f32 %v12192_v63, %v6585_v35  ;;  %v6587_v56 = vpop.f32.mrb[155].mxu0 }
 0xb0d   :  { %6705 = vadd.xlane.f32.xlu1 %v12247_v52 }
 0xb0e   :  { %v6590_v40 = vpop.f32.mrb[156].mxu0 }
 0xb0f   :  { %v12251_v61 = vadd.f32 %v12192_v63, %v6590_v40  ;;  %v6592_v60 = vpop.f32.mrb[157].mxu0 }
 0xb11   :  { %6707 = vadd.xlane.f32.xlu0 %v12251_v61 }
 0xb12   :  { %v6595_v42 = vpop.f32.mrb[158].mxu0 }
 0xb13   :  { %v12255_v43 = vadd.f32 %v12192_v63, %v6595_v42  ;;  %v6597_v15 = vpop.f32.mrb[159].mxu0 }
 0xb15   :  { %6709 = vadd.xlane.f32.xlu1 %v12255_v43 }
 0xb16   :  { %v6600_v24 = vpop.f32.mrb[160].mxu0 }
 0xb17   :  { %v12259_v32 = vadd.f32 %v12192_v63, %v6600_v24  ;;  %v6602_v23 = vpop.f32.mrb[161].mxu0 }
 0xb19   :  { %6711 = vadd.xlane.f32.xlu0 %v12259_v32 }
 0xb1a   :  { %v6605_v1 = vpop.f32.mrb[162].mxu0 }
 0xb1b   :  { %v12263_v34 = vadd.f32 %v12192_v63, %v6605_v1  ;;  %v6607_v26 = vpop.f32.mrb[163].mxu0 }
 0xb1d   :  { %6713 = vadd.xlane.f32.xlu1 %v12263_v34 }
 0xb1e   :  { %v6610_v62 = vpop.f32.mrb[164].mxu0 }
 0xb1f   :  { %v12267_v4 = vadd.f32 %v12192_v63, %v6610_v62  ;;  %v6612_v16 = vpop.f32.mrb[165].mxu0 }
 0xb21   :  { %6715 = vadd.xlane.f32.xlu0 %v12267_v4 }
 0xb22   :  { %v6615_v22 = vpop.f32.mrb[166].mxu0 }
 0xb23   :  { %v12271_v45 = vadd.f32 %v12192_v63, %v6615_v22  ;;  %v6617_v3 = vpop.f32.mrb[167].mxu0 }
 0xb25   :  { %6717 = vadd.xlane.f32.xlu1 %v12271_v45 }
 0xb26   :  { %v6620_v38 = vpop.f32.mrb[168].mxu0 }
 0xb27   :  { %v12275_v6 = vadd.f32 %v12192_v63, %v6620_v38  ;;  %v6622_v59 = vpop.f32.mrb[169].mxu0 }
 0xb29   :  { %6719 = vadd.xlane.f32.xlu0 %v12275_v6 }
 0xb2a   :  { %v6625_v25 = vpop.f32.mrb[170].mxu0 }
 0xb2b   :  { %v12279_v14 = vadd.f32 %v12192_v63, %v6625_v25  ;;  %v6627_v19 = vpop.f32.mrb[171].mxu0 }
 0xb2d   :  { %6721 = vadd.xlane.f32.xlu1 %v12279_v14 }
 0xb2e   :  { %v6630_v57 = vpop.f32.mrb[172].mxu0 }
 0xb2f   :  { %v12283_v17 = vadd.f32 %v12192_v63, %v6630_v57  ;;  %v6632_v46 = vpop.f32.mrb[173].mxu0 }
 0xb31   :  { %6723 = vadd.xlane.f32.xlu0 %v12283_v17 }
 0xb32   :  { %v6635_v28 = vpop.f32.mrb[174].mxu0 }
 0xb33   :  { %v12287_v33 = vadd.f32 %v12192_v63, %v6635_v28  ;;  %v6637_v30 = vpop.f32.mrb[175].mxu0 }
 0xb35   :  { %6725 = vadd.xlane.f32.xlu1 %v12287_v33 }
 0xb36   :  { %v6640_v12 = vpop.f32.mrb[176].mxu0 }
 0xb37   :  { %v12291_v53 = vadd.f32 %v12192_v63, %v6640_v12  ;;  %v6642_v7 = vpop.f32.mrb[177].mxu0 }
 0xb39   :  { %6727 = vadd.xlane.f32.xlu0 %v12291_v53 }
 0xb3a   :  { %v6645_v10 = vpop.f32.mrb[178].mxu0 }
 0xb3b   :  { %v12295_v0 = vadd.f32 %v12192_v63, %v6645_v10  ;;  %v6647_v20 = vpop.f32.mrb[179].mxu0 }
 0xb3d   :  { %6729 = vadd.xlane.f32.xlu1 %v12295_v0 }
 0xb3e   :  { %v6650_v13 = vpop.f32.mrb[180].mxu0 }
 0xb3f   :  { %v12299_v29 = vadd.f32 %v12192_v63, %v6650_v13  ;;  %v6652_v47 = vpop.f32.mrb[181].mxu0 }
 0xb41   :  { %6731 = vadd.xlane.f32.xlu0 %v12299_v29 }
 0xb42   :  { %v6655_v37 = vpop.f32.mrb[182].mxu0 }
 0xb43   :  { %v12303_v27 = vadd.f32 %v12192_v63, %v6655_v37  ;;  %v6657_v11 = vpop.f32.mrb[183].mxu0 }
 0xb45   :  { %6733 = vadd.xlane.f32.xlu1 %v12303_v27 }
 0xb46   :  { %v6660_v2 = vpop.f32.mrb[184].mxu0 }
 0xb47   :  { %v12307_v8 = vadd.f32 %v12192_v63, %v6660_v2  ;;  %v6662_v44 = vpop.f32.mrb[185].mxu0 }
 0xb49   :  { %6735 = vadd.xlane.f32.xlu0 %v12307_v8 }
 0xb4a   :  { %v6665_v9 = vpop.f32.mrb[186].mxu0 }
 0xb4b   :  { %v12311_v21 = vadd.f32 %v12192_v63, %v6665_v9  ;;  %v6667_v35 = vpop.f32.mrb[187].mxu0 }
 0xb4d   :  { %6737 = vadd.xlane.f32.xlu1 %v12311_v21 }
 0xb4e   :  { %v6670_v56 = vpop.f32.mrb[188].mxu0 }
 0xb4f   :  { %v12315_v40 = vadd.f32 %v12192_v63, %v6670_v56  ;;  %v6672_v60 = vpop.f32.mrb[189].mxu0 }
 0xb51   :  { %6739 = vadd.xlane.f32.xlu0 %v12315_v40 }
 0xb52   :  { %v6675_v42 = vpop.f32.mrb[190].mxu0 }
 0xb53   :  { %v12319_v15 = vadd.f32 %v12192_v63, %v6675_v42  ;;  %v6677_v24 = vpop.f32.mrb[191].mxu0 }
 0xb55   :  { %6741 = vadd.xlane.f32.xlu1 %v12319_v15 }
 0xb66   :  { %v6680_v23 = vpop.xlane.xlu0 %6679 }
 0xb67   :  { %v6744_v1 = vmul.f32 0.0078125, %v6680_v23 }
 0xb69   :  { %v12323_v26 = vsub.f32 %v12195_v54, %v6744_v1 }
 0xb6a   :  { %v6682_v62 = vpop.xlane.xlu0 %6681 }
 0xb6b   :  { %v6745_v16 = vmul.f32 0.0078125, %v6682_v62  ;;  %v6808_v22 = vmul.f32 %v12323_v26, %v12323_v26 }
 0xb6d   :  { %v12328_v3 = vsub.f32 %v12199_v31, %v6745_v16  ;;  %6840 = vadd.xlane.f32.xlu0 %v6808_v22 }
 0xb6e   :  { %v6684_v38 = vpop.xlane.xlu1 %6683 }
 0xb6f   :  { %v6746_v63 = vmul.f32 0.0078125, %v6684_v38  ;;  %v6809_v59 = vmul.f32 %v12328_v3, %v12328_v3 }
 0xb71   :  { %v12333_v25 = vsub.f32 %v12203_v50, %v6746_v63  ;;  %6842 = vadd.xlane.f32.xlu1 %v6809_v59 }
 0xb72   :  { %v6686_v54 = vpop.xlane.xlu1 %6685 }
 0xb73   :  { %v6747_v19 = vmul.f32 0.0078125, %v6686_v54  ;;  %v6810_v57 = vmul.f32 %v12333_v25, %v12333_v25 }
 0xb75   :  { %v12338_v46 = vsub.f32 %v12207_v41, %v6747_v19  ;;  %6844 = vadd.xlane.f32.xlu0 %v6810_v57 }
 0xb76   :  { %v6688_v31 = vpop.xlane.xlu0 %6687 }
 0xb77   :  { %v6748_v28 = vmul.f32 0.0078125, %v6688_v31  ;;  %v6811_v30 = vmul.f32 %v12338_v46, %v12338_v46 }
 0xb79   :  { %v12343_v12 = vsub.f32 %v12211_v18, %v6748_v28  ;;  %6846 = vadd.xlane.f32.xlu1 %v6811_v30 }
 0xb7a   :  { %v6690_v50 = vpop.xlane.xlu1 %6689 }
 0xb7b   :  { %v6749_v7 = vmul.f32 0.0078125, %v6690_v50  ;;  %v6812_v10 = vmul.f32 %v12343_v12, %v12343_v12 }
 0xb7d   :  { %v12348_v20 = vsub.f32 %v12215_v49, %v6749_v7  ;;  %6848 = vadd.xlane.f32.xlu0 %v6812_v10 }
 0xb7e   :  { %v6692_v41 = vpop.xlane.xlu0 %6691 }
 0xb7f   :  { %v6750_v13 = vmul.f32 0.0078125, %v6692_v41  ;;  %v6813_v47 = vmul.f32 %v12348_v20, %v12348_v20 }
 0xb81   :  { %v12353_v37 = vsub.f32 %v12219_v55, %v6750_v13  ;;  %6850 = vadd.xlane.f32.xlu1 %v6813_v47 }
 0xb82   :  { %v6694_v18 = vpop.xlane.xlu1 %6693 }
 0xb83   :  { %v6751_v11 = vmul.f32 0.0078125, %v6694_v18  ;;  %v6814_v2 = vmul.f32 %v12353_v37, %v12353_v37 }
 0xb85   :  { %v12358_v44 = vsub.f32 %v12223_v51, %v6751_v11  ;;  %6852 = vadd.xlane.f32.xlu0 %v6814_v2 }
 0xb86   :  { %v6696_v49 = vpop.xlane.xlu0 %6695 }
 0xb87   :  { %v6752_v9 = vmul.f32 0.0078125, %v6696_v49  ;;  %v6815_v35 = vmul.f32 %v12358_v44, %v12358_v44 }
 0xb89   :  { %v12363_v56 = vsub.f32 %v12227_v5, %v6752_v9  ;;  %6854 = vadd.xlane.f32.xlu1 %v6815_v35 }
 0xb8a   :  { %v6698_v55 = vpop.xlane.xlu1 %6697 }
 0xb8b   :  { %v6753_v60 = vmul.f32 0.0078125, %v6698_v55  ;;  %v6816_v42 = vmul.f32 %v12363_v56, %v12363_v56 }
 0xb8d   :  { %v12368_v24 = vsub.f32 %v12231_v39, %v6753_v60  ;;  %6856 = vadd.xlane.f32.xlu0 %v6816_v42 }
 0xb8e   :  { %v6700_v51 = vpop.xlane.xlu0 %6699 }
 0xb8f   :  { %v6754_v23 = vmul.f32 0.0078125, %v6700_v51  ;;  %v6817_v1 = vmul.f32 %v12368_v24, %v12368_v24 }
 0xb91   :  { %v12373_v62 = vsub.f32 %v12235_v48, %v6754_v23  ;;  %6858 = vadd.xlane.f32.xlu1 %v6817_v1 }
 0xb92   :  { %v6702_v5 = vpop.xlane.xlu1 %6701 }
 0xb93   :  { %v6755_v16 = vmul.f32 0.0078125, %v6702_v5  ;;  %v6818_v22 = vmul.f32 %v12373_v62, %v12373_v62 }
 0xb95   :  { %v12378_v38 = vsub.f32 %v12239_v58, %v6755_v16  ;;  %6860 = vadd.xlane.f32.xlu0 %v6818_v22 }
 0xb96   :  { %v6704_v39 = vpop.xlane.xlu0 %6703 }
 0xb97   :  { %v6756_v63 = vmul.f32 0.0078125, %v6704_v39  ;;  %v6819_v59 = vmul.f32 %v12378_v38, %v12378_v38 }
 0xb99   :  { %v12383_v54 = vsub.f32 %v12243_v36, %v6756_v63  ;;  %6862 = vadd.xlane.f32.xlu1 %v6819_v59 }
 0xb9a   :  { %v6706_v48 = vpop.xlane.xlu1 %6705 }
 0xb9b   :  { %v6757_v19 = vmul.f32 0.0078125, %v6706_v48  ;;  %v6820_v57 = vmul.f32 %v12383_v54, %v12383_v54 }
 0xb9d   :  { %v12388_v31 = vsub.f32 %v12247_v52, %v6757_v19  ;;  %6864 = vadd.xlane.f32.xlu0 %v6820_v57 }
 0xb9e   :  { %v6708_v58 = vpop.xlane.xlu0 %6707 }
 0xb9f   :  { %v6758_v28 = vmul.f32 0.0078125, %v6708_v58  ;;  %v6821_v30 = vmul.f32 %v12388_v31, %v12388_v31 }
 0xba1   :  { %v12393_v50 = vsub.f32 %v12251_v61, %v6758_v28  ;;  %6866 = vadd.xlane.f32.xlu1 %v6821_v30 }
 0xba2   :  { %v6710_v36 = vpop.xlane.xlu1 %6709 }
 0xba3   :  { %v6759_v7 = vmul.f32 0.0078125, %v6710_v36  ;;  %v6822_v10 = vmul.f32 %v12393_v50, %v12393_v50 }
 0xba5   :  { %v12398_v41 = vsub.f32 %v12255_v43, %v6759_v7  ;;  %6868 = vadd.xlane.f32.xlu0 %v6822_v10 }
 0xba6   :  { %v6712_v52 = vpop.xlane.xlu0 %6711 }
 0xba7   :  { %v6760_v13 = vmul.f32 0.0078125, %v6712_v52  ;;  %v6823_v47 = vmul.f32 %v12398_v41, %v12398_v41 }
 0xba9   :  { %v12403_v18 = vsub.f32 %v12259_v32, %v6760_v13  ;;  %6870 = vadd.xlane.f32.xlu1 %v6823_v47 }
 0xbaa   :  { %v6714_v61 = vpop.xlane.xlu1 %6713 }
 0xbab   :  { %v6761_v11 = vmul.f32 0.0078125, %v6714_v61  ;;  %v6824_v2 = vmul.f32 %v12403_v18, %v12403_v18 }
 0xbad   :  { %v12408_v49 = vsub.f32 %v12263_v34, %v6761_v11  ;;  %6872 = vadd.xlane.f32.xlu0 %v6824_v2 }
 0xbae   :  { %v6716_v43 = vpop.xlane.xlu0 %6715 }
 0xbaf   :  { %v6762_v9 = vmul.f32 0.0078125, %v6716_v43  ;;  %v6825_v35 = vmul.f32 %v12408_v49, %v12408_v49 }
 0xbb1   :  { %v12413_v55 = vsub.f32 %v12267_v4, %v6762_v9  ;;  %6874 = vadd.xlane.f32.xlu1 %v6825_v35 }
 0xbb2   :  { %v6718_v32 = vpop.xlane.xlu1 %6717 }
 0xbb3   :  { %v6763_v60 = vmul.f32 0.0078125, %v6718_v32  ;;  %v6826_v42 = vmul.f32 %v12413_v55, %v12413_v55 }
 0xbb5   :  { %v12418_v51 = vsub.f32 %v12271_v45, %v6763_v60  ;;  %6876 = vadd.xlane.f32.xlu0 %v6826_v42 }
 0xbb6   :  { %v6720_v34 = vpop.xlane.xlu0 %6719 }
 0xbb7   :  { %v6764_v23 = vmul.f32 0.0078125, %v6720_v34  ;;  %v6827_v1 = vmul.f32 %v12418_v51, %v12418_v51 }
 0xbb9   :  { %v12423_v5 = vsub.f32 %v12275_v6, %v6764_v23  ;;  %6878 = vadd.xlane.f32.xlu1 %v6827_v1 }
 0xbba   :  { %v6722_v4 = vpop.xlane.xlu1 %6721 }
 0xbbb   :  { %v6765_v16 = vmul.f32 0.0078125, %v6722_v4  ;;  %v6828_v22 = vmul.f32 %v12423_v5, %v12423_v5 }
 0xbbd   :  { %v12428_v39 = vsub.f32 %v12279_v14, %v6765_v16  ;;  %6880 = vadd.xlane.f32.xlu0 %v6828_v22 }
 0xbbe   :  { %v6724_v45 = vpop.xlane.xlu0 %6723 }
 0xbbf   :  { %v6766_v63 = vmul.f32 0.0078125, %v6724_v45  ;;  %v6829_v59 = vmul.f32 %v12428_v39, %v12428_v39 }
 0xbc1   :  { %v12433_v48 = vsub.f32 %v12283_v17, %v6766_v63  ;;  %6882 = vadd.xlane.f32.xlu1 %v6829_v59 }
 0xbc2   :  { %v6726_v6 = vpop.xlane.xlu1 %6725 }
 0xbc3   :  { %v6767_v19 = vmul.f32 0.0078125, %v6726_v6  ;;  %v6830_v57 = vmul.f32 %v12433_v48, %v12433_v48 }
 0xbc5   :  { %v12438_v58 = vsub.f32 %v12287_v33, %v6767_v19  ;;  %6884 = vadd.xlane.f32.xlu0 %v6830_v57 }
 0xbc6   :  { %v6728_v14 = vpop.xlane.xlu0 %6727 }
 0xbc7   :  { %v6768_v28 = vmul.f32 0.0078125, %v6728_v14  ;;  %v6831_v30 = vmul.f32 %v12438_v58, %v12438_v58 }
 0xbc9   :  { %v12443_v36 = vsub.f32 %v12291_v53, %v6768_v28  ;;  %6886 = vadd.xlane.f32.xlu1 %v6831_v30 }
 0xbca   :  { %v6730_v17 = vpop.xlane.xlu1 %6729 }
 0xbcb   :  { %v6769_v7 = vmul.f32 0.0078125, %v6730_v17  ;;  %v6832_v10 = vmul.f32 %v12443_v36, %v12443_v36 }
 0xbcd   :  { %v12448_v52 = vsub.f32 %v12295_v0, %v6769_v7  ;;  %6888 = vadd.xlane.f32.xlu0 %v6832_v10  ;;  %v12482_v10 = vld [vmem:[#allocation16] ss:$0 sm:$0xff] }
 0xbce   :  { %v6732_v33 = vpop.xlane.xlu0 %6731 }
 0xbcf   :  { %v6770_v13 = vmul.f32 0.0078125, %v6732_v33  ;;  %v6833_v47 = vmul.f32 %v12448_v52, %v12448_v52 }
 0xbd1   :  { %v12453_v61 = vsub.f32 %v12299_v29, %v6770_v13  ;;  %6890 = vadd.xlane.f32.xlu1 %v6833_v47 }
 0xbd2   :  { %v6734_v53 = vpop.xlane.xlu1 %6733 }
 0xbd3   :  { %v6771_v11 = vmul.f32 0.0078125, %v6734_v53  ;;  %v6834_v2 = vmul.f32 %v12453_v61, %v12453_v61  ;;  %v12485_v53 = vld [vmem:[#allocation18] ss:$0 sm:$0xff] }
 0xbd5   :  { %v12458_v43 = vsub.f32 %v12303_v27, %v6771_v11  ;;  %6892 = vadd.xlane.f32.xlu0 %v6834_v2 }
 0xbd6   :  { %v6736_v0 = vpop.xlane.xlu0 %6735 }
 0xbd7   :  { %v6772_v9 = vmul.f32 0.0078125, %v6736_v0  ;;  %v6835_v35 = vmul.f32 %v12458_v43, %v12458_v43 }
 0xbd9   :  { %v12463_v32 = vsub.f32 %v12307_v8, %v6772_v9  ;;  %6894 = vadd.xlane.f32.xlu1 %v6835_v35  ;;  %v7110_v9 = vld [vmem:[#allocation4] sm:$0xff] }
 0xbda   :  { %v6738_v29 = vpop.xlane.xlu1 %6737 }
 0xbdb   :  { %v6773_v60 = vmul.f32 0.0078125, %v6738_v29  ;;  %v6836_v42 = vmul.f32 %v12463_v32, %v12463_v32 }
 0xbdd   :  { %v12468_v34 = vsub.f32 %v12311_v21, %v6773_v60  ;;  %6896 = vadd.xlane.f32.xlu0 %v6836_v42 }
 0xbde   :  { %v6740_v27 = vpop.xlane.xlu0 %6739 }
 0xbdf   :  { %v6774_v23 = vmul.f32 0.0078125, %v6740_v27  ;;  %v6837_v1 = vmul.f32 %v12468_v34, %v12468_v34 }
 0xbe1   :  { %v12473_v4 = vsub.f32 %v12315_v40, %v6774_v23  ;;  %6898 = vadd.xlane.f32.xlu1 %v6837_v1 }
 0xbe2   :  { %v6742_v8 = vpop.xlane.xlu1 %6741 }
 0xbe3   :  { %v6775_v16 = vmul.f32 0.0078125, %v6742_v8  ;;  %v6838_v22 = vmul.f32 %v12473_v4, %v12473_v4  ;;  %v7111_v8 = vld [vmem:[#allocation4 + $0x8] sm:$0xff] }
 0xbe5   :  { %v12478_v45 = vsub.f32 %v12319_v15, %v6775_v16  ;;  %6900 = vadd.xlane.f32.xlu0 %v6838_v22 }
 0xbe7   :  { %v6839_v21 = vmul.f32 %v12478_v45, %v12478_v45 }
 0xbe9   :  { %6902 = vadd.xlane.f32.xlu1 %v6839_v21 }
 0xbfa   :  { %v6841_v63 = vpop.xlane.xlu0 %6840 }
 0xbfb   :  { %v6904_v59 = vmul.f32 0.0078125, %v6841_v63 }
 0xbfd   :  { %v6936_v6 = vadd.f32 1e-05, %v6904_v59 }
 0xbfe   :  { %v6843_v19 = vpop.xlane.xlu1 %6842 }
 0xbff   :  { %9616 = vrsqrt.f32 %v6936_v6  ;;  %v6905_v40 = vmul.f32 0.0078125, %v6843_v19 }
 0xc01   :  { %v6937_v57 = vadd.f32 1e-05, %v6905_v40  ;;  %v7112_v40 = vld [vmem:[#allocation4 + $0x10] sm:$0xff] }
 0xc02   :  { %v6845_v14 = vpop.xlane.xlu0 %6844 }
 0xc03   :  { %9618 = vrsqrt.f32 %v6937_v57  ;;  %v6906_v28 = vmul.f32 0.0078125, %v6845_v14 }
 0xc05   :  { %v6938_v30 = vadd.f32 1e-05, %v6906_v28 }
 0xc06   :  { %v6847_v17 = vpop.xlane.xlu1 %6846 }
 0xc07   :  { %9620 = vrsqrt.f32 %v6938_v30  ;;  %v6907_v15 = vmul.f32 0.0078125, %v6847_v17 }
 0xc09   :  { %v9617_v7 = vpop.eup %9616  ;;  %v6939_v33 = vadd.f32 1e-05, %v6907_v15 }
 0xc0a   :  { %v7000_v13 = vmul.f32 %v9617_v7, %v12323_v26  ;;  %v6849_v47 = vpop.xlane.xlu0 %6848 }
 0xc0b   :  { %9622 = vrsqrt.f32 %v6939_v33  ;;  %v6908_v11 = vmul.f32 0.0078125, %v6849_v47  ;;  %v7113_v33 = vld [vmem:[#allocation4 + $0x18] sm:$0xff] }
 0xc0c   :  { %v7039_v2 = vmul.f32 %v12482_v10, %v7000_v13 }
 0xc0d   :  { %v9619_v0 = vpop.eup %9618  ;;  %v6940_v35 = vadd.f32 1e-05, %v6908_v11 }
 0xc0e   :  { %v7078_v29 = vadd.f32 %v12485_v53, %v7039_v2  ;;  %v7001_v60 = vmul.f32 %v9619_v0, %v12328_v3  ;;  %v6851_v42 = vpop.xlane.xlu1 %6850 }
 0xc0f   :  { %9624 = vrsqrt.f32 %v6940_v35  ;;  %v6909_v27 = vmul.f32 0.0078125, %v6851_v42 }
 0xc10   :  { %v7142_v23 = vadd.f32 %v7110_v9, %v7078_v29  ;;  %v7040_v26 = vmul.f32 %v12482_v10, %v7001_v60  ;;  %v7114_v29 = vld [vmem:[#allocation4 + $0x20] sm:$0xff] }
 0xc11   :  { %v9621_v1 = vpop.eup %9620  ;;  %v6941_v16 = vadd.f32 1e-05, %v6909_v27 }
 0xc12   :  { %7174 = vst [vmem:[#allocation19] sm:$0xff] %v7142_v23  ;;  %v7079_v22 = vadd.f32 %v12485_v53, %v7040_v26  ;;  %v7002_v21 = vmul.f32 %v9621_v1, %v12333_v25  ;;  %v6853_v63 = vpop.xlane.xlu0 %6852 }
 0xc13   :  { %9626 = vrsqrt.f32 %v6941_v16  ;;  %v6910_v59 = vmul.f32 0.0078125, %v6853_v63  ;;  %v7115_v16 = vld [vmem:[#allocation4 + $0x28] sm:$0xff] }
 0xc14   :  { %v7143_v6 = vadd.f32 %v7111_v8, %v7079_v22  ;;  %v7041_v3 = vmul.f32 %v12482_v10, %v7002_v21 }
 0xc15   :  { %v9623_v19 = vpop.eup %9622  ;;  %v6942_v57 = vadd.f32 1e-05, %v6910_v59 }
 0xc16   :  { %7175 = vst [vmem:[#allocation19 + $0x8] sm:$0xff] %v7143_v6  ;;  %v7080_v14 = vadd.f32 %v12485_v53, %v7041_v3  ;;  %v7003_v28 = vmul.f32 %v9623_v19, %v12338_v46  ;;  %v6855_v30 = vpop.xlane.xlu1 %6854 }
 0xc17   :  { %9628 = vrsqrt.f32 %v6942_v57  ;;  %v6911_v17 = vmul.f32 0.0078125, %v6855_v30 }
 0xc18   :  { %v7144_v15 = vadd.f32 %v7112_v40, %v7080_v14  ;;  %v7042_v25 = vmul.f32 %v12482_v10, %v7003_v28  ;;  %v7116_v40 = vld [vmem:[#allocation4 + $0x30] sm:$0xff] }
 0xc19   :  { %v9625_v7 = vpop.eup %9624  ;;  %v6943_v13 = vadd.f32 1e-05, %v6911_v17 }
 0xc1a   :  { %7176 = vst [vmem:[#allocation19 + $0x10] sm:$0xff] %v7144_v15  ;;  %v7081_v47 = vadd.f32 %v12485_v53, %v7042_v25  ;;  %v7004_v11 = vmul.f32 %v9625_v7, %v12343_v12  ;;  %v6857_v2 = vpop.xlane.xlu0 %6856  ;;  %v7117_v7 = vld [vmem:[#allocation4 + $0x38] sm:$0xff] }
 0xc1b   :  { %9630 = vrsqrt.f32 %v6943_v13  ;;  %v6912_v0 = vmul.f32 0.0078125, %v6857_v2 }
 0xc1c   :  { %v7145_v9 = vadd.f32 %v7113_v33, %v7081_v47  ;;  %v7043_v46 = vmul.f32 %v12482_v10, %v7004_v11 }
 0xc1d   :  { %v9627_v35 = vpop.eup %9626  ;;  %v6944_v60 = vadd.f32 1e-05, %v6912_v0 }
 0xc1e   :  { %7177 = vst [vmem:[#allocation19 + $0x18] sm:$0xff] %v7145_v9  ;;  %v7082_v42 = vadd.f32 %v12485_v53, %v7043_v46  ;;  %v7005_v27 = vmul.f32 %v9627_v35, %v12348_v20  ;;  %v6859_v23 = vpop.xlane.xlu1 %6858  ;;  %v7118_v46 = vld [vmem:[#allocation4 + $0x40] sm:$0xff] }
 0xc1f   :  { %9632 = vrsqrt.f32 %v6944_v60  ;;  %v6913_v26 = vmul.f32 0.0078125, %v6859_v23 }
 0xc20   :  { %v7146_v1 = vadd.f32 %v7114_v29, %v7082_v42  ;;  %v7044_v12 = vmul.f32 %v12482_v10, %v7005_v27 }
 0xc21   :  { %v9629_v8 = vpop.eup %9628  ;;  %v6945_v22 = vadd.f32 1e-05, %v6913_v26 }
 0xc22   :  { %7178 = vst [vmem:[#allocation19 + $0x20] sm:$0xff] %v7146_v1  ;;  %v7083_v21 = vadd.f32 %v12485_v53, %v7044_v12  ;;  %v7006_v63 = vmul.f32 %v9629_v8, %v12353_v37  ;;  %v6861_v59 = vpop.xlane.xlu0 %6860  ;;  %v7119_v1 = vld [vmem:[#allocation4 + $0x48] sm:$0xff] }
 0xc23   :  { %9634 = vrsqrt.f32 %v6945_v22  ;;  %v6914_v6 = vmul.f32 0.0078125, %v6861_v59 }
 0xc24   :  { %v7147_v3 = vadd.f32 %v7115_v16, %v7083_v21  ;;  %v7045_v20 = vmul.f32 %v12482_v10, %v7006_v63 }
 0xc25   :  { %v9631_v19 = vpop.eup %9630  ;;  %v6946_v57 = vadd.f32 1e-05, %v6914_v6  ;;  %v7120_v6 = vld [vmem:[#allocation4 + $0x50] sm:$0xff] }
 0xc26   :  { %7179 = vst [vmem:[#allocation19 + $0x28] sm:$0xff] %v7147_v3  ;;  %v7084_v14 = vadd.f32 %v12485_v53, %v7045_v20  ;;  %v7007_v28 = vmul.f32 %v9631_v19, %v12358_v44  ;;  %v6863_v30 = vpop.xlane.xlu1 %6862 }
 0xc27   :  { %9636 = vrsqrt.f32 %v6946_v57  ;;  %v6915_v17 = vmul.f32 0.0078125, %v6863_v30  ;;  %v7121_v30 = vld [vmem:[#allocation4 + $0x58] sm:$0xff] }
 0xc28   :  { %v7148_v15 = vadd.f32 %v7116_v40, %v7084_v14  ;;  %v7046_v37 = vmul.f32 %v12482_v10, %v7007_v28 }
 0xc29   :  { %v9633_v25 = vpop.eup %9632  ;;  %v6947_v33 = vadd.f32 1e-05, %v6915_v17 }
 0xc2a   :  { %7180 = vst [vmem:[#allocation19 + $0x30] sm:$0xff] %v7148_v15  ;;  %v7085_v13 = vadd.f32 %v12485_v53, %v7046_v37  ;;  %v7008_v47 = vmul.f32 %v9633_v25, %v12363_v56  ;;  %v6865_v11 = vpop.xlane.xlu0 %6864 }
 0xc2b   :  { %9638 = vrsqrt.f32 %v6947_v33  ;;  %v6916_v2 = vmul.f32 0.0078125, %v6865_v11 }
 0xc2c   :  { %v7149_v0 = vadd.f32 %v7117_v7, %v7085_v13  ;;  %v7047_v44 = vmul.f32 %v12482_v10, %v7008_v47  ;;  %v7122_v47 = vld [vmem:[#allocation4 + $0x60] sm:$0xff] }
 0xc2d   :  { %v9635_v9 = vpop.eup %9634  ;;  %v6948_v35 = vadd.f32 1e-05, %v6916_v2 }
 0xc2e   :  { %7181 = vst [vmem:[#allocation19 + $0x38] sm:$0xff] %v7149_v0  ;;  %v7086_v29 = vadd.f32 %v12485_v53, %v7047_v44  ;;  %v7009_v60 = vmul.f32 %v9635_v9, %v12368_v24  ;;  %v6867_v42 = vpop.xlane.xlu1 %6866 }
 0xc2f   :  { %9640 = vrsqrt.f32 %v6948_v35  ;;  %v6917_v27 = vmul.f32 0.0078125, %v6867_v42 }
 0xc30   :  { %v7150_v23 = vadd.f32 %v7118_v46, %v7086_v29  ;;  %v7048_v56 = vmul.f32 %v12482_v10, %v7009_v60  ;;  %v7123_v29 = vld [vmem:[#allocation4 + $0x68] sm:$0xff] }
 0xc31   :  { %v9637_v26 = vpop.eup %9636  ;;  %v6949_v12 = vadd.f32 1e-05, %v6917_v27 }
 0xc32   :  { %7182 = vst [vmem:[#allocation19 + $0x40] sm:$0xff] %v7150_v23  ;;  %v7087_v8 = vadd.f32 %v12485_v53, %v7048_v56  ;;  %v7010_v16 = vmul.f32 %v9637_v26, %v12373_v62  ;;  %v6869_v22 = vpop.xlane.xlu0 %6868 }
 0xc33   :  { %9642 = vrsqrt.f32 %v6949_v12  ;;  %v6918_v21 = vmul.f32 0.0078125, %v6869_v22  ;;  %v7124_v12 = vld [vmem:[#allocation4 + $0x70] sm:$0xff] }
 0xc34   :  { %v7151_v63 = vadd.f32 %v7119_v1, %v7087_v8  ;;  %v7049_v24 = vmul.f32 %v12482_v10, %v7010_v16 }
 0xc35   :  { %v9639_v59 = vpop.eup %9638  ;;  %v6950_v3 = vadd.f32 1e-05, %v6918_v21 }
 0xc36   :  { %7183 = vst [vmem:[#allocation19 + $0x48] sm:$0xff] %v7151_v63  ;;  %v7088_v20 = vadd.f32 %v12485_v53, %v7049_v24  ;;  %v7011_v19 = vmul.f32 %v9639_v59, %v12378_v38  ;;  %v6871_v40 = vpop.xlane.xlu1 %6870 }
 0xc37   :  { %9644 = vrsqrt.f32 %v6950_v3  ;;  %v6919_v57 = vmul.f32 0.0078125, %v6871_v40 }
 0xc38   :  { %v7152_v14 = vadd.f32 %v7120_v6, %v7088_v20  ;;  %v7050_v62 = vmul.f32 %v12482_v10, %v7011_v19  ;;  %v7125_v6 = vld [vmem:[#allocation4 + $0x78] sm:$0xff] }
 0xc39   :  { %v9641_v28 = vpop.eup %9640  ;;  %v6951_v17 = vadd.f32 1e-05, %v6919_v57 }
 0xc3a   :  { %7184 = vst [vmem:[#allocation19 + $0x50] sm:$0xff] %v7152_v14  ;;  %v7089_v15 = vadd.f32 %v12485_v53, %v7050_v62  ;;  %v7012_v37 = vmul.f32 %v9641_v28, %v12383_v54  ;;  %v6873_v25 = vpop.xlane.xlu0 %6872  ;;  %v7126_v28 = vld [vmem:[#allocation4 + $0x80] sm:$0xff] }
 0xc3b   :  { %9646 = vrsqrt.f32 %v6951_v17  ;;  %v6920_v7 = vmul.f32 0.0078125, %v6873_v25 }
 0xc3c   :  { %v7153_v33 = vadd.f32 %v7121_v30, %v7089_v15  ;;  %v7051_v38 = vmul.f32 %v12482_v10, %v7012_v37 }
 0xc3d   :  { %v9643_v13 = vpop.eup %9642  ;;  %v6952_v11 = vadd.f32 1e-05, %v6920_v7 }
 0xc3e   :  { %7185 = vst [vmem:[#allocation19 + $0x58] sm:$0xff] %v7153_v33  ;;  %v7090_v2 = vadd.f32 %v12485_v53, %v7051_v38  ;;  %v7013_v0 = vmul.f32 %v9643_v13, %v12388_v31  ;;  %v6875_v44 = vpop.xlane.xlu1 %6874  ;;  %v7127_v38 = vld [vmem:[#allocation4 + $0x88] sm:$0xff] }
 0xc3f   :  { %9648 = vrsqrt.f32 %v6952_v11  ;;  %v6921_v9 = vmul.f32 0.0078125, %v6875_v44 }
 0xc40   :  { %v7154_v46 = vadd.f32 %v7122_v47, %v7090_v2  ;;  %v7052_v54 = vmul.f32 %v12482_v10, %v7013_v0 }
 0xc41   :  { %v9645_v35 = vpop.eup %9644  ;;  %v6953_v60 = vadd.f32 1e-05, %v6921_v9 }
 0xc42   :  { %7186 = vst [vmem:[#allocation19 + $0x60] sm:$0xff] %v7154_v46  ;;  %v7091_v42 = vadd.f32 %v12485_v53, %v7052_v54  ;;  %v7014_v27 = vmul.f32 %v9645_v35, %v12393_v50  ;;  %v6877_v23 = vpop.xlane.xlu0 %6876  ;;  %v7128_v46 = vld [vmem:[#allocation4 + $0x90] sm:$0xff] }
 0xc43   :  { %9650 = vrsqrt.f32 %v6953_v60  ;;  %v6922_v56 = vmul.f32 0.0078125, %v6877_v23 }
 0xc44   :  { %v7155_v26 = vadd.f32 %v7123_v29, %v7091_v42  ;;  %v7053_v31 = vmul.f32 %v12482_v10, %v7014_v27 }
 0xc45   :  { %v9647_v1 = vpop.eup %9646  ;;  %v6954_v8 = vadd.f32 1e-05, %v6922_v56  ;;  %v7129_v56 = vld [vmem:[#allocation4 + $0x98] sm:$0xff] }
 0xc46   :  { %7187 = vst [vmem:[#allocation19 + $0x68] sm:$0xff] %v7155_v26  ;;  %v7092_v16 = vadd.f32 %v12485_v53, %v7053_v31  ;;  %v7015_v22 = vmul.f32 %v9647_v1, %v12398_v41  ;;  %v6879_v21 = vpop.xlane.xlu1 %6878 }
 0xc47   :  { %9652 = vrsqrt.f32 %v6954_v8  ;;  %v6923_v63 = vmul.f32 0.0078125, %v6879_v21  ;;  %v7130_v21 = vld [vmem:[#allocation4 + $0xa0] sm:$0xff] }
 0xc48   :  { %v7156_v24 = vadd.f32 %v7124_v12, %v7092_v16  ;;  %v7054_v50 = vmul.f32 %v12482_v10, %v7015_v22 }
 0xc49   :  { %v9649_v59 = vpop.eup %9648  ;;  %v6955_v3 = vadd.f32 1e-05, %v6923_v63 }
 0xc4a   :  { %7188 = vst [vmem:[#allocation19 + $0x70] sm:$0xff] %v7156_v24  ;;  %v7093_v20 = vadd.f32 %v12485_v53, %v7054_v50  ;;  %v7016_v19 = vmul.f32 %v9649_v59, %v12403_v18  ;;  %v6881_v40 = vpop.xlane.xlu0 %6880 }
 0xc4b   :  { %9654 = vrsqrt.f32 %v6955_v3  ;;  %v6924_v57 = vmul.f32 0.0078125, %v6881_v40 }
 0xc4c   :  { %v7157_v14 = vadd.f32 %v7125_v6, %v7093_v20  ;;  %v7055_v41 = vmul.f32 %v12482_v10, %v7016_v19  ;;  %v7131_v19 = vld [vmem:[#allocation4 + $0xa8] sm:$0xff] }
 0xc4d   :  { %v9651_v62 = vpop.eup %9650  ;;  %v6956_v30 = vadd.f32 1e-05, %v6924_v57 }
 0xc4e   :  { %7189 = vst [vmem:[#allocation19 + $0x78] sm:$0xff] %v7157_v14  ;;  %v7094_v17 = vadd.f32 %v12485_v53, %v7055_v41  ;;  %v7017_v15 = vmul.f32 %v9651_v62, %v12408_v49  ;;  %v6883_v37 = vpop.xlane.xlu1 %6882 }
 0xc4f   :  { %9656 = vrsqrt.f32 %v6956_v30  ;;  %v6925_v25 = vmul.f32 0.0078125, %v6883_v37 }
 0xc50   :  { %v7158_v7 = vadd.f32 %v7126_v28, %v7094_v17  ;;  %v7056_v18 = vmul.f32 %v12482_v10, %v7017_v15  ;;  %v7132_v17 = vld [vmem:[#allocation4 + $0xb0] sm:$0xff] }
 0xc51   :  { %v9653_v33 = vpop.eup %9652  ;;  %v6957_v13 = vadd.f32 1e-05, %v6925_v25 }
 0xc52   :  { %7190 = vst [vmem:[#allocation19 + $0x80] sm:$0xff] %v7158_v7  ;;  %v7095_v47 = vadd.f32 %v12485_v53, %v7056_v18  ;;  %v7018_v11 = vmul.f32 %v9653_v33, %v12413_v55  ;;  %v6885_v2 = vpop.xlane.xlu0 %6884 }
 0xc53   :  { %9658 = vrsqrt.f32 %v6957_v13  ;;  %v6926_v0 = vmul.f32 0.0078125, %v6885_v2  ;;  %v7133_v13 = vld [vmem:[#allocation4 + $0xb8] sm:$0xff] }
 0xc54   :  { %v7159_v44 = vadd.f32 %v7127_v38, %v7095_v47  ;;  %v7057_v49 = vmul.f32 %v12482_v10, %v7018_v11 }
 0xc55   :  { %v9655_v9 = vpop.eup %9654  ;;  %v6958_v54 = vadd.f32 1e-05, %v6926_v0 }
 0xc56   :  { %7191 = vst [vmem:[#allocation19 + $0x88] sm:$0xff] %v7159_v44  ;;  %v7096_v35 = vadd.f32 %v12485_v53, %v7057_v49  ;;  %v7019_v29 = vmul.f32 %v9655_v9, %v12418_v51  ;;  %v6887_v60 = vpop.xlane.xlu1 %6886 }
 0xc57   :  { %9660 = vrsqrt.f32 %v6958_v54  ;;  %v6927_v42 = vmul.f32 0.0078125, %v6887_v60 }
 0xc58   :  { %v7160_v27 = vadd.f32 %v7128_v46, %v7096_v35  ;;  %v7058_v55 = vmul.f32 %v12482_v10, %v7019_v29  ;;  %v7134_v46 = vld [vmem:[#allocation4 + $0xc0] sm:$0xff] }
 0xc59   :  { %v9657_v23 = vpop.eup %9656  ;;  %v6959_v26 = vadd.f32 1e-05, %v6927_v42 }
 0xc5a   :  { %7192 = vst [vmem:[#allocation19 + $0x90] sm:$0xff] %v7160_v27  ;;  %v7097_v31 = vadd.f32 %v12485_v53, %v7058_v55  ;;  %v7020_v1 = vmul.f32 %v9657_v23, %v12423_v5  ;;  %v6889_v12 = vpop.xlane.xlu0 %6888  ;;  %v7135_v23 = vld [vmem:[#allocation4 + $0xc8] sm:$0xff] }
 0xc5b   :  { %9662 = vrsqrt.f32 %v6959_v26  ;;  %v6928_v8 = vmul.f32 0.0078125, %v6889_v12 }
 0xc5c   :  { %v7161_v16 = vadd.f32 %v7129_v56, %v7097_v31  ;;  %v7059_v51 = vmul.f32 %v12482_v10, %v7020_v1 }
 0xc5d   :  { %v9659_v22 = vpop.eup %9658  ;;  %v6960_v63 = vadd.f32 1e-05, %v6928_v8 }
 0xc5e   :  { %7193 = vst [vmem:[#allocation19 + $0x98] sm:$0xff] %v7161_v16  ;;  %v7098_v24 = vadd.f32 %v12485_v53, %v7059_v51  ;;  %v7021_v50 = vmul.f32 %v9659_v22, %v12428_v39  ;;  %v6891_v59 = vpop.xlane.xlu1 %6890  ;;  %v7136_v51 = vld [vmem:[#allocation4 + $0xd0] sm:$0xff] }
 0xc5f   :  { %9664 = vrsqrt.f32 %v6960_v63  ;;  %v6929_v6 = vmul.f32 0.0078125, %v6891_v59 }
 0xc60   :  { %v7162_v3 = vadd.f32 %v7130_v21, %v7098_v24  ;;  %v7060_v5 = vmul.f32 %v12482_v10, %v7021_v50 }
 0xc61   :  { %v9661_v20 = vpop.eup %9660  ;;  %v6961_v40 = vadd.f32 1e-05, %v6929_v6 }
 0xc62   :  { %7194 = vst [vmem:[#allocation19 + $0xa0] sm:$0xff] %v7162_v3  ;;  %v7099_v57 = vadd.f32 %v12485_v53, %v7060_v5  ;;  %v7022_v14 = vmul.f32 %v9661_v20, %v12433_v48  ;;  %v6893_v41 = vpop.xlane.xlu0 %6892  ;;  %v7137_v3 = vld [vmem:[#allocation4 + $0xd8] sm:$0xff] }
 0xc63   :  { %9666 = vrsqrt.f32 %v6961_v40  ;;  %v6930_v62 = vmul.f32 0.0078125, %v6893_v41 }
 0xc64   :  { %v7163_v28 = vadd.f32 %v7131_v19, %v7099_v57  ;;  %v7061_v39 = vmul.f32 %v12482_v10, %v7022_v14 }
 0xc65   :  { %v9663_v30 = vpop.eup %9662  ;;  %v6962_v15 = vadd.f32 1e-05, %v6930_v62 }
 0xc66   :  { %7195 = vst [vmem:[#allocation19 + $0xa8] sm:$0xff] %v7163_v28  ;;  %v7100_v37 = vadd.f32 %v12485_v53, %v7061_v39  ;;  %v7023_v25 = vmul.f32 %v9663_v30, %v12438_v58  ;;  %v6895_v7 = vpop.xlane.xlu1 %6894 }
 0xc67   :  { %9668 = vrsqrt.f32 %v6962_v15  ;;  %v6931_v18 = vmul.f32 0.0078125, %v6895_v7 }
 0xc68   :  { %v7164_v33 = vadd.f32 %v7132_v17, %v7100_v37  ;;  %v7062_v48 = vmul.f32 %v12482_v10, %v7023_v25  ;;  %v7139_v17 = vld [vmem:[#allocation4 + $0xe8] sm:$0xff] }
 0xc69   :  { %v9665_v38 = vpop.eup %9664  ;;  %v6963_v47 = vadd.f32 1e-05, %v6931_v18  ;;  %v7140_v18 = vld [vmem:[#allocation4 + $0xf0] sm:$0xff] }
 0xc6a   :  { %7196 = vst [vmem:[#allocation19 + $0xb0] sm:$0xff] %v7164_v33  ;;  %v7101_v11 = vadd.f32 %v12485_v53, %v7062_v48  ;;  %v7024_v2 = vmul.f32 %v9665_v38, %v12443_v36  ;;  %v6897_v0 = vpop.xlane.xlu0 %6896 }
 0xc6b   :  { %9670 = vrsqrt.f32 %v6963_v47  ;;  %v6932_v44 = vmul.f32 0.0078125, %v6897_v0 }
 0xc6c   :  { %v7165_v49 = vadd.f32 %v7133_v13, %v7101_v11  ;;  %v7063_v58 = vmul.f32 %v12482_v10, %v7024_v2  ;;  %v7141_v13 = vld [vmem:[#allocation4 + $0xf8] sm:$0xff] }
 0xc6d   :  { %v9667_v9 = vpop.eup %9666  ;;  %v6964_v54 = vadd.f32 1e-05, %v6932_v44 }
 0xc6e   :  { %7197 = vst [vmem:[#allocation19 + $0xb8] sm:$0xff] %v7165_v49  ;;  %v7102_v35 = vadd.f32 %v12485_v53, %v7063_v58  ;;  %v7025_v29 = vmul.f32 %v9667_v9, %v12448_v52  ;;  %v6899_v60 = vpop.xlane.xlu1 %6898 }
 0xc6f   :  { %9672 = vrsqrt.f32 %v6964_v54  ;;  %v6933_v42 = vmul.f32 0.0078125, %v6899_v60 }
 0xc70   :  { %v7166_v27 = vadd.f32 %v7134_v46, %v7102_v35  ;;  %v7064_v36 = vmul.f32 %v12482_v10, %v7025_v29 }
 0xc71   :  { %v9669_v55 = vpop.eup %9668  ;;  %v6965_v56 = vadd.f32 1e-05, %v6933_v42 }
 0xc72   :  { %7198 = vst [vmem:[#allocation19 + $0xc0] sm:$0xff] %v7166_v27  ;;  %v7103_v26 = vadd.f32 %v12485_v53, %v7064_v36  ;;  %v7026_v31 = vmul.f32 %v9669_v55, %v12453_v61  ;;  %v6901_v1 = vpop.xlane.xlu0 %6900 }
 0xc73   :  { %9674 = vrsqrt.f32 %v6965_v56  ;;  %v6934_v12 = vmul.f32 0.0078125, %v6901_v1 }
 0xc74   :  { %v7167_v8 = vadd.f32 %v7135_v23, %v7103_v26  ;;  %v7065_v52 = vmul.f32 %v12482_v10, %v7026_v31 }
 0xc75   :  { %v9671_v16 = vpop.eup %9670  ;;  %v6966_v22 = vadd.f32 1e-05, %v6934_v12 }
 0xc76   :  { %7199 = vst [vmem:[#allocation19 + $0xc8] sm:$0xff] %v7167_v8  ;;  %v7104_v21 = vadd.f32 %v12485_v53, %v7065_v52  ;;  %v7027_v63 = vmul.f32 %v9671_v16, %v12458_v43  ;;  %v6903_v24 = vpop.xlane.xlu1 %6902  ;;  %v7138_v43 = vld [vmem:[#allocation4 + $0xe0] sm:$0xff] }
 0xc77   :  { %9676 = vrsqrt.f32 %v6966_v22  ;;  %v6935_v50 = vmul.f32 0.0078125, %v6903_v24 }
 0xc78   :  { %v7168_v59 = vadd.f32 %v7136_v51, %v7104_v21  ;;  %v7066_v61 = vmul.f32 %v12482_v10, %v7027_v63 }
 0xc79   :  { %v9673_v6 = vpop.eup %9672  ;;  %v6967_v5 = vadd.f32 1e-05, %v6935_v50 }
 0xc7a   :  { %7200 = vst [vmem:[#allocation19 + $0xd0] sm:$0xff] %v7168_v59  ;;  %v7105_v20 = vadd.f32 %v12485_v53, %v7066_v61  ;;  %v7028_v19 = vmul.f32 %v9673_v6, %v12463_v32 }
 0xc7b   :  { %9678 = vrsqrt.f32 %v6967_v5 }
 0xc7c   :  { %v7169_v40 = vadd.f32 %v7137_v3, %v7105_v20  ;;  %v7067_v57 = vmul.f32 %v12482_v10, %v7028_v19 }
 0xc7d   :  { %v9675_v14 = vpop.eup %9674 }
 0xc7e   :  { %7201 = vst [vmem:[#allocation19 + $0xd8] sm:$0xff] %v7169_v40  ;;  %v7106_v41 = vadd.f32 %v12485_v53, %v7067_v57  ;;  %v7029_v62 = vmul.f32 %v9675_v14, %v12468_v34 }
 0xc80   :  { %v7170_v28 = vadd.f32 %v7138_v43, %v7106_v41  ;;  %v7068_v39 = vmul.f32 %v12482_v10, %v7029_v62 }
 0xc81   :  { %v9677_v30 = vpop.eup %9676 }
 0xc82   :  { %7202 = vst [vmem:[#allocation19 + $0xe0] sm:$0xff] %v7170_v28  ;;  %v7107_v15 = vadd.f32 %v12485_v53, %v7068_v39  ;;  %v7030_v32 = vmul.f32 %v9677_v30, %v12473_v4 }
 0xc84   :  { %v7171_v37 = vadd.f32 %v7139_v17, %v7107_v15  ;;  %v7069_v25 = vmul.f32 %v12482_v10, %v7030_v32 }
 0xc85   :  { %v9679_v7 = vpop.eup %9678 }
 0xc86   :  { %7203 = vst [vmem:[#allocation19 + $0xe8] sm:$0xff] %v7171_v37  ;;  %v7108_v33 = vadd.f32 %v12485_v53, %v7069_v25  ;;  %v7031_v34 = vmul.f32 %v9679_v7, %v12478_v45 }
 0xc88   :  { %v7172_v48 = vadd.f32 %v7140_v18, %v7108_v33  ;;  %v7070_v38 = vmul.f32 %v12482_v10, %v7031_v34 }
 0xc8a   :  { %7204 = vst [vmem:[#allocation19 + $0xf0] sm:$0xff] %v7172_v48  ;;  %v7109_v47 = vadd.f32 %v12485_v53, %v7070_v38 }
 0xc8c   :  { %v7173_v4 = vadd.f32 %v7141_v13, %v7109_v47 }
 0xc8e   :  { %7205 = vst [vmem:[#allocation19 + $0xf8] sm:$0xff] %v7173_v4 }
 0xc8f   :  { %9908 = shalt.err (!%p9905_p6)
}
 0xc90   :  { %s9909_s17 = scalar_lea.hbm %s12606_s9, 4096 }
 0xc91   :  { %p9910_p7 = scmp.ne.s32.totalorder %s12606_s9, %s9909_s17  ;;  %p9913_p8 = scmp.lt.u32.totalorder %s9909_s17, %s12606_s9 }
 0xc93   :  { %p9915_p9 = pnand %p9913_p8, %p9910_p7 }
 0xc95   :  { %9918 = shalt.err (!%p9915_p9)
}
 0xc96   :  { %7217 = dma.vmem_to_hbm [thread:$0]  %s7212_s2, 4096, %s12606_s9, [#allocation6], %s9939_s24, %s9939_s24, %s9940_s27  }
 0xc97   :  { %9929 = dma.done.wait [#allocation6], 4096  }
 0xc98   :  { %9930 = vsyncadd [#allocation6], 4294963200 }
 0xc99   :  { %7221 = vsyncpa [#allocation5], 1 }
 0xc9a   :  { %7222 = vsyncpa [#allocation8], 1 }
 0xc9b   :  { %7223 = vsyncpa [#allocation11], 1 }
 0xc9c   :  { %7224 = vsyncpa [#allocation14], 1 }
 0xc9d   :  { %7225 = vsyncpa [#allocation17], 1 }
 0xc9e   :  { %7226 = vsyncpa [#allocation6], 1 }

</bundles_post_ra>
